<compile_context>
chip_gen: v5e
topology: v5e:2x2
jax: 0.10.0
libtpu: 0.0.40
codegen_flags: <defaults>
</compile_context>

<pallas_src>
import jax
import jax.numpy as jnp
from jax.experimental import pallas as pl
from jax.experimental.pallas import tpu as pltpu


def _l1_label_diff_kernel(a_ref, bt_ref, o_ref):
    # a_ref : (TI, D)  rows i of labels
    # bt_ref: (D, TJ)  columns j of labels.T
    # o_ref : (TI, TJ) output tile (lane-dense, TJ % 128 == 0)
    ti, d = a_ref.shape
    tj = bt_ref.shape[1]

    a = a_ref[...]    # (TI, D)  -- tiny block, load once
    bt = bt_ref[...]  # (D, TJ)

    acc = jnp.zeros((ti, tj), jnp.float32)
    # D is small (label dim); static Python loop -> fully unrolled VPU adds.
    for dd in range(d):
        col = a[:, dd:dd + 1].astype(jnp.float32)   # (TI, 1) -> lane broadcast
        row = bt[dd:dd + 1, :].astype(jnp.float32)  # (1, TJ) -> sublane broadcast
        acc = acc + jnp.abs(col - row)

    o_ref[...] = acc.astype(o_ref.dtype)


def label_difference_l1(labels, *, ti=256, tj=512):
    """Pairwise L1 label distance matrix via a tiled, lane-dense Pallas kernel.

    labels: (N, D) array.  Returns (N, N) with out[i, j] = sum_d |l[i,d]-l[j,d]|.
    Tile defaults (ti=256, tj=512) keep double-buffered output tiles at
    ~1 MiB, safe on v5e/v6e/v7x; raise them on v6e for more HBM-roofline
    utilization if desired.
    """
    N, D = labels.shape
    ni = -(-N // ti)          # cdiv
    nj = -(-N // tj)
    Ni, Nj = ni * ti, nj * tj

    # Pad to tile multiples; padded rows/cols only affect output entries that
    # are sliced away below, so zero padding is safe.
    a = labels
    if Ni != N:
        a = jnp.pad(a, ((0, Ni - N), (0, 0)))
    bt = labels.T             # (D, N) -- keeps TJ on the lane axis in-kernel
    if Nj != N:
        bt = jnp.pad(bt, ((0, 0), (0, Nj - N)))

    out = pl.pallas_call(
        _l1_label_diff_kernel,
        out_shape=jax.ShapeDtypeStruct((Ni, Nj), labels.dtype),
        grid_spec=pltpu.PrefetchScalarGridSpec(
            num_scalar_prefetch=0,
            grid=(ni, nj),
            in_specs=[
                # i-block of rows; re-DMA'd only when i changes.
                pl.BlockSpec((ti, D), lambda i, j: (i, 0)),
                # j-block of transposed labels; tiny (D, tj) DMA per step.
                pl.BlockSpec((D, tj), lambda i, j: (0, j)),
            ],
            out_specs=pl.BlockSpec((ti, tj), lambda i, j: (i, j)),
        ),
        compiler_params=pltpu.CompilerParams(
            dimension_semantics=("parallel", "parallel"),
        ),
    )(a, bt)

    if Ni != N or Nj != N:
        out = out[:N, :N]
    return out


def label_difference_l1_ref(labels):
    # pure-JAX reference (mirrors the PyTorch forward exactly)
    return jnp.abs(labels[:, None, :] - labels[None, :, :]).sum(axis=-1)


if __name__ == "__main__":
    key = jax.random.PRNGKey(0)
    # Small example: 384 samples (exercises the padding path: 384 is not a
    # multiple of tj=512), 8-dim labels.
    N, D = 384, 8
    labels = jax.random.normal(key, (N, D), dtype=jnp.float32)

    out = label_difference_l1(labels)
    out = jax.block_until_ready(out)

    ref = label_difference_l1_ref(labels)
    assert out.shape == (N, N)
    assert jnp.allclose(out, ref, atol=1e-4, rtol=1e-4), "mismatch vs reference"

    print("KERNEL_OK")
</pallas_src>

<mosaic_0001>
module attributes {stable_mosaic.version = 11 : i64} {
  func.func @_l1_label_diff_kernel(%arg0: i32, %arg1: i32, %arg2: memref<256x8xf32, #tpu.memory_space<vmem>>, %arg3: memref<8x512xf32, #tpu.memory_space<vmem>>, %arg4: memref<256x512xf32, #tpu.memory_space<vmem>>) attributes {dimension_semantics = [#tpu.dimension_semantics<parallel>, #tpu.dimension_semantics<parallel>], iteration_bounds = array<i64: 2, 1>, scalar_prefetch = 0 : i64, scratch_operands = 0 : i64, tpu.core_type = #tpu.core_type<tc>, window_params = [{transform_indices = @transform_0, window_bounds = array<i64: 256, 8>}, {transform_indices = @transform_1, window_bounds = array<i64: 8, 512>}, {transform_indices = @transform_2, window_bounds = array<i64: 256, 512>}]} {
    %c0 = arith.constant 0 : index
    %c0_0 = arith.constant 0 : index
    %0 = vector.load %arg2[%c0, %c0_0] : memref<256x8xf32, #tpu.memory_space<vmem>>, vector<256x8xf32>
    %c0_1 = arith.constant 0 : index
    %c0_2 = arith.constant 0 : index
    %1 = vector.load %arg3[%c0_1, %c0_2] : memref<8x512xf32, #tpu.memory_space<vmem>>, vector<8x512xf32>
    %cst = arith.constant 0.000000e+00 : f32
    %2 = vector.broadcast %cst : f32 to vector<256x512xf32>
    %3 = vector.extract_strided_slice %0 {offsets = [0, 0], sizes = [256, 1], strides = [1, 1]} : vector<256x8xf32> to vector<256x1xf32>
    %4 = vector.extract_strided_slice %1 {offsets = [0, 0], sizes = [1, 512], strides = [1, 1]} : vector<8x512xf32> to vector<1x512xf32>
    %5 = vector.broadcast %3 : vector<256x1xf32> to vector<256x512xf32>
    %6 = vector.broadcast %4 : vector<1x512xf32> to vector<256x512xf32>
    %7 = arith.subf %5, %6 : vector<256x512xf32>
    %8 = math.absf %7 : vector<256x512xf32>
    %9 = arith.addf %2, %8 : vector<256x512xf32>
    %10 = vector.extract_strided_slice %0 {offsets = [0, 1], sizes = [256, 1], strides = [1, 1]} : vector<256x8xf32> to vector<256x1xf32>
    %11 = vector.extract_strided_slice %1 {offsets = [1, 0], sizes = [1, 512], strides = [1, 1]} : vector<8x512xf32> to vector<1x512xf32>
    %12 = vector.broadcast %10 : vector<256x1xf32> to vector<256x512xf32>
    %13 = vector.broadcast %11 : vector<1x512xf32> to vector<256x512xf32>
    %14 = arith.subf %12, %13 : vector<256x512xf32>
    %15 = math.absf %14 : vector<256x512xf32>
    %16 = arith.addf %9, %15 : vector<256x512xf32>
    %17 = vector.extract_strided_slice %0 {offsets = [0, 2], sizes = [256, 1], strides = [1, 1]} : vector<256x8xf32> to vector<256x1xf32>
    %18 = vector.extract_strided_slice %1 {offsets = [2, 0], sizes = [1, 512], strides = [1, 1]} : vector<8x512xf32> to vector<1x512xf32>
    %19 = vector.broadcast %17 : vector<256x1xf32> to vector<256x512xf32>
    %20 = vector.broadcast %18 : vector<1x512xf32> to vector<256x512xf32>
    %21 = arith.subf %19, %20 : vector<256x512xf32>
    %22 = math.absf %21 : vector<256x512xf32>
    %23 = arith.addf %16, %22 : vector<256x512xf32>
    %24 = vector.extract_strided_slice %0 {offsets = [0, 3], sizes = [256, 1], strides = [1, 1]} : vector<256x8xf32> to vector<256x1xf32>
    %25 = vector.extract_strided_slice %1 {offsets = [3, 0], sizes = [1, 512], strides = [1, 1]} : vector<8x512xf32> to vector<1x512xf32>
    %26 = vector.broadcast %24 : vector<256x1xf32> to vector<256x512xf32>
    %27 = vector.broadcast %25 : vector<1x512xf32> to vector<256x512xf32>
    %28 = arith.subf %26, %27 : vector<256x512xf32>
    %29 = math.absf %28 : vector<256x512xf32>
    %30 = arith.addf %23, %29 : vector<256x512xf32>
    %31 = vector.extract_strided_slice %0 {offsets = [0, 4], sizes = [256, 1], strides = [1, 1]} : vector<256x8xf32> to vector<256x1xf32>
    %32 = vector.extract_strided_slice %1 {offsets = [4, 0], sizes = [1, 512], strides = [1, 1]} : vector<8x512xf32> to vector<1x512xf32>
    %33 = vector.broadcast %31 : vector<256x1xf32> to vector<256x512xf32>
    %34 = vector.broadcast %32 : vector<1x512xf32> to vector<256x512xf32>
    %35 = arith.subf %33, %34 : vector<256x512xf32>
    %36 = math.absf %35 : vector<256x512xf32>
    %37 = arith.addf %30, %36 : vector<256x512xf32>
    %38 = vector.extract_strided_slice %0 {offsets = [0, 5], sizes = [256, 1], strides = [1, 1]} : vector<256x8xf32> to vector<256x1xf32>
    %39 = vector.extract_strided_slice %1 {offsets = [5, 0], sizes = [1, 512], strides = [1, 1]} : vector<8x512xf32> to vector<1x512xf32>
    %40 = vector.broadcast %38 : vector<256x1xf32> to vector<256x512xf32>
    %41 = vector.broadcast %39 : vector<1x512xf32> to vector<256x512xf32>
    %42 = arith.subf %40, %41 : vector<256x512xf32>
    %43 = math.absf %42 : vector<256x512xf32>
    %44 = arith.addf %37, %43 : vector<256x512xf32>
    %45 = vector.extract_strided_slice %0 {offsets = [0, 6], sizes = [256, 1], strides = [1, 1]} : vector<256x8xf32> to vector<256x1xf32>
    %46 = vector.extract_strided_slice %1 {offsets = [6, 0], sizes = [1, 512], strides = [1, 1]} : vector<8x512xf32> to vector<1x512xf32>
    %47 = vector.broadcast %45 : vector<256x1xf32> to vector<256x512xf32>
    %48 = vector.broadcast %46 : vector<1x512xf32> to vector<256x512xf32>
    %49 = arith.subf %47, %48 : vector<256x512xf32>
    %50 = math.absf %49 : vector<256x512xf32>
    %51 = arith.addf %44, %50 : vector<256x512xf32>
    %52 = vector.extract_strided_slice %0 {offsets = [0, 7], sizes = [256, 1], strides = [1, 1]} : vector<256x8xf32> to vector<256x1xf32>
    %53 = vector.extract_strided_slice %1 {offsets = [7, 0], sizes = [1, 512], strides = [1, 1]} : vector<8x512xf32> to vector<1x512xf32>
    %54 = vector.broadcast %52 : vector<256x1xf32> to vector<256x512xf32>
    %55 = vector.broadcast %53 : vector<1x512xf32> to vector<256x512xf32>
    %56 = arith.subf %54, %55 : vector<256x512xf32>
    %57 = math.absf %56 : vector<256x512xf32>
    %58 = arith.addf %51, %57 : vector<256x512xf32>
    %c0_3 = arith.constant 0 : index
    %c0_4 = arith.constant 0 : index
    %59 = vector.load %arg4[%c0_3, %c0_4] : memref<256x512xf32, #tpu.memory_space<vmem>>, vector<256x512xf32>
    tpu.vector_store %arg4[%c0_3, %c0_4], %58 {strides = array<i32>} : memref<256x512xf32, #tpu.memory_space<vmem>>, vector<256x512xf32>,
    return
  }
  func.func @transform_0(%arg0: i32, %arg1: i32) -> (i32, i32) {
    %c0_i32 = arith.constant 0 : i32
    %c0_i32_0 = arith.constant 0 : i32
    return %arg0, %c0_i32 : i32, i32
  }
  func.func @transform_1(%arg0: i32, %arg1: i32) -> (i32, i32) {
    %c0_i32 = arith.constant 0 : i32
    %c0_i32_0 = arith.constant 0 : i32
    return %c0_i32, %arg1 : i32, i32
  }
  func.func @transform_2(%arg0: i32, %arg1: i32) -> (i32, i32) {
    %c0_i32 = arith.constant 0 : i32
    return %arg0, %arg1 : i32, i32
  }
}

</mosaic_0001>

<bundles_post_ra>
// kernel: tpu_custom_call.1
= control target key start
LH: loop header
LB: loop body
LE: loop exit
PB: predicated region body
PF: predicated region fallthrough
CT: control target
= control target key end

     0   :  { %7 = vsyncpa [#allocation3], 0  ;;  %s10671_s0 = inlined_call_operand.vmem [shape: f32[512,8], index: 0, kind: input, shape index: {}]   ;;  %s10672_s1 = inlined_call_operand.vmem [shape: f32[8,512], index: 1, kind: input, shape index: {}]   ;;  %s10673_s2 = inlined_call_operand.hbm [shape: f32[512,512], index: 2, kind: output, shape index: {}]  }
   0x1   :  { %9 = vsyncpa [#allocation3 + $0x1], 0  ;;  %s4936_s9 = smov 0   ;;  %s4938_s10 = smov 0  }
   0x2   :  { %s4940_s11 = smov 0   ;;  %s4942_s12 = smov 0  }
   0x3   :  { %s4944_s13 = smov 0   ;;  %s4946_s14 = smov 0  }
   0x4 LB: > { %s4613_s15 = sadd.s32 4294967295, %s4909_s14   ;;  %s4614_s16 = sadd.s32 4294967294, %s4909_s14   ;;  %s4909_s14 = sphi %s4946_s14, %s15_s14   ;;  %s4905_s13 = sphi %s4944_s13, %s12225_s13   ;;  %s4901_s12 = sphi %s4942_s12, %s12224_s12   ;;  %s4897_s11 = sphi %s4940_s11, %s12223_s11   ;;  %s4893_s10 = sphi %s4938_s10, %s12222_s10   ;;  %s4889_s9 = sphi %s4936_s9, %s12221_s9  }
   0x5   : > { %s27_s17 = sadd.s32 1, %s4905_s13  ;;  %s88_s18 = sadd.s32 1, %s4897_s11 }
   0x6   : > { %p29_p0 = scmp.ge.s32.totalorder %s27_s17, 2  ;;  %p98_p1 = scmp.ne.s32.totalorder %s4897_s11, %s4893_s10 }
   0x7   : > { %p99_p2 = scmp.eq.s32.totalorder %s4613_s15, 1  ;;  %p104_p3 = scmp.ne.s32.totalorder %s4893_s10, %s4889_s9 }
   0x8   : > { %s12227_s17 = smov (%p29_p0, %s27_s17), 0  ;;  %p105_p5 = scmp.eq.s32.totalorder %s4614_s16, 1 }
   0x9   : > { %p4976_p4 = por %p99_p2, %p98_p1  ;;  %s83_s20 = ssub.s32 %s4905_s13, %s12227_s17 }
   0xa   : > { %p4618_p6 = scmp.ge.s32.totalorder %s4909_s14, 1  ;;  %p86_p7 = scmp.eq.s32.totalorder %s83_s20, 0 }
   0xb   : > { %p4983_p8 = por %p105_p5, %p104_p3  ;;  %p141_p9 = scmp.lt.s32.totalorder %s4909_s14, 3 }
   0xc   : > { %s4989_s22 = scalar_select %p86_p7, %s4897_s11, %s88_s18  }
   0xd   : > { %p142_p10 = pnand %p4618_p6, %p141_p9 }
   0xf   : > { %145 = sbr.rel (%p142_p10) target bundleno = 1059 (0x423), region = 28 }
  0x14   : > { %s4620_s23 = sshll.u32 %s4901_s12, 5  ;;  %v4911_v0 = vmov 0   ;;  %v4912_v33 = vmov 1   ;;  %v5145_v40 = vld [vmem:[%s10672_s1] sm:$0xff]  ;;  %v5150_v41 = vld [vmem:[%s10672_s1 + $0x8] sm:$0xff]  ;;  %v5155_v42 = vld [vmem:[%s10672_s1 + $0x10] sm:$0xff] }
  0x15   : > { %4697 = vset.pattern.permute.xlu2 %v4911_v0  ;;  %4696 = vset.pattern.permute.xlu1 %v4911_v0  ;;  %p169_p11 = scmp.lt.s32.totalorder %s4620_s23, 63  ;;  %v5160_v43 = vld [vmem:[%s10672_s1 + $0x18] sm:$0xff]  ;;  %v5170_v46 = vperm.slane %v5145_v40, 0  ;;  %v5173_v47 = vperm.slane %v5150_v41, 0  ;;  %v5178_v49 = vperm.slane %v5155_v42, 0  ;;  %s4629_s8 = sshll.u32 %s4901_s12, 10 }
  0x16   : > { %4695 = vset.pattern.permute.xlu0 %v4911_v0  ;;  %v5181_v50 = vperm.slane %v5160_v43, 0  ;;  %s4521_s12 = scalar_lea.hbm %s10673_s2, %s4629_s8  ;;  %s4851_s29 = scalar_lea.hbm %s10673_s2, 2048 }
  0x17   : > { %s12229_s23 = smov (!%p169_p11, %s4620_s23), 63  ;;  %s4524_s20 = sshll.u32 %s4521_s12, 4  ;;  %s4525_s20 = int_to_ptr.hbm [resolvable:$true] %s4524_s20 }
  0x18   : > { %s4621_s24 = sshll.u32 %s12229_s23, 3 }
  0x19   : > { %s4995_s27 = scalar_lea.vmem %s10671_s0, %s4621_s24  ;;  %s4845_s24 = sshra.s32 %s4525_s20, 4  ;;  %s4846_s24 = int_to_ptr.hbm [resolvable:$true] %s4845_s24 }
  0x1a   : > { %v4998_v1 = vld [vmem:[%s4995_s27 + $0x20] sm:$0xff]  ;;  %v5001_v2 = vld [vmem:[%s4995_s27 + $0x10] sm:$0xff]  ;;  %v5010_v4 = vld [vmem:[%s4995_s27 + $0x28] sm:$0xff]  ;;  %s4847_s25 = scalar_lea.hbm %s4846_s24, 1024  ;;  %p4852_p1 = scmp.lt.s32.totalorder %s4846_s24, %s10673_s2 }
  0x1b   : > { %v5004_v3 = vld [vmem:[%s4995_s27] sm:$0xff]  ;;  %240 = vperm.xlu2 %4697, %v4998_v1   ;;  %230 = vperm.xlu1 %4696, %v5001_v2   ;;  %v5013_v5 = vld [vmem:[%s4995_s27 + $0x18] sm:$0xff]  ;;  %v5016_v6 = vld [vmem:[%s4995_s27 + $0x8] sm:$0xff]  ;;  %p4848_p12 = scmp.ne.s32.totalorder %s4846_s24, %s4847_s25  ;;  %p4853_p2 = scmp.lt.s32.totalorder %s4851_s29, %s4847_s25 }
  0x1c   : > { %220 = vperm.xlu0 %4695, %v5004_v3   ;;  %v5022_v7 = vld [vmem:[%s4995_s27 + $0x40] sm:$0xff]  ;;  %v5025_v8 = vld [vmem:[%s4995_s27 + $0x38] sm:$0xff]  ;;  %v5028_v9 = vld [vmem:[%s4995_s27 + $0x30] sm:$0xff] }
  0x1d   : > { %v5034_v10 = vld [vmem:[%s4995_s27 + $0x58] sm:$0xff]  ;;  %v5037_v11 = vld [vmem:[%s4995_s27 + $0x50] sm:$0xff]  ;;  %v5040_v12 = vld [vmem:[%s4995_s27 + $0x48] sm:$0xff]  ;;  %p4849_p13 = pnand %p4848_p12, %p4976_p4  ;;  %p4854_p3 = por %p4853_p2, %p4852_p1 }
  0x1e   : > { %10729 = vst [vmem:[#allocation5_spill] sm:$0xff] %v5034_v10  ;;  %v5046_v13 = vld [vmem:[%s4995_s27 + $0x70] sm:$0xff]  ;;  %v5049_v14 = vld [vmem:[%s4995_s27 + $0x68] sm:$0xff]  ;;  %v5052_v15 = vld [vmem:[%s4995_s27 + $0x60] sm:$0xff] }
  0x1f   : > { %10730 = vst [vmem:[#allocation6_spill] sm:$0xff] %v5046_v13  ;;  %v5058_v16 = vld [vmem:[%s4995_s27 + $0x88] sm:$0xff]  ;;  %v5061_v17 = vld [vmem:[%s4995_s27 + $0x80] sm:$0xff]  ;;  %v5064_v18 = vld [vmem:[%s4995_s27 + $0x78] sm:$0xff]  ;;  %p4850_p0 = pneg %p4849_p13 }
  0x20   : > { %10731 = vst [vmem:[#allocation7_spill] sm:$0xff] %v5049_v14  ;;  %v5070_v19 = vld [vmem:[%s4995_s27 + $0xa0] sm:$0xff]  ;;  %v5073_v20 = vld [vmem:[%s4995_s27 + $0x98] sm:$0xff]  ;;  %v5076_v21 = vld [vmem:[%s4995_s27 + $0x90] sm:$0xff] }
  0x21   : > { %10732 = vst [vmem:[#allocation8_spill] sm:$0xff] %v5058_v16  ;;  %v5082_v22 = vld [vmem:[%s4995_s27 + $0xb8] sm:$0xff]  ;;  %v5085_v23 = vld [vmem:[%s4995_s27 + $0xb0] sm:$0xff]  ;;  %v5088_v24 = vld [vmem:[%s4995_s27 + $0xa8] sm:$0xff]  ;;  %p4855_p5 = pnand %p4854_p3, %p4850_p0 }
  0x22   : > { %10733 = vst [vmem:[#allocation9_spill] sm:$0xff] %v5061_v17  ;;  %v5094_v25 = vld [vmem:[%s4995_s27 + $0xd0] sm:$0xff]  ;;  %v5097_v26 = vld [vmem:[%s4995_s27 + $0xc8] sm:$0xff]  ;;  %v5100_v27 = vld [vmem:[%s4995_s27 + $0xc0] sm:$0xff] }
  0x23   : > { %245 = vperm.xlu2 %4697, %v5010_v4   ;;  %235 = vperm.xlu1 %4696, %v5013_v5   ;;  %10734 = vst [vmem:[#allocation10_spill] sm:$0xff] %v5064_v18  ;;  %v5106_v28 = vld [vmem:[%s4995_s27 + $0xe8] sm:$0xff]  ;;  %v5109_v29 = vld [vmem:[%s4995_s27 + $0xe0] sm:$0xff]  ;;  %v5112_v30 = vld [vmem:[%s4995_s27 + $0xd8] sm:$0xff] }
  0x24   : > { %225 = vperm.xlu0 %4695, %v5016_v6   ;;  %10735 = vst [vmem:[#allocation11_spill] sm:$0xff] %v5076_v21  ;;  %v5118_v31 = vld [vmem:[%s4995_s27 + $0xf8] sm:$0xff]  ;;  %v5121_v32 = vld [vmem:[%s4995_s27 + $0xf0] sm:$0xff] }
  0x25   : > { %10736 = vst [vmem:[#allocation12_spill] sm:$0xff] %v5088_v24 }
  0x2b   : > { %260 = vperm.xlu2 %4697, %v5022_v7   ;;  %255 = vperm.xlu1 %4696, %v5025_v8  }
  0x2c   : > { %250 = vperm.xlu0 %4695, %v5028_v9  }
  0x33   : > { %275 = vperm.xlu2 %4697, %v5034_v10   ;;  %270 = vperm.xlu1 %4696, %v5037_v11  }
  0x34   : > { %265 = vperm.xlu0 %4695, %v5040_v12  }
  0x3b   : > { %290 = vperm.xlu2 %4697, %v5046_v13   ;;  %285 = vperm.xlu1 %4696, %v5049_v14  }
  0x3c   : > { %280 = vperm.xlu0 %4695, %v5052_v15  }
  0x43   : > { %305 = vperm.xlu2 %4697, %v5058_v16   ;;  %300 = vperm.xlu1 %4696, %v5061_v17  }
  0x44   : > { %295 = vperm.xlu0 %4695, %v5064_v18  }
  0x4b   : > { %320 = vperm.xlu2 %4697, %v5070_v19   ;;  %315 = vperm.xlu1 %4696, %v5073_v20  }
  0x4c   : > { %310 = vperm.xlu0 %4695, %v5076_v21  }
  0x53   : > { %335 = vperm.xlu2 %4697, %v5082_v22   ;;  %330 = vperm.xlu1 %4696, %v5085_v23  }
  0x54   : > { %325 = vperm.xlu0 %4695, %v5088_v24  }
  0x5b   : > { %350 = vperm.xlu2 %4697, %v5094_v25   ;;  %345 = vperm.xlu1 %4696, %v5097_v26  }
  0x5c   : > { %340 = vperm.xlu0 %4695, %v5100_v27  }
  0x63   : > { %365 = vperm.xlu2 %4697, %v5106_v28   ;;  %360 = vperm.xlu1 %4696, %v5109_v29  }
  0x64   : > { %355 = vperm.xlu0 %4695, %v5112_v30  }
  0x6b   : > { %4698 = vset.pattern.permute.xlu2 %v4912_v33  ;;  %375 = vperm.xlu1 %4696, %v5118_v31  }
  0x6c   : > { %370 = vperm.xlu0 %4695, %v5121_v32   ;;  %767 = vperm.xlu2 %4698, %v5004_v3  }
  0x73   : > { %4700 = vset.pattern.permute.xlu1 %v4912_v33 }
  0x74   : > { %4699 = vset.pattern.permute.xlu0 %v4912_v33  ;;  %775 = vperm.xlu1 %4700, %v5001_v2  }
  0x75   : > { %779 = vperm.xlu2 %4698, %v5013_v5   ;;  %771 = vperm.xlu0 %4699, %v5016_v6   ;;  %v241_v34 = vpop.permute.xlu2 %240 }
  0x76   : > { %v398_v51 = vsub.f32 %v241_v34, %v5170_v46  ;;  %v399_v52 = vsub.f32 %v241_v34, %v5173_v47  ;;  %v400_v53 = vsub.f32 %v241_v34, %v5178_v49  ;;  %v401_v54 = vsub.f32 %v241_v34, %v5181_v50 }
  0x78   : > { %v5193_v61 = vand.u32 2147483647, %v398_v51  ;;  %v5195_v62 = vand.u32 2147483647, %v399_v52  ;;  %v5200_v33 = vand.u32 2147483647, %v400_v53 }
  0x79   : > { %v5202_v34 = vand.u32 2147483647, %v401_v54 }
  0x7a   : > { %10737 = vst [vmem:[#allocation13_spill] sm:$0xff] %v5193_v61 }
  0x7b   : > { %10738 = vst [vmem:[#allocation14_spill] sm:$0xff] %v5195_v62 }
  0x7c   : > { %783 = vperm.xlu1 %4700, %v4998_v1   ;;  %10739 = vst [vmem:[#allocation15_spill] sm:$0xff] %v5200_v33 }
  0x7d   : > { %787 = vperm.xlu2 %4698, %v5010_v4   ;;  %791 = vperm.xlu0 %4699, %v5028_v9   ;;  %v246_v35 = vpop.permute.xlu2 %245  ;;  %10740 = vst [vmem:[#allocation16_spill] sm:$0xff] %v5202_v34 }
  0x7e   : > { %v402_v55 = vsub.f32 %v246_v35, %v5170_v46  ;;  %v403_v56 = vsub.f32 %v246_v35, %v5173_v47  ;;  %v404_v57 = vsub.f32 %v246_v35, %v5178_v49  ;;  %v405_v58 = vsub.f32 %v246_v35, %v5181_v50 }
  0x80   : > { %v5212_v62 = vand.u32 2147483647, %v402_v55  ;;  %v5216_v53 = vand.u32 2147483647, %v404_v57  ;;  %v5221_v34 = vand.u32 2147483647, %v405_v58 }
  0x84   : > { %795 = vperm.xlu1 %4700, %v5025_v8  }
  0x85   : > { %799 = vperm.xlu2 %4698, %v5022_v7   ;;  %803 = vperm.xlu0 %4699, %v5040_v12   ;;  %v261_v36 = vpop.permute.xlu2 %260 }
  0x86   : > { %v414_v59 = vsub.f32 %v261_v36, %v5170_v46  ;;  %v415_v60 = vsub.f32 %v261_v36, %v5173_v47  ;;  %v416_v63 = vsub.f32 %v261_v36, %v5178_v49  ;;  %v417_v0 = vsub.f32 %v261_v36, %v5181_v50 }
  0x87   : > { %v5214_v36 = vand.u32 2147483647, %v403_v56 }
  0x88   : > { %v5223_v33 = vand.u32 2147483647, %v414_v59  ;;  %v5230_v55 = vand.u32 2147483647, %v417_v0 }
  0x8a   : > { %10741 = vst [vmem:[#allocation17_spill] sm:$0xff] %v5223_v33 }
  0x8b   : > { %10744 = vst [vmem:[#allocation20_spill] sm:$0xff] %v5230_v55 }
  0x8c   : > { %807 = vperm.xlu1 %4700, %v5037_v11  }
  0x8d   : > { %811 = vperm.xlu2 %4698, %v5034_v10   ;;  %815 = vperm.xlu0 %4699, %v5052_v15   ;;  %v276_v37 = vpop.permute.xlu2 %275  ;;  %v5138_v38 = vpop.permute.xlu1 %230 }
  0x8e   : > { %v5140_v39 = vpop.permute.xlu0 %220  ;;  %v426_v35 = vsub.f32 %v276_v37, %v5170_v46  ;;  %v428_v54 = vsub.f32 %v276_v37, %v5178_v49  ;;  %v429_v61 = vsub.f32 %v276_v37, %v5181_v50  ;;  %v390_v56 = vsub.f32 %v5138_v38, %v5170_v46 }
  0x8f   : > { %v391_v57 = vsub.f32 %v5138_v38, %v5173_v47  ;;  %v392_v59 = vsub.f32 %v5138_v38, %v5178_v49  ;;  %v383_v0 = vsub.f32 %v5140_v39, %v5173_v47 }
  0x94   : > { %819 = vperm.xlu1 %4700, %v5049_v14   ;;  %v5236_v14 = vand.u32 2147483647, %v426_v35  ;;  %v384_v35 = vsub.f32 %v5140_v39, %v5178_v49 }
  0x95   : > { %823 = vperm.xlu2 %4698, %v5046_v13   ;;  %827 = vperm.xlu0 %4699, %v5064_v18   ;;  %v5165_v44 = vpop.permute.xlu2 %290  ;;  %v5167_v45 = vpop.permute.xlu1 %235  ;;  %v427_v13 = vsub.f32 %v276_v37, %v5173_v47  ;;  %v393_v37 = vsub.f32 %v5138_v38, %v5181_v50 }
  0x96   : > { %v5175_v48 = vpop.permute.xlu0 %225  ;;  %10745 = vst [vmem:[#allocation21_spill] sm:$0xff] %v5236_v14  ;;  %v5252_v14 = vand.u32 2147483647, %v429_v61  ;;  %v439_v38 = vsub.f32 %v5165_v44, %v5173_v47  ;;  %v440_v18 = vsub.f32 %v5165_v44, %v5178_v49  ;;  %v441_v61 = vsub.f32 %v5165_v44, %v5181_v50 }
  0x97   : > { %v5238_v58 = vand.u32 2147483647, %v427_v13  ;;  %v385_v13 = vsub.f32 %v5140_v39, %v5181_v50  ;;  %v394_v55 = vsub.f32 %v5167_v45, %v5170_v46 }
  0x98   : > { %10748 = vst [vmem:[#allocation24_spill] sm:$0xff] %v5252_v14  ;;  %v5269_v14 = vand.u32 2147483647, %v392_v59  ;;  %v5287_v59 = vand.u32 2147483647, %v384_v35  ;;  %v386_v35 = vsub.f32 %v5175_v48, %v5170_v46 }
  0x99   : > { %10746 = vst [vmem:[#allocation22_spill] sm:$0xff] %v5238_v58  ;;  %v438_v58 = vsub.f32 %v5165_v44, %v5170_v46 }
  0x9a   : > { %10751 = vst [vmem:[#allocation27_spill] sm:$0xff] %v5269_v14  ;;  %v5293_v14 = vand.u32 2147483647, %v385_v13 }
  0x9c   : > { %831 = vperm.xlu1 %4700, %v5061_v17  }
  0x9d   : > { %835 = vperm.xlu2 %4698, %v5058_v16   ;;  %839 = vperm.xlu0 %4699, %v5076_v21   ;;  %v5208_v51 = vpop.permute.xlu2 %305  ;;  %v5210_v52 = vpop.permute.xlu1 %255  ;;  %v5225_v16 = vand.u32 2147483647, %v415_v60  ;;  %v5228_v21 = vand.u32 2147483647, %v416_v63  ;;  %v5244_v60 = vand.u32 2147483647, %v428_v54  ;;  %v382_v63 = vsub.f32 %v5140_v39, %v5170_v46 }
  0x9e   : > { %v5219_v17 = vpop.permute.xlu0 %250  ;;  %v5260_v54 = vand.u32 2147483647, %v390_v56  ;;  %v5271_v39 = vand.u32 2147483647, %v393_v37  ;;  %v395_v56 = vsub.f32 %v5167_v45, %v5173_v47  ;;  %v396_v37 = vsub.f32 %v5167_v45, %v5178_v49 }
  0x9f   : > { %10742 = vst [vmem:[#allocation18_spill] sm:$0xff] %v5225_v16  ;;  %v5283_v44 = vand.u32 2147483647, %v382_v63  ;;  %v5301_v63 = vand.u32 2147483647, %v440_v18  ;;  %v406_v33 = vsub.f32 %v5219_v17, %v5170_v46 }
  0xa0   : > { %10743 = vst [vmem:[#allocation19_spill] sm:$0xff] %v5228_v21  ;;  %v387_v21 = vsub.f32 %v5175_v48, %v5173_v47  ;;  %v5309_v16 = vand.u32 2147483647, %v394_v55  ;;  %v5311_v13 = vand.u32 2147483647, %v395_v56  ;;  %v452_v55 = vsub.f32 %v5208_v51, %v5178_v49 }
  0xa1   : > { %10747 = vst [vmem:[#allocation23_spill] sm:$0xff] %v5244_v60  ;;  %v5262_v60 = vand.u32 2147483647, %v391_v57  ;;  %v5317_v18 = vand.u32 2147483647, %v396_v37  ;;  %v453_v56 = vsub.f32 %v5208_v51, %v5181_v50 }
  0xa2   : > { %10749 = vst [vmem:[#allocation25_spill] sm:$0xff] %v5260_v54  ;;  %v397_v54 = vsub.f32 %v5167_v45, %v5181_v50  ;;  %v389_v45 = vsub.f32 %v5175_v48, %v5181_v50  ;;  %v5333_v37 = vand.u32 2147483647, %v386_v35  ;;  %v407_v35 = vsub.f32 %v5219_v17, %v5173_v47 }
  0xa3   : > { %10750 = vst [vmem:[#allocation26_spill] sm:$0xff] %v5262_v60 }
  0xa4   : > { %843 = vperm.xlu1 %4700, %v5073_v20   ;;  %10752 = vst [vmem:[#allocation28_spill] sm:$0xff] %v5271_v39  ;;  %v5285_v20 = vand.u32 2147483647, %v383_v0  ;;  %v5303_v0 = vand.u32 2147483647, %v441_v61  ;;  %v451_v61 = vsub.f32 %v5208_v51, %v5173_v47 }
  0xa5   : > { %847 = vperm.xlu2 %4698, %v5070_v19   ;;  %851 = vperm.xlu0 %4699, %v5088_v24   ;;  %v5279_v57 = vpop.permute.xlu2 %320  ;;  %v5281_v60 = vpop.permute.xlu1 %270  ;;  %v5295_v19 = vand.u32 2147483647, %v438_v58  ;;  %v5297_v24 = vand.u32 2147483647, %v439_v38  ;;  %10755 = vst [vmem:[#allocation31_spill] sm:$0xff] %v5301_v63  ;;  %v388_v58 = vsub.f32 %v5175_v48, %v5178_v49  ;;  %v450_v38 = vsub.f32 %v5208_v51, %v5170_v46 }
  0xa6   : > { %v5291_v39 = vpop.permute.xlu0 %265  ;;  %10756 = vst [vmem:[#allocation32_spill] sm:$0xff] %v5303_v0  ;;  %v5325_v0 = vand.u32 2147483647, %v397_v54  ;;  %v410_v63 = vsub.f32 %v5210_v52, %v5170_v46  ;;  %v411_v48 = vsub.f32 %v5210_v52, %v5173_v47  ;;  %v413_v54 = vsub.f32 %v5210_v52, %v5181_v50 }
  0xa7   : > { %10753 = vst [vmem:[#allocation29_spill] sm:$0xff] %v5295_v19  ;;  %v412_v19 = vsub.f32 %v5210_v52, %v5178_v49  ;;  %v5342_v10 = vand.u32 2147483647, %v388_v58  ;;  %v5344_v51 = vand.u32 2147483647, %v389_v45  ;;  %v408_v45 = vsub.f32 %v5219_v17, %v5178_v49 }
  0xa8   : > { %10754 = vst [vmem:[#allocation30_spill] sm:$0xff] %v5297_v24  ;;  %v5335_v24 = vand.u32 2147483647, %v387_v21  ;;  %v5356_v52 = vand.u32 2147483647, %v450_v38 }
  0xa9   : > { %10757 = vst [vmem:[#allocation33_spill] sm:$0xff] %v5333_v37  ;;  %v5360_v58 = vand.u32 2147483647, %v452_v55  ;;  %v409_v37 = vsub.f32 %v5219_v17, %v5181_v50  ;;  %v5374_v38 = vand.u32 2147483647, %v412_v19  ;;  %v462_v55 = vsub.f32 %v5279_v57, %v5170_v46 }
  0xaa   : > { %10758 = vst [vmem:[#allocation34_spill] sm:$0xff] %v5335_v24  ;;  %v465_v17 = vsub.f32 %v5279_v57, %v5181_v50  ;;  %v5390_v19 = vand.u32 2147483647, %v408_v45 }
  0xab   : > { %10759 = vst [vmem:[#allocation35_spill] sm:$0xff] %v5342_v10  ;;  %v5366_v10 = vand.u32 2147483647, %v453_v56  ;;  %v5384_v56 = vand.u32 2147483647, %v407_v35  ;;  %v425_v35 = vsub.f32 %v5281_v60, %v5181_v50 }
  0xac   : > { %855 = vperm.xlu1 %4700, %v5085_v23   ;;  %10760 = vst [vmem:[#allocation36_spill] sm:$0xff] %v5344_v51  ;;  %v5358_v23 = vand.u32 2147483647, %v451_v61  ;;  %v5376_v61 = vand.u32 2147483647, %v413_v54  ;;  %v423_v54 = vsub.f32 %v5281_v60, %v5173_v47 }
  0xad   : > { %859 = vperm.xlu2 %4698, %v5082_v22   ;;  %863 = vperm.xlu0 %4699, %v5100_v27   ;;  %v5352_v21 = vpop.permute.xlu2 %335  ;;  %v5354_v24 = vpop.permute.xlu1 %285  ;;  %10761 = vst [vmem:[#allocation37_spill] sm:$0xff] %v5356_v52  ;;  %v5368_v22 = vand.u32 2147483647, %v410_v63  ;;  %v5370_v27 = vand.u32 2147483647, %v411_v48  ;;  %v464_v63 = vsub.f32 %v5279_v57, %v5178_v49  ;;  %v422_v48 = vsub.f32 %v5281_v60, %v5170_v46 }
  0xae   : > { %10762 = vst [vmem:[#allocation38_spill] sm:$0xff] %v5358_v23  ;;  %v5364_v51 = vpop.permute.xlu0 %280  ;;  %v5382_v23 = vand.u32 2147483647, %v406_v33  ;;  %v424_v33 = vsub.f32 %v5281_v60, %v5178_v49  ;;  %v418_v52 = vsub.f32 %v5291_v39, %v5170_v46  ;;  %v5406_v45 = vand.u32 2147483647, %v462_v55 }
  0xaf   : > { %10763 = vst [vmem:[#allocation39_spill] sm:$0xff] %v5360_v58  ;;  %v463_v58 = vsub.f32 %v5279_v57, %v5173_v47  ;;  %v419_v57 = vsub.f32 %v5291_v39, %v5173_v47  ;;  %v421_v60 = vsub.f32 %v5291_v39, %v5181_v50 }
  0xb0   : > { %10764 = vst [vmem:[#allocation40_spill] sm:$0xff] %v5366_v10  ;;  %v5398_v10 = vand.u32 2147483647, %v409_v37  ;;  %v420_v37 = vsub.f32 %v5291_v39, %v5178_v49 }
  0xb1   : > { %10765 = vst [vmem:[#allocation41_spill] sm:$0xff] %v5370_v27  ;;  %v5413_v27 = vand.u32 2147483647, %v465_v17  ;;  %v5435_v39 = vand.u32 2147483647, %v419_v57  ;;  %v477_v57 = vsub.f32 %v5352_v21, %v5181_v50 }
  0xb2   : > { %10766 = vst [vmem:[#allocation42_spill] sm:$0xff] %v5374_v38  ;;  %v5411_v38 = vand.u32 2147483647, %v464_v63  ;;  %v5427_v63 = vand.u32 2147483647, %v424_v33 }
  0xb3   : > { %10767 = vst [vmem:[#allocation43_spill] sm:$0xff] %v5376_v61  ;;  %v5408_v61 = vand.u32 2147483647, %v463_v58  ;;  %v5423_v58 = vand.u32 2147483647, %v422_v48  ;;  %v5442_v48 = vperm.slane %v5145_v40, 1  ;;  %v435_v40 = vsub.f32 %v5354_v24, %v5173_v47 }
  0xb4   : > { %10768 = vst [vmem:[#allocation44_spill] sm:$0xff] %v5406_v45  ;;  %867 = vperm.xlu1 %4700, %v5097_v26   ;;  %v5425_v26 = vand.u32 2147483647, %v423_v54  ;;  %v5445_v54 = vperm.slane %v5150_v41, 1  ;;  %v5447_v33 = vand.u32 2147483647, %v420_v37  ;;  %v436_v41 = vsub.f32 %v5354_v24, %v5178_v49 }
  0xb5   : > { %10769 = vst [vmem:[#allocation45_spill] sm:$0xff] %v5408_v61  ;;  %871 = vperm.xlu2 %4698, %v5094_v25   ;;  %875 = vperm.xlu0 %4699, %v5112_v30   ;;  %v351_v55 = vpop.permute.xlu2 %350  ;;  %v5421_v45 = vpop.permute.xlu1 %300  ;;  %v474_v25 = vsub.f32 %v5352_v21, %v5170_v46  ;;  %v475_v30 = vsub.f32 %v5352_v21, %v5173_v47  ;;  %v5462_v37 = vperm.slane %v5155_v42, 1 }
  0xb6   : > { %10770 = vst [vmem:[#allocation46_spill] sm:$0xff] %v5411_v38  ;;  %v5429_v17 = vpop.permute.xlu0 %295  ;;  %v5433_v38 = vand.u32 2147483647, %v418_v52  ;;  %v476_v52 = vsub.f32 %v5352_v21, %v5178_v49  ;;  %v434_v61 = vsub.f32 %v5354_v24, %v5170_v46  ;;  %v431_v21 = vsub.f32 %v5364_v51, %v5173_v47 }
  0xb7   : > { %10771 = vst [vmem:[#allocation47_spill] sm:$0xff] %v5413_v27  ;;  %v5431_v27 = vand.u32 2147483647, %v425_v35  ;;  %v5449_v35 = vand.u32 2147483647, %v421_v60  ;;  %v437_v60 = vsub.f32 %v5354_v24, %v5181_v50  ;;  %v432_v42 = vsub.f32 %v5364_v51, %v5178_v49 }
  0xb8   : > { %10772 = vst [vmem:[#allocation48_spill] sm:$0xff] %v5423_v58  ;;  %v5475_v58 = vand.u32 2147483647, %v475_v30  ;;  %v5482_v24 = vand.u32 2147483647, %v476_v52  ;;  %v488_v52 = vsub.f32 %v351_v55, %v5178_v49 }
  0xb9   : > { %10773 = vst [vmem:[#allocation49_spill] sm:$0xff] %v5425_v26  ;;  %v5473_v26 = vand.u32 2147483647, %v474_v25 }
  0xba   : > { %10774 = vst [vmem:[#allocation50_spill] sm:$0xff] %v5427_v63  ;;  %v5471_v63 = vperm.slane %v5160_v43, 1  ;;  %v487_v43 = vsub.f32 %v351_v55, %v5173_v47 }
  0xbb   : > { %10775 = vst [vmem:[#allocation51_spill] sm:$0xff] %v5431_v27  ;;  %v430_v27 = vsub.f32 %v5364_v51, %v5170_v46 }
  0xbc   : > { %10776 = vst [vmem:[#allocation52_spill] sm:$0xff] %v5435_v39  ;;  %879 = vperm.xlu1 %4700, %v5109_v29   ;;  %v486_v39 = vsub.f32 %v351_v55, %v5170_v46  ;;  %v5496_v29 = vand.u32 2147483647, %v436_v41  ;;  %v447_v41 = vsub.f32 %v5421_v45, %v5173_v47 }
  0xbd   : > { %10777 = vst [vmem:[#allocation53_spill] sm:$0xff] %v5447_v33  ;;  %v5484_v33 = vand.u32 2147483647, %v477_v57  ;;  %883 = vperm.xlu2 %4698, %v5106_v28   ;;  %887 = vperm.xlu0 %4699, %v5121_v32   ;;  %v366_v25 = vpop.permute.xlu2 %365  ;;  %v5490_v30 = vpop.permute.xlu1 %315  ;;  %v5505_v28 = vand.u32 2147483647, %v431_v21  ;;  %v489_v32 = vsub.f32 %v351_v55, %v5181_v50  ;;  %v449_v55 = vsub.f32 %v5421_v45, %v5181_v50 }
  0xbe   : > { %10778 = vst [vmem:[#allocation54_spill] sm:$0xff] %v5449_v35  ;;  %v433_v35 = vsub.f32 %v5364_v51, %v5181_v50  ;;  %v5494_v51 = vand.u32 2147483647, %v435_v40  ;;  %v5499_v57 = vpop.permute.xlu0 %310  ;;  %v446_v40 = vsub.f32 %v5421_v45, %v5170_v46  ;;  %v5524_v21 = vand.u32 2147483647, %v488_v52 }
  0xbf   : > { %10779 = vst [vmem:[#allocation55_spill] sm:$0xff] %v5473_v26  ;;  %v5508_v26 = vand.u32 2147483647, %v432_v42  ;;  %v443_v42 = vsub.f32 %v5429_v17, %v5173_v47 }
  0xc0   : > { %10780 = vst [vmem:[#allocation56_spill] sm:$0xff] %v5475_v58  ;;  %v5492_v58 = vand.u32 2147483647, %v434_v61  ;;  %v5510_v61 = vand.u32 2147483647, %v433_v35  ;;  %v442_v35 = vsub.f32 %v5429_v17, %v5170_v46 }
  0xc1   : > { %10781 = vst [vmem:[#allocation57_spill] sm:$0xff] %v5482_v24  ;;  %v5503_v24 = vand.u32 2147483647, %v430_v27  ;;  %v448_v27 = vsub.f32 %v5421_v45, %v5178_v49  ;;  %v499_v45 = vsub.f32 %v366_v25, %v5173_v47  ;;  %v5538_v52 = vand.u32 2147483647, %v446_v40 }
  0xc2   : > { %10782 = vst [vmem:[#allocation58_spill] sm:$0xff] %v5484_v33  ;;  %v5501_v33 = vand.u32 2147483647, %v437_v60  ;;  %v5518_v60 = vand.u32 2147483647, %v487_v43  ;;  %v445_v43 = vsub.f32 %v5429_v17, %v5181_v50  ;;  %v4913_v40 = vmov 2  }
  0xc3   : > { %10783 = vst [vmem:[#allocation59_spill] sm:$0xff] %v5492_v58  ;;  %v459_v58 = vsub.f32 %v5490_v30, %v5173_v47 }
  0xc4   : > { %10784 = vst [vmem:[#allocation60_spill] sm:$0xff] %v5494_v51  ;;  %v458_v51 = vsub.f32 %v5490_v30, %v5170_v46  ;;  %891 = vperm.xlu1 %4700, %v5118_v31   ;;  %v460_v31 = vsub.f32 %v5490_v30, %v5178_v49 }
  0xc5   : > { %10785 = vst [vmem:[#allocation61_spill] sm:$0xff] %v5496_v29  ;;  %v5516_v29 = vand.u32 2147483647, %v486_v39  ;;  %v444_v39 = vsub.f32 %v5429_v17, %v5178_v49  ;;  %v5549_v17 = vand.u32 2147483647, %v449_v55  ;;  %4701 = vset.pattern.permute.xlu2 %v4913_v40  ;;  %4702 = vset.pattern.permute.xlu0 %v4913_v40 }
  0xc6   : > { %10786 = vst [vmem:[#allocation62_spill] sm:$0xff] %v5501_v33  ;;  %v501_v33 = vsub.f32 %v366_v25, %v5181_v50  ;;  %1283 = vperm.xlu2 %4701, %v5004_v3   ;;  %v5562_v55 = vand.u32 2147483647, %v445_v43  ;;  %1287 = vperm.xlu0 %4702, %v5016_v6   ;;  %v454_v3 = vsub.f32 %v5499_v57, %v5170_v46  ;;  %v5579_v43 = vand.u32 2147483647, %v459_v58 }
  0xc7   : > { %10787 = vst [vmem:[#allocation63_spill] sm:$0xff] %v5508_v26  ;;  %v5557_v26 = vand.u32 2147483647, %v444_v39  ;;  %v457_v6 = vsub.f32 %v5499_v57, %v5181_v50 }
  0xc8   : > { %10788 = vst [vmem:[#allocation64_spill] sm:$0xff] %v5510_v61  ;;  %v5553_v61 = vand.u32 2147483647, %v442_v35  ;;  %v461_v35 = vsub.f32 %v5490_v30, %v5181_v50  ;;  %v5573_v39 = vand.u32 2147483647, %v501_v33 }
  0xc9   : > { %10789 = vst [vmem:[#allocation65_spill] sm:$0xff] %v5516_v29  ;;  %v5532_v29 = vand.u32 2147483647, %v489_v32  ;;  %v5545_v32 = vand.u32 2147483647, %v447_v41  ;;  %v326_v41 = vpop.permute.xlu0 %325 }
  0xca   : > { %10790 = vst [vmem:[#allocation66_spill] sm:$0xff] %v5518_v60  ;;  %v498_v60 = vsub.f32 %v366_v25, %v5170_v46  ;;  %v5587_v30 = vand.u32 2147483647, %v460_v31 }
  0xcb   : > { %10791 = vst [vmem:[#allocation67_spill] sm:$0xff] %v5524_v21  ;;  %v500_v21 = vsub.f32 %v366_v25, %v5178_v49  ;;  %v5555_v25 = vand.u32 2147483647, %v443_v42 }
  0xcc   : > { %10792 = vst [vmem:[#allocation68_spill] sm:$0xff] %v5532_v29  ;;  %v5547_v29 = vand.u32 2147483647, %v448_v27  ;;  %v768_v27 = vpop.permute.xlu2 %767  ;;  %4703 = vset.pattern.permute.xlu1 %v4913_v40 }
  0xcd   : > { %10793 = vst [vmem:[#allocation69_spill] sm:$0xff] %v5538_v52  ;;  %v331_v52 = vpop.permute.xlu1 %330  ;;  %v5571_v42 = vand.u32 2147483647, %v500_v21  ;;  %v898_v31 = vsub.f32 %v768_v27, %v5442_v48  ;;  %1291 = vperm.xlu1 %4703, %v5001_v2   ;;  %v901_v2 = vsub.f32 %v768_v27, %v5471_v63 }
  0xce   : > { %10794 = vst [vmem:[#allocation70_spill] sm:$0xff] %v5545_v32  ;;  %v5575_v32 = vand.u32 2147483647, %v458_v51  ;;  %v470_v33 = vsub.f32 %v331_v52, %v5170_v46  ;;  %v471_v51 = vsub.f32 %v331_v52, %v5173_v47  ;;  %v472_v21 = vsub.f32 %v331_v52, %v5178_v49  ;;  %1295 = vperm.xlu2 %4701, %v5013_v5  }
  0xcf   : > { %10795 = vst [vmem:[#allocation71_spill] sm:$0xff] %v5547_v29  ;;  %v5566_v29 = vand.u32 2147483647, %v499_v45  ;;  %v456_v45 = vsub.f32 %v5499_v57, %v5178_v49  ;;  %v473_v58 = vsub.f32 %v331_v52, %v5181_v50  ;;  %v469_v52 = vsub.f32 %v326_v41, %v5181_v50  ;;  %1307 = vperm.xlu0 %4702, %v5028_v9  }
  0xd0   : > { %10796 = vst [vmem:[#allocation72_spill] sm:$0xff] %v5549_v17  ;;  %v5564_v17 = vand.u32 2147483647, %v498_v60  ;;  %v455_v60 = vsub.f32 %v5499_v57, %v5173_v47  ;;  %v468_v57 = vsub.f32 %v326_v41, %v5178_v49 }
  0xd1   : > { %10797 = vst [vmem:[#allocation73_spill] sm:$0xff] %v5557_v26  ;;  %v900_v26 = vsub.f32 %v768_v27, %v5462_v37  ;;  %v341_v40 = vpop.permute.xlu0 %340 }
  0xd2   : > { %10798 = vst [vmem:[#allocation74_spill] sm:$0xff] %v5562_v55  ;;  %v5614_v55 = vand.u32 2147483647, %v472_v21  ;;  %v478_v9 = vsub.f32 %v341_v40, %v5170_v46 }
  0xd3   : > { %10799 = vst [vmem:[#allocation75_spill] sm:$0xff] %v5564_v17  ;;  %v5597_v17 = vand.u32 2147483647, %v454_v3  ;;  %v5610_v3 = vand.u32 2147483647, %v470_v33 }
  0xd4   : > { %10800 = vst [vmem:[#allocation76_spill] sm:$0xff] %v5566_v29  ;;  %v467_v29 = vsub.f32 %v326_v41, %v5173_v47  ;;  %v5626_v33 = vand.u32 2147483647, %v468_v57  ;;  %v479_v57 = vsub.f32 %v341_v40, %v5173_v47 }
  0xd5   : > { %10801 = vst [vmem:[#allocation77_spill] sm:$0xff] %v5571_v42  ;;  %v466_v42 = vsub.f32 %v326_v41, %v5170_v46  ;;  %v780_v41 = vpop.permute.xlu2 %779  ;;  %1299 = vperm.xlu1 %4703, %v4998_v1  }
  0xd6   : > { %10802 = vst [vmem:[#allocation78_spill] sm:$0xff] %v5573_v39  ;;  %v5592_v39 = vand.u32 2147483647, %v461_v35  ;;  %v5606_v35 = vand.u32 2147483647, %v457_v6  ;;  %1303 = vperm.xlu2 %4701, %v5010_v4  }
  0xd7   : > { %10803 = vst [vmem:[#allocation79_spill] sm:$0xff] %v5575_v32  ;;  %v5604_v32 = vand.u32 2147483647, %v456_v45  ;;  %v5620_v45 = vand.u32 2147483647, %v466_v42  ;;  %v910_v42 = vsub.f32 %v780_v41, %v5442_v48  ;;  %1319 = vperm.xlu0 %4702, %v5040_v12  }
  0xd8   : > { %10804 = vst [vmem:[#allocation80_spill] sm:$0xff] %v5579_v43  ;;  %v5602_v43 = vand.u32 2147483647, %v455_v60  ;;  %v5618_v60 = vand.u32 2147483647, %v473_v58 }
  0xd9   : > { %10805 = vst [vmem:[#allocation81_spill] sm:$0xff] %v5587_v30  ;;  %v899_v30 = vsub.f32 %v768_v27, %v5445_v54  ;;  %v5622_v6 = vand.u32 2147483647, %v467_v29 }
  0xda   : > { %10806 = vst [vmem:[#allocation82_spill] sm:$0xff] %v5592_v39  ;;  %v346_v39 = vpop.permute.xlu1 %345 }
  0xdb   : > { %10807 = vst [vmem:[#allocation83_spill] sm:$0xff] %v5597_v17  ;;  %v5612_v17 = vand.u32 2147483647, %v471_v51  ;;  %v1026_v51 = vand.u32 2147483647, %v898_v31  ;;  %v482_v5 = vsub.f32 %v346_v39, %v5170_v46  ;;  %v483_v58 = vsub.f32 %v346_v39, %v5173_v47 }
  0xdc   : > { %10808 = vst [vmem:[#allocation84_spill] sm:$0xff] %v5610_v3  ;;  %v1027_v21 = vand.u32 2147483647, %v899_v30  ;;  %v484_v29 = vsub.f32 %v346_v39, %v5178_v49  ;;  %v485_v27 = vsub.f32 %v346_v39, %v5181_v50  ;;  %v911_v30 = vsub.f32 %v780_v41, %v5445_v54 }
  0xdd   : > { %10809 = vst [vmem:[#allocation85_spill] sm:$0xff] %v5612_v17  ;;  %v1029_v17 = vand.u32 2147483647, %v901_v2  ;;  %v912_v31 = vsub.f32 %v780_v41, %v5462_v37  ;;  %v5647_v39 = vand.u32 2147483647, %v482_v5  ;;  %v913_v2 = vsub.f32 %v780_v41, %v5471_v63  ;;  %1311 = vperm.xlu1 %4703, %v5025_v8  }
  0xde   : > { %10810 = vst [vmem:[#allocation86_spill] sm:$0xff] %v5614_v55  ;;  %v5628_v55 = vand.u32 2147483647, %v469_v52  ;;  %v5640_v52 = vadd.f32 %v1026_v51, %v5283_v44  ;;  %v5643_v3 = vadd.f32 %v1027_v21, %v5285_v20  ;;  %v5656_v51 = vand.u32 2147483647, %v484_v29  ;;  %1315 = vperm.xlu2 %4701, %v5022_v7  }
  0xdf   : > { %10811 = vst [vmem:[#allocation87_spill] sm:$0xff] %v5618_v60  ;;  %v1028_v60 = vand.u32 2147483647, %v900_v26  ;;  %v480_v26 = vsub.f32 %v341_v40, %v5178_v49  ;;  %v5658_v20 = vand.u32 2147483647, %v485_v27  ;;  %v5664_v5 = vadd.f32 %v1029_v17, %v5293_v14  ;;  %1331 = vperm.xlu0 %4702, %v5052_v15  }
  0xe0   : > { %10812 = vst [vmem:[#allocation88_spill] sm:$0xff] %v5620_v45  ;;  %v5660_v21 = vand.u32 2147483647, %v478_v9  ;;  %v5666_v41 = vand.u32 2147483647, %v479_v57 }
  0xe1   : > { %10813 = vst [vmem:[#allocation89_spill] sm:$0xff] %v5622_v6  ;;  %v1038_v6 = vand.u32 2147483647, %v910_v42  ;;  %v5654_v44 = vadd.f32 %v1028_v60, %v5287_v59  ;;  %v1040_v1 = vand.u32 2147483647, %v912_v31  ;;  %v788_v59 = vpop.permute.xlu2 %787 }
  0xe2   : > { %10814 = vst [vmem:[#allocation90_spill] sm:$0xff] %v5626_v33  ;;  %v5649_v33 = vand.u32 2147483647, %v483_v58  ;;  %v361_v45 = vpop.permute.xlu1 %360  ;;  %v1039_v58 = vand.u32 2147483647, %v911_v30  ;;  %v918_v30 = vsub.f32 %v788_v59, %v5442_v48 }
  0xe3   : > { %10815 = vst [vmem:[#allocation91_spill] sm:$0xff] %v5628_v55  ;;  %v481_v55 = vsub.f32 %v341_v40, %v5181_v50  ;;  %v356_v40 = vpop.permute.xlu0 %355  ;;  %v5669_v60 = vand.u32 2147483647, %v480_v26  ;;  %v494_v29 = vsub.f32 %v361_v45, %v5170_v46  ;;  %v495_v27 = vsub.f32 %v361_v45, %v5173_v47 }
  0xe4   : > { %10816 = vst [vmem:[#allocation92_spill] sm:$0xff] %v5656_v51  ;;  %v1041_v4 = vand.u32 2147483647, %v913_v2  ;;  %v5676_v9 = vadd.f32 %v1038_v6, %v5309_v16  ;;  %v496_v14 = vsub.f32 %v361_v45, %v5178_v49  ;;  %v497_v17 = vsub.f32 %v361_v45, %v5181_v50 }
  0xe5   : > { %10817 = vst [vmem:[#allocation93_spill] sm:$0xff] %v5658_v20  ;;  %v5671_v42 = vand.u32 2147483647, %v481_v55  ;;  %v490_v57 = vsub.f32 %v356_v40, %v5170_v46  ;;  %v491_v12 = vsub.f32 %v356_v40, %v5173_v47  ;;  %v919_v55 = vsub.f32 %v788_v59, %v5445_v54  ;;  %1323 = vperm.xlu1 %4703, %v5037_v11  }
  0xe6   : > { %10818 = vst [vmem:[#allocation94_spill] sm:$0xff] %v5676_v9  ;;  %v5685_v31 = vadd.f32 %v1039_v58, %v5311_v13  ;;  %v5688_v26 = vadd.f32 %v1040_v1, %v5317_v18  ;;  %v492_v16 = vsub.f32 %v356_v40, %v5178_v49  ;;  %v493_v6 = vsub.f32 %v356_v40, %v5181_v50 }
  0xe7   : > { %v5692_v2 = vand.u32 2147483647, %v494_v29  ;;  %v5694_v45 = vand.u32 2147483647, %v495_v27  ;;  %v920_v9 = vsub.f32 %v788_v59, %v5462_v37  ;;  %v921_v20 = vsub.f32 %v788_v59, %v5471_v63 }
  0xe8   : > { %10819 = vst [vmem:[#allocation95_spill] sm:$0xff] %v5688_v26  ;;  %v5699_v51 = vadd.f32 %v1041_v4, %v5325_v0  ;;  %v5701_v13 = vand.u32 2147483647, %v496_v14  ;;  %v1046_v58 = vand.u32 2147483647, %v918_v30 }
  0xe9   : > { %v1047_v18 = vand.u32 2147483647, %v919_v55  ;;  %v5704_v26 = vand.u32 2147483647, %v497_v17  ;;  %v5706_v40 = vand.u32 2147483647, %v490_v57  ;;  %v800_v17 = vpop.permute.xlu2 %799 }
  0xea   : > { %10820 = vst [vmem:[#allocation96_spill] sm:$0xff] %v5701_v13  ;;  %v376_v1 = vpop.permute.xlu1 %375  ;;  %v5708_v29 = vand.u32 2147483647, %v491_v12  ;;  %v5712_v0 = vand.u32 2147483647, %v492_v16  ;;  %v5722_v7 = vadd.f32 %v1046_v58, %v5212_v62  ;;  %v932_v62 = vsub.f32 %v800_v17, %v5462_v37 }
  0xeb   : > { %10821 = vst [vmem:[#allocation97_spill] sm:$0xff] %v5704_v26  ;;  %v506_v27 = vsub.f32 %v376_v1, %v5170_v46  ;;  %v371_v59 = vpop.permute.xlu0 %370  ;;  %v5714_v4 = vand.u32 2147483647, %v493_v6  ;;  %v507_v14 = vsub.f32 %v376_v1, %v5173_v47  ;;  %v508_v8 = vsub.f32 %v376_v1, %v5178_v49 }
  0xec   : > { %v1048_v57 = vand.u32 2147483647, %v920_v9  ;;  %v1049_v30 = vand.u32 2147483647, %v921_v20  ;;  %v509_v12 = vsub.f32 %v376_v1, %v5181_v50  ;;  %v502_v55 = vsub.f32 %v371_v59, %v5170_v46  ;;  %10822 = vst [vmem:[#allocation98_spill] sm:$0xff] %v5722_v7 }
  0xed   : > { %v5725_v16 = vadd.f32 %v1047_v18, %v5214_v36  ;;  %v5727_v6 = vand.u32 2147483647, %v506_v27  ;;  %v503_v26 = vsub.f32 %v371_v59, %v5173_v47  ;;  %v5730_v13 = vand.u32 2147483647, %v507_v14 }
  0xee   : > { %v504_v15 = vsub.f32 %v371_v59, %v5178_v49  ;;  %v505_v20 = vsub.f32 %v371_v59, %v5181_v50  ;;  %v930_v9 = vsub.f32 %v800_v17, %v5442_v48  ;;  %v5735_v1 = vand.u32 2147483647, %v508_v8 }
  0xef   : > { %10823 = vst [vmem:[#allocation99_spill] sm:$0xff] %v5725_v16  ;;  %v931_v46 = vsub.f32 %v800_v17, %v5445_v54  ;;  %v933_v36 = vsub.f32 %v800_v17, %v5471_v63  ;;  %v5741_v58 = vadd.f32 %v1048_v57, %v5216_v53  ;;  %v5743_v47 = vand.u32 2147483647, %v509_v12  ;;  %v10831_v53 = vld [vmem:[#allocation17_spill] sm:$0xff]  ;;  %v10847_v16 = vld [vmem:[#allocation28_spill] sm:$0xff] }
  0xf0   : > { %10824 = vst [vmem:[#allocation100_spill] sm:$0xff] %v5727_v6  ;;  %v5745_v18 = vand.u32 2147483647, %v502_v55  ;;  %v1058_v49 = vand.u32 2147483647, %v930_v9  ;;  %v5748_v50 = vadd.f32 %v1049_v30, %v5221_v34  ;;  %v10833_v12 = vld [vmem:[#allocation5_spill] sm:$0xff] }
  0xf1   : > { %10825 = vst [vmem:[#allocation101_spill] sm:$0xff] %v5730_v13  ;;  %v1059_v27 = vand.u32 2147483647, %v931_v46  ;;  %v1060_v59 = vand.u32 2147483647, %v932_v62  ;;  %1327 = vperm.xlu2 %4701, %v10833_v12   ;;  %v10834_v9 = vld [vmem:[#allocation18_spill] sm:$0xff] }
  0xf2   : > { %10826 = vst [vmem:[#allocation102_spill] sm:$0xff] %v5735_v1  ;;  %v1061_v14 = vand.u32 2147483647, %v933_v36  ;;  %v5751_v8 = vand.u32 2147483647, %v503_v26  ;;  %v5758_v57 = vadd.f32 %v1058_v49, %v10831_v53  ;;  %v776_v55 = vpop.permute.xlu1 %775  ;;  %v10836_v30 = vld [vmem:[#allocation19_spill] sm:$0xff] }
  0xf3   : > { %10827 = vst [vmem:[#allocation103_spill] sm:$0xff] %v5741_v58  ;;  %v5753_v1 = vand.u32 2147483647, %v504_v15  ;;  %v5755_v17 = vand.u32 2147483647, %v505_v20  ;;  %v5762_v34 = vadd.f32 %v1059_v27, %v10834_v9  ;;  %v5765_v46 = vadd.f32 %v1060_v59, %v10836_v30  ;;  %v10838_v62 = vld [vmem:[#allocation20_spill] sm:$0xff]  ;;  %v812_v20 = vpop.permute.xlu2 %811  ;;  %v772_v36 = vpop.permute.xlu0 %771 }
  0xf4   : > { %10828 = vst [vmem:[#allocation104_spill] sm:$0xff] %v5743_v47  ;;  %v5768_v11 = vadd.f32 %v1061_v14, %v10838_v62  ;;  %v10840_v26 = vld [vmem:[#allocation10_spill] sm:$0xff]  ;;  %v906_v15 = vsub.f32 %v776_v55, %v5442_v48  ;;  %v907_v49 = vsub.f32 %v776_v55, %v5445_v54  ;;  %v908_v53 = vsub.f32 %v776_v55, %v5462_v37 }
  0xf5   : > { %10829 = vst [vmem:[#allocation105_spill] sm:$0xff] %v5748_v50  ;;  %1343 = vperm.xlu0 %4702, %v10840_v26   ;;  %v909_v12 = vsub.f32 %v776_v55, %v5471_v63  ;;  %v942_v27 = vsub.f32 %v812_v20, %v5442_v48  ;;  %v943_v59 = vsub.f32 %v812_v20, %v5445_v54  ;;  %v10843_v6 = vld [vmem:[#allocation26_spill] sm:$0xff] }
  0xf6   : > { %10830 = vst [vmem:[#allocation106_spill] sm:$0xff] %v5755_v17  ;;  %v1034_v9 = vand.u32 2147483647, %v906_v15  ;;  %v944_v14 = vsub.f32 %v812_v20, %v5462_v37  ;;  %v945_v30 = vsub.f32 %v812_v20, %v5471_v63  ;;  %v1035_v62 = vand.u32 2147483647, %v907_v49  ;;  %v10845_v15 = vld [vmem:[#allocation27_spill] sm:$0xff] }
  0xf7   : > { %10832 = vst [vmem:[#allocation17_spill] sm:$0xff] %v5758_v57  ;;  %v1036_v26 = vand.u32 2147483647, %v908_v53  ;;  %v1070_v47 = vand.u32 2147483647, %v942_v27  ;;  %v10849_v49 = vld [vmem:[#allocation21_spill] sm:$0xff] }
  0xf8   : > { %10835 = vst [vmem:[#allocation5_spill] sm:$0xff] %v5762_v34  ;;  %v10841_v34 = vld [vmem:[#allocation25_spill] sm:$0xff]  ;;  %v1071_v13 = vand.u32 2147483647, %v943_v59  ;;  %v1072_v55 = vand.u32 2147483647, %v944_v14  ;;  %v5784_v50 = vadd.f32 %v1035_v62, %v10843_v6 }
  0xf9   : > { %10837 = vst [vmem:[#allocation18_spill] sm:$0xff] %v5765_v46  ;;  %v902_v46 = vsub.f32 %v772_v36, %v5442_v48  ;;  %v5781_v57 = vadd.f32 %v1034_v9, %v10841_v34  ;;  %v5787_v58 = vadd.f32 %v1036_v26, %v10845_v15  ;;  %v1073_v20 = vand.u32 2147483647, %v945_v30  ;;  %v10853_v34 = vld [vmem:[#allocation23_spill] sm:$0xff]  ;;  %v10856_v59 = vld [vmem:[#allocation24_spill] sm:$0xff] }
  0xfa   : > { %10839 = vst [vmem:[#allocation19_spill] sm:$0xff] %v5768_v11  ;;  %v1037_v11 = vand.u32 2147483647, %v909_v12  ;;  %v5793_v53 = vadd.f32 %v1070_v47, %v10849_v49  ;;  %v10851_v12 = vld [vmem:[#allocation22_spill] sm:$0xff]  ;;  %v5799_v27 = vadd.f32 %v1072_v55, %v10853_v34  ;;  %v903_v9 = vsub.f32 %v772_v36, %v5445_v54  ;;  %v10855_v6 = vld [vmem:[#allocation7_spill] sm:$0xff]  ;;  %v784_v62 = vpop.permute.xlu1 %783 }
  0xfb   : > { %10842 = vst [vmem:[#allocation20_spill] sm:$0xff] %v5781_v57  ;;  %v5796_v17 = vadd.f32 %v1071_v13, %v10851_v12  ;;  %1335 = vperm.xlu1 %4703, %v10855_v6   ;;  %v5804_v14 = vadd.f32 %v1073_v20, %v10856_v59  ;;  %v1030_v30 = vand.u32 2147483647, %v902_v46  ;;  %v10858_v47 = vld [vmem:[#allocation6_spill] sm:$0xff]  ;;  %v10859_v26 = vld [vmem:[#allocation11_spill] sm:$0xff]  ;;  %v914_v55 = vsub.f32 %v784_v62, %v5442_v48  ;;  %v824_v12 = vpop.permute.xlu2 %823  ;;  %v792_v20 = vpop.permute.xlu0 %791  ;;  %v10860_v59 = vld [vmem:[#allocation33_spill] sm:$0xff] }
  0xfc   : > { %10844 = vst [vmem:[#allocation10_spill] sm:$0xff] %v5784_v50  ;;  %v5790_v7 = vadd.f32 %v1037_v11, %v10847_v16  ;;  %v904_v16 = vsub.f32 %v772_v36, %v5462_v37  ;;  %v905_v11 = vsub.f32 %v772_v36, %v5471_v63  ;;  %1339 = vperm.xlu2 %4701, %v10858_v47   ;;  %v1031_v13 = vand.u32 2147483647, %v903_v9  ;;  %v10861_v36 = vld [vmem:[#allocation34_spill] sm:$0xff]  ;;  %v10878_v57 = vld [vmem:[#allocation12_spill] sm:$0xff] }
  0xfd   : > { %10846 = vst [vmem:[#allocation25_spill] sm:$0xff] %v5787_v58  ;;  %1355 = vperm.xlu0 %4702, %v10859_v26   ;;  %v915_v15 = vsub.f32 %v784_v62, %v5445_v54  ;;  %v916_v49 = vsub.f32 %v784_v62, %v5462_v37  ;;  %v917_v46 = vsub.f32 %v784_v62, %v5471_v63  ;;  %v1042_v9 = vand.u32 2147483647, %v914_v55 }
  0xfe   : > { %10848 = vst [vmem:[#allocation26_spill] sm:$0xff] %v5790_v7  ;;  %v1032_v34 = vand.u32 2147483647, %v904_v16  ;;  %v1033_v6 = vand.u32 2147483647, %v905_v11  ;;  %v5818_v47 = vadd.f32 %v1031_v13, %v10861_v36  ;;  %v10863_v7 = vld [vmem:[#allocation36_spill] sm:$0xff]  ;;  %v954_v16 = vsub.f32 %v824_v12, %v5442_v48 }
  0xff   : > { %10850 = vst [vmem:[#allocation27_spill] sm:$0xff] %v5793_v53  ;;  %v1043_v26 = vand.u32 2147483647, %v915_v15  ;;  %v1045_v50 = vand.u32 2147483647, %v917_v46  ;;  %v10865_v11 = vld [vmem:[#allocation13_spill] sm:$0xff]  ;;  %v955_v55 = vsub.f32 %v824_v12, %v5445_v54  ;;  %v922_v46 = vsub.f32 %v792_v20, %v5442_v48 }
 0x100   : > { %10852 = vst [vmem:[#allocation28_spill] sm:$0xff] %v5796_v17  ;;  %v10862_v17 = vld [vmem:[#allocation35_spill] sm:$0xff]  ;;  %v5824_v58 = vadd.f32 %v1033_v6, %v10863_v7  ;;  %v10871_v15 = vld [vmem:[#allocation16_spill] sm:$0xff]  ;;  %v956_v7 = vsub.f32 %v824_v12, %v5462_v37 }
 0x101   : > { %10854 = vst [vmem:[#allocation21_spill] sm:$0xff] %v5799_v27  ;;  %v1044_v27 = vand.u32 2147483647, %v916_v49  ;;  %v5821_v53 = vadd.f32 %v1032_v34, %v10862_v17  ;;  %v10869_v13 = vld [vmem:[#allocation15_spill] sm:$0xff]  ;;  %v5838_v17 = vadd.f32 %v1045_v50, %v10871_v15  ;;  %v957_v49 = vsub.f32 %v824_v12, %v5471_v63  ;;  %v10876_v15 = vld [vmem:[#allocation8_spill] sm:$0xff] }
 0x102   : > { %10857 = vst [vmem:[#allocation22_spill] sm:$0xff] %v5804_v14  ;;  %v5814_v14 = vadd.f32 %v1030_v30, %v10860_v59  ;;  %v5828_v30 = vadd.f32 %v1042_v9, %v10865_v11  ;;  %v10867_v59 = vld [vmem:[#allocation14_spill] sm:$0xff]  ;;  %v1082_v34 = vand.u32 2147483647, %v954_v16  ;;  %v1083_v6 = vand.u32 2147483647, %v955_v55  ;;  %v796_v12 = vpop.permute.xlu1 %795 }
 0x103   : > { %10864 = vst [vmem:[#allocation23_spill] sm:$0xff] %v5824_v58  ;;  %v5831_v62 = vadd.f32 %v1043_v26, %v10867_v59  ;;  %v5834_v36 = vadd.f32 %v1044_v27, %v10869_v13  ;;  %v923_v9 = vsub.f32 %v792_v20, %v5445_v54  ;;  %v924_v26 = vsub.f32 %v792_v20, %v5462_v37  ;;  %v10873_v11 = vld [vmem:[#allocation9_spill] sm:$0xff]  ;;  %v10877_v16 = vld [vmem:[#allocation30_spill] sm:$0xff]  ;;  %v836_v58 = vpop.permute.xlu2 %835 }
 0x104   : > { %10866 = vst [vmem:[#allocation7_spill] sm:$0xff] %v5828_v30  ;;  %1347 = vperm.xlu1 %4703, %v10873_v11   ;;  %v1084_v27 = vand.u32 2147483647, %v956_v7  ;;  %v1085_v59 = vand.u32 2147483647, %v957_v49  ;;  %v10874_v13 = vld [vmem:[#allocation29_spill] sm:$0xff]  ;;  %v925_v50 = vsub.f32 %v792_v20, %v5471_v63  ;;  %1351 = vperm.xlu2 %4701, %v10876_v15   ;;  %v5852_v55 = vadd.f32 %v1083_v6, %v10877_v16  ;;  %v804_v11 = vpop.permute.xlu0 %803 }
 0x105   : > { %10868 = vst [vmem:[#allocation24_spill] sm:$0xff] %v5831_v62  ;;  %v1051_v62 = vand.u32 2147483647, %v923_v9  ;;  %v1052_v30 = vand.u32 2147483647, %v924_v26  ;;  %1367 = vperm.xlu0 %4702, %v10878_v57   ;;  %v10879_v7 = vld [vmem:[#allocation31_spill] sm:$0xff]  ;;  %v926_v15 = vsub.f32 %v796_v12, %v5442_v48  ;;  %v927_v57 = vsub.f32 %v796_v12, %v5445_v54 }
 0x106   : > { %10870 = vst [vmem:[#allocation6_spill] sm:$0xff] %v5834_v36  ;;  %v5847_v36 = vadd.f32 %v1082_v34, %v10874_v13  ;;  %v5856_v49 = vadd.f32 %v1084_v27, %v10879_v7  ;;  %v10881_v34 = vld [vmem:[#allocation32_spill] sm:$0xff]  ;;  %v1053_v20 = vand.u32 2147483647, %v925_v50  ;;  %v928_v26 = vsub.f32 %v796_v12, %v5462_v37  ;;  %v10888_v16 = vld [vmem:[#allocation41_spill] sm:$0xff] }
 0x107   : > { %10872 = vst [vmem:[#allocation11_spill] sm:$0xff] %v5838_v17  ;;  %v1050_v17 = vand.u32 2147483647, %v922_v46  ;;  %v5859_v13 = vadd.f32 %v1085_v59, %v10881_v34  ;;  %v5866_v6 = vadd.f32 %v1051_v62, %v5384_v56  ;;  %v5869_v46 = vadd.f32 %v1052_v30, %v5390_v19 }
 0x108   : > { %10875 = vst [vmem:[#allocation33_spill] sm:$0xff] %v5847_v36  ;;  %v5873_v9 = vadd.f32 %v1053_v20, %v5398_v10  ;;  %v929_v27 = vsub.f32 %v796_v12, %v5471_v63  ;;  %v1054_v59 = vand.u32 2147483647, %v926_v15  ;;  %v1055_v50 = vand.u32 2147483647, %v927_v57  ;;  %v5888_v15 = vld [vmem:[%s4995_s27 + $0x98] sm:$0xff] }
 0x109   : > { %10880 = vst [vmem:[#allocation34_spill] sm:$0xff] %v5856_v49  ;;  %v5863_v36 = vadd.f32 %v1050_v17, %v5382_v23  ;;  %v966_v23 = vsub.f32 %v836_v58, %v5442_v48  ;;  %v967_v56 = vsub.f32 %v836_v58, %v5445_v54  ;;  %v968_v19 = vsub.f32 %v836_v58, %v5462_v37  ;;  %v10890_v57 = vld [vmem:[#allocation42_spill] sm:$0xff]  ;;  %v10926_v49 = vld [vmem:[#allocation47_spill] sm:$0xff] }
 0x10a   : > { %10882 = vst [vmem:[#allocation35_spill] sm:$0xff] %v5859_v13  ;;  %v1056_v30 = vand.u32 2147483647, %v928_v26  ;;  %v1057_v62 = vand.u32 2147483647, %v929_v27  ;;  %v5881_v17 = vadd.f32 %v1054_v59, %v5368_v22  ;;  %v969_v10 = vsub.f32 %v836_v58, %v5471_v63  ;;  %v10892_v26 = vld [vmem:[#allocation43_spill] sm:$0xff] }
 0x10b   : > { %10883 = vst [vmem:[#allocation36_spill] sm:$0xff] %v5863_v36  ;;  %v5885_v7 = vadd.f32 %v1055_v50, %v10888_v16  ;;  %v1094_v12 = vand.u32 2147483647, %v966_v23  ;;  %v1095_v34 = vand.u32 2147483647, %v967_v56  ;;  %v934_v58 = vsub.f32 %v804_v11, %v5442_v48  ;;  %v5899_v59 = vld [vmem:[%s4995_s27 + $0xa0] sm:$0xff]  ;;  %v808_v50 = vpop.permute.xlu1 %807 }
 0x10c   : > { %10884 = vst [vmem:[#allocation13_spill] sm:$0xff] %v5866_v6  ;;  %v1096_v20 = vand.u32 2147483647, %v968_v19  ;;  %1359 = vperm.xlu1 %4703, %v5888_v15   ;;  %v5895_v27 = vadd.f32 %v1057_v62, %v10892_v26  ;;  %v1097_v22 = vand.u32 2147483647, %v969_v10  ;;  %1363 = vperm.xlu2 %4701, %v5899_v59   ;;  %v10894_v23 = vld [vmem:[#allocation37_spill] sm:$0xff]  ;;  %v935_v62 = vsub.f32 %v804_v11, %v5445_v54  ;;  %v848_v10 = vpop.permute.xlu2 %847  ;;  %v816_v26 = vpop.permute.xlu0 %815 }
 0x10d   : > { %10885 = vst [vmem:[#allocation14_spill] sm:$0xff] %v5869_v46  ;;  %v5903_v56 = vadd.f32 %v1094_v12, %v10894_v23  ;;  %v10896_v19 = vld [vmem:[#allocation38_spill] sm:$0xff]  ;;  %v10898_v46 = vld [vmem:[#allocation39_spill] sm:$0xff]  ;;  %v10900_v6 = vld [vmem:[#allocation40_spill] sm:$0xff]  ;;  %v936_v12 = vsub.f32 %v804_v11, %v5462_v37  ;;  %v937_v23 = vsub.f32 %v804_v11, %v5471_v63 }
 0x10e   : > { %10886 = vst [vmem:[#allocation15_spill] sm:$0xff] %v5873_v9  ;;  %v5892_v9 = vadd.f32 %v1056_v30, %v10890_v57  ;;  %v5906_v16 = vadd.f32 %v1095_v34, %v10896_v19  ;;  %v5909_v30 = vadd.f32 %v1096_v20, %v10898_v46  ;;  %v5913_v57 = vld [vmem:[%s4995_s27 + $0xc0] sm:$0xff]  ;;  %v5917_v36 = vadd.f32 %v1097_v22, %v10900_v6  ;;  %v10903_v22 = vld [vmem:[#allocation52_spill] sm:$0xff] }
 0x10f   : > { %10887 = vst [vmem:[#allocation16_spill] sm:$0xff] %v5881_v17  ;;  %1379 = vperm.xlu0 %4702, %v5913_v57   ;;  %v1062_v34 = vand.u32 2147483647, %v934_v58  ;;  %v1063_v19 = vand.u32 2147483647, %v935_v62  ;;  %v938_v46 = vsub.f32 %v808_v50, %v5442_v48  ;;  %v939_v20 = vsub.f32 %v808_v50, %v5445_v54  ;;  %v10907_v17 = vld [vmem:[#allocation54_spill] sm:$0xff] }
 0x110   : > { %10889 = vst [vmem:[#allocation9_spill] sm:$0xff] %v5885_v7  ;;  %v941_v6 = vsub.f32 %v808_v50, %v5471_v63 }
 0x111   : > { %10891 = vst [vmem:[#allocation29_spill] sm:$0xff] %v5892_v9  ;;  %v1066_v11 = vand.u32 2147483647, %v938_v46  ;;  %v1067_v58 = vand.u32 2147483647, %v939_v20  ;;  %v10905_v9 = vld [vmem:[#allocation53_spill] sm:$0xff]  ;;  %v981_v20 = vsub.f32 %v848_v10, %v5471_v63 }
 0x112   : > { %10893 = vst [vmem:[#allocation8_spill] sm:$0xff] %v5895_v27  ;;  %v5925_v27 = vadd.f32 %v1062_v34, %v5433_v38  ;;  %v10909_v38 = vld [vmem:[#allocation48_spill] sm:$0xff] }
 0x113   : > { %10895 = vst [vmem:[#allocation30_spill] sm:$0xff] %v5903_v56  ;;  %v1065_v56 = vand.u32 2147483647, %v937_v23  ;;  %v978_v23 = vsub.f32 %v848_v10, %v5442_v48  ;;  %v5939_v34 = vadd.f32 %v1066_v11, %v10909_v38  ;;  %v820_v11 = vpop.permute.xlu1 %819  ;;  %v947_v38 = vsub.f32 %v816_v26, %v5445_v54 }
 0x114   : > { %10897 = vst [vmem:[#allocation12_spill] sm:$0xff] %v5906_v16  ;;  %v1064_v16 = vand.u32 2147483647, %v936_v12  ;;  %v1069_v12 = vand.u32 2147483647, %v941_v6 }
 0x115   : > { %10899 = vst [vmem:[#allocation31_spill] sm:$0xff] %v5909_v30  ;;  %v940_v30 = vsub.f32 %v808_v50, %v5462_v37  ;;  %v5935_v13 = vadd.f32 %v1065_v56, %v10907_v17  ;;  %v10911_v50 = vld [vmem:[#allocation49_spill] sm:$0xff]  ;;  %v10916_v17 = vld [vmem:[#allocation51_spill] sm:$0xff]  ;;  %v1106_v6 = vand.u32 2147483647, %v978_v23 }
 0x116   : > { %10901 = vst [vmem:[#allocation32_spill] sm:$0xff] %v5917_v36  ;;  %v5929_v36 = vadd.f32 %v1063_v19, %v10903_v22  ;;  %v5932_v7 = vadd.f32 %v1064_v16, %v10905_v9  ;;  %v10913_v19 = vld [vmem:[#allocation50_spill] sm:$0xff]  ;;  %v5949_v9 = vld [vmem:[%s4995_s27 + $0xb0] sm:$0xff]  ;;  %v5953_v56 = vadd.f32 %v1069_v12, %v10916_v17  ;;  %v980_v16 = vsub.f32 %v848_v10, %v5462_v37  ;;  %v5958_v22 = vld [vmem:[%s4995_s27 + $0xb8] sm:$0xff]  ;;  %v860_v12 = vpop.permute.xlu2 %859  ;;  %v828_v17 = vpop.permute.xlu0 %827 }
 0x117   : > { %10902 = vst [vmem:[#allocation41_spill] sm:$0xff] %v5925_v27  ;;  %v1068_v62 = vand.u32 2147483647, %v940_v30  ;;  %v5942_v27 = vadd.f32 %v1067_v58, %v10911_v50  ;;  %v979_v30 = vsub.f32 %v848_v10, %v5445_v54  ;;  %1371 = vperm.xlu1 %4703, %v5949_v9   ;;  %1375 = vperm.xlu2 %4701, %v5958_v22   ;;  %v1109_v23 = vand.u32 2147483647, %v981_v20 }
 0x118   : > { %10904 = vst [vmem:[#allocation42_spill] sm:$0xff] %v5929_v36  ;;  %v948_v50 = vsub.f32 %v816_v26, %v5462_v37  ;;  %v1108_v10 = vand.u32 2147483647, %v980_v16  ;;  %v949_v36 = vsub.f32 %v816_v26, %v5471_v63  ;;  %v950_v20 = vsub.f32 %v820_v11, %v5442_v48 }
 0x119   : > { %10906 = vst [vmem:[#allocation43_spill] sm:$0xff] %v5932_v7  ;;  %v5945_v46 = vadd.f32 %v1068_v62, %v10913_v19  ;;  %v1107_v58 = vand.u32 2147483647, %v979_v30  ;;  %v946_v62 = vsub.f32 %v816_v26, %v5442_v48  ;;  %v5965_v19 = vld [vmem:[%s4995_s27 + $0xd8] sm:$0xff]  ;;  %v10922_v30 = vld [vmem:[#allocation45_spill] sm:$0xff] }
 0x11a   : > { %10908 = vst [vmem:[#allocation37_spill] sm:$0xff] %v5935_v13  ;;  %1391 = vperm.xlu0 %4702, %v5965_v19   ;;  %v10920_v13 = vld [vmem:[#allocation44_spill] sm:$0xff]  ;;  %v1077_v16 = vand.u32 2147483647, %v949_v36  ;;  %v953_v36 = vsub.f32 %v820_v11, %v5471_v63 }
 0x11b   : > { %10910 = vst [vmem:[#allocation38_spill] sm:$0xff] %v5939_v34  ;;  %v5969_v7 = vadd.f32 %v1106_v6, %v10920_v13  ;;  %v1076_v34 = vand.u32 2147483647, %v948_v50  ;;  %v10930_v6 = vld [vmem:[#allocation63_spill] sm:$0xff]  ;;  %v1078_v50 = vand.u32 2147483647, %v950_v20 }
 0x11c   : > { %10912 = vst [vmem:[#allocation39_spill] sm:$0xff] %v5942_v27  ;;  %v1075_v27 = vand.u32 2147483647, %v947_v38  ;;  %v6009_v20 = vld [vmem:[%s4995_s27 + $0xd0] sm:$0xff] }
 0x11d   : > { %10914 = vst [vmem:[#allocation40_spill] sm:$0xff] %v5945_v46  ;;  %v1074_v46 = vand.u32 2147483647, %v946_v62  ;;  %v10932_v62 = vld [vmem:[#allocation64_spill] sm:$0xff] }
 0x11e   : > { %10915 = vst [vmem:[#allocation52_spill] sm:$0xff] %v5949_v9  ;;  %v5986_v26 = vadd.f32 %v1075_v27, %v5505_v28  ;;  %v5993_v38 = vadd.f32 %v1077_v16, %v10932_v62  ;;  %v991_v28 = vsub.f32 %v860_v12, %v5445_v54  ;;  %v992_v27 = vsub.f32 %v860_v12, %v5462_v37 }
 0x11f   : > { %10917 = vst [vmem:[#allocation53_spill] sm:$0xff] %v5953_v56  ;;  %v5973_v56 = vadd.f32 %v1107_v58, %v10922_v30  ;;  %v5983_v13 = vadd.f32 %v1074_v46, %v5503_v24  ;;  %v5989_v58 = vadd.f32 %v1076_v34, %v10930_v6  ;;  %v990_v24 = vsub.f32 %v860_v12, %v5442_v48  ;;  %v6001_v34 = vld [vmem:[%s4995_s27 + $0xc8] sm:$0xff]  ;;  %v10934_v30 = vld [vmem:[#allocation59_spill] sm:$0xff]  ;;  %v832_v6 = vpop.permute.xlu1 %831 }
 0x120   : > { %10918 = vst [vmem:[#allocation54_spill] sm:$0xff] %v5958_v22  ;;  %v10924_v22 = vld [vmem:[#allocation46_spill] sm:$0xff]  ;;  %1383 = vperm.xlu1 %4703, %v6001_v34   ;;  %v6005_v16 = vadd.f32 %v1078_v50, %v10934_v30  ;;  %1387 = vperm.xlu2 %4701, %v6009_v20   ;;  %v10938_v50 = vld [vmem:[#allocation61_spill] sm:$0xff] }
 0x121   : > { %10919 = vst [vmem:[#allocation48_spill] sm:$0xff] %v5965_v19  ;;  %v5976_v9 = vadd.f32 %v1108_v10, %v10924_v22  ;;  %v5979_v19 = vadd.f32 %v1109_v23, %v10926_v49  ;;  %v951_v22 = vsub.f32 %v820_v11, %v5445_v54  ;;  %v952_v49 = vsub.f32 %v820_v11, %v5462_v37 }
 0x122   : > { %10921 = vst [vmem:[#allocation49_spill] sm:$0xff] %v5969_v7  ;;  %v1081_v23 = vand.u32 2147483647, %v953_v36  ;;  %v993_v11 = vsub.f32 %v860_v12, %v5471_v63  ;;  %v6016_v7 = vld [vmem:[%s4995_s27 + $0xf0] sm:$0xff]  ;;  %v840_v36 = vpop.permute.xlu0 %839  ;;  %v10940_v12 = vld [vmem:[#allocation62_spill] sm:$0xff] }
 0x123   : > { %10923 = vst [vmem:[#allocation50_spill] sm:$0xff] %v5973_v56  ;;  %v1079_v10 = vand.u32 2147483647, %v951_v22  ;;  %v1080_v46 = vand.u32 2147483647, %v952_v49  ;;  %v10936_v22 = vld [vmem:[#allocation60_spill] sm:$0xff]  ;;  %1403 = vperm.xlu0 %4702, %v6016_v7   ;;  %v872_v49 = vpop.permute.xlu2 %871 }
 0x124   : > { %10925 = vst [vmem:[#allocation51_spill] sm:$0xff] %v5976_v9  ;;  %v1119_v9 = vand.u32 2147483647, %v991_v28  ;;  %v1120_v56 = vand.u32 2147483647, %v992_v27  ;;  %v10946_v27 = vld [vmem:[#allocation57_spill] sm:$0xff] }
 0x125   : > { %10927 = vst [vmem:[#allocation44_spill] sm:$0xff] %v5979_v19  ;;  %v6013_v62 = vadd.f32 %v1079_v10, %v10936_v22  ;;  %v1118_v19 = vand.u32 2147483647, %v990_v24  ;;  %v6020_v30 = vadd.f32 %v1080_v46, %v10938_v50  ;;  %v10942_v10 = vld [vmem:[#allocation55_spill] sm:$0xff]  ;;  %v10944_v24 = vld [vmem:[#allocation56_spill] sm:$0xff] }
 0x126   : > { %10928 = vst [vmem:[#allocation45_spill] sm:$0xff] %v5983_v13  ;;  %v6030_v28 = vadd.f32 %v1119_v9, %v10944_v24  ;;  %v6033_v13 = vadd.f32 %v1120_v56, %v10946_v27  ;;  %v963_v9 = vsub.f32 %v832_v6, %v5445_v54  ;;  %v964_v56 = vsub.f32 %v832_v6, %v5462_v37 }
 0x127   : > { %10929 = vst [vmem:[#allocation46_spill] sm:$0xff] %v5986_v26  ;;  %v958_v26 = vsub.f32 %v828_v17, %v5442_v48  ;;  %v6027_v22 = vadd.f32 %v1118_v19, %v10942_v10  ;;  %v962_v19 = vsub.f32 %v832_v6, %v5442_v48 }
 0x128   : > { %10931 = vst [vmem:[#allocation47_spill] sm:$0xff] %v5989_v58  ;;  %v1121_v58 = vand.u32 2147483647, %v993_v11  ;;  %v961_v11 = vsub.f32 %v828_v17, %v5471_v63 }
 0x129   : > { %10933 = vst [vmem:[#allocation63_spill] sm:$0xff] %v5993_v38  ;;  %v6023_v38 = vadd.f32 %v1081_v23, %v10940_v12  ;;  %v960_v23 = vsub.f32 %v828_v17, %v5462_v37  ;;  %v1086_v50 = vand.u32 2147483647, %v958_v26  ;;  %v1091_v26 = vand.u32 2147483647, %v963_v9  ;;  %v10960_v9 = vld [vmem:[#allocation70_spill] sm:$0xff] }
 0x12a   : > { %10935 = vst [vmem:[#allocation64_spill] sm:$0xff] %v6005_v16  ;;  %v10948_v16 = vld [vmem:[#allocation58_spill] sm:$0xff]  ;;  %v1089_v24 = vand.u32 2147483647, %v961_v11 }
 0x12b   : > { %10937 = vst [vmem:[#allocation59_spill] sm:$0xff] %v6013_v62  ;;  %v959_v62 = vsub.f32 %v828_v17, %v5445_v54  ;;  %v6037_v46 = vadd.f32 %v1121_v58, %v10948_v16  ;;  %v1088_v10 = vand.u32 2147483647, %v960_v23  ;;  %v6045_v27 = vadd.f32 %v1086_v50, %v5553_v61  ;;  %v10955_v23 = vld [vmem:[#allocation74_spill] sm:$0xff] }
 0x12c   : > { %10939 = vst [vmem:[#allocation60_spill] sm:$0xff] %v6020_v30  ;;  %v965_v58 = vsub.f32 %v832_v6, %v5471_v63  ;;  %v1090_v17 = vand.u32 2147483647, %v962_v19  ;;  %v6059_v11 = vadd.f32 %v1089_v24, %v10955_v23  ;;  %v1002_v50 = vsub.f32 %v872_v49, %v5442_v48  ;;  %v6063_v6 = vld [vmem:[%s4995_s27 + $0xe8] sm:$0xff]  ;;  %v884_v24 = vpop.permute.xlu2 %883  ;;  %v10964_v23 = vld [vmem:[#allocation72_spill] sm:$0xff] }
 0x12d   : > { %10941 = vst [vmem:[#allocation61_spill] sm:$0xff] %v6023_v38  ;;  %v1087_v12 = vand.u32 2147483647, %v959_v62  ;;  %v1092_v62 = vand.u32 2147483647, %v964_v56  ;;  %1399 = vperm.xlu2 %4701, %v6063_v6   ;;  %v6070_v56 = vadd.f32 %v1091_v26, %v10960_v9  ;;  %v970_v26 = vsub.f32 %v840_v36, %v5442_v48 }
 0x12e   : > { %10943 = vst [vmem:[#allocation62_spill] sm:$0xff] %v6027_v22  ;;  %v1093_v61 = vand.u32 2147483647, %v965_v58  ;;  %v10962_v22 = vld [vmem:[#allocation71_spill] sm:$0xff]  ;;  %v6076_v58 = vpop.permute.xlu0 %851  ;;  %v971_v9 = vsub.f32 %v840_v36, %v5445_v54 }
 0x12f   : > { %10945 = vst [vmem:[#allocation55_spill] sm:$0xff] %v6030_v28  ;;  %v6049_v16 = vadd.f32 %v1087_v12, %v5555_v25  ;;  %v844_v25 = vpop.permute.xlu1 %843  ;;  %v10958_v12 = vld [vmem:[#allocation69_spill] sm:$0xff] }
 0x130   : > { %10947 = vst [vmem:[#allocation56_spill] sm:$0xff] %v6033_v13  ;;  %v10953_v13 = vld [vmem:[#allocation73_spill] sm:$0xff]  ;;  %v6067_v19 = vadd.f32 %v1090_v17, %v10958_v12  ;;  %v1130_v17 = vand.u32 2147483647, %v1002_v50 }
 0x131   : > { %10949 = vst [vmem:[#allocation57_spill] sm:$0xff] %v6037_v46  ;;  %v6052_v46 = vld [vmem:[%s4995_s27 + $0xe0] sm:$0xff]  ;;  %v6056_v28 = vadd.f32 %v1088_v10, %v10953_v13  ;;  %v6073_v13 = vadd.f32 %v1092_v62, %v10962_v22  ;;  %v1003_v10 = vsub.f32 %v872_v49, %v5445_v54  ;;  %v972_v22 = vsub.f32 %v840_v36, %v5462_v37 }
 0x132   : > { %10950 = vst [vmem:[#allocation58_spill] sm:$0xff] %v6045_v27  ;;  %1395 = vperm.xlu1 %4703, %v6052_v46  }
 0x133   : > { %10951 = vst [vmem:[#allocation107_spill] sm:$0xff] %v6049_v16  ;;  %v1005_v16 = vsub.f32 %v872_v49, %v5471_v63  ;;  %v1131_v12 = vand.u32 2147483647, %v1003_v10  ;;  %v1100_v50 = vand.u32 2147483647, %v972_v22  ;;  %v10970_v10 = vld [vmem:[#allocation67_spill] sm:$0xff]  ;;  %v1014_v22 = vsub.f32 %v884_v24, %v5442_v48 }
 0x134   : > { %10952 = vst [vmem:[#allocation108_spill] sm:$0xff] %v6052_v46  ;;  %v10972_v46 = vld [vmem:[#allocation68_spill] sm:$0xff] }
 0x135   : > { %10954 = vst [vmem:[#allocation73_spill] sm:$0xff] %v6056_v28  ;;  %v1004_v28 = vsub.f32 %v872_v49, %v5462_v37  ;;  %v1133_v27 = vand.u32 2147483647, %v1005_v16  ;;  %v1099_v49 = vand.u32 2147483647, %v971_v9  ;;  %v10974_v16 = vld [vmem:[#allocation83_spill] sm:$0xff] }
 0x136   : > { %10956 = vst [vmem:[#allocation74_spill] sm:$0xff] %v6059_v11  ;;  %v6079_v11 = vadd.f32 %v1093_v61, %v10964_v23  ;;  %v973_v61 = vsub.f32 %v840_v36, %v5471_v63  ;;  %v10968_v23 = vld [vmem:[#allocation66_spill] sm:$0xff]  ;;  %v6106_v36 = vadd.f32 %v1100_v50, %v5604_v32 }
 0x137   : > { %10957 = vst [vmem:[#allocation109_spill] sm:$0xff] %v6063_v6  ;;  %v1132_v62 = vand.u32 2147483647, %v1004_v28  ;;  %v6097_v38 = vadd.f32 %v1133_v27, %v10972_v46  ;;  %v975_v46 = vsub.f32 %v844_v25, %v5445_v54  ;;  %v976_v27 = vsub.f32 %v844_v25, %v5462_v37  ;;  %v856_v32 = vpop.permute.xlu1 %855 }
 0x138   : > { %10959 = vst [vmem:[#allocation69_spill] sm:$0xff] %v6067_v19  ;;  %v1098_v19 = vand.u32 2147483647, %v970_v26  ;;  %v1101_v28 = vand.u32 2147483647, %v973_v61  ;;  %v6123_v61 = vld [vmem:[%s4995_s27 + $0xf8] sm:$0xff] }
 0x139   : > { %10961 = vst [vmem:[#allocation70_spill] sm:$0xff] %v6070_v56  ;;  %v6094_v6 = vadd.f32 %v1132_v62, %v10970_v10  ;;  %v1015_v62 = vsub.f32 %v884_v24, %v5445_v54  ;;  %v1017_v10 = vsub.f32 %v884_v24, %v5471_v63 }
 0x13a   : > { %10963 = vst [vmem:[#allocation71_spill] sm:$0xff] %v6073_v13  ;;  %v10966_v13 = vld [vmem:[#allocation65_spill] sm:$0xff]  ;;  %v6100_v30 = vadd.f32 %v1098_v19, %v10974_v16  ;;  %v6110_v26 = vadd.f32 %v1101_v28, %v5606_v35  ;;  %v977_v19 = vsub.f32 %v844_v25, %v5471_v63  ;;  %v1016_v35 = vsub.f32 %v884_v24, %v5462_v37  ;;  %v6133_v16 = vpop.permute.xlu2 %1283 }
 0x13b   : > { %10965 = vst [vmem:[#allocation72_spill] sm:$0xff] %v6079_v11  ;;  %v6087_v56 = vadd.f32 %v1130_v17, %v10966_v13  ;;  %v6091_v11 = vadd.f32 %v1131_v12, %v10968_v23  ;;  %v6103_v13 = vadd.f32 %v1099_v49, %v5602_v43  ;;  %v4914_v17 = vmov 3   ;;  %v6116_v43 = vld [vmem:[%s4995_s27 + $0x8] sm:$0xff]  ;;  %1407 = vperm.xlu1 %4703, %v6123_v61   ;;  %v6126_v23 = vpop.permute.xlu0 %863  ;;  %v6130_v28 = vld [vmem:[%s4995_s27] sm:$0xff] }
 0x13c   : > { %10971 = vst [vmem:[#allocation67_spill] sm:$0xff] %v6094_v6  ;;  %4705 = vset.pattern.permute.xlu0 %v4914_v17  ;;  %v974_v12 = vsub.f32 %v844_v25, %v5442_v48  ;;  %4704 = vset.pattern.permute.xlu2 %v4914_v17  ;;  %v1103_v25 = vand.u32 2147483647, %v975_v46  ;;  %v1104_v49 = vand.u32 2147483647, %v976_v27  ;;  %v10985_v46 = vld [vmem:[#allocation81_spill] sm:$0xff] }
 0x13d   : > { %10967 = vst [vmem:[#allocation65_spill] sm:$0xff] %v6087_v56  ;;  %1803 = vperm.xlu0 %4705, %v6116_v43   ;;  %v1105_v50 = vand.u32 2147483647, %v977_v19  ;;  %1799 = vperm.xlu2 %4704, %v6130_v28   ;;  %v1142_v6 = vand.u32 2147483647, %v1014_v22  ;;  %v10987_v19 = vld [vmem:[#allocation82_spill] sm:$0xff] }
 0x13e   : > { %10969 = vst [vmem:[#allocation66_spill] sm:$0xff] %v6091_v11  ;;  %v1102_v9 = vand.u32 2147483647, %v974_v12  ;;  %v10981_v12 = vld [vmem:[#allocation79_spill] sm:$0xff]  ;;  %v1143_v11 = vand.u32 2147483647, %v1015_v62  ;;  %v6142_v27 = vadd.f32 %v1104_v49, %v10985_v46  ;;  %v983_v49 = vsub.f32 %v6076_v58, %v5445_v54 }
 0x13f   : > { %10973 = vst [vmem:[#allocation68_spill] sm:$0xff] %v6097_v38  ;;  %v1144_v56 = vand.u32 2147483647, %v1016_v35  ;;  %v6145_v24 = vadd.f32 %v1105_v50, %v10987_v19  ;;  %v10993_v22 = vld [vmem:[#allocation77_spill] sm:$0xff]  ;;  %v10995_v35 = vld [vmem:[#allocation78_spill] sm:$0xff]  ;;  %v988_v50 = vsub.f32 %v856_v32, %v5462_v37  ;;  %v989_v46 = vsub.f32 %v856_v32, %v5471_v63  ;;  %v6172_v19 = vld [vmem:[%s4995_s27 + $0x30] sm:$0xff] }
 0x140   : > { %10975 = vst [vmem:[#allocation83_spill] sm:$0xff] %v6100_v30  ;;  %v6136_v38 = vadd.f32 %v1102_v9, %v10981_v12  ;;  %v10989_v30 = vld [vmem:[#allocation75_spill] sm:$0xff] }
 0x141   : > { %10976 = vst [vmem:[#allocation110_spill] sm:$0xff] %v6103_v13  ;;  %v1145_v13 = vand.u32 2147483647, %v1017_v10  ;;  %v6154_v62 = vadd.f32 %v1144_v56, %v10993_v22  ;;  %v987_v56 = vsub.f32 %v856_v32, %v5445_v54  ;;  %v1111_v10 = vand.u32 2147483647, %v983_v49  ;;  %v6175_v22 = vpop.permute.xlu1 %867 }
 0x142   : > { %10977 = vst [vmem:[#allocation111_spill] sm:$0xff] %v6106_v36 }
 0x143   : > { %10978 = vst [vmem:[#allocation112_spill] sm:$0xff] %v6110_v26  ;;  %v10983_v26 = vld [vmem:[#allocation80_spill] sm:$0xff]  ;;  %4706 = vset.pattern.permute.xlu1 %v4914_v17  ;;  %v6180_v49 = vpop.permute.xlu0 %875  ;;  %v6199_v17 = vpop.permute.xlu2 %1295 }
 0x144   : > { %10979 = vst [vmem:[#allocation113_spill] sm:$0xff] %v6123_v61  ;;  %v6139_v36 = vadd.f32 %v1103_v25, %v10983_v26  ;;  %v10991_v61 = vld [vmem:[#allocation76_spill] sm:$0xff]  ;;  %v982_v26 = vsub.f32 %v6076_v58, %v5442_v48  ;;  %v6159_v25 = vadd.f32 %v1145_v13, %v10995_v35 }
 0x145   : > { %10980 = vst [vmem:[#allocation114_spill] sm:$0xff] %v6130_v28  ;;  %v6148_v28 = vadd.f32 %v1142_v6, %v10989_v30  ;;  %v6151_v9 = vadd.f32 %v1143_v11, %v10991_v61  ;;  %v984_v30 = vsub.f32 %v6076_v58, %v5462_v37  ;;  %v985_v6 = vsub.f32 %v6076_v58, %v5471_v63  ;;  %v10997_v58 = vld [vmem:[#allocation88_spill] sm:$0xff] }
 0x146   : > { %10982 = vst [vmem:[#allocation79_spill] sm:$0xff] %v6136_v38  ;;  %v1110_v11 = vand.u32 2147483647, %v982_v26  ;;  %v986_v61 = vsub.f32 %v856_v32, %v5442_v48  ;;  %1823 = vperm.xlu0 %4705, %v6172_v19   ;;  %v11001_v32 = vld [vmem:[#allocation90_spill] sm:$0xff] }
 0x147   : > { %10984 = vst [vmem:[#allocation80_spill] sm:$0xff] %v6139_v36  ;;  %v1112_v12 = vand.u32 2147483647, %v984_v30  ;;  %v1113_v13 = vand.u32 2147483647, %v985_v6  ;;  %v10999_v30 = vld [vmem:[#allocation89_spill] sm:$0xff] }
 0x148   : > { %10986 = vst [vmem:[#allocation81_spill] sm:$0xff] %v6142_v27  ;;  %v6178_v26 = vadd.f32 %v1110_v11, %v10997_v58  ;;  %v1114_v35 = vand.u32 2147483647, %v986_v61  ;;  %v6183_v6 = vadd.f32 %v1111_v10, %v10999_v30  ;;  %v1117_v27 = vand.u32 2147483647, %v989_v46  ;;  %v6192_v36 = vld [vmem:[%s4995_s27 + $0x10] sm:$0xff] }
 0x149   : > { %10988 = vst [vmem:[#allocation82_spill] sm:$0xff] %v6145_v24  ;;  %1807 = vperm.xlu1 %4706, %v6192_v36   ;;  %v6196_v11 = vld [vmem:[%s4995_s27 + $0x18] sm:$0xff]  ;;  %v11011_v46 = vld [vmem:[#allocation87_spill] sm:$0xff]  ;;  %v995_v30 = vsub.f32 %v6126_v23, %v5445_v54 }
 0x14a   : > { %10990 = vst [vmem:[#allocation75_spill] sm:$0xff] %v6148_v28  ;;  %v11003_v28 = vld [vmem:[#allocation91_spill] sm:$0xff]  ;;  %1811 = vperm.xlu2 %4704, %v6196_v11   ;;  %v11005_v61 = vld [vmem:[#allocation84_spill] sm:$0xff]  ;;  %v6213_v58 = vadd.f32 %v1117_v27, %v11011_v46  ;;  %v6232_v27 = vld [vmem:[%s10672_s1 + $0x8] sm:$0xff] }
 0x14b   : > { %10992 = vst [vmem:[#allocation76_spill] sm:$0xff] %v6151_v9  ;;  %v6186_v9 = vadd.f32 %v1112_v12, %v11001_v32  ;;  %v6189_v24 = vadd.f32 %v1113_v13, %v11003_v28  ;;  %v11009_v12 = vld [vmem:[#allocation86_spill] sm:$0xff]  ;;  %v994_v13 = vsub.f32 %v6126_v23, %v5442_v48  ;;  %v996_v32 = vsub.f32 %v6126_v23, %v5462_v37 }
 0x14c   : > { %10994 = vst [vmem:[#allocation77_spill] sm:$0xff] %v6154_v62  ;;  %v1116_v62 = vand.u32 2147483647, %v988_v50  ;;  %v11007_v50 = vld [vmem:[#allocation85_spill] sm:$0xff] }
 0x14d   : > { %10996 = vst [vmem:[#allocation78_spill] sm:$0xff] %v6159_v25  ;;  %v1115_v25 = vand.u32 2147483647, %v987_v56  ;;  %v6202_v56 = vadd.f32 %v1114_v35, %v11005_v61  ;;  %v997_v35 = vsub.f32 %v6126_v23, %v5471_v63  ;;  %v6240_v23 = vld [vmem:[%s10672_s1 + $0x10] sm:$0xff]  ;;  %v1124_v46 = vand.u32 2147483647, %v996_v32 }
 0x14e   : > { %10998 = vst [vmem:[#allocation88_spill] sm:$0xff] %v6178_v26  ;;  %v6208_v28 = vadd.f32 %v1116_v62, %v11009_v12  ;;  %v6224_v62 = vld [vmem:[%s10672_s1] sm:$0xff]  ;;  %v6243_v12 = vperm.slane %v6240_v23, 2 }
 0x14f   : > { %11000 = vst [vmem:[#allocation89_spill] sm:$0xff] %v6183_v6  ;;  %v6205_v10 = vadd.f32 %v1115_v25, %v11007_v50  ;;  %v1122_v25 = vand.u32 2147483647, %v994_v13  ;;  %v6227_v61 = vperm.slane %v6224_v62, 2  ;;  %v6235_v50 = vperm.slane %v6232_v27, 2  ;;  %v6290_v6 = vld [vmem:[%s4995_s27 + $0x20] sm:$0xff] }
 0x150   : > { %11002 = vst [vmem:[#allocation90_spill] sm:$0xff] %v6186_v9  ;;  %v1123_v13 = vand.u32 2147483647, %v995_v30  ;;  %v6277_v9 = vpop.permute.xlu1 %879 }
 0x151   : > { %11004 = vst [vmem:[#allocation91_spill] sm:$0xff] %v6189_v24  ;;  %v1414_v24 = vsub.f32 %v6133_v16, %v6227_v61  ;;  %v1415_v30 = vsub.f32 %v6133_v16, %v6235_v50  ;;  %1815 = vperm.xlu1 %4706, %v6290_v6  }
 0x152   : > { %11006 = vst [vmem:[#allocation84_spill] sm:$0xff] %v6202_v56  ;;  %v6253_v56 = vld [vmem:[%s10672_s1 + $0x18] sm:$0xff]  ;;  %v6263_v32 = vadd.f32 %v1123_v13, %v5666_v41 }
 0x153   : > { %11008 = vst [vmem:[#allocation85_spill] sm:$0xff] %v6205_v10  ;;  %v6248_v10 = vadd.f32 %v1122_v25, %v5660_v21  ;;  %v6256_v38 = vperm.slane %v6253_v56, 2  ;;  %v6266_v21 = vadd.f32 %v1124_v46, %v5669_v60  ;;  %v1416_v25 = vsub.f32 %v6133_v16, %v6243_v12 }
 0x154   : > { %11010 = vst [vmem:[#allocation86_spill] sm:$0xff] %v6208_v28  ;;  %v998_v28 = vsub.f32 %v6175_v22, %v5442_v48  ;;  %v1542_v13 = vand.u32 2147483647, %v1414_v24  ;;  %v999_v60 = vsub.f32 %v6175_v22, %v5445_v54  ;;  %v1000_v46 = vsub.f32 %v6175_v22, %v5462_v37  ;;  %v6297_v24 = vpop.permute.xlu2 %1303 }
 0x155   : > { %11012 = vst [vmem:[#allocation87_spill] sm:$0xff] %v6213_v58  ;;  %v1125_v58 = vand.u32 2147483647, %v997_v35  ;;  %v1417_v41 = vsub.f32 %v6133_v16, %v6256_v38  ;;  %v6294_v16 = vld [vmem:[%s4995_s27 + $0x28] sm:$0xff] }
 0x156   : > { %11013 = vst [vmem:[#allocation115_spill] sm:$0xff] %v6240_v23  ;;  %1819 = vperm.xlu2 %4704, %v6294_v16  }
 0x157   : > { %11014 = vst [vmem:[#allocation116_spill] sm:$0xff] %v6248_v10  ;;  %v6269_v35 = vadd.f32 %v1125_v58, %v5671_v42  ;;  %v6274_v10 = vld [vmem:[%s4995_s27 + $0x48] sm:$0xff]  ;;  %v6283_v42 = vpop.permute.xlu0 %887  ;;  %v1544_v58 = vand.u32 2147483647, %v1416_v25  ;;  %v6300_v25 = vadd.f32 %v1542_v13, %v5640_v52  ;;  %v1007_v52 = vsub.f32 %v6180_v49, %v5445_v54 }
 0x158   : > { %11015 = vst [vmem:[#allocation117_spill] sm:$0xff] %v6253_v56  ;;  %1835 = vperm.xlu0 %4705, %v6274_v10   ;;  %v1127_v56 = vand.u32 2147483647, %v999_v60  ;;  %v1427_v60 = vsub.f32 %v6199_v17, %v6235_v50 }
 0x159   : > { %11016 = vst [vmem:[#allocation118_spill] sm:$0xff] %v6263_v32  ;;  %v1543_v32 = vand.u32 2147483647, %v1415_v30  ;;  %v1545_v30 = vand.u32 2147483647, %v1417_v41 }
 0x15a   : > { %11017 = vst [vmem:[#allocation119_spill] sm:$0xff] %v6266_v21  ;;  %v1126_v21 = vand.u32 2147483647, %v998_v28  ;;  %v1128_v28 = vand.u32 2147483647, %v1000_v46  ;;  %v6315_v41 = vadd.f32 %v1127_v56, %v5649_v33 }
 0x15b   : > { %11018 = vst [vmem:[#allocation120_spill] sm:$0xff] %v6269_v35  ;;  %v1001_v35 = vsub.f32 %v6175_v22, %v5471_v63  ;;  %v6303_v26 = vadd.f32 %v1543_v32, %v5643_v3  ;;  %v6306_v22 = vadd.f32 %v1544_v58, %v5654_v44  ;;  %v1006_v3 = vsub.f32 %v6180_v49, %v5442_v48  ;;  %v11027_v44 = vld [vmem:[#allocation92_spill] sm:$0xff] }
 0x15c   : > { %11019 = vst [vmem:[#allocation121_spill] sm:$0xff] %v6290_v6  ;;  %v6309_v6 = vadd.f32 %v1126_v21, %v5647_v39  ;;  %v6322_v32 = vadd.f32 %v1128_v28, %v11027_v44  ;;  %v1008_v39 = vsub.f32 %v6180_v49, %v5462_v37  ;;  %v1135_v56 = vand.u32 2147483647, %v1007_v52  ;;  %v6340_v28 = vld [vmem:[%s4995_s27 + $0x60] sm:$0xff] }
 0x15d   : > { %11020 = vst [vmem:[#allocation122_spill] sm:$0xff] %v6294_v16  ;;  %v1129_v23 = vand.u32 2147483647, %v1001_v35  ;;  %v6312_v16 = vadd.f32 %v1545_v30, %v5664_v5  ;;  %v11029_v35 = vld [vmem:[#allocation93_spill] sm:$0xff]  ;;  %v1009_v5 = vsub.f32 %v6180_v49, %v5471_v63  ;;  %v1134_v33 = vand.u32 2147483647, %v1006_v3  ;;  %v6343_v49 = vpop.permute.xlu1 %891 }
 0x15e   : > { %11021 = vst [vmem:[#allocation123_spill] sm:$0xff] %v6300_v25  ;;  %v1426_v21 = vsub.f32 %v6199_v17, %v6227_v61  ;;  %v1136_v58 = vand.u32 2147483647, %v1008_v39  ;;  %v1429_v30 = vsub.f32 %v6199_v17, %v6256_v38  ;;  %v6349_v52 = vadd.f32 %v1135_v56, %v5708_v29  ;;  %v11035_v29 = vld [vmem:[#allocation94_spill] sm:$0xff] }
 0x15f   : > { %11022 = vst [vmem:[#allocation124_spill] sm:$0xff] %v6303_v26  ;;  %v6325_v13 = vadd.f32 %v1129_v23, %v11029_v35  ;;  %v1137_v46 = vand.u32 2147483647, %v1009_v5  ;;  %v1428_v23 = vsub.f32 %v6199_v17, %v6243_v12  ;;  %v6346_v3 = vadd.f32 %v1134_v33, %v5706_v40  ;;  %v6365_v40 = vpop.permute.xlu2 %1315  ;;  %v11060_v26 = vld [vmem:[#allocation100_spill] sm:$0xff] }
 0x160   : > { %11023 = vst [vmem:[#allocation125_spill] sm:$0xff] %v6306_v22  ;;  %1847 = vperm.xlu0 %4705, %v6340_v28   ;;  %v1554_v44 = vand.u32 2147483647, %v1426_v21  ;;  %v1555_v35 = vand.u32 2147483647, %v1427_v60  ;;  %v6352_v39 = vadd.f32 %v1136_v58, %v5712_v0  ;;  %v1011_v56 = vsub.f32 %v6277_v9, %v5445_v54  ;;  %v6377_v21 = vpop.permute.xlu0 %1287  ;;  %v11038_v60 = vld [vmem:[#allocation95_spill] sm:$0xff] }
 0x161   : > { %11024 = vst [vmem:[#allocation126_spill] sm:$0xff] %v6309_v6  ;;  %v6355_v5 = vadd.f32 %v1137_v46, %v5714_v4  ;;  %v1556_v17 = vand.u32 2147483647, %v1428_v23  ;;  %v1010_v4 = vsub.f32 %v6277_v9, %v5442_v48  ;;  %v1012_v23 = vsub.f32 %v6277_v9, %v5462_v37 }
 0x162   : > { %11025 = vst [vmem:[#allocation127_spill] sm:$0xff] %v6312_v16  ;;  %v6368_v33 = vadd.f32 %v1554_v44, %v11035_v29  ;;  %v6371_v0 = vadd.f32 %v1555_v35, %v5685_v31  ;;  %v1013_v31 = vsub.f32 %v6277_v9, %v5471_v63  ;;  %v1139_v44 = vand.u32 2147483647, %v1011_v56  ;;  %v6410_v16 = vld [vmem:[%s4995_s27 + $0x78] sm:$0xff] }
 0x163   : > { %11026 = vst [vmem:[#allocation128_spill] sm:$0xff] %v6315_v41  ;;  %v6362_v41 = vld [vmem:[%s4995_s27 + $0x40] sm:$0xff]  ;;  %v6380_v58 = vadd.f32 %v1556_v17, %v11038_v60  ;;  %v1018_v35 = vsub.f32 %v6283_v42, %v5442_v48  ;;  %v1019_v29 = vsub.f32 %v6283_v42, %v5445_v54  ;;  %v1140_v17 = vand.u32 2147483647, %v1012_v23 }
 0x164   : > { %11028 = vst [vmem:[#allocation92_spill] sm:$0xff] %v6322_v32  ;;  %v6358_v32 = vld [vmem:[%s4995_s27 + $0x38] sm:$0xff]  ;;  %1831 = vperm.xlu2 %4704, %v6362_v41   ;;  %v1141_v60 = vand.u32 2147483647, %v1013_v31  ;;  %v6401_v9 = vadd.f32 %v1139_v44, %v5694_v45  ;;  %v11045_v23 = vld [vmem:[#allocation97_spill] sm:$0xff] }
 0x165   : > { %11030 = vst [vmem:[#allocation93_spill] sm:$0xff] %v6325_v13  ;;  %v1557_v13 = vand.u32 2147483647, %v1429_v30  ;;  %1827 = vperm.xlu1 %4706, %v6358_v32   ;;  %v1138_v30 = vand.u32 2147483647, %v1010_v4 }
 0x166   : > { %11031 = vst [vmem:[#allocation129_spill] sm:$0xff] %v6346_v3  ;;  %v1146_v4 = vand.u32 2147483647, %v1018_v35  ;;  %v1147_v56 = vand.u32 2147483647, %v1019_v29  ;;  %v6407_v31 = vadd.f32 %v1141_v60, %v11045_v23  ;;  %v11050_v35 = vld [vmem:[#allocation106_spill] sm:$0xff]  ;;  %v1024_v23 = vsub.f32 %v6343_v49, %v5462_v37 }
 0x167   : > { %11032 = vst [vmem:[#allocation130_spill] sm:$0xff] %v6349_v52  ;;  %v6383_v46 = vadd.f32 %v1557_v13, %v5699_v51  ;;  %v1020_v51 = vsub.f32 %v6283_v42, %v5462_v37  ;;  %v1021_v13 = vsub.f32 %v6283_v42, %v5471_v63  ;;  %v1434_v42 = vsub.f32 %v6297_v24, %v6227_v61  ;;  %v6439_v60 = vpop.permute.xlu2 %1327  ;;  %v11130_v52 = vld [vmem:[#allocation39_spill] sm:$0xff] }
 0x168   : > { %11033 = vst [vmem:[#allocation131_spill] sm:$0xff] %v6352_v39  ;;  %1859 = vperm.xlu0 %4705, %v6410_v16   ;;  %v6417_v45 = vadd.f32 %v1147_v56, %v5751_v8  ;;  %v1437_v8 = vsub.f32 %v6297_v24, %v6256_v38  ;;  %v1152_v22 = vand.u32 2147483647, %v1024_v23 }
 0x169   : > { %11034 = vst [vmem:[#allocation132_spill] sm:$0xff] %v6355_v5  ;;  %v1149_v6 = vand.u32 2147483647, %v1021_v13 }
 0x16a   : > { %11036 = vst [vmem:[#allocation94_spill] sm:$0xff] %v6368_v33  ;;  %v1148_v33 = vand.u32 2147483647, %v1020_v51  ;;  %v1562_v51 = vand.u32 2147483647, %v1434_v42  ;;  %v1025_v42 = vsub.f32 %v6343_v49, %v5471_v63  ;;  %v11062_v63 = vld [vmem:[#allocation101_spill] sm:$0xff] }
 0x16b   : > { %11037 = vst [vmem:[#allocation133_spill] sm:$0xff] %v6371_v0  ;;  %v6429_v29 = vadd.f32 %v1149_v6, %v11050_v35  ;;  %v1023_v6 = vsub.f32 %v6343_v49, %v5445_v54  ;;  %v1565_v56 = vand.u32 2147483647, %v1437_v8 }
 0x16c   : > { %11039 = vst [vmem:[#allocation95_spill] sm:$0xff] %v6380_v58  ;;  %v11043_v58 = vld [vmem:[#allocation96_spill] sm:$0xff]  ;;  %v6426_v44 = vadd.f32 %v1148_v33, %v5753_v1  ;;  %v1022_v1 = vsub.f32 %v6343_v49, %v5442_v48  ;;  %v11054_v48 = vld [vmem:[#allocation99_spill] sm:$0xff]  ;;  %v1153_v37 = vand.u32 2147483647, %v1025_v42  ;;  %v1419_v42 = vsub.f32 %v6377_v21, %v6235_v50 }
 0x16d   : > { %11040 = vst [vmem:[#allocation134_spill] sm:$0xff] %v6383_v46  ;;  %v6398_v46 = vadd.f32 %v1138_v30, %v5692_v2  ;;  %v6404_v0 = vadd.f32 %v1140_v17, %v11043_v58  ;;  %v6414_v2 = vadd.f32 %v1146_v4, %v5745_v18  ;;  %v1435_v58 = vsub.f32 %v6297_v24, %v6235_v50  ;;  %v6423_v30 = vpop.permute.xlu1 %1291  ;;  %v6436_v17 = vld [vmem:[%s4995_s27 + $0x50] sm:$0xff]  ;;  %v6446_v33 = vld [vmem:[%s4995_s27 + $0x58] sm:$0xff]  ;;  %v6449_v4 = vpop.permute.xlu0 %1307 }
 0x16e   : > { %11042 = vst [vmem:[#allocation136_spill] sm:$0xff] %v6401_v9  ;;  %v1436_v18 = vsub.f32 %v6297_v24, %v6243_v12  ;;  %1839 = vperm.xlu1 %4706, %v6436_v17   ;;  %1843 = vperm.xlu2 %4704, %v6446_v33   ;;  %v11056_v9 = vld [vmem:[#allocation103_spill] sm:$0xff] }
 0x16f   : > { %11041 = vst [vmem:[#allocation135_spill] sm:$0xff] %v6398_v46  ;;  %v1563_v13 = vand.u32 2147483647, %v1435_v58  ;;  %v11052_v58 = vld [vmem:[#allocation98_spill] sm:$0xff] }
 0x170   : > { %11044 = vst [vmem:[#allocation96_spill] sm:$0xff] %v6404_v0  ;;  %v1564_v24 = vand.u32 2147483647, %v1436_v18  ;;  %v6456_v35 = vadd.f32 %v1562_v51, %v11052_v58  ;;  %v1151_v0 = vand.u32 2147483647, %v1023_v6  ;;  %v11058_v18 = vld [vmem:[#allocation105_spill] sm:$0xff]  ;;  %v1446_v51 = vsub.f32 %v6365_v40, %v6227_v61 }
 0x171   : > { %11046 = vst [vmem:[#allocation97_spill] sm:$0xff] %v6407_v31  ;;  %v6459_v54 = vadd.f32 %v1563_v13, %v11054_v48  ;;  %v1150_v31 = vand.u32 2147483647, %v1022_v1  ;;  %v6465_v8 = vadd.f32 %v1565_v56, %v11058_v18  ;;  %v1447_v13 = vsub.f32 %v6365_v40, %v6235_v50  ;;  %v11064_v1 = vld [vmem:[#allocation102_spill] sm:$0xff]  ;;  %v11066_v6 = vld [vmem:[#allocation104_spill] sm:$0xff] }
 0x172   : > { %11047 = vst [vmem:[#allocation137_spill] sm:$0xff] %v6414_v2  ;;  %v6462_v46 = vadd.f32 %v1564_v24, %v11056_v9  ;;  %v6471_v49 = vadd.f32 %v1151_v0, %v11062_v63  ;;  %v6478_v9 = vadd.f32 %v1152_v22, %v11064_v1  ;;  %v6481_v24 = vadd.f32 %v1153_v37, %v11066_v6  ;;  %v6502_v63 = vld [vmem:[%s4995_s27 + $0x68] sm:$0xff]  ;;  %v11071_v6 = vld [vmem:[#allocation5_spill] sm:$0xff] }
 0x173   : > { %11048 = vst [vmem:[#allocation138_spill] sm:$0xff] %v6417_v45  ;;  %v6468_v25 = vadd.f32 %v1150_v31, %v11060_v26  ;;  %v1448_v26 = vsub.f32 %v6365_v40, %v6243_v12  ;;  %v1449_v0 = vsub.f32 %v6365_v40, %v6256_v38  ;;  %v6488_v31 = vld [vmem:[%s4995_s27 + $0x90] sm:$0xff]  ;;  %v1574_v56 = vand.u32 2147483647, %v1446_v51  ;;  %v6505_v51 = vpop.permute.xlu2 %1339 }
 0x174   : > { %11049 = vst [vmem:[#allocation139_spill] sm:$0xff] %v6426_v44  ;;  %1871 = vperm.xlu0 %4705, %v6488_v31   ;;  %v1575_v23 = vand.u32 2147483647, %v1447_v13  ;;  %v1418_v22 = vsub.f32 %v6377_v21, %v6227_v61  ;;  %v1420_v40 = vsub.f32 %v6377_v21, %v6243_v12  ;;  %v1421_v37 = vsub.f32 %v6377_v21, %v6256_v38  ;;  %v11069_v13 = vld [vmem:[#allocation17_spill] sm:$0xff]  ;;  %v11074_v21 = vld [vmem:[#allocation18_spill] sm:$0xff] }
 0x175   : > { %11051 = vst [vmem:[#allocation106_spill] sm:$0xff] %v6429_v29  ;;  %v6495_v58 = vpop.permute.xlu1 %1299  ;;  %v1576_v48 = vand.u32 2147483647, %v1448_v26  ;;  %v1577_v18 = vand.u32 2147483647, %v1449_v0  ;;  %v6508_v1 = vadd.f32 %v1574_v56, %v11069_v13  ;;  %v11108_v29 = vld [vmem:[#allocation11_spill] sm:$0xff] }
 0x176   : > { %11053 = vst [vmem:[#allocation98_spill] sm:$0xff] %v6456_v35  ;;  %1851 = vperm.xlu1 %4706, %v6502_v63   ;;  %v1546_v26 = vand.u32 2147483647, %v1418_v22  ;;  %v1547_v0 = vand.u32 2147483647, %v1419_v42  ;;  %v1422_v22 = vsub.f32 %v6423_v30, %v6227_v61  ;;  %v1423_v42 = vsub.f32 %v6423_v30, %v6235_v50 }
 0x177   : > { %11055 = vst [vmem:[#allocation99_spill] sm:$0xff] %v6459_v54  ;;  %v1548_v54 = vand.u32 2147483647, %v1420_v40  ;;  %v1549_v56 = vand.u32 2147483647, %v1421_v37  ;;  %v1425_v40 = vsub.f32 %v6423_v30, %v6256_v38 }
 0x178   : > { %11057 = vst [vmem:[#allocation103_spill] sm:$0xff] %v6462_v46  ;;  %v6526_v13 = vadd.f32 %v1546_v26, %v5814_v14  ;;  %v1424_v14 = vsub.f32 %v6423_v30, %v6243_v12  ;;  %v1551_v37 = vand.u32 2147483647, %v1423_v42  ;;  %v1459_v26 = vsub.f32 %v6439_v60, %v6235_v50  ;;  %v11084_v30 = vld [vmem:[#allocation20_spill] sm:$0xff]  ;;  %v11086_v42 = vld [vmem:[#allocation10_spill] sm:$0xff] }
 0x179   : > { %11059 = vst [vmem:[#allocation105_spill] sm:$0xff] %v6465_v8  ;;  %v11076_v8 = vld [vmem:[#allocation19_spill] sm:$0xff] }
 0x17a   : > { %11061 = vst [vmem:[#allocation100_spill] sm:$0xff] %v6468_v25  ;;  %v6520_v25 = vadd.f32 %v1576_v48, %v11074_v21  ;;  %v6523_v46 = vadd.f32 %v1577_v18, %v11076_v8  ;;  %v6536_v48 = vadd.f32 %v1548_v54, %v5821_v53  ;;  %v11081_v8 = vld [vmem:[#allocation23_spill] sm:$0xff]  ;;  %v1552_v53 = vand.u32 2147483647, %v1424_v14 }
 0x17b   : > { %11063 = vst [vmem:[#allocation101_spill] sm:$0xff] %v6471_v49  ;;  %v6517_v49 = vpop.permute.xlu0 %1319  ;;  %v6539_v18 = vadd.f32 %v1549_v56, %v11081_v8  ;;  %v1553_v54 = vand.u32 2147483647, %v1425_v40  ;;  %v1461_v21 = vsub.f32 %v6439_v60, %v6256_v38  ;;  %v6554_v56 = vld [vmem:[%s4995_s27 + $0xa8] sm:$0xff]  ;;  %v6561_v8 = vadd.f32 %v1551_v37, %v11086_v42  ;;  %v11093_v37 = vld [vmem:[#allocation27_spill] sm:$0xff] }
 0x17c   : > { %11065 = vst [vmem:[#allocation102_spill] sm:$0xff] %v6478_v9  ;;  %v6514_v9 = vld [vmem:[%s4995_s27 + $0x70] sm:$0xff]  ;;  %1883 = vperm.xlu0 %4705, %v6554_v56   ;;  %v1587_v14 = vand.u32 2147483647, %v1459_v26 }
 0x17d   : > { %11067 = vst [vmem:[#allocation104_spill] sm:$0xff] %v6481_v24  ;;  %v6511_v24 = vadd.f32 %v1575_v23, %v11071_v6  ;;  %1855 = vperm.xlu2 %4704, %v6514_v9   ;;  %v6529_v23 = vadd.f32 %v1547_v0, %v5818_v47  ;;  %v1550_v47 = vand.u32 2147483647, %v1422_v22  ;;  %v1458_v6 = vsub.f32 %v6439_v60, %v6227_v61  ;;  %v6563_v40 = vpop.permute.xlu1 %1311 }
 0x17e   : > { %11068 = vst [vmem:[#allocation140_spill] sm:$0xff] %v6502_v63  ;;  %v1460_v0 = vsub.f32 %v6439_v60, %v6243_v12 }
 0x17f   : > { %11070 = vst [vmem:[#allocation17_spill] sm:$0xff] %v6508_v1  ;;  %v6558_v22 = vadd.f32 %v1550_v47, %v11084_v30  ;;  %v11090_v1 = vld [vmem:[#allocation26_spill] sm:$0xff]  ;;  %v6575_v47 = vpop.permute.xlu2 %1351 }
 0x180   : > { %11072 = vst [vmem:[#allocation5_spill] sm:$0xff] %v6511_v24  ;;  %v6569_v60 = vadd.f32 %v1553_v54, %v11090_v1  ;;  %v1588_v35 = vand.u32 2147483647, %v1460_v0  ;;  %v1439_v1 = vsub.f32 %v6449_v4, %v6235_v50  ;;  %v11098_v0 = vld [vmem:[#allocation21_spill] sm:$0xff] }
 0x181   : > { %11073 = vst [vmem:[#allocation141_spill] sm:$0xff] %v6514_v9  ;;  %v11141_v9 = vld [vmem:[#allocation59_spill] sm:$0xff] }
 0x182   : > { %11075 = vst [vmem:[#allocation18_spill] sm:$0xff] %v6520_v25  ;;  %v11088_v25 = vld [vmem:[#allocation25_spill] sm:$0xff] }
 0x183   : > { %11077 = vst [vmem:[#allocation19_spill] sm:$0xff] %v6523_v46  ;;  %v1586_v46 = vand.u32 2147483647, %v1458_v6  ;;  %v6566_v24 = vadd.f32 %v1552_v53, %v11088_v25  ;;  %v11095_v6 = vld [vmem:[#allocation28_spill] sm:$0xff]  ;;  %v1438_v25 = vsub.f32 %v6449_v4, %v6227_v61  ;;  %v6588_v53 = vld [vmem:[%s4995_s27 + $0x88] sm:$0xff]  ;;  %v6591_v54 = vpop.permute.xlu0 %1331 }
 0x184   : > { %11078 = vst [vmem:[#allocation142_spill] sm:$0xff] %v6526_v13  ;;  %v6581_v26 = vadd.f32 %v1587_v14, %v11095_v6  ;;  %v1440_v14 = vsub.f32 %v6449_v4, %v6243_v12  ;;  %1895 = vperm.xlu0 %4705, %v5913_v57  }
 0x185   : > { %11079 = vst [vmem:[#allocation143_spill] sm:$0xff] %v6529_v23  ;;  %v6578_v30 = vadd.f32 %v1586_v46, %v11093_v37  ;;  %1867 = vperm.xlu2 %4704, %v6588_v53   ;;  %v11100_v46 = vld [vmem:[#allocation22_spill] sm:$0xff]  ;;  %v1441_v37 = vsub.f32 %v6449_v4, %v6256_v38  ;;  %v6603_v6 = vand.u32 2147483647, %v1438_v25  ;;  %v1433_v4 = vsub.f32 %v6495_v58, %v6256_v38  ;;  %v6634_v13 = vpop.permute.xlu1 %1323 }
 0x186   : > { %11080 = vst [vmem:[#allocation144_spill] sm:$0xff] %v6536_v48  ;;  %v6572_v48 = vld [vmem:[%s4995_s27 + $0x80] sm:$0xff] }
 0x187   : > { %11082 = vst [vmem:[#allocation23_spill] sm:$0xff] %v6539_v18  ;;  %v1589_v18 = vand.u32 2147483647, %v1461_v21  ;;  %1863 = vperm.xlu1 %4706, %v6572_v48   ;;  %v6594_v21 = vadd.f32 %v1588_v35, %v11098_v0  ;;  %v1431_v35 = vsub.f32 %v6495_v58, %v6235_v50  ;;  %v6611_v0 = vand.u32 2147483647, %v1440_v14  ;;  %v6643_v57 = vpop.permute.xlu2 %1363 }
 0x188   : > { %11083 = vst [vmem:[#allocation145_spill] sm:$0xff] %v6554_v56  ;;  %v1472_v14 = vsub.f32 %v6505_v51, %v6243_v12  ;;  %v1495_v2 = vsub.f32 %v6643_v57, %v6235_v50 }
 0x189   : > { %11085 = vst [vmem:[#allocation20_spill] sm:$0xff] %v6558_v22  ;;  %v6597_v42 = vadd.f32 %v1589_v18, %v11100_v46  ;;  %v6613_v18 = vand.u32 2147483647, %v1441_v37  ;;  %v1432_v46 = vsub.f32 %v6495_v58, %v6243_v12  ;;  %v1473_v37 = vsub.f32 %v6505_v51, %v6256_v38 }
 0x18a   : > { %11087 = vst [vmem:[#allocation10_spill] sm:$0xff] %v6561_v8  ;;  %v11102_v8 = vld [vmem:[#allocation7_spill] sm:$0xff]  ;;  %v1600_v45 = vand.u32 2147483647, %v1472_v14 }
 0x18b   : > { %11089 = vst [vmem:[#allocation25_spill] sm:$0xff] %v6566_v24  ;;  %v1561_v24 = vand.u32 2147483647, %v1433_v4 }
 0x18c   : > { %11091 = vst [vmem:[#allocation26_spill] sm:$0xff] %v6569_v60  ;;  %v1560_v60 = vand.u32 2147483647, %v1432_v46  ;;  %v11106_v46 = vld [vmem:[#allocation6_spill] sm:$0xff] }
 0x18d   : > { %11092 = vst [vmem:[#allocation146_spill] sm:$0xff] %v6572_v48  ;;  %v6640_v44 = vadd.f32 %v1561_v24, %v11108_v29  ;;  %1879 = vperm.xlu2 %4704, %v5899_v59   ;;  %v6656_v29 = vpop.permute.xlu0 %1343  ;;  %v11113_v24 = vld [vmem:[#allocation34_spill] sm:$0xff]  ;;  %v1442_v59 = vsub.f32 %v6563_v40, %v6227_v61 }
 0x18e   : > { %11094 = vst [vmem:[#allocation27_spill] sm:$0xff] %v6578_v30  ;;  %v1430_v30 = vsub.f32 %v6495_v58, %v6227_v61  ;;  %v6637_v4 = vadd.f32 %v1560_v60, %v11106_v46  ;;  %v1451_v60 = vsub.f32 %v6517_v49, %v6235_v50 }
 0x18f   : > { %11096 = vst [vmem:[#allocation28_spill] sm:$0xff] %v6581_v26  ;;  %v6605_v26 = vand.u32 2147483647, %v1439_v1  ;;  %v1470_v1 = vsub.f32 %v6505_v51, %v6227_v61  ;;  %1875 = vperm.xlu1 %4706, %v5888_v15   ;;  %v6659_v15 = vadd.f32 %v1600_v45, %v11113_v24  ;;  %v1443_v45 = vsub.f32 %v6563_v40, %v6235_v50 }
 0x190   : > { %11097 = vst [vmem:[#allocation147_spill] sm:$0xff] %v6588_v53  ;;  %v1558_v25 = vand.u32 2147483647, %v1430_v30  ;;  %v11104_v30 = vld [vmem:[#allocation24_spill] sm:$0xff]  ;;  %v1483_v24 = vsub.f32 %v6575_v47, %v6235_v50 }
 0x191   : > { %11099 = vst [vmem:[#allocation21_spill] sm:$0xff] %v6594_v21  ;;  %v1471_v21 = vsub.f32 %v6505_v51, %v6235_v50  ;;  %v1598_v22 = vand.u32 2147483647, %v1470_v1  ;;  %v1601_v51 = vand.u32 2147483647, %v1473_v37  ;;  %v11115_v1 = vld [vmem:[#allocation35_spill] sm:$0xff] }
 0x192   : > { %11101 = vst [vmem:[#allocation22_spill] sm:$0xff] %v6597_v42  ;;  %v1559_v42 = vand.u32 2147483647, %v1431_v35  ;;  %v6629_v58 = vadd.f32 %v1558_v25, %v11102_v8  ;;  %v11110_v8 = vld [vmem:[#allocation33_spill] sm:$0xff]  ;;  %v6670_v37 = vand.u32 2147483647, %v1451_v60  ;;  %v1482_v60 = vsub.f32 %v6575_v47, %v6227_v61 }
 0x193   : > { %v1599_v23 = vand.u32 2147483647, %v1471_v21  ;;  %11107 = vst [vmem:[#allocation6_spill] sm:$0xff] %v6637_v4  ;;  %v6646_v25 = vadd.f32 %v1598_v22, %v11110_v8  ;;  %v1450_v21 = vsub.f32 %v6517_v49, %v6227_v61  ;;  %v6662_v14 = vadd.f32 %v1601_v51, %v11115_v1 }
 0x194   : > { %11103 = vst [vmem:[#allocation7_spill] sm:$0xff] %v6629_v58  ;;  %v6632_v35 = vadd.f32 %v1559_v42, %v11104_v30  ;;  %v1444_v51 = vsub.f32 %v6563_v40, %v6243_v12  ;;  %v1570_v8 = vand.u32 2147483647, %v1442_v59  ;;  %v11120_v59 = vld [vmem:[#allocation9_spill] sm:$0xff] }
 0x195   : > { %11109 = vst [vmem:[#allocation11_spill] sm:$0xff] %v6640_v44  ;;  %v6649_v42 = vadd.f32 %v1599_v23, %v5852_v55  ;;  %v1452_v55 = vsub.f32 %v6517_v49, %v6243_v12  ;;  %v1453_v23 = vsub.f32 %v6517_v49, %v6256_v38  ;;  %v6668_v22 = vand.u32 2147483647, %v1450_v21 }
 0x196   : > { %11105 = vst [vmem:[#allocation24_spill] sm:$0xff] %v6632_v35  ;;  %v1445_v49 = vsub.f32 %v6563_v40, %v6256_v38  ;;  %v1571_v21 = vand.u32 2147483647, %v1443_v45  ;;  %v1572_v1 = vand.u32 2147483647, %v1444_v51  ;;  %v1336_v51 = vpop.permute.xlu1 %1335  ;;  %v11124_v35 = vld [vmem:[#allocation8_spill] sm:$0xff] }
 0x197   : > { %11111 = vst [vmem:[#allocation33_spill] sm:$0xff] %v6646_v25  ;;  %v6676_v30 = vand.u32 2147483647, %v1452_v55  ;;  %v6678_v46 = vand.u32 2147483647, %v1453_v23  ;;  %v1484_v55 = vsub.f32 %v6575_v47, %v6243_v12  ;;  %v1485_v23 = vsub.f32 %v6575_v47, %v6256_v38 }
 0x198   : > { %11112 = vst [vmem:[#allocation148_spill] sm:$0xff] %v6649_v42  ;;  %v11118_v42 = vld [vmem:[#allocation16_spill] sm:$0xff]  ;;  %v6697_v45 = vadd.f32 %v1571_v21, %v11120_v59  ;;  %v6699_v25 = vand.u32 2147483647, %v1482_v60  ;;  %v6701_v44 = vand.u32 2147483647, %v1483_v24  ;;  %v1462_v21 = vsub.f32 %v6591_v54, %v6227_v61 }
 0x199   : > { %11114 = vst [vmem:[#allocation34_spill] sm:$0xff] %v6659_v15  ;;  %v11117_v15 = vld [vmem:[#allocation48_spill] sm:$0xff]  ;;  %v6694_v40 = vadd.f32 %v1570_v8, %v11118_v42  ;;  %v6709_v47 = vand.u32 2147483647, %v1484_v55  ;;  %v6714_v8 = vpop.permute.xlu2 %1375  ;;  %v1463_v60 = vsub.f32 %v6591_v54, %v6235_v50  ;;  %v1464_v24 = vsub.f32 %v6591_v54, %v6243_v12 }
 0x19a   : > { %11116 = vst [vmem:[#allocation35_spill] sm:$0xff] %v6662_v14  ;;  %v1573_v14 = vand.u32 2147483647, %v1445_v49  ;;  %1907 = vperm.xlu0 %4705, %v11117_v15   ;;  %v11122_v49 = vld [vmem:[#allocation29_spill] sm:$0xff]  ;;  %v6711_v15 = vand.u32 2147483647, %v1485_v23  ;;  %v1454_v55 = vsub.f32 %v6634_v13, %v6227_v61  ;;  %v1455_v23 = vsub.f32 %v6634_v13, %v6235_v50 }
 0x19b   : > { %11119 = vst [vmem:[#allocation48_spill] sm:$0xff] %v6694_v40  ;;  %v6704_v4 = vadd.f32 %v1572_v1, %v11122_v49  ;;  %v11126_v42 = vld [vmem:[#allocation52_spill] sm:$0xff]  ;;  %v6725_v1 = vpop.permute.xlu0 %1355  ;;  %v1456_v59 = vsub.f32 %v6634_v13, %v6243_v12  ;;  %v1457_v49 = vsub.f32 %v6634_v13, %v6256_v38  ;;  %v1496_v13 = vsub.f32 %v6643_v57, %v6243_v12 }
 0x19c   : > { %11121 = vst [vmem:[#allocation16_spill] sm:$0xff] %v6697_v45  ;;  %v6707_v58 = vadd.f32 %v1573_v14, %v11124_v35  ;;  %1887 = vperm.xlu1 %4706, %v11126_v42   ;;  %v1465_v35 = vsub.f32 %v6591_v54, %v6256_v38  ;;  %v11127_v14 = vld [vmem:[#allocation54_spill] sm:$0xff]  ;;  %v6735_v42 = vand.u32 2147483647, %v1462_v21  ;;  %v6739_v54 = vand.u32 2147483647, %v1464_v24 }
 0x19d   : > { %11123 = vst [vmem:[#allocation9_spill] sm:$0xff] %v6704_v4  ;;  %1891 = vperm.xlu2 %4704, %v11127_v14   ;;  %v1494_v14 = vsub.f32 %v6643_v57, %v6227_v61  ;;  %v1582_v45 = vand.u32 2147483647, %v1454_v55  ;;  %v1583_v40 = vand.u32 2147483647, %v1455_v23  ;;  %v1497_v21 = vsub.f32 %v6643_v57, %v6256_v38  ;;  %v11133_v23 = vld [vmem:[#allocation40_spill] sm:$0xff] }
 0x19e   : > { %11125 = vst [vmem:[#allocation29_spill] sm:$0xff] %v6707_v58  ;;  %v6737_v58 = vand.u32 2147483647, %v1463_v60  ;;  %v6743_v4 = vand.u32 2147483647, %v1465_v35  ;;  %v11128_v60 = vld [vmem:[#allocation38_spill] sm:$0xff] }
 0x19f   : > { %v1584_v5 = vand.u32 2147483647, %v1456_v59  ;;  %v1585_v39 = vand.u32 2147483647, %v1457_v49  ;;  %v6752_v24 = vadd.f32 %v1582_v45, %v11128_v60  ;;  %v6755_v3 = vadd.f32 %v1583_v40, %v11130_v52  ;;  %v11135_v49 = vld [vmem:[#allocation53_spill] sm:$0xff]  ;;  %v1348_v45 = vpop.permute.xlu1 %1347 }
 0x1a0   : > { %v6757_v35 = vand.u32 2147483647, %v1494_v14  ;;  %v6759_v55 = vand.u32 2147483647, %v1495_v2  ;;  %v6768_v48 = vand.u32 2147483647, %v1496_v13  ;;  %v1474_v52 = vsub.f32 %v6656_v29, %v6227_v61 }
 0x1a1   : > { %11129 = vst [vmem:[#allocation8_spill] sm:$0xff] %v6752_v24  ;;  %v6763_v59 = vadd.f32 %v1584_v5, %v11133_v23  ;;  %v6766_v53 = vadd.f32 %v1585_v39, %v11135_v49  ;;  %v6770_v57 = vand.u32 2147483647, %v1497_v21  ;;  %v1475_v2 = vsub.f32 %v6656_v29, %v6235_v50  ;;  %v1388_v39 = vpop.permute.xlu2 %1387 }
 0x1a2   : > { %11131 = vst [vmem:[#allocation52_spill] sm:$0xff] %v6755_v3  ;;  %1919 = vperm.xlu0 %4705, %v6016_v7   ;;  %v1476_v7 = vsub.f32 %v6656_v29, %v6243_v12  ;;  %v1477_v5 = vsub.f32 %v6656_v29, %v6256_v38  ;;  %v1466_v40 = vsub.f32 %v1336_v51, %v6227_v61  ;;  %v6788_v23 = vand.u32 2147483647, %v1474_v52 }
 0x1a3   : > { %11132 = vst [vmem:[#allocation54_spill] sm:$0xff] %v6759_v55  ;;  %v1467_v14 = vsub.f32 %v1336_v51, %v6235_v50  ;;  %v1468_v13 = vsub.f32 %v1336_v51, %v6243_v12  ;;  %v1469_v21 = vsub.f32 %v1336_v51, %v6256_v38  ;;  %v6786_v60 = vpop.permute.xlu0 %1367  ;;  %v6790_v49 = vand.u32 2147483647, %v1475_v2 }
 0x1a4   : > { %11134 = vst [vmem:[#allocation38_spill] sm:$0xff] %v6763_v59  ;;  %1899 = vperm.xlu1 %4706, %v6001_v34   ;;  %v6792_v29 = vand.u32 2147483647, %v1476_v7  ;;  %v1506_v34 = vsub.f32 %v6714_v8, %v6227_v61  ;;  %v1594_v59 = vand.u32 2147483647, %v1466_v40  ;;  %v1507_v51 = vsub.f32 %v6714_v8, %v6235_v50  ;;  %v11139_v7 = vld [vmem:[#allocation64_spill] sm:$0xff] }
 0x1a5   : > { %11136 = vst [vmem:[#allocation39_spill] sm:$0xff] %v6766_v53  ;;  %1903 = vperm.xlu2 %4704, %v6009_v20   ;;  %v6796_v53 = vand.u32 2147483647, %v1477_v5  ;;  %v1595_v3 = vand.u32 2147483647, %v1467_v14  ;;  %v1508_v52 = vsub.f32 %v6714_v8, %v6243_v12  ;;  %v1509_v2 = vsub.f32 %v6714_v8, %v6256_v38  ;;  %v11145_v14 = vld [vmem:[#allocation60_spill] sm:$0xff] }
 0x1a6   : > { %11137 = vst [vmem:[#allocation40_spill] sm:$0xff] %v6768_v48  ;;  %v1596_v24 = vand.u32 2147483647, %v1468_v13  ;;  %v1597_v20 = vand.u32 2147483647, %v1469_v21  ;;  %v11147_v13 = vld [vmem:[#allocation61_spill] sm:$0xff]  ;;  %v1486_v8 = vsub.f32 %v6725_v1, %v6227_v61 }
 0x1a7   : > { %11138 = vst [vmem:[#allocation53_spill] sm:$0xff] %v6770_v57  ;;  %v6805_v57 = vadd.f32 %v1594_v59, %v11139_v7  ;;  %v6808_v56 = vadd.f32 %v1595_v3, %v11141_v9  ;;  %v6810_v5 = vand.u32 2147483647, %v1506_v34  ;;  %v6812_v40 = vand.u32 2147483647, %v1507_v51  ;;  %v1360_v59 = vpop.permute.xlu1 %1359 }
 0x1a8   : > { %v6815_v63 = vadd.f32 %v1596_v24, %v11145_v14  ;;  %v6818_v21 = vadd.f32 %v1597_v20, %v11147_v13  ;;  %v6820_v48 = vand.u32 2147483647, %v1508_v52  ;;  %v6822_v55 = vand.u32 2147483647, %v1509_v2  ;;  %v11151_v52 = vld [vmem:[#allocation108_spill] sm:$0xff] }
 0x1a9   : > { %11140 = vst [vmem:[#allocation64_spill] sm:$0xff] %v6805_v57  ;;  %v1487_v3 = vsub.f32 %v6725_v1, %v6235_v50  ;;  %v1488_v9 = vsub.f32 %v6725_v1, %v6243_v12  ;;  %v1489_v24 = vsub.f32 %v6725_v1, %v6256_v38  ;;  %v1478_v34 = vsub.f32 %v1348_v45, %v6227_v61  ;;  %v1400_v2 = vpop.permute.xlu2 %1399 }
 0x1aa   : > { %11142 = vst [vmem:[#allocation59_spill] sm:$0xff] %v6808_v56  ;;  %v1479_v51 = vsub.f32 %v1348_v45, %v6235_v50  ;;  %v1480_v20 = vsub.f32 %v1348_v45, %v6243_v12  ;;  %v6836_v7 = vand.u32 2147483647, %v1486_v8  ;;  %v1481_v1 = vsub.f32 %v1348_v45, %v6256_v38  ;;  %v11158_v45 = vld [vmem:[#allocation70_spill] sm:$0xff] }
 0x1ab   : > { %11143 = vst [vmem:[#allocation149_spill] sm:$0xff] %v6810_v5  ;;  %v6838_v14 = vand.u32 2147483647, %v1487_v3  ;;  %v6840_v13 = vand.u32 2147483647, %v1488_v9  ;;  %v1380_v56 = vpop.permute.xlu0 %1379  ;;  %v1519_v9 = vsub.f32 %v1388_v39, %v6235_v50 }
 0x1ac   : > { %11144 = vst [vmem:[#allocation150_spill] sm:$0xff] %v6812_v40  ;;  %1911 = vperm.xlu1 %4706, %v11151_v52   ;;  %v6845_v57 = vand.u32 2147483647, %v1489_v24  ;;  %v1518_v52 = vsub.f32 %v1388_v39, %v6227_v61  ;;  %v1608_v8 = vand.u32 2147483647, %v1480_v20  ;;  %v1520_v40 = vsub.f32 %v1388_v39, %v6243_v12 }
 0x1ad   : > { %11146 = vst [vmem:[#allocation60_spill] sm:$0xff] %v6815_v63  ;;  %v11154_v63 = vld [vmem:[#allocation109_spill] sm:$0xff]  ;;  %v1609_v3 = vand.u32 2147483647, %v1481_v1  ;;  %v1521_v24 = vsub.f32 %v1388_v39, %v6256_v38  ;;  %v6866_v1 = vand.u32 2147483647, %v1519_v9  ;;  %v1500_v39 = vsub.f32 %v6786_v60, %v6243_v12 }
 0x1ae   : > { %11148 = vst [vmem:[#allocation61_spill] sm:$0xff] %v6818_v21  ;;  %v10698_v21 = vmov 4   ;;  %1915 = vperm.xlu2 %4704, %v11154_v63  }
 0x1af   : > { %11149 = vst [vmem:[#allocation151_spill] sm:$0xff] %v6820_v48  ;;  %4708 = vset.pattern.permute.xlu0 %v10698_v21  ;;  %v1607_v48 = vand.u32 2147483647, %v1479_v51  ;;  %v11156_v21 = vld [vmem:[#allocation69_spill] sm:$0xff]  ;;  %v11160_v51 = vld [vmem:[#allocation71_spill] sm:$0xff] }
 0x1b0   : > { %11150 = vst [vmem:[#allocation152_spill] sm:$0xff] %v6822_v55  ;;  %v1606_v55 = vand.u32 2147483647, %v1478_v34  ;;  %2319 = vperm.xlu0 %4708, %v6116_v43   ;;  %v6858_v34 = vand.u32 2147483647, %v1518_v52  ;;  %v11162_v43 = vld [vmem:[#allocation72_spill] sm:$0xff]  ;;  %v1490_v52 = vsub.f32 %v1360_v59, %v6227_v61 }
 0x1b1   : > { %11152 = vst [vmem:[#allocation108_spill] sm:$0xff] %v6838_v14  ;;  %v6855_v63 = vadd.f32 %v1607_v48, %v11158_v45  ;;  %v6864_v20 = vadd.f32 %v1609_v3, %v11162_v43  ;;  %v6870_v14 = vand.u32 2147483647, %v1521_v24  ;;  %v1498_v48 = vsub.f32 %v6786_v60, %v6227_v61  ;;  %v1372_v3 = vpop.permute.xlu1 %1371  ;;  %v11166_v43 = vld [vmem:[#allocation113_spill] sm:$0xff] }
 0x1b2   : > { %11153 = vst [vmem:[#allocation153_spill] sm:$0xff] %v6840_v13  ;;  %v6852_v5 = vadd.f32 %v1606_v55, %v11156_v21  ;;  %v6868_v13 = vand.u32 2147483647, %v1520_v40  ;;  %v1499_v55 = vsub.f32 %v6786_v60, %v6235_v50  ;;  %v1501_v21 = vsub.f32 %v6786_v60, %v6256_v38 }
 0x1b3   : > { %11155 = vst [vmem:[#allocation109_spill] sm:$0xff] %v6845_v57  ;;  %v6861_v57 = vadd.f32 %v1608_v8, %v11160_v51  ;;  %v1491_v8 = vsub.f32 %v1360_v59, %v6235_v50  ;;  %v1492_v40 = vsub.f32 %v1360_v59, %v6243_v12  ;;  %v6883_v9 = vand.u32 2147483647, %v1498_v48  ;;  %v1392_v48 = vpop.permute.xlu0 %1391 }
 0x1b4   : > { %11157 = vst [vmem:[#allocation69_spill] sm:$0xff] %v6852_v5  ;;  %v6885_v45 = vand.u32 2147483647, %v1499_v55  ;;  %v6887_v24 = vand.u32 2147483647, %v1500_v39  ;;  %v1493_v51 = vsub.f32 %v1360_v59, %v6256_v38  ;;  %1923 = vperm.xlu1 %4706, %v11166_v43   ;;  %v11169_v5 = vmov 4  }
 0x1b5   : > { %11159 = vst [vmem:[#allocation70_spill] sm:$0xff] %v6855_v63  ;;  %v6893_v60 = vand.u32 2147483647, %v1490_v52  ;;  %v1530_v63 = vsub.f32 %v1400_v2, %v6227_v61  ;;  %v1531_v39 = vsub.f32 %v1400_v2, %v6235_v50  ;;  %v1532_v59 = vsub.f32 %v1400_v2, %v6243_v12  ;;  %v1800_v52 = vpop.permute.xlu2 %1799 }
 0x1b6   : > { %11161 = vst [vmem:[#allocation71_spill] sm:$0xff] %v6861_v57  ;;  %v6895_v57 = vand.u32 2147483647, %v1491_v8  ;;  %4707 = vset.pattern.permute.xlu2 %v11169_v5  ;;  %v6901_v55 = vand.u32 2147483647, %v1493_v51  ;;  %v1533_v8 = vsub.f32 %v1400_v2, %v6256_v38  ;;  %v1502_v2 = vsub.f32 %v1372_v3, %v6227_v61 }
 0x1b7   : > { %11163 = vst [vmem:[#allocation72_spill] sm:$0xff] %v6864_v20  ;;  %v6891_v20 = vand.u32 2147483647, %v1501_v21  ;;  %v11172_v21 = vld [vmem:[#allocation114_spill] sm:$0xff]  ;;  %v6908_v43 = vand.u32 2147483647, %v1530_v63 }
 0x1b8   : > { %11164 = vst [vmem:[#allocation154_spill] sm:$0xff] %v6868_v13  ;;  %2339 = vperm.xlu0 %4708, %v6172_v19   ;;  %2315 = vperm.xlu2 %4707, %v11172_v21   ;;  %v6914_v51 = vand.u32 2147483647, %v1532_v59  ;;  %v6918_v19 = vand.u32 2147483647, %v1533_v8  ;;  %v1504_v59 = vsub.f32 %v1372_v3, %v6243_v12 }
 0x1b9   : > { %11165 = vst [vmem:[#allocation155_spill] sm:$0xff] %v6870_v14  ;;  %v6899_v14 = vand.u32 2147483647, %v1492_v40  ;;  %v1511_v40 = vsub.f32 %v1380_v56, %v6235_v50  ;;  %v1384_v8 = vpop.permute.xlu1 %1383 }
 0x1ba   : > { %11167 = vst [vmem:[#allocation113_spill] sm:$0xff] %v6893_v60  ;;  %v1513_v60 = vsub.f32 %v1380_v56, %v6256_v38 }
 0x1bb   : > { %11168 = vst [vmem:[#allocation156_spill] sm:$0xff] %v6895_v57  ;;  %v1510_v57 = vsub.f32 %v1380_v56, %v6227_v61  ;;  %v6922_v13 = vand.u32 2147483647, %v1511_v40 }
 0x1bc   : > { %11170 = vst [vmem:[#allocation157_spill] sm:$0xff] %v6899_v14  ;;  %v6912_v14 = vand.u32 2147483647, %v1531_v39  ;;  %v1503_v39 = vsub.f32 %v1372_v3, %v6235_v50  ;;  %4709 = vset.pattern.permute.xlu1 %v11169_v5  ;;  %v6960_v5 = vperm.slane %v6232_v27, 3  ;;  %v1517_v27 = vsub.f32 %v1384_v8, %v6256_v38 }
 0x1bd   : > { %11171 = vst [vmem:[#allocation158_spill] sm:$0xff] %v6901_v55  ;;  %v1512_v55 = vsub.f32 %v1380_v56, %v6243_v12  ;;  %v6920_v21 = vand.u32 2147483647, %v1510_v57  ;;  %v1522_v56 = vsub.f32 %v1392_v48, %v6227_v61  ;;  %v1523_v57 = vsub.f32 %v1392_v48, %v6235_v50  ;;  %2323 = vperm.xlu1 %4709, %v6192_v36   ;;  %v11189_v36 = vld [vmem:[#allocation117_spill] sm:$0xff] }
 0x1be   : > { %11173 = vst [vmem:[#allocation114_spill] sm:$0xff] %v6908_v43  ;;  %v6927_v43 = vand.u32 2147483647, %v1513_v60  ;;  %v6936_v40 = vand.u32 2147483647, %v1503_v39  ;;  %v1524_v60 = vsub.f32 %v1392_v48, %v6243_v12 }
 0x1bf   : > { %11174 = vst [vmem:[#allocation159_spill] sm:$0xff] %v6912_v14  ;;  %v6925_v63 = vand.u32 2147483647, %v1512_v55  ;;  %v6932_v14 = vand.u32 2147483647, %v1502_v2  ;;  %v1525_v55 = vsub.f32 %v1392_v48, %v6256_v38  ;;  %v6957_v48 = vperm.slane %v6224_v62, 3 }
 0x1c0   : > { %11175 = vst [vmem:[#allocation160_spill] sm:$0xff] %v6914_v51  ;;  %v1505_v51 = vsub.f32 %v1372_v3, %v6256_v38  ;;  %v6945_v3 = vand.u32 2147483647, %v1522_v56  ;;  %v6947_v2 = vand.u32 2147483647, %v1523_v57  ;;  %2351 = vperm.xlu0 %4708, %v6274_v10   ;;  %2327 = vperm.xlu2 %4707, %v6196_v11   ;;  %v11188_v56 = vld [vmem:[#allocation115_spill] sm:$0xff]  ;;  %v1515_v10 = vsub.f32 %v1384_v8, %v6235_v50 }
 0x1c1   : > { %11176 = vst [vmem:[#allocation161_spill] sm:$0xff] %v6918_v19  ;;  %v6938_v19 = vand.u32 2147483647, %v1504_v59  ;;  %v6952_v39 = vand.u32 2147483647, %v1524_v60  ;;  %v6964_v57 = vperm.slane %v11188_v56, 3  ;;  %v1516_v60 = vsub.f32 %v1384_v8, %v6243_v12 }
 0x1c2   : > { %11177 = vst [vmem:[#allocation162_spill] sm:$0xff] %v6922_v13  ;;  %v6954_v59 = vand.u32 2147483647, %v1525_v55  ;;  %v1404_v55 = vpop.permute.xlu0 %1403  ;;  %v1930_v62 = vsub.f32 %v1800_v52, %v6957_v48 }
 0x1c3   : > { %11178 = vst [vmem:[#allocation163_spill] sm:$0xff] %v6925_v63  ;;  %v1932_v11 = vsub.f32 %v1800_v52, %v6964_v57  ;;  %v1534_v63 = vsub.f32 %v1404_v55, %v6227_v61 }
 0x1c4   : > { %11179 = vst [vmem:[#allocation164_spill] sm:$0xff] %v6927_v43  ;;  %v6943_v43 = vand.u32 2147483647, %v1505_v51  ;;  %v1812_v51 = vpop.permute.xlu2 %1811 }
 0x1c5   : > { %11180 = vst [vmem:[#allocation165_spill] sm:$0xff] %v6932_v14  ;;  %v1514_v14 = vsub.f32 %v1384_v8, %v6227_v61  ;;  %v6989_v13 = vand.u32 2147483647, %v1932_v11  ;;  %v1535_v8 = vsub.f32 %v1404_v55, %v6235_v50  ;;  %v1944_v11 = vsub.f32 %v1812_v51, %v6964_v57 }
 0x1c6   : > { %11181 = vst [vmem:[#allocation166_spill] sm:$0xff] %v6936_v40 }
 0x1c7   : > { %11182 = vst [vmem:[#allocation167_spill] sm:$0xff] %v6938_v19  ;;  %v1931_v19 = vsub.f32 %v1800_v52, %v6960_v5  ;;  %v6974_v40 = vand.u32 2147483647, %v1514_v14 }
 0x1c8   : > { %11183 = vst [vmem:[#allocation168_spill] sm:$0xff] %v6943_v43  ;;  %v6967_v43 = vperm.slane %v11189_v36, 3  ;;  %v6980_v36 = vand.u32 2147483647, %v1516_v60  ;;  %v1537_v60 = vsub.f32 %v1404_v55, %v6256_v38  ;;  %2363 = vperm.xlu0 %4708, %v6340_v28  }
 0x1c9   : > { %11184 = vst [vmem:[#allocation169_spill] sm:$0xff] %v6945_v3  ;;  %v6986_v3 = vand.u32 2147483647, %v1517_v27  ;;  %v7000_v27 = vand.u32 2147483647, %v1535_v8  ;;  %v11200_v8 = vld [vmem:[#allocation122_spill] sm:$0xff] }
 0x1ca   : > { %11185 = vst [vmem:[#allocation170_spill] sm:$0xff] %v6947_v2  ;;  %v1933_v56 = vsub.f32 %v1800_v52, %v6967_v43  ;;  %v6984_v2 = vand.u32 2147483647, %v1931_v19  ;;  %v1536_v52 = vsub.f32 %v1404_v55, %v6243_v12  ;;  %v1942_v19 = vsub.f32 %v1812_v51, %v6957_v48  ;;  %2335 = vperm.xlu2 %4707, %v11200_v8  }
 0x1cb   : > { %11186 = vst [vmem:[#allocation171_spill] sm:$0xff] %v6952_v39  ;;  %v6982_v39 = vand.u32 2147483647, %v1930_v62  ;;  %v1943_v62 = vsub.f32 %v1812_v51, %v6960_v5 }
 0x1cc   : > { %11187 = vst [vmem:[#allocation172_spill] sm:$0xff] %v6954_v59  ;;  %v6978_v59 = vand.u32 2147483647, %v1515_v10  ;;  %v6991_v14 = vand.u32 2147483647, %v1933_v56  ;;  %v1396_v10 = vpop.permute.xlu1 %1395  ;;  %v1945_v56 = vsub.f32 %v1812_v51, %v6967_v43 }
 0x1cd   : > { %11190 = vst [vmem:[#allocation115_spill] sm:$0xff] %v6974_v40  ;;  %v7008_v40 = vand.u32 2147483647, %v1537_v60  ;;  %v7012_v55 = vand.u32 2147483647, %v1943_v62  ;;  %v1527_v51 = vsub.f32 %v1396_v10, %v6235_v50  ;;  %v1529_v28 = vsub.f32 %v1396_v10, %v6256_v38 }
 0x1ce   : > { %11191 = vst [vmem:[#allocation117_spill] sm:$0xff] %v6978_v59  ;;  %v11197_v59 = vld [vmem:[#allocation121_spill] sm:$0xff] }
 0x1cf   : > { %11192 = vst [vmem:[#allocation173_spill] sm:$0xff] %v6980_v36  ;;  %v6996_v36 = vand.u32 2147483647, %v1534_v63  ;;  %2331 = vperm.xlu1 %4709, %v11197_v59   ;;  %v7010_v63 = vand.u32 2147483647, %v1942_v19  ;;  %v1528_v59 = vsub.f32 %v1396_v10, %v6243_v12 }
 0x1d0   : > { %11193 = vst [vmem:[#allocation174_spill] sm:$0xff] %v6984_v2  ;;  %v7018_v2 = vand.u32 2147483647, %v1945_v56  ;;  %2375 = vperm.xlu0 %4708, %v6410_v16  }
 0x1d1   : > { %11194 = vst [vmem:[#allocation175_spill] sm:$0xff] %v6986_v3  ;;  %v7002_v3 = vand.u32 2147483647, %v1536_v52  ;;  %v1820_v52 = vpop.permute.xlu2 %1819  ;;  %v7029_v8 = vand.u32 2147483647, %v1528_v59  ;;  %v11210_v59 = vld [vmem:[#allocation13_spill] sm:$0xff] }
 0x1d2   : > { %11195 = vst [vmem:[#allocation176_spill] sm:$0xff] %v6989_v13  ;;  %v7016_v13 = vand.u32 2147483647, %v1944_v11  ;;  %v1950_v19 = vsub.f32 %v1820_v52, %v6957_v48  ;;  %v1951_v62 = vsub.f32 %v1820_v52, %v6960_v5  ;;  %v1952_v11 = vsub.f32 %v1820_v52, %v6964_v57  ;;  %2347 = vperm.xlu2 %4707, %v6362_v41  }
 0x1d3   : > { %11196 = vst [vmem:[#allocation177_spill] sm:$0xff] %v6991_v14  ;;  %v1526_v14 = vsub.f32 %v1396_v10, %v6227_v61  ;;  %v1953_v56 = vsub.f32 %v1820_v52, %v6967_v43 }
 0x1d4   : > { %11198 = vst [vmem:[#allocation121_spill] sm:$0xff] %v7010_v63  ;;  %v7037_v63 = vand.u32 2147483647, %v1951_v62 }
 0x1d5   : > { %11199 = vst [vmem:[#allocation178_spill] sm:$0xff] %v7012_v55  ;;  %v7023_v60 = vand.u32 2147483647, %v1526_v14  ;;  %v7027_v55 = vand.u32 2147483647, %v1527_v51  ;;  %v11207_v14 = vld [vmem:[#allocation36_spill] sm:$0xff] }
 0x1d6   : > { %11201 = vst [vmem:[#allocation122_spill] sm:$0xff] %v7016_v13  ;;  %v7035_v13 = vand.u32 2147483647, %v1950_v19  ;;  %v7041_v10 = vadd.f32 %v6603_v6, %v11207_v14  ;;  %v7045_v51 = vand.u32 2147483647, %v1953_v56  ;;  %v11212_v19 = vld [vmem:[#allocation15_spill] sm:$0xff] }
 0x1d7   : > { %11202 = vst [vmem:[#allocation179_spill] sm:$0xff] %v7018_v2  ;;  %v7033_v2 = vand.u32 2147483647, %v1529_v28  ;;  %v1804_v28 = vpop.permute.xlu0 %1803  ;;  %v7057_v62 = vadd.f32 %v6613_v18, %v11212_v19  ;;  %v11215_v14 = vld [vmem:[#allocation43_spill] sm:$0xff]  ;;  %2343 = vperm.xlu1 %4709, %v6358_v32  }
 0x1d8   : > { %11203 = vst [vmem:[#allocation180_spill] sm:$0xff] %v7023_v60  ;;  %v7043_v60 = vand.u32 2147483647, %v1952_v11  ;;  %v11214_v11 = vld [vmem:[#allocation42_spill] sm:$0xff]  ;;  %v1937_v18 = vsub.f32 %v1804_v28, %v6967_v43  ;;  %2387 = vperm.xlu0 %4708, %v6488_v31  }
 0x1d9   : > { %11204 = vst [vmem:[#allocation181_spill] sm:$0xff] %v7027_v55  ;;  %v11211_v55 = vld [vmem:[#allocation14_spill] sm:$0xff]  ;;  %v7065_v56 = vadd.f32 %v6670_v37, %v11214_v11  ;;  %v1832_v11 = vpop.permute.xlu2 %1831 }
 0x1da   : > { %11205 = vst [vmem:[#allocation182_spill] sm:$0xff] %v7029_v8  ;;  %v7049_v8 = vadd.f32 %v6605_v26, %v11210_v59  ;;  %v7053_v52 = vadd.f32 %v6611_v0, %v11211_v55  ;;  %v7069_v26 = vadd.f32 %v6676_v30, %v11215_v14  ;;  %v1934_v0 = vsub.f32 %v1804_v28, %v6957_v48 }
 0x1db   : > { %11206 = vst [vmem:[#allocation183_spill] sm:$0xff] %v7037_v63  ;;  %v11213_v63 = vld [vmem:[#allocation41_spill] sm:$0xff]  ;;  %v1935_v55 = vsub.f32 %v1804_v28, %v6960_v5  ;;  %v1936_v59 = vsub.f32 %v1804_v28, %v6964_v57  ;;  %v1962_v32 = vsub.f32 %v1832_v11, %v6957_v48  ;;  %v7089_v16 = vand.u32 2147483647, %v1937_v18  ;;  %2359 = vperm.xlu2 %4707, %v6446_v33  }
 0x1dc   : > { %11208 = vst [vmem:[#allocation36_spill] sm:$0xff] %v7043_v60  ;;  %v7061_v6 = vadd.f32 %v6668_v22, %v11213_v63  ;;  %v1408_v22 = vpop.permute.xlu1 %1407  ;;  %v7081_v14 = vand.u32 2147483647, %v1934_v0  ;;  %v1964_v0 = vsub.f32 %v1832_v11, %v6964_v57  ;;  %v11220_v18 = vld [vmem:[#allocation37_spill] sm:$0xff] }
 0x1dd   : > { %11209 = vst [vmem:[#allocation184_spill] sm:$0xff] %v7045_v51  ;;  %v1538_v37 = vsub.f32 %v1408_v22, %v6227_v61  ;;  %v1539_v63 = vsub.f32 %v1408_v22, %v6235_v50  ;;  %v1540_v30 = vsub.f32 %v1408_v22, %v6243_v12  ;;  %v1541_v19 = vsub.f32 %v1408_v22, %v6256_v38 }
 0x1de   : > { %v7083_v51 = vand.u32 2147483647, %v1935_v55  ;;  %v7085_v60 = vand.u32 2147483647, %v1936_v59  ;;  %v1963_v12 = vsub.f32 %v1832_v11, %v6960_v5  ;;  %v1965_v55 = vsub.f32 %v1832_v11, %v6967_v43  ;;  %v11225_v11 = vld [vmem:[#allocation47_spill] sm:$0xff] }
 0x1df   : > { %v7091_v61 = vand.u32 2147483647, %v1538_v37  ;;  %v7093_v50 = vand.u32 2147483647, %v1539_v63  ;;  %v7096_v38 = vand.u32 2147483647, %v1540_v30  ;;  %v7108_v22 = vadd.f32 %v6678_v46, %v11220_v18  ;;  %2355 = vperm.xlu1 %4709, %v6436_v17  }
 0x1e0   : > { %v7098_v28 = vand.u32 2147483647, %v1541_v19  ;;  %v7102_v59 = vand.u32 2147483647, %v1962_v32  ;;  %v7104_v41 = vand.u32 2147483647, %v1963_v12  ;;  %v7124_v32 = vadd.f32 %v6739_v54, %v11225_v11  ;;  %v1824_v12 = vpop.permute.xlu0 %1823 }
 0x1e1   : > { %11216 = vst [vmem:[#allocation13_spill] sm:$0xff] %v7096_v38  ;;  %v11221_v37 = vld [vmem:[#allocation45_spill] sm:$0xff]  ;;  %v7114_v30 = vand.u32 2147483647, %v1964_v0  ;;  %v7116_v19 = vand.u32 2147483647, %v1965_v55  ;;  %v1954_v54 = vsub.f32 %v1824_v12, %v6957_v48  ;;  %v1956_v11 = vsub.f32 %v1824_v12, %v6964_v57 }
 0x1e2   : > { %11217 = vst [vmem:[#allocation14_spill] sm:$0xff] %v7098_v28  ;;  %v7112_v63 = vadd.f32 %v6735_v42, %v11221_v37  ;;  %v11224_v28 = vld [vmem:[#allocation46_spill] sm:$0xff]  ;;  %v11228_v0 = vld [vmem:[#allocation12_spill] sm:$0xff]  ;;  %v11229_v37 = vld [vmem:[#allocation31_spill] sm:$0xff] }
 0x1e3   : > { %11218 = vst [vmem:[#allocation15_spill] sm:$0xff] %v7102_v59  ;;  %v7120_v38 = vadd.f32 %v6737_v58, %v11224_v28  ;;  %v11227_v18 = vld [vmem:[#allocation30_spill] sm:$0xff]  ;;  %v7136_v55 = vadd.f32 %v6701_v44, %v11228_v0  ;;  %v7140_v58 = vadd.f32 %v6709_v47, %v11229_v37  ;;  %v1955_v28 = vsub.f32 %v1824_v12, %v6960_v5  ;;  %v11232_v0 = vld [vmem:[#allocation107_spill] sm:$0xff] }
 0x1e4   : > { %11219 = vst [vmem:[#allocation41_spill] sm:$0xff] %v7104_v41  ;;  %v11226_v41 = vld [vmem:[#allocation63_spill] sm:$0xff]  ;;  %v7132_v42 = vadd.f32 %v6699_v25, %v11227_v18  ;;  %v1808_v25 = vpop.permute.xlu1 %1807  ;;  %v11231_v18 = vld [vmem:[#allocation58_spill] sm:$0xff]  ;;  %v7158_v37 = vadd.f32 %v6790_v49, %v11232_v0  ;;  %v2082_v17 = vand.u32 2147483647, %v1954_v54 }
 0x1e5   : > { %11222 = vst [vmem:[#allocation42_spill] sm:$0xff] %v7114_v30  ;;  %v7128_v46 = vadd.f32 %v6743_v4, %v11226_v41  ;;  %v1957_v4 = vsub.f32 %v1824_v12, %v6967_v43  ;;  %v11230_v41 = vld [vmem:[#allocation32_spill] sm:$0xff]  ;;  %v7154_v47 = vadd.f32 %v6788_v23, %v11231_v18  ;;  %v2083_v30 = vand.u32 2147483647, %v1955_v28 }
 0x1e6   : > { %11223 = vst [vmem:[#allocation43_spill] sm:$0xff] %v7116_v19  ;;  %v7150_v44 = vadd.f32 %v6711_v15, %v11230_v41  ;;  %v11233_v19 = vld [vmem:[#allocation73_spill] sm:$0xff]  ;;  %v2084_v31 = vand.u32 2147483647, %v1956_v11  ;;  %v1938_v15 = vsub.f32 %v1808_v25, %v6957_v48  ;;  %v1844_v41 = vpop.permute.xlu2 %1843  ;;  %v1939_v23 = vsub.f32 %v1808_v25, %v6960_v5 }
 0x1e7   : > { %v7162_v12 = vadd.f32 %v6792_v29, %v11233_v19  ;;  %v2085_v59 = vand.u32 2147483647, %v1957_v4  ;;  %v1940_v18 = vsub.f32 %v1808_v25, %v6964_v57  ;;  %v1941_v49 = vsub.f32 %v1808_v25, %v6967_v43 }
 0x1e8   : > { %v7170_v0 = vadd.f32 %v2082_v17, %v7041_v10  ;;  %v7173_v29 = vadd.f32 %v2083_v30, %v7049_v8  ;;  %v7176_v19 = vadd.f32 %v2084_v31, %v7053_v52  ;;  %v7178_v33 = vand.u32 2147483647, %v1938_v15  ;;  %v1836_v30 = vpop.permute.xlu0 %1835  ;;  %v11241_v17 = vld [vmem:[#allocation74_spill] sm:$0xff] }
 0x1e9   : > { %v7181_v54 = vadd.f32 %v2085_v59, %v7057_v62  ;;  %v7183_v28 = vand.u32 2147483647, %v1939_v23  ;;  %v7185_v11 = vand.u32 2147483647, %v1940_v18  ;;  %v7187_v4 = vand.u32 2147483647, %v1941_v49 }
 0x1ea   : > { %11234 = vst [vmem:[#allocation37_spill] sm:$0xff] %v7173_v29  ;;  %v1974_v10 = vsub.f32 %v1844_v41, %v6957_v48  ;;  %v1975_v25 = vsub.f32 %v1844_v41, %v6960_v5  ;;  %v1976_v8 = vsub.f32 %v1844_v41, %v6964_v57  ;;  %v1977_v52 = vsub.f32 %v1844_v41, %v6967_v43  ;;  %v11242_v62 = vld [vmem:[#allocation49_spill] sm:$0xff]  ;;  %v11243_v15 = vld [vmem:[#allocation50_spill] sm:$0xff]  ;;  %v11245_v49 = vld [vmem:[#allocation51_spill] sm:$0xff] }
 0x1eb   : > { %11235 = vst [vmem:[#allocation45_spill] sm:$0xff] %v7176_v19  ;;  %v7195_v31 = vadd.f32 %v6796_v53, %v11241_v17  ;;  %v7199_v59 = vadd.f32 %v6757_v35, %v11242_v62  ;;  %v11244_v23 = vld [vmem:[#allocation54_spill] sm:$0xff]  ;;  %v1966_v53 = vsub.f32 %v1836_v30, %v6957_v48  ;;  %v11250_v17 = vld [vmem:[#allocation140_spill] sm:$0xff]  ;;  %v11251_v35 = vld [vmem:[#allocation145_spill] sm:$0xff] }
 0x1ec   : > { %11236 = vst [vmem:[#allocation46_spill] sm:$0xff] %v7178_v33  ;;  %v7203_v18 = vadd.f32 %v11244_v23, %v11243_v15  ;;  %v7211_v41 = vand.u32 2147483647, %v1975_v25  ;;  %v7213_v33 = vand.u32 2147483647, %v1976_v8  ;;  %2367 = vperm.xlu1 %4709, %v11250_v17   ;;  %2399 = vperm.xlu0 %4708, %v11251_v35   ;;  %v1967_v15 = vsub.f32 %v1836_v30, %v6960_v5  ;;  %v11253_v25 = vld [vmem:[#allocation141_spill] sm:$0xff] }
 0x1ed   : > { %11237 = vst [vmem:[#allocation47_spill] sm:$0xff] %v7181_v54  ;;  %v7218_v62 = vand.u32 2147483647, %v1977_v52  ;;  %v1968_v23 = vsub.f32 %v1836_v30, %v6964_v57  ;;  %2371 = vperm.xlu2 %4707, %v11253_v25  }
 0x1ee   : > { %11238 = vst [vmem:[#allocation63_spill] sm:$0xff] %v7183_v28  ;;  %v7209_v28 = vand.u32 2147483647, %v1974_v10  ;;  %v1816_v10 = vpop.permute.xlu1 %1815  ;;  %v2095_v35 = vand.u32 2147483647, %v1967_v15 }
 0x1ef   : > { %11239 = vst [vmem:[#allocation30_spill] sm:$0xff] %v7185_v11  ;;  %v1946_v8 = vsub.f32 %v1816_v10, %v6957_v48  ;;  %v1948_v17 = vsub.f32 %v1816_v10, %v6964_v57  ;;  %v2096_v52 = vand.u32 2147483647, %v1968_v23 }
 0x1f0   : > { %11240 = vst [vmem:[#allocation12_spill] sm:$0xff] %v7187_v4  ;;  %v11246_v4 = vld [vmem:[#allocation40_spill] sm:$0xff]  ;;  %v7238_v19 = vadd.f32 %v2095_v35, %v7065_v56 }
 0x1f1   : > { %v7207_v11 = vadd.f32 %v11246_v4, %v11245_v49  ;;  %11247 = vst [vmem:[#allocation31_spill] sm:$0xff] %v7209_v28  ;;  %v1969_v4 = vsub.f32 %v1836_v30, %v6967_v43  ;;  %v2094_v49 = vand.u32 2147483647, %v1966_v53  ;;  %v1949_v28 = vsub.f32 %v1816_v10, %v6967_v43  ;;  %v11262_v56 = vld [vmem:[#allocation44_spill] sm:$0xff] }
 0x1f2   : > { %11248 = vst [vmem:[#allocation32_spill] sm:$0xff] %v7211_v41  ;;  %v1856_v41 = vpop.permute.xlu2 %1855  ;;  %v7231_v30 = vand.u32 2147483647, %v1946_v8  ;;  %v7235_v25 = vand.u32 2147483647, %v1948_v17  ;;  %v7241_v29 = vadd.f32 %v2096_v52, %v7069_v26  ;;  %v11263_v8 = vld [vmem:[#allocation53_spill] sm:$0xff] }
 0x1f3   : > { %11249 = vst [vmem:[#allocation58_spill] sm:$0xff] %v7213_v33  ;;  %v1947_v33 = vsub.f32 %v1816_v10, %v6960_v5  ;;  %v7229_v54 = vadd.f32 %v2094_v49, %v7061_v6  ;;  %v7246_v23 = vand.u32 2147483647, %v1949_v28  ;;  %v1986_v6 = vsub.f32 %v1856_v41, %v6957_v48  ;;  %v1848_v49 = vpop.permute.xlu0 %1847  ;;  %v11264_v26 = vld [vmem:[#allocation83_spill] sm:$0xff]  ;;  %v11266_v28 = vld [vmem:[#allocation108_spill] sm:$0xff] }
 0x1f4   : > { %11252 = vst [vmem:[#allocation107_spill] sm:$0xff] %v7218_v62  ;;  %v2097_v62 = vand.u32 2147483647, %v1969_v4  ;;  %v1987_v4 = vsub.f32 %v1856_v41, %v6960_v5  ;;  %v1989_v10 = vsub.f32 %v1856_v41, %v6967_v43  ;;  %v7254_v17 = vadd.f32 %v11263_v8, %v11262_v56  ;;  %v11267_v52 = vld [vmem:[#allocation111_spill] sm:$0xff]  ;;  %v11272_v8 = vld [vmem:[#allocation146_spill] sm:$0xff] }
 0x1f5   : > { %11254 = vst [vmem:[#allocation73_spill] sm:$0xff] %v7229_v54  ;;  %v7233_v53 = vand.u32 2147483647, %v1947_v33  ;;  %v1988_v33 = vsub.f32 %v1856_v41, %v6964_v57  ;;  %v1978_v56 = vsub.f32 %v1848_v49, %v6957_v48  ;;  %2379 = vperm.xlu1 %4709, %v11272_v8  }
 0x1f6   : > { %11255 = vst [vmem:[#allocation74_spill] sm:$0xff] %v7231_v30  ;;  %v7244_v15 = vadd.f32 %v2097_v62, %v7108_v22  ;;  %v7258_v22 = vadd.f32 %v6836_v7, %v11264_v26  ;;  %v11265_v62 = vld [vmem:[#allocation110_spill] sm:$0xff]  ;;  %v7270_v41 = vand.u32 2147483647, %v1987_v4  ;;  %v7277_v7 = vld [vmem:[%s4995_s27 + $0xc0] sm:$0xff]  ;;  %v1828_v4 = vpop.permute.xlu1 %1827 }
 0x1f7   : > { %11256 = vst [vmem:[#allocation49_spill] sm:$0xff] %v7233_v53  ;;  %v7262_v35 = vadd.f32 %v11266_v28, %v11265_v62  ;;  %v7268_v53 = vand.u32 2147483647, %v1986_v6  ;;  %v7272_v30 = vand.u32 2147483647, %v1988_v33  ;;  %2411 = vperm.xlu0 %4708, %v7277_v7   ;;  %v1979_v62 = vsub.f32 %v1848_v49, %v6960_v5  ;;  %v11274_v33 = vld [vmem:[#allocation147_spill] sm:$0xff] }
 0x1f8   : > { %11257 = vst [vmem:[#allocation50_spill] sm:$0xff] %v7235_v25  ;;  %v7280_v26 = vand.u32 2147483647, %v1989_v10  ;;  %v1981_v6 = vsub.f32 %v1848_v49, %v6967_v43  ;;  %v2106_v28 = vand.u32 2147483647, %v1978_v56  ;;  %2383 = vperm.xlu2 %4707, %v11274_v33   ;;  %v1959_v8 = vsub.f32 %v1828_v4, %v6960_v5 }
 0x1f9   : > { %11258 = vst [vmem:[#allocation54_spill] sm:$0xff] %v7238_v19 }
 0x1fa   : > { %11259 = vst [vmem:[#allocation51_spill] sm:$0xff] %v7241_v29  ;;  %v7291_v29 = vadd.f32 %v2106_v28, %v7112_v63  ;;  %v7295_v56 = vand.u32 2147483647, %v1959_v8  ;;  %v11284_v28 = vld [vmem:[#allocation109_spill] sm:$0xff] }
 0x1fb   : > { %11260 = vst [vmem:[#allocation40_spill] sm:$0xff] %v7244_v15  ;;  %v1961_v15 = vsub.f32 %v1828_v4, %v6967_v43  ;;  %v11286_v8 = vld [vmem:[#allocation149_spill] sm:$0xff] }
 0x1fc   : > { %11261 = vst [vmem:[#allocation140_spill] sm:$0xff] %v7246_v23  ;;  %v11268_v23 = vld [vmem:[#allocation153_spill] sm:$0xff] }
 0x1fd   : > { %v7266_v25 = vadd.f32 %v11268_v23, %v11267_v52  ;;  %11269 = vst [vmem:[#allocation145_spill] sm:$0xff] %v7268_v53  ;;  %v1980_v23 = vsub.f32 %v1848_v49, %v6964_v57  ;;  %v1958_v52 = vsub.f32 %v1828_v4, %v6957_v48  ;;  %v2107_v53 = vand.u32 2147483647, %v1979_v62 }
 0x1fe   : > { %11270 = vst [vmem:[#allocation141_spill] sm:$0xff] %v7270_v41  ;;  %v1868_v41 = vpop.permute.xlu2 %1867 }
 0x1ff   : > { %11271 = vst [vmem:[#allocation44_spill] sm:$0xff] %v7272_v30  ;;  %v1960_v30 = vsub.f32 %v1828_v4, %v6964_v57  ;;  %v2108_v10 = vand.u32 2147483647, %v1980_v23  ;;  %v7293_v49 = vand.u32 2147483647, %v1958_v52  ;;  %v7300_v19 = vadd.f32 %v2107_v53, %v7120_v38  ;;  %v1860_v38 = vpop.permute.xlu0 %1859  ;;  %v11283_v53 = vld [vmem:[#allocation112_spill] sm:$0xff] }
 0x200   : > { %11273 = vst [vmem:[#allocation53_spill] sm:$0xff] %v7280_v26  ;;  %v2109_v26 = vand.u32 2147483647, %v1981_v6  ;;  %v7308_v23 = vand.u32 2147483647, %v1961_v15  ;;  %v1998_v63 = vsub.f32 %v1868_v41, %v6957_v48  ;;  %v1999_v6 = vsub.f32 %v1868_v41, %v6960_v5  ;;  %v11288_v15 = vld [vmem:[#allocation150_spill] sm:$0xff] }
 0x201   : > { %11275 = vst [vmem:[#allocation83_spill] sm:$0xff] %v7291_v29  ;;  %v7297_v33 = vand.u32 2147483647, %v1960_v30  ;;  %v7303_v54 = vadd.f32 %v2108_v10, %v7124_v32  ;;  %v2000_v30 = vsub.f32 %v1868_v41, %v6964_v57  ;;  %v2001_v4 = vsub.f32 %v1868_v41, %v6967_v43  ;;  %v11285_v32 = vld [vmem:[#allocation62_spill] sm:$0xff]  ;;  %v7328_v41 = vld [vmem:[%s4995_s27 + $0x98] sm:$0xff] }
 0x202   : > { %11276 = vst [vmem:[#allocation110_spill] sm:$0xff] %v7293_v49  ;;  %v7306_v62 = vadd.f32 %v2109_v26, %v7128_v46  ;;  %v7316_v52 = vadd.f32 %v11284_v28, %v11283_v53  ;;  %v7320_v46 = vadd.f32 %v11286_v8, %v11285_v32  ;;  %v11287_v26 = vld [vmem:[#allocation55_spill] sm:$0xff]  ;;  %v1990_v49 = vsub.f32 %v1860_v38, %v6957_v48  ;;  %v7332_v53 = vld [vmem:[%s4995_s27 + $0xd8] sm:$0xff] }
 0x203   : > { %11277 = vst [vmem:[#allocation108_spill] sm:$0xff] %v7295_v56  ;;  %v7324_v10 = vadd.f32 %v11288_v15, %v11287_v26  ;;  %v2128_v56 = vand.u32 2147483647, %v2000_v30  ;;  %2391 = vperm.xlu1 %4709, %v7328_v41   ;;  %2423 = vperm.xlu0 %4708, %v7332_v53   ;;  %v2129_v28 = vand.u32 2147483647, %v2001_v4  ;;  %v1991_v32 = vsub.f32 %v1860_v38, %v6960_v5 }
 0x204   : > { %11278 = vst [vmem:[#allocation111_spill] sm:$0xff] %v7297_v33  ;;  %v2127_v33 = vand.u32 2147483647, %v1999_v6  ;;  %v1992_v8 = vsub.f32 %v1860_v38, %v6964_v57  ;;  %v1840_v6 = vpop.permute.xlu1 %1839 }
 0x205   : > { %11279 = vst [vmem:[#allocation153_spill] sm:$0xff] %v7300_v19  ;;  %v7345_v15 = vadd.f32 %v2128_v56, %v7140_v58  ;;  %v7352_v19 = vadd.f32 %v2129_v28, %v7150_v44  ;;  %v1971_v58 = vsub.f32 %v1840_v6, %v6960_v5 }
 0x206   : > { %11280 = vst [vmem:[#allocation146_spill] sm:$0xff] %v7303_v54  ;;  %v7342_v26 = vadd.f32 %v2127_v33, %v7136_v55  ;;  %v7348_v54 = vld [vmem:[%s4995_s27 + $0xa0] sm:$0xff]  ;;  %v1880_v4 = vpop.permute.xlu2 %1879  ;;  %v2120_v29 = vand.u32 2147483647, %v1992_v8  ;;  %v1970_v55 = vsub.f32 %v1840_v6, %v6957_v48 }
 0x207   : > { %11281 = vst [vmem:[#allocation147_spill] sm:$0xff] %v7306_v62  ;;  %v2118_v62 = vand.u32 2147483647, %v1990_v49  ;;  %2395 = vperm.xlu2 %4707, %v7348_v54   ;;  %v1972_v49 = vsub.f32 %v1840_v6, %v6964_v57 }
 0x208   : > { %11282 = vst [vmem:[#allocation185_spill] sm:$0xff] %v7308_v23  ;;  %v2126_v23 = vand.u32 2147483647, %v1998_v63  ;;  %v1993_v63 = vsub.f32 %v1860_v38, %v6967_v43  ;;  %v2119_v38 = vand.u32 2147483647, %v1991_v32  ;;  %v7364_v33 = vadd.f32 %v2120_v29, %v7162_v12 }
 0x209   : > { %11289 = vst [vmem:[#allocation112_spill] sm:$0xff] %v7328_v41  ;;  %v7374_v28 = vand.u32 2147483647, %v1972_v49  ;;  %v2010_v32 = vsub.f32 %v1880_v4, %v6957_v48  ;;  %v2011_v12 = vsub.f32 %v1880_v4, %v6960_v5  ;;  %v2012_v29 = vsub.f32 %v1880_v4, %v6964_v57 }
 0x20a   : > { %v7339_v30 = vadd.f32 %v2126_v23, %v7132_v42  ;;  %11291 = vst [vmem:[#allocation62_spill] sm:$0xff] %v7342_v26  ;;  %v2121_v41 = vand.u32 2147483647, %v1993_v63  ;;  %v7355_v42 = vadd.f32 %v2118_v62, %v7154_v47  ;;  %v7361_v56 = vadd.f32 %v2119_v38, %v7158_v37 }
 0x20b   : > { %11292 = vst [vmem:[#allocation149_spill] sm:$0xff] %v7345_v15  ;;  %v1973_v23 = vsub.f32 %v1840_v6, %v6967_v43  ;;  %v7370_v47 = vand.u32 2147483647, %v1970_v55  ;;  %v7372_v62 = vand.u32 2147483647, %v1971_v58  ;;  %v7386_v55 = vld [vmem:[%s4995_s27 + $0xb0] sm:$0xff] }
 0x20c   : > { %11290 = vst [vmem:[#allocation109_spill] sm:$0xff] %v7339_v30  ;;  %v7367_v44 = vadd.f32 %v2121_v41, %v7195_v31  ;;  %v2013_v31 = vsub.f32 %v1880_v4, %v6967_v43  ;;  %v1872_v41 = vpop.permute.xlu0 %1871  ;;  %v2138_v8 = vand.u32 2147483647, %v2010_v32  ;;  %2403 = vperm.xlu1 %4709, %v7386_v55   ;;  %v7390_v58 = vld [vmem:[%s4995_s27 + $0xf0] sm:$0xff]  ;;  %v2139_v49 = vand.u32 2147483647, %v2011_v12 }
 0x20d   : > { %11293 = vst [vmem:[#allocation55_spill] sm:$0xff] %v7352_v19  ;;  %v7377_v37 = vand.u32 2147483647, %v1973_v23  ;;  %v2002_v63 = vsub.f32 %v1872_v41, %v6957_v48  ;;  %v2003_v6 = vsub.f32 %v1872_v41, %v6960_v5  ;;  %v2004_v38 = vsub.f32 %v1872_v41, %v6964_v57  ;;  %2435 = vperm.xlu0 %4708, %v7390_v58   ;;  %v7398_v15 = vld [vmem:[%s4995_s27 + $0xb8] sm:$0xff] }
 0x20e   : > { %11294 = vst [vmem:[#allocation150_spill] sm:$0xff] %v7370_v47  ;;  %v2140_v23 = vand.u32 2147483647, %v2012_v29  ;;  %v2141_v4 = vand.u32 2147483647, %v2013_v31  ;;  %v2005_v32 = vsub.f32 %v1872_v41, %v6967_v43  ;;  %v1892_v26 = vpop.permute.xlu2 %1891  ;;  %v7402_v30 = vadd.f32 %v2139_v49, %v7203_v18 }
 0x20f   : > { %11295 = vst [vmem:[#allocation186_spill] sm:$0xff] %v7372_v62  ;;  %v2130_v62 = vand.u32 2147483647, %v2002_v63  ;;  %v2131_v47 = vand.u32 2147483647, %v2003_v6  ;;  %2407 = vperm.xlu2 %4707, %v7398_v15   ;;  %v2022_v49 = vsub.f32 %v1892_v26, %v6957_v48 }
 0x210   : > { %11296 = vst [vmem:[#allocation187_spill] sm:$0xff] %v7374_v28  ;;  %v7395_v28 = vadd.f32 %v2138_v8, %v7199_v59  ;;  %v2132_v19 = vand.u32 2147483647, %v2004_v38  ;;  %v7405_v12 = vadd.f32 %v2140_v23, %v7207_v11  ;;  %v7408_v29 = vadd.f32 %v2141_v4, %v7254_v17  ;;  %v11309_v38 = vld [vmem:[#allocation57_spill] sm:$0xff] }
 0x211   : > { %11297 = vst [vmem:[#allocation188_spill] sm:$0xff] %v7377_v37  ;;  %v1852_v37 = vpop.permute.xlu1 %1851  ;;  %v2133_v31 = vand.u32 2147483647, %v2005_v32  ;;  %v7411_v59 = vadd.f32 %v2130_v62, %v7258_v22  ;;  %v7414_v41 = vadd.f32 %v2131_v47, %v7262_v35  ;;  %v11307_v62 = vld [vmem:[#allocation56_spill] sm:$0xff]  ;;  %v11308_v35 = vld [vmem:[#allocation151_spill] sm:$0xff]  ;;  %v2023_v32 = vsub.f32 %v1892_v26, %v6960_v5 }
 0x212   : > { %11298 = vst [vmem:[#allocation189_spill] sm:$0xff] %v7395_v28  ;;  %v7417_v8 = vadd.f32 %v2132_v19, %v7266_v25  ;;  %v1982_v63 = vsub.f32 %v1852_v37, %v6957_v48  ;;  %v1983_v11 = vsub.f32 %v1852_v37, %v6960_v5  ;;  %v1984_v17 = vsub.f32 %v1852_v37, %v6964_v57  ;;  %v11310_v19 = vld [vmem:[#allocation152_spill] sm:$0xff] }
 0x213   : > { %11299 = vst [vmem:[#allocation190_spill] sm:$0xff] %v7402_v30  ;;  %v7421_v18 = vadd.f32 %v2133_v31, %v7316_v52  ;;  %v1985_v6 = vsub.f32 %v1852_v37, %v6967_v43  ;;  %v1764_v47 = vadd.f32 %v11308_v35, %v11307_v62  ;;  %v1765_v25 = vadd.f32 %v11310_v19, %v11309_v38  ;;  %v11314_v35 = vld [vmem:[#allocation88_spill] sm:$0xff]  ;;  %v7445_v19 = vld [vmem:[%s4995_s27 + $0xc8] sm:$0xff] }
 0x214   : > { %11300 = vst [vmem:[#allocation191_spill] sm:$0xff] %v7405_v12  ;;  %v7426_v22 = vand.u32 2147483647, %v1982_v63  ;;  %v7433_v23 = vand.u32 2147483647, %v1983_v11  ;;  %v1884_v31 = vpop.permute.xlu0 %1883  ;;  %v2024_v37 = vsub.f32 %v1892_v26, %v6964_v57  ;;  %v2025_v63 = vsub.f32 %v1892_v26, %v6967_v43  ;;  %2415 = vperm.xlu1 %4709, %v7445_v19   ;;  %v11317_v26 = vld [vmem:[#allocation91_spill] sm:$0xff] }
 0x215   : > { %11301 = vst [vmem:[#allocation192_spill] sm:$0xff] %v7408_v29  ;;  %v7435_v52 = vand.u32 2147483647, %v1984_v17  ;;  %v7437_v4 = vand.u32 2147483647, %v1985_v6  ;;  %v1754_v38 = vadd.f32 %v6883_v9, %v11314_v35  ;;  %v10701_v11 = vmov 5  }
 0x216   : > { %11302 = vst [vmem:[#allocation193_spill] sm:$0xff] %v7411_v59  ;;  %v2150_v62 = vand.u32 2147483647, %v2022_v49  ;;  %4711 = vset.pattern.permute.xlu0 %v10701_v11  ;;  %v2151_v17 = vand.u32 2147483647, %v2023_v32  ;;  %v11315_v6 = vld [vmem:[#allocation89_spill] sm:$0xff]  ;;  %v1757_v49 = vadd.f32 %v6891_v20, %v11317_v26  ;;  %v2014_v32 = vsub.f32 %v1884_v31, %v6957_v48 }
 0x217   : > { %11303 = vst [vmem:[#allocation194_spill] sm:$0xff] %v7414_v41  ;;  %v2152_v9 = vand.u32 2147483647, %v2024_v37  ;;  %v2153_v35 = vand.u32 2147483647, %v2025_v63  ;;  %v7459_v12 = vld [vmem:[%s4995_s27 + $0x8] sm:$0xff]  ;;  %v2015_v20 = vsub.f32 %v1884_v31, %v6960_v5 }
 0x218   : > { %11304 = vst [vmem:[#allocation195_spill] sm:$0xff] %v7417_v8  ;;  %v7456_v29 = vadd.f32 %v2150_v62, %v7320_v46  ;;  %2835 = vperm.xlu0 %4711, %v7459_v12   ;;  %v7464_v11 = vld [vmem:[%s4995_s27 + $0xd0] sm:$0xff]  ;;  %v2017_v46 = vsub.f32 %v1884_v31, %v6967_v43  ;;  %v2142_v62 = vand.u32 2147483647, %v2014_v32  ;;  %v11350_v8 = vld [vmem:[#allocation113_spill] sm:$0xff] }
 0x219   : > { %11305 = vst [vmem:[#allocation196_spill] sm:$0xff] %v7421_v18  ;;  %2419 = vperm.xlu2 %4707, %v7464_v11   ;;  %v7473_v37 = vadd.f32 %v2152_v9, %v1764_v47  ;;  %v7475_v63 = vadd.f32 %v2153_v35, %v1765_v25  ;;  %v2143_v26 = vand.u32 2147483647, %v2015_v20  ;;  %v11349_v18 = vld [vmem:[#allocation79_spill] sm:$0xff]  ;;  %v11377_v59 = vld [vmem:[#allocation129_spill] sm:$0xff] }
 0x21a   : > { %11306 = vst [vmem:[#allocation197_spill] sm:$0xff] %v7426_v22  ;;  %v1864_v22 = vpop.permute.xlu1 %1863  ;;  %v2145_v30 = vand.u32 2147483647, %v2017_v46  ;;  %v1746_v41 = vadd.f32 %v11350_v8, %v11349_v18 }
 0x21b   : > { %11311 = vst [vmem:[#allocation56_spill] sm:$0xff] %v7433_v23  ;;  %v1997_v28 = vsub.f32 %v1864_v22, %v6967_v43 }
 0x21c   : > { %11312 = vst [vmem:[#allocation151_spill] sm:$0xff] %v7435_v52  ;;  %v11316_v52 = vld [vmem:[#allocation90_spill] sm:$0xff]  ;;  %v7489_v9 = vadd.f32 %v2145_v30, %v1757_v49  ;;  %v1896_v32 = vpop.permute.xlu0 %1895  ;;  %v11333_v30 = vld [vmem:[#allocation67_spill] sm:$0xff]  ;;  %v11335_v49 = vld [vmem:[#allocation68_spill] sm:$0xff] }
 0x21d   : > { %11313 = vst [vmem:[#allocation57_spill] sm:$0xff] %v7437_v4  ;;  %v1755_v4 = vadd.f32 %v6885_v45, %v11315_v6  ;;  %v1756_v23 = vadd.f32 %v6887_v24, %v11316_v52  ;;  %v1904_v45 = vpop.permute.xlu2 %1903  ;;  %v7468_v24 = vadd.f32 %v2151_v17, %v7324_v10  ;;  %v2016_v52 = vsub.f32 %v1884_v31, %v6964_v57 }
 0x21e   : > { %11318 = vst [vmem:[#allocation152_spill] sm:$0xff] %v7456_v29  ;;  %v1994_v6 = vsub.f32 %v1864_v22, %v6957_v48  ;;  %v1995_v10 = vsub.f32 %v1864_v22, %v6960_v5  ;;  %v7479_v17 = vadd.f32 %v2142_v62, %v1754_v38  ;;  %v7495_v38 = vand.u32 2147483647, %v1997_v28 }
 0x21f   : > { %11319 = vst [vmem:[#allocation88_spill] sm:$0xff] %v7459_v12  ;;  %v2144_v29 = vand.u32 2147483647, %v2016_v52  ;;  %v7485_v47 = vadd.f32 %v2143_v26, %v1755_v4  ;;  %v11331_v52 = vld [vmem:[#allocation65_spill] sm:$0xff]  ;;  %v2034_v28 = vsub.f32 %v1904_v45, %v6957_v48  ;;  %v2035_v26 = vsub.f32 %v1904_v45, %v6960_v5 }
 0x220   : > { %11320 = vst [vmem:[#allocation89_spill] sm:$0xff] %v7468_v24  ;;  %v1996_v24 = vsub.f32 %v1864_v22, %v6964_v57  ;;  %v7483_v31 = vand.u32 2147483647, %v1994_v6  ;;  %v7491_v35 = vand.u32 2147483647, %v1995_v10  ;;  %v1774_v46 = vadd.f32 %v6858_v34, %v11331_v52  ;;  %v11332_v22 = vld [vmem:[#allocation66_spill] sm:$0xff] }
 0x221   : > { %11321 = vst [vmem:[#allocation90_spill] sm:$0xff] %v7473_v37  ;;  %v7487_v25 = vadd.f32 %v2144_v29, %v1756_v23  ;;  %v1775_v62 = vadd.f32 %v6866_v1, %v11332_v22  ;;  %v7502_v4 = vld [vmem:[%s4995_s27 + $0xe0] sm:$0xff]  ;;  %v11334_v29 = vld [vmem:[#allocation154_spill] sm:$0xff]  ;;  %v11336_v6 = vld [vmem:[#allocation155_spill] sm:$0xff]  ;;  %v2036_v34 = vsub.f32 %v1904_v45, %v6964_v57  ;;  %v2037_v1 = vsub.f32 %v1904_v45, %v6967_v43 }
 0x222   : > { %11322 = vst [vmem:[#allocation91_spill] sm:$0xff] %v7475_v63  ;;  %v7493_v20 = vand.u32 2147483647, %v1996_v24  ;;  %2427 = vperm.xlu1 %4709, %v7502_v4   ;;  %v1776_v23 = vadd.f32 %v11334_v29, %v11333_v30  ;;  %v1777_v24 = vadd.f32 %v11336_v6, %v11335_v49  ;;  %v1876_v10 = vpop.permute.xlu1 %1875  ;;  %v7514_v52 = vld [vmem:[%s4995_s27 + $0x30] sm:$0xff]  ;;  %v11338_v22 = vld [vmem:[#allocation116_spill] sm:$0xff]  ;;  %v11339_v29 = vld [vmem:[#allocation118_spill] sm:$0xff] }
 0x223   : > { %11323 = vst [vmem:[#allocation198_spill] sm:$0xff] %v7479_v17  ;;  %2855 = vperm.xlu0 %4711, %v7514_v52   ;;  %v1766_v30 = vadd.f32 %v6920_v21, %v11338_v22  ;;  %v2162_v6 = vand.u32 2147483647, %v2034_v28  ;;  %v11342_v63 = vld [vmem:[#allocation163_spill] sm:$0xff]  ;;  %v7526_v45 = vld [vmem:[%s4995_s27 + $0xe8] sm:$0xff]  ;;  %v2026_v21 = vsub.f32 %v1896_v32, %v6957_v48  ;;  %v2027_v22 = vsub.f32 %v1896_v32, %v6960_v5 }
 0x224   : > { %11324 = vst [vmem:[#allocation199_spill] sm:$0xff] %v7483_v31  ;;  %v11341_v31 = vld [vmem:[#allocation119_spill] sm:$0xff]  ;;  %2431 = vperm.xlu2 %4707, %v7526_v45   ;;  %v2164_v17 = vand.u32 2147483647, %v2036_v34 }
 0x225   : > { %11325 = vst [vmem:[#allocation200_spill] sm:$0xff] %v7485_v47  ;;  %v1916_v49 = vpop.permute.xlu2 %1915  ;;  %v1768_v37 = vadd.f32 %v11342_v63, %v11341_v31  ;;  %v2028_v63 = vsub.f32 %v1896_v32, %v6964_v57  ;;  %v2029_v31 = vsub.f32 %v1896_v32, %v6967_v43  ;;  %v2155_v34 = vand.u32 2147483647, %v2027_v22 }
 0x226   : > { %11326 = vst [vmem:[#allocation201_spill] sm:$0xff] %v7487_v25  ;;  %v11344_v25 = vld [vmem:[#allocation164_spill] sm:$0xff] }
 0x227   : > { %11327 = vst [vmem:[#allocation202_spill] sm:$0xff] %v7489_v9  ;;  %v11343_v9 = vld [vmem:[#allocation120_spill] sm:$0xff] }
 0x228   : > { %11328 = vst [vmem:[#allocation203_spill] sm:$0xff] %v7491_v35  ;;  %v2163_v35 = vand.u32 2147483647, %v2035_v26  ;;  %v1769_v47 = vadd.f32 %v11344_v25, %v11343_v9  ;;  %v7537_v25 = vadd.f32 %v2164_v17, %v1776_v23  ;;  %v2154_v26 = vand.u32 2147483647, %v2026_v21  ;;  %v11355_v17 = vld [vmem:[#allocation81_spill] sm:$0xff] }
 0x229   : > { %11329 = vst [vmem:[#allocation204_spill] sm:$0xff] %v7493_v20  ;;  %v11356_v23 = vld [vmem:[#allocation157_spill] sm:$0xff]  ;;  %v11358_v21 = vld [vmem:[#allocation158_spill] sm:$0xff] }
 0x22a   : > { %11330 = vst [vmem:[#allocation205_spill] sm:$0xff] %v7495_v38  ;;  %v11340_v38 = vld [vmem:[#allocation162_spill] sm:$0xff]  ;;  %v7533_v28 = vadd.f32 %v2163_v35, %v1775_v62  ;;  %v7545_v62 = vpop.permute.xlu0 %1907 }
 0x22b   : > { %11337 = vst [vmem:[#allocation65_spill] sm:$0xff] %v7514_v52  ;;  %v1767_v20 = vadd.f32 %v11340_v38, %v11339_v29  ;;  %v2165_v52 = vand.u32 2147483647, %v2037_v1  ;;  %v7531_v38 = vadd.f32 %v2162_v6, %v1774_v46  ;;  %v2156_v1 = vand.u32 2147483647, %v2028_v63  ;;  %v11351_v46 = vld [vmem:[#allocation80_spill] sm:$0xff] }
 0x22c   : > { %11346 = vst [vmem:[#allocation67_spill] sm:$0xff] %v7533_v28  ;;  %v2157_v29 = vand.u32 2147483647, %v2029_v31  ;;  %v11352_v6 = vld [vmem:[#allocation156_spill] sm:$0xff]  ;;  %v7547_v28 = vadd.f32 %v2154_v26, %v1766_v30  ;;  %v2006_v31 = vsub.f32 %v1876_v10, %v6957_v48  ;;  %v2007_v30 = vsub.f32 %v1876_v10, %v6960_v5 }
 0x22d   : > { %11345 = vst [vmem:[#allocation66_spill] sm:$0xff] %v7531_v38  ;;  %v7539_v9 = vadd.f32 %v2165_v52, %v1777_v24  ;;  %v1747_v35 = vadd.f32 %v11352_v6, %v11351_v46  ;;  %v7549_v32 = vadd.f32 %v2155_v34, %v1767_v20  ;;  %v1748_v24 = vadd.f32 %v11356_v23, %v11355_v17  ;;  %v11357_v52 = vld [vmem:[#allocation82_spill] sm:$0xff]  ;;  %v7556_v63 = vld [vmem:[%s4995_s27 + $0xf8] sm:$0xff]  ;;  %v7565_v20 = vpop.permute.xlu1 %1887  ;;  %v11362_v46 = vld [vmem:[#allocation75_spill] sm:$0xff] }
 0x22e   : > { %11347 = vst [vmem:[#allocation154_spill] sm:$0xff] %v7537_v25  ;;  %v1749_v22 = vadd.f32 %v11358_v21, %v11357_v52  ;;  %2439 = vperm.xlu1 %4709, %v7556_v63   ;;  %v7559_v8 = vadd.f32 %v2156_v1, %v1768_v37  ;;  %v7561_v18 = vadd.f32 %v2157_v29, %v1769_v47  ;;  %v11363_v6 = vld [vmem:[#allocation114_spill] sm:$0xff]  ;;  %v11364_v23 = vld [vmem:[#allocation76_spill] sm:$0xff]  ;;  %v11365_v52 = vld [vmem:[#allocation159_spill] sm:$0xff]  ;;  %v2134_v47 = vand.u32 2147483647, %v2006_v31 }
 0x22f   : > { %11348 = vst [vmem:[#allocation68_spill] sm:$0xff] %v7539_v9  ;;  %v2008_v26 = vsub.f32 %v1876_v10, %v6964_v57  ;;  %v2009_v34 = vsub.f32 %v1876_v10, %v6967_v43  ;;  %v1786_v17 = vadd.f32 %v11363_v6, %v11362_v46  ;;  %v1787_v37 = vadd.f32 %v11365_v52, %v11364_v23  ;;  %v7574_v1 = vld [vmem:[%s4995_s27 + $0x48] sm:$0xff]  ;;  %v11367_v21 = vld [vmem:[#allocation77_spill] sm:$0xff]  ;;  %v11368_v9 = vld [vmem:[#allocation160_spill] sm:$0xff]  ;;  %v7582_v10 = vpop.permute.xlu2 %2315 }
 0x230   : > { %11353 = vst [vmem:[#allocation155_spill] sm:$0xff] %v7547_v28  ;;  %2867 = vperm.xlu0 %4711, %v7574_v1   ;;  %v2135_v29 = vand.u32 2147483647, %v2007_v30  ;;  %v1788_v25 = vadd.f32 %v11368_v9, %v11367_v21  ;;  %v11369_v38 = vld [vmem:[#allocation78_spill] sm:$0xff]  ;;  %v2046_v23 = vsub.f32 %v1916_v49, %v6957_v48  ;;  %v2047_v52 = vsub.f32 %v1916_v49, %v6960_v5  ;;  %v7587_v28 = vld [vmem:[%s4995_s27] sm:$0xff] }
 0x231   : > { %11354 = vst [vmem:[#allocation116_spill] sm:$0xff] %v7549_v32  ;;  %v11371_v32 = vmov 5   ;;  %v2136_v46 = vand.u32 2147483647, %v2008_v26  ;;  %v2137_v6 = vand.u32 2147483647, %v2009_v34  ;;  %v7590_v31 = vadd.f32 %v2134_v47, %v1746_v41 }
 0x232   : > { %11359 = vst [vmem:[#allocation118_spill] sm:$0xff] %v7556_v63  ;;  %4710 = vset.pattern.permute.xlu2 %v11371_v32  ;;  %v7592_v9 = vadd.f32 %v2135_v29, %v1747_v35  ;;  %v2174_v34 = vand.u32 2147483647, %v2046_v23  ;;  %v2175_v21 = vand.u32 2147483647, %v2047_v52  ;;  %v11378_v63 = vld [vmem:[#allocation169_spill] sm:$0xff] }
 0x233   : > { %11360 = vst [vmem:[#allocation162_spill] sm:$0xff] %v7559_v8  ;;  %2831 = vperm.xlu2 %4710, %v7587_v28   ;;  %v7596_v30 = vadd.f32 %v2136_v46, %v1748_v24  ;;  %v7598_v26 = vadd.f32 %v2137_v6, %v1749_v22  ;;  %v11379_v41 = vld [vmem:[#allocation130_spill] sm:$0xff]  ;;  %v11384_v24 = vld [vmem:[#allocation171_spill] sm:$0xff]  ;;  %v11385_v46 = vld [vmem:[#allocation132_spill] sm:$0xff] }
 0x234   : > { %11361 = vst [vmem:[#allocation119_spill] sm:$0xff] %v7561_v18  ;;  %v11370_v18 = vld [vmem:[#allocation161_spill] sm:$0xff]  ;;  %v11380_v47 = vld [vmem:[#allocation170_spill] sm:$0xff]  ;;  %v7604_v29 = vadd.f32 %v2174_v34, %v1786_v17  ;;  %v11386_v6 = vld [vmem:[#allocation172_spill] sm:$0xff]  ;;  %v1920_v17 = vpop.permute.xlu0 %1919 }
 0x235   : > { %11366 = vst [vmem:[#allocation163_spill] sm:$0xff] %v7574_v1  ;;  %v1789_v8 = vadd.f32 %v11370_v18, %v11369_v38  ;;  %v2048_v38 = vsub.f32 %v1916_v49, %v6964_v57  ;;  %v2049_v18 = vsub.f32 %v1916_v49, %v6967_v43  ;;  %v1779_v35 = vadd.f32 %v11380_v47, %v11379_v41  ;;  %v11383_v49 = vld [vmem:[#allocation131_spill] sm:$0xff]  ;;  %v11391_v34 = vld [vmem:[#allocation85_spill] sm:$0xff] }
 0x236   : > { %11372 = vst [vmem:[#allocation120_spill] sm:$0xff] %v7587_v28  ;;  %v1778_v28 = vadd.f32 %v11378_v63, %v11377_v59  ;;  %v1780_v22 = vadd.f32 %v11384_v24, %v11383_v49  ;;  %v1781_v23 = vadd.f32 %v11386_v6, %v11385_v46  ;;  %4712 = vset.pattern.permute.xlu1 %v11371_v32  ;;  %v11389_v32 = vld [vmem:[#allocation84_spill] sm:$0xff]  ;;  %v7636_v47 = vld [vmem:[%s4995_s27 + $0x60] sm:$0xff]  ;;  %v11394_v46 = vld [vmem:[#allocation86_spill] sm:$0xff] }
 0x237   : > { %11373 = vst [vmem:[#allocation164_spill] sm:$0xff] %v7590_v31  ;;  %v2176_v1 = vand.u32 2147483647, %v2048_v38  ;;  %v2177_v12 = vand.u32 2147483647, %v2049_v18  ;;  %v2038_v59 = vsub.f32 %v7545_v62, %v6957_v48  ;;  %v2039_v63 = vsub.f32 %v7545_v62, %v6960_v5  ;;  %v7625_v18 = vpop.permute.xlu1 %1899  ;;  %v11395_v6 = vld [vmem:[#allocation167_spill] sm:$0xff] }
 0x238   : > { %11374 = vst [vmem:[#allocation79_spill] sm:$0xff] %v7592_v9  ;;  %v7606_v9 = vadd.f32 %v2175_v21, %v1787_v37  ;;  %v7622_v37 = vld [vmem:[%s4995_s27 + $0x10] sm:$0xff]  ;;  %v11392_v21 = vld [vmem:[#allocation166_spill] sm:$0xff]  ;;  %2879 = vperm.xlu0 %4711, %v7636_v47  }
 0x239   : > { %11375 = vst [vmem:[#allocation113_spill] sm:$0xff] %v7596_v30  ;;  %v7613_v52 = vadd.f32 %v2176_v1, %v1788_v25  ;;  %v7615_v38 = vadd.f32 %v2177_v12, %v1789_v8  ;;  %2839 = vperm.xlu1 %4712, %v7622_v37   ;;  %v2040_v25 = vsub.f32 %v7545_v62, %v6964_v57  ;;  %v11390_v8 = vld [vmem:[#allocation165_spill] sm:$0xff]  ;;  %v2166_v49 = vand.u32 2147483647, %v2038_v59 }
 0x23a   : > { %11376 = vst [vmem:[#allocation80_spill] sm:$0xff] %v7598_v26  ;;  %v2041_v12 = vsub.f32 %v7545_v62, %v6967_v43  ;;  %v1758_v1 = vadd.f32 %v11390_v8, %v11389_v32  ;;  %v1759_v41 = vadd.f32 %v11392_v21, %v11391_v34  ;;  %v2167_v24 = vand.u32 2147483647, %v2039_v63  ;;  %v7643_v26 = vpop.permute.xlu2 %2327  ;;  %v7650_v34 = vld [vmem:[%s4995_s27 + $0x18] sm:$0xff] }
 0x23b   : > { %11381 = vst [vmem:[#allocation156_spill] sm:$0xff] %v7604_v29  ;;  %v2168_v62 = vand.u32 2147483647, %v2040_v25  ;;  %v2018_v32 = vsub.f32 %v7565_v20, %v6957_v48  ;;  %v2019_v8 = vsub.f32 %v7565_v20, %v6960_v5  ;;  %2843 = vperm.xlu2 %4710, %v7650_v34   ;;  %v7653_v59 = vadd.f32 %v2166_v49, %v1778_v28 }
 0x23c   : > { %11382 = vst [vmem:[#allocation81_spill] sm:$0xff] %v7606_v9  ;;  %v11397_v9 = vld [vmem:[#allocation168_spill] sm:$0xff]  ;;  %v2169_v30 = vand.u32 2147483647, %v2041_v12  ;;  %v7655_v63 = vadd.f32 %v2167_v24, %v1779_v35  ;;  %v11404_v35 = vld [vmem:[#allocation138_spill] sm:$0xff] }
 0x23d   : > { %11387 = vst [vmem:[#allocation157_spill] sm:$0xff] %v7613_v52  ;;  %v11396_v52 = vld [vmem:[#allocation87_spill] sm:$0xff]  ;;  %v7661_v25 = vadd.f32 %v2168_v62, %v1780_v22  ;;  %v2146_v21 = vand.u32 2147483647, %v2018_v32  ;;  %v1791_v49 = vadd.f32 %v7000_v27, %v11404_v35  ;;  %v7684_v27 = vld [vmem:[%s4995_s27 + $0x20] sm:$0xff]  ;;  %v7715_v35 = vpop.permute.xlu0 %2319 }
 0x23e   : > { %11388 = vst [vmem:[#allocation82_spill] sm:$0xff] %v7615_v38  ;;  %v1760_v38 = vadd.f32 %v11395_v6, %v11394_v46  ;;  %v1761_v29 = vadd.f32 %v11397_v9, %v11396_v52  ;;  %v2020_v9 = vsub.f32 %v7565_v20, %v6964_v57  ;;  %v2021_v52 = vsub.f32 %v7565_v20, %v6967_v43  ;;  %v11407_v20 = vld [vmem:[#allocation139_spill] sm:$0xff] }
 0x23f   : > { %11393 = vst [vmem:[#allocation158_spill] sm:$0xff] %v7636_v47  ;;  %v7663_v12 = vadd.f32 %v2169_v30, %v1781_v23  ;;  %v2147_v46 = vand.u32 2147483647, %v2019_v8  ;;  %v11403_v47 = vld [vmem:[#allocation137_spill] sm:$0xff]  ;;  %v7669_v24 = vadd.f32 %v2146_v21, %v1758_v1  ;;  %v1792_v22 = vadd.f32 %v7002_v3, %v11407_v20  ;;  %v11408_v30 = vld [vmem:[#allocation106_spill] sm:$0xff]  ;;  %v7687_v1 = vpop.permute.xlu1 %1911  ;;  %v7702_v8 = vld [vmem:[%s4995_s27 + $0x78] sm:$0xff] }
 0x240   : > { %11398 = vst [vmem:[#allocation75_spill] sm:$0xff] %v7650_v34  ;;  %v2148_v6 = vand.u32 2147483647, %v2020_v9  ;;  %v2149_v31 = vand.u32 2147483647, %v2021_v52  ;;  %v1790_v28 = vadd.f32 %v6996_v36, %v11403_v47  ;;  %v1793_v23 = vadd.f32 %v7008_v40, %v11408_v30  ;;  %v4775_v40 = vld [vmem:[%s10672_s1] sm:$0xff]  ;;  %2891 = vperm.xlu0 %4711, %v7702_v8  }
 0x241   : > { %11399 = vst [vmem:[#allocation114_spill] sm:$0xff] %v7653_v59  ;;  %v2050_v36 = vsub.f32 %v1920_v17, %v6957_v48  ;;  %v2051_v47 = vsub.f32 %v1920_v17, %v6960_v5  ;;  %2847 = vperm.xlu1 %4712, %v7684_v27   ;;  %v2053_v3 = vsub.f32 %v1920_v17, %v6967_v43  ;;  %v7788_v34 = vld [vmem:[%s4995_s27 + $0x40] sm:$0xff] }
 0x242   : > { %11400 = vst [vmem:[#allocation76_spill] sm:$0xff] %v7655_v63  ;;  %v7671_v63 = vadd.f32 %v2147_v46, %v1759_v41  ;;  %v7677_v62 = vadd.f32 %v2148_v6, %v1760_v38  ;;  %v7679_v32 = vadd.f32 %v2149_v31, %v1761_v29  ;;  %v2052_v41 = vsub.f32 %v1920_v17, %v6964_v57  ;;  %v4776_v29 = vld [vmem:[%s10672_s1 + $0x8] sm:$0xff]  ;;  %v4778_v17 = vld [vmem:[%s10672_s1 + $0x10] sm:$0xff]  ;;  %v4779_v46 = vld [vmem:[%s10672_s1 + $0x18] sm:$0xff]  ;;  %v7717_v20 = vpop.permute.xlu2 %2335 }
 0x243   : > { %11401 = vst [vmem:[#allocation159_spill] sm:$0xff] %v7661_v25  ;;  %v7694_v31 = vperm.slane %v4775_v40, 4  ;;  %v7699_v38 = vperm.slane %v4776_v29, 4  ;;  %v2178_v9 = vand.u32 2147483647, %v2050_v36  ;;  %v7708_v21 = vperm.slane %v4778_v17, 4 }
 0x244   : > { %11402 = vst [vmem:[#allocation77_spill] sm:$0xff] %v7663_v12  ;;  %v2179_v52 = vand.u32 2147483647, %v2051_v47  ;;  %v7713_v6 = vperm.slane %v4779_v46, 4  ;;  %v2180_v30 = vand.u32 2147483647, %v2052_v41 }
 0x245   : > { %11405 = vst [vmem:[#allocation160_spill] sm:$0xff] %v7669_v24  ;;  %v2181_v40 = vand.u32 2147483647, %v2053_v3  ;;  %v11413_v36 = vld [vmem:[#allocation123_spill] sm:$0xff]  ;;  %v11414_v29 = vld [vmem:[#allocation124_spill] sm:$0xff]  ;;  %v7724_v17 = vld [vmem:[%s4995_s27 + $0x28] sm:$0xff] }
 0x246   : > { %11406 = vst [vmem:[#allocation78_spill] sm:$0xff] %v7671_v63  ;;  %v2186_v47 = vadd.f32 %v6982_v39, %v11413_v36  ;;  %2851 = vperm.xlu2 %4710, %v7724_v17   ;;  %v7727_v63 = vadd.f32 %v2178_v9, %v1790_v28  ;;  %v7729_v46 = vadd.f32 %v2179_v52, %v1791_v49  ;;  %v11419_v24 = vld [vmem:[#allocation125_spill] sm:$0xff]  ;;  %v11421_v25 = vld [vmem:[#allocation127_spill] sm:$0xff]  ;;  %v11429_v36 = vld [vmem:[#allocation92_spill] sm:$0xff] }
 0x247   : > { %11409 = vst [vmem:[#allocation161_spill] sm:$0xff] %v7677_v62  ;;  %v11422_v41 = vld [vmem:[#allocation177_spill] sm:$0xff]  ;;  %v7735_v59 = vadd.f32 %v2180_v30, %v1792_v22  ;;  %v7737_v39 = vadd.f32 %v2181_v40, %v1793_v23  ;;  %v2447_v28 = vsub.f32 %v7582_v10, %v7699_v38  ;;  %v2448_v49 = vsub.f32 %v7582_v10, %v7708_v21  ;;  %v11426_v9 = vld [vmem:[#allocation115_spill] sm:$0xff]  ;;  %v11427_v22 = vld [vmem:[#allocation128_spill] sm:$0xff] }
 0x248   : > { %11410 = vst [vmem:[#allocation129_spill] sm:$0xff] %v7679_v32  ;;  %v11415_v32 = vld [vmem:[#allocation174_spill] sm:$0xff]  ;;  %v2189_v3 = vadd.f32 %v11422_v41, %v11421_v25  ;;  %v11428_v52 = vld [vmem:[#allocation117_spill] sm:$0xff] }
 0x249   : > { %11411 = vst [vmem:[#allocation169_spill] sm:$0xff] %v7684_v27  ;;  %v2187_v62 = vadd.f32 %v11415_v32, %v11414_v29  ;;  %v2446_v32 = vsub.f32 %v7582_v10, %v7694_v31  ;;  %v1771_v30 = vadd.f32 %v11428_v52, %v11427_v22  ;;  %v2575_v40 = vand.u32 2147483647, %v2447_v28  ;;  %v11430_v29 = vld [vmem:[#allocation173_spill] sm:$0xff]  ;;  %v11441_v27 = vld [vmem:[#allocation178_spill] sm:$0xff] }
 0x24a   : > { %11412 = vst [vmem:[#allocation130_spill] sm:$0xff] %v7702_v8  ;;  %v11420_v8 = vld [vmem:[#allocation176_spill] sm:$0xff]  ;;  %v1772_v41 = vadd.f32 %v11430_v29, %v11429_v36 }
 0x24b   : > { %11416 = vst [vmem:[#allocation170_spill] sm:$0xff] %v7724_v17  ;;  %v2188_v12 = vadd.f32 %v11420_v8, %v11419_v24  ;;  %v2449_v24 = vsub.f32 %v7582_v10, %v7713_v6  ;;  %v11425_v8 = vld [vmem:[#allocation126_spill] sm:$0xff]  ;;  %v2574_v23 = vand.u32 2147483647, %v2446_v32  ;;  %v2030_v10 = vsub.f32 %v7625_v18, %v6957_v48  ;;  %v7763_v32 = vpop.permute.xlu1 %1923 }
 0x24c   : > { %11417 = vst [vmem:[#allocation131_spill] sm:$0xff] %v7727_v63  ;;  %v1770_v25 = vadd.f32 %v11426_v9, %v11425_v8  ;;  %v2576_v63 = vand.u32 2147483647, %v2448_v49  ;;  %v2031_v8 = vsub.f32 %v7625_v18, %v6960_v5  ;;  %v7760_v9 = vld [vmem:[%s4995_s27 + $0x38] sm:$0xff]  ;;  %v7767_v22 = vadd.f32 %v2575_v40, %v2187_v62  ;;  %v7774_v49 = vld [vmem:[%s4995_s27 + $0x90] sm:$0xff]  ;;  %v11438_v40 = vld [vmem:[#allocation94_spill] sm:$0xff] }
 0x24d   : > { %11418 = vst [vmem:[#allocation171_spill] sm:$0xff] %v7729_v46  ;;  %v2577_v17 = vand.u32 2147483647, %v2449_v24  ;;  %2859 = vperm.xlu1 %4712, %v7760_v9   ;;  %v7765_v28 = vadd.f32 %v2574_v23, %v2186_v47  ;;  %2903 = vperm.xlu0 %4711, %v7774_v49   ;;  %v2158_v36 = vand.u32 2147483647, %v2030_v10  ;;  %v7781_v47 = vpop.permute.xlu0 %2339  ;;  %v11445_v10 = vld [vmem:[#allocation122_spill] sm:$0xff] }
 0x24e   : > { %11423 = vst [vmem:[#allocation132_spill] sm:$0xff] %v7735_v59  ;;  %v11432_v59 = vld [vmem:[#allocation175_spill] sm:$0xff]  ;;  %v7777_v24 = vadd.f32 %v2576_v63, %v2188_v12  ;;  %v2159_v29 = vand.u32 2147483647, %v2031_v8  ;;  %2863 = vperm.xlu2 %4710, %v7788_v34   ;;  %v7791_v63 = vpop.permute.xlu2 %2347 }
 0x24f   : > { %11424 = vst [vmem:[#allocation172_spill] sm:$0xff] %v7737_v39  ;;  %v11431_v39 = vld [vmem:[#allocation93_spill] sm:$0xff]  ;;  %v7779_v52 = vadd.f32 %v2577_v17, %v2189_v3  ;;  %v7793_v12 = vadd.f32 %v2158_v36, %v1770_v25  ;;  %v11444_v3 = vld [vmem:[#allocation95_spill] sm:$0xff]  ;;  %v2459_v25 = vsub.f32 %v7643_v26, %v7699_v38  ;;  %v2461_v36 = vsub.f32 %v7643_v26, %v7713_v6 }
 0x250   : > { %v1773_v46 = vadd.f32 %v11432_v59, %v11431_v39  ;;  %11433 = vst [vmem:[#allocation84_spill] sm:$0xff] %v7760_v9  ;;  %v2032_v59 = vsub.f32 %v7625_v18, %v6964_v57  ;;  %v2033_v39 = vsub.f32 %v7625_v18, %v6967_v43  ;;  %v11440_v9 = vld [vmem:[#allocation133_spill] sm:$0xff]  ;;  %v7795_v17 = vadd.f32 %v2159_v29, %v1771_v30  ;;  %v11450_v29 = vld [vmem:[#allocation142_spill] sm:$0xff] }
 0x251   : > { %11434 = vst [vmem:[#allocation165_spill] sm:$0xff] %v7765_v28  ;;  %v2199_v18 = vadd.f32 %v11441_v27, %v11440_v9  ;;  %v2200_v8 = vadd.f32 %v11445_v10, %v11444_v3  ;;  %v2458_v9 = vsub.f32 %v7643_v26, %v7694_v31  ;;  %v2460_v30 = vsub.f32 %v7643_v26, %v7708_v21  ;;  %v11452_v3 = vld [vmem:[#allocation144_spill] sm:$0xff] }
 0x252   : > { %11435 = vst [vmem:[#allocation85_spill] sm:$0xff] %v7767_v22  ;;  %v2160_v62 = vand.u32 2147483647, %v2032_v59  ;;  %v2161_v23 = vand.u32 2147483647, %v2033_v39  ;;  %v11439_v22 = vld [vmem:[#allocation121_spill] sm:$0xff]  ;;  %v2192_v10 = vadd.f32 %v7085_v60, %v11452_v3  ;;  %v2450_v26 = vsub.f32 %v7715_v35, %v7694_v31 }
 0x253   : > { %11436 = vst [vmem:[#allocation166_spill] sm:$0xff] %v7777_v24  ;;  %v2198_v28 = vadd.f32 %v11439_v22, %v11438_v40  ;;  %v11446_v59 = vld [vmem:[#allocation134_spill] sm:$0xff]  ;;  %v11447_v39 = vld [vmem:[#allocation179_spill] sm:$0xff]  ;;  %v2190_v40 = vadd.f32 %v7081_v14, %v11450_v29  ;;  %v2451_v14 = vsub.f32 %v7715_v35, %v7699_v38  ;;  %v2452_v60 = vsub.f32 %v7715_v35, %v7708_v21  ;;  %v7854_v24 = vld [vmem:[%s4995_s27 + $0x58] sm:$0xff] }
 0x254   : > { %11437 = vst [vmem:[#allocation86_spill] sm:$0xff] %v7779_v52  ;;  %v2201_v52 = vadd.f32 %v11447_v39, %v11446_v59  ;;  %v7801_v22 = vadd.f32 %v2160_v62, %v1772_v41  ;;  %v7803_v27 = vadd.f32 %v2161_v23, %v1773_v46  ;;  %v11451_v41 = vld [vmem:[#allocation143_spill] sm:$0xff]  ;;  %v2586_v62 = vand.u32 2147483647, %v2458_v9 }
 0x255   : > { %11442 = vst [vmem:[#allocation167_spill] sm:$0xff] %v7793_v12  ;;  %v2191_v46 = vadd.f32 %v7083_v51, %v11451_v41  ;;  %v2587_v23 = vand.u32 2147483647, %v2459_v25  ;;  %v11453_v59 = vld [vmem:[#allocation23_spill] sm:$0xff]  ;;  %v7838_v25 = vld [vmem:[%s4995_s27 + $0xa8] sm:$0xff] }
 0x256   : > { %11443 = vst [vmem:[#allocation87_spill] sm:$0xff] %v7795_v17  ;;  %v2193_v39 = vadd.f32 %v7089_v16, %v11453_v59  ;;  %v7826_v29 = vld [vmem:[%s4995_s27 + $0x50] sm:$0xff]  ;;  %v7829_v51 = vadd.f32 %v2586_v62, %v2198_v28  ;;  %v2453_v16 = vsub.f32 %v7715_v35, %v7713_v6  ;;  %2915 = vperm.xlu0 %4711, %v7838_v25   ;;  %v2578_v28 = vand.u32 2147483647, %v2450_v26  ;;  %v11460_v35 = vld [vmem:[#allocation136_spill] sm:$0xff]  ;;  %v11461_v17 = vld [vmem:[#allocation181_spill] sm:$0xff] }
 0x257   : > { %11448 = vst [vmem:[#allocation168_spill] sm:$0xff] %v7801_v22  ;;  %v2589_v22 = vand.u32 2147483647, %v2461_v36  ;;  %2871 = vperm.xlu1 %4712, %v7826_v29   ;;  %v7831_v9 = vadd.f32 %v2587_v23, %v2199_v18  ;;  %v2579_v62 = vand.u32 2147483647, %v2451_v14  ;;  %v7847_v18 = vpop.permute.xlu0 %2351  ;;  %v11458_v59 = vld [vmem:[#allocation135_spill] sm:$0xff]  ;;  %v1783_v12 = vadd.f32 %v11461_v17, %v11460_v35  ;;  %2875 = vperm.xlu2 %4710, %v7854_v24  }
 0x258   : > { %11449 = vst [vmem:[#allocation137_spill] sm:$0xff] %v7803_v27  ;;  %v2588_v27 = vand.u32 2147483647, %v2460_v30  ;;  %v7841_v30 = vpop.permute.xlu1 %2323  ;;  %v2580_v23 = vand.u32 2147483647, %v2452_v60  ;;  %v11465_v26 = vld [vmem:[#allocation182_spill] sm:$0xff] }
 0x259   : > { %11454 = vst [vmem:[#allocation138_spill] sm:$0xff] %v7829_v51  ;;  %v7845_v41 = vadd.f32 %v2589_v22, %v2201_v52  ;;  %v2581_v3 = vand.u32 2147483647, %v2453_v16  ;;  %v7859_v52 = vadd.f32 %v2578_v28, %v2190_v40  ;;  %v7861_v22 = vadd.f32 %v2579_v62, %v2191_v46  ;;  %v11466_v60 = vld [vmem:[#allocation97_spill] sm:$0xff]  ;;  %v11469_v62 = vld [vmem:[#allocation98_spill] sm:$0xff] }
 0x25a   : > { %11455 = vst [vmem:[#allocation139_spill] sm:$0xff] %v7831_v9  ;;  %v7843_v36 = vadd.f32 %v2588_v27, %v2200_v8  ;;  %v11459_v9 = vld [vmem:[#allocation180_spill] sm:$0xff]  ;;  %v7857_v8 = vpop.permute.xlu2 %2359  ;;  %v1785_v16 = vadd.f32 %v7033_v2, %v11466_v60  ;;  %v2043_v40 = vsub.f32 %v7687_v1, %v6960_v5  ;;  %v2044_v46 = vsub.f32 %v7687_v1, %v6964_v57 }
 0x25b   : > { %11457 = vst [vmem:[#allocation123_spill] sm:$0xff] %v7845_v41  ;;  %v1782_v51 = vadd.f32 %v11459_v9, %v11458_v59  ;;  %v11464_v27 = vld [vmem:[#allocation96_spill] sm:$0xff]  ;;  %v7867_v9 = vadd.f32 %v2580_v23, %v2192_v10  ;;  %v7869_v17 = vadd.f32 %v2581_v3, %v2193_v39  ;;  %v2042_v59 = vsub.f32 %v7687_v1, %v6957_v48  ;;  %v11470_v10 = vld [vmem:[#allocation99_spill] sm:$0xff]  ;;  %v11474_v41 = vld [vmem:[#allocation105_spill] sm:$0xff] }
 0x25c   : > { %11456 = vst [vmem:[#allocation106_spill] sm:$0xff] %v7843_v36  ;;  %v1784_v14 = vadd.f32 %v11465_v26, %v11464_v27  ;;  %v2045_v28 = vsub.f32 %v7687_v1, %v6967_v43  ;;  %v2206_v2 = vadd.f32 %v7035_v13, %v11469_v62  ;;  %v11471_v23 = vld [vmem:[#allocation183_spill] sm:$0xff]  ;;  %v2171_v3 = vand.u32 2147483647, %v2043_v40  ;;  %v11473_v26 = vld [vmem:[#allocation36_spill] sm:$0xff]  ;;  %v7892_v13 = vld [vmem:[%s4995_s27 + $0x68] sm:$0xff] }
 0x25d   : > { %11462 = vst [vmem:[#allocation124_spill] sm:$0xff] %v7859_v52  ;;  %v2207_v35 = vadd.f32 %v11471_v23, %v11470_v10  ;;  %v2170_v39 = vand.u32 2147483647, %v2042_v59  ;;  %v11472_v27 = vld [vmem:[#allocation103_spill] sm:$0xff]  ;;  %v11475_v36 = vld [vmem:[#allocation184_spill] sm:$0xff]  ;;  %v2466_v52 = vsub.f32 %v7717_v20, %v7694_v31  ;;  %v2467_v1 = vsub.f32 %v7717_v20, %v7699_v38 }
 0x25e   : > { %11463 = vst [vmem:[#allocation174_spill] sm:$0xff] %v7861_v22  ;;  %v2208_v60 = vadd.f32 %v11473_v26, %v11472_v27  ;;  %v2173_v22 = vand.u32 2147483647, %v2045_v28  ;;  %v7897_v40 = vadd.f32 %v2171_v3, %v1783_v12  ;;  %2927 = vperm.xlu0 %4711, %v7277_v7   ;;  %v2470_v3 = vsub.f32 %v7781_v47, %v7694_v31  ;;  %v7917_v27 = vld [vmem:[%s4995_s27 + $0x70] sm:$0xff] }
 0x25f   : > { %11467 = vst [vmem:[#allocation125_spill] sm:$0xff] %v7867_v9  ;;  %v2172_v9 = vand.u32 2147483647, %v2044_v46  ;;  %2883 = vperm.xlu1 %4712, %v7892_v13   ;;  %v7895_v59 = vadd.f32 %v2170_v39, %v1782_v51  ;;  %v2594_v10 = vand.u32 2147483647, %v2466_v52  ;;  %v7910_v51 = vpop.permute.xlu0 %2363  ;;  %2887 = vperm.xlu2 %4710, %v7917_v27   ;;  %v2472_v52 = vsub.f32 %v7781_v47, %v7708_v21 }
 0x260   : > { %11468 = vst [vmem:[#allocation176_spill] sm:$0xff] %v7869_v17  ;;  %v2209_v17 = vadd.f32 %v11475_v36, %v11474_v41  ;;  %v2468_v36 = vsub.f32 %v7717_v20, %v7708_v21  ;;  %v2469_v41 = vsub.f32 %v7717_v20, %v7713_v6  ;;  %v7904_v46 = vpop.permute.xlu1 %2331  ;;  %v7908_v62 = vadd.f32 %v2173_v22, %v1785_v16 }
 0x261   : > { %11476 = vst [vmem:[#allocation127_spill] sm:$0xff] %v7897_v40  ;;  %v7906_v28 = vadd.f32 %v2172_v9, %v1784_v14  ;;  %v2595_v23 = vand.u32 2147483647, %v2467_v1  ;;  %v2471_v20 = vsub.f32 %v7781_v47, %v7699_v38  ;;  %v7920_v7 = vadd.f32 %v2594_v10, %v2206_v2  ;;  %v11483_v10 = vld [vmem:[#allocation100_spill] sm:$0xff] }
 0x262   : > { %11478 = vst [vmem:[#allocation126_spill] sm:$0xff] %v7908_v62  ;;  %v2596_v12 = vand.u32 2147483647, %v2468_v36  ;;  %v2597_v39 = vand.u32 2147483647, %v2469_v41  ;;  %v2473_v14 = vsub.f32 %v7781_v47, %v7713_v6  ;;  %v7928_v16 = vpop.permute.xlu2 %2371  ;;  %v11485_v47 = vld [vmem:[#allocation37_spill] sm:$0xff] }
 0x263   : > { %11477 = vst [vmem:[#allocation177_spill] sm:$0xff] %v7906_v28  ;;  %v7922_v22 = vadd.f32 %v2595_v23, %v2207_v35  ;;  %v2598_v1 = vand.u32 2147483647, %v2470_v3  ;;  %v2599_v36 = vand.u32 2147483647, %v2471_v20  ;;  %v1794_v35 = vadd.f32 %v7091_v61, %v11483_v10  ;;  %v11484_v23 = vld [vmem:[#allocation101_spill] sm:$0xff] }
 0x264   : > { %11479 = vst [vmem:[#allocation115_spill] sm:$0xff] %v7920_v7  ;;  %v7930_v9 = vadd.f32 %v2596_v12, %v2208_v60  ;;  %v7932_v26 = vadd.f32 %v2597_v39, %v2209_v17  ;;  %v2600_v41 = vand.u32 2147483647, %v2472_v52  ;;  %v2601_v2 = vand.u32 2147483647, %v2473_v14  ;;  %v11486_v60 = vld [vmem:[#allocation102_spill] sm:$0xff] }
 0x265   : > { %11480 = vst [vmem:[#allocation128_spill] sm:$0xff] %v7922_v22  ;;  %v1795_v22 = vadd.f32 %v7093_v50, %v11484_v23  ;;  %v7939_v7 = vadd.f32 %v2598_v1, %v7170_v0  ;;  %v7942_v62 = vadd.f32 %v2599_v36, %v11485_v47  ;;  %v11487_v12 = vld [vmem:[#allocation13_spill] sm:$0xff]  ;;  %v11488_v39 = vld [vmem:[#allocation104_spill] sm:$0xff]  ;;  %v11489_v3 = vld [vmem:[#allocation14_spill] sm:$0xff]  ;;  %v2054_v50 = vsub.f32 %v7763_v32, %v6957_v48 }
 0x266   : > { %11481 = vst [vmem:[#allocation117_spill] sm:$0xff] %v7930_v9  ;;  %v1796_v17 = vadd.f32 %v11487_v12, %v11486_v60  ;;  %v1797_v20 = vadd.f32 %v11489_v3, %v11488_v39  ;;  %v11490_v52 = vld [vmem:[#allocation45_spill] sm:$0xff]  ;;  %v2055_v0 = vsub.f32 %v7763_v32, %v6960_v5  ;;  %v2056_v36 = vsub.f32 %v7763_v32, %v6964_v57  ;;  %v11496_v12 = vld [vmem:[#allocation18_spill] sm:$0xff]  ;;  %v11499_v9 = vld [vmem:[#allocation43_spill] sm:$0xff] }
 0x267   : > { %11482 = vst [vmem:[#allocation92_spill] sm:$0xff] %v7932_v26  ;;  %v7949_v14 = vadd.f32 %v2600_v41, %v11490_v52  ;;  %v11491_v26 = vld [vmem:[#allocation47_spill] sm:$0xff]  ;;  %v7959_v1 = vld [vmem:[%s4995_s27 + $0x80] sm:$0xff]  ;;  %v2057_v41 = vsub.f32 %v7763_v32, %v6967_v43  ;;  %2939 = vperm.xlu0 %4711, %v7332_v53   ;;  %v2182_v5 = vand.u32 2147483647, %v2054_v50  ;;  %v11497_v39 = vld [vmem:[#allocation42_spill] sm:$0xff]  ;;  %v7975_v57 = vpop.permute.xlu0 %2375  ;;  %v2479_v53 = vsub.f32 %v7791_v63, %v7699_v38 }
 0x268   : > { %v7952_v61 = vadd.f32 %v2601_v2, %v11491_v26  ;;  %2895 = vperm.xlu1 %4712, %v7959_v1   ;;  %v11492_v10 = vld [vmem:[#allocation17_spill] sm:$0xff]  ;;  %v11493_v26 = vld [vmem:[#allocation15_spill] sm:$0xff]  ;;  %v2183_v60 = vand.u32 2147483647, %v2055_v0  ;;  %v2220_v3 = vadd.f32 %v11497_v39, %v11496_v12  ;;  %v7977_v40 = vpop.permute.xlu1 %2343  ;;  %v2184_v43 = vand.u32 2147483647, %v2056_v36 }
 0x269   : > { %v2218_v2 = vadd.f32 %v11493_v26, %v11492_v10  ;;  %v11494_v23 = vld [vmem:[#allocation5_spill] sm:$0xff]  ;;  %v11498_v52 = vld [vmem:[#allocation19_spill] sm:$0xff]  ;;  %v2185_v32 = vand.u32 2147483647, %v2057_v41  ;;  %v2478_v10 = vsub.f32 %v7791_v63, %v7694_v31  ;;  %v7984_v50 = vld [vmem:[%s4995_s27 + $0x88] sm:$0xff]  ;;  %v7987_v0 = vadd.f32 %v2182_v5, %v1794_v35 }
 0x26a   : > { %v11495_v47 = vld [vmem:[#allocation41_spill] sm:$0xff]  ;;  %v2221_v28 = vadd.f32 %v11499_v9, %v11498_v52  ;;  %2899 = vperm.xlu2 %4710, %v7984_v50   ;;  %v7989_v26 = vadd.f32 %v2183_v60, %v1795_v22  ;;  %v2480_v9 = vsub.f32 %v7791_v63, %v7708_v21  ;;  %v2481_v36 = vsub.f32 %v7791_v63, %v7713_v6  ;;  %v8003_v5 = vpop.permute.xlu2 %2383 }
 0x26b   : > { %v2219_v48 = vadd.f32 %v11495_v47, %v11494_v23  ;;  %11500 = vst [vmem:[#allocation173_spill] sm:$0xff] %v7987_v0  ;;  %v7995_v41 = vadd.f32 %v2184_v43, %v1796_v17  ;;  %v7997_v23 = vadd.f32 %v2185_v32, %v1797_v20  ;;  %v2606_v47 = vand.u32 2147483647, %v2478_v10  ;;  %v11531_v0 = vld [vmem:[#allocation107_spill] sm:$0xff] }
 0x26c   : > { %11501 = vst [vmem:[#allocation93_spill] sm:$0xff] %v7989_v26  ;;  %v2607_v12 = vand.u32 2147483647, %v2479_v53  ;;  %v2608_v39 = vand.u32 2147483647, %v2480_v9  ;;  %v2482_v35 = vsub.f32 %v7847_v18, %v7694_v31  ;;  %v2483_v22 = vsub.f32 %v7847_v18, %v7699_v38  ;;  %v11508_v53 = vld [vmem:[#allocation112_spill] sm:$0xff] }
 0x26d   : > { %11502 = vst [vmem:[#allocation175_spill] sm:$0xff] %v7995_v41  ;;  %v2609_v52 = vand.u32 2147483647, %v2481_v36  ;;  %v8005_v60 = vadd.f32 %v2606_v47, %v2218_v2  ;;  %v2484_v63 = vsub.f32 %v7847_v18, %v7708_v21  ;;  %v2485_v17 = vsub.f32 %v7847_v18, %v7713_v6  ;;  %v11509_v2 = vld [vmem:[#allocation20_spill] sm:$0xff]  ;;  %v11510_v47 = vld [vmem:[#allocation46_spill] sm:$0xff] }
 0x26e   : > { %11503 = vst [vmem:[#allocation94_spill] sm:$0xff] %v7997_v23  ;;  %v8007_v26 = vadd.f32 %v2607_v12, %v2219_v48  ;;  %v8013_v20 = vadd.f32 %v2608_v39, %v2220_v3  ;;  %v2610_v32 = vand.u32 2147483647, %v2482_v35  ;;  %v2611_v10 = vand.u32 2147483647, %v2483_v22  ;;  %v11511_v12 = vld [vmem:[#allocation10_spill] sm:$0xff] }
 0x26f   : > { %11504 = vst [vmem:[#allocation121_spill] sm:$0xff] %v8005_v60  ;;  %v8015_v43 = vadd.f32 %v2609_v52, %v2221_v28  ;;  %v2612_v9 = vand.u32 2147483647, %v2484_v63  ;;  %v2613_v36 = vand.u32 2147483647, %v2485_v17  ;;  %v2194_v48 = vadd.f32 %v11510_v47, %v11509_v2  ;;  %2951 = vperm.xlu0 %4711, %v7390_v58   ;;  %v11513_v23 = vld [vmem:[#allocation73_spill] sm:$0xff] }
 0x270   : > { %11505 = vst [vmem:[#allocation133_spill] sm:$0xff] %v8007_v26  ;;  %2907 = vperm.xlu1 %4712, %v11508_v53   ;;  %v11512_v26 = vld [vmem:[#allocation63_spill] sm:$0xff]  ;;  %v8024_v18 = vadd.f32 %v2610_v32, %v11513_v23  ;;  %v11514_v3 = vld [vmem:[#allocation54_spill] sm:$0xff]  ;;  %v11516_v39 = vld [vmem:[#allocation25_spill] sm:$0xff]  ;;  %v8033_v53 = vpop.permute.xlu0 %2387  ;;  %v2454_v58 = vsub.f32 %v7841_v30, %v7694_v31  ;;  %v2455_v23 = vsub.f32 %v7841_v30, %v7699_v38 }
 0x271   : > { %11506 = vst [vmem:[#allocation178_spill] sm:$0xff] %v8013_v20  ;;  %v2195_v60 = vadd.f32 %v11512_v26, %v11511_v12  ;;  %v8027_v28 = vadd.f32 %v2611_v10, %v11514_v3  ;;  %v11517_v52 = vld [vmem:[#allocation30_spill] sm:$0xff]  ;;  %v11519_v63 = vld [vmem:[#allocation12_spill] sm:$0xff]  ;;  %v11520_v2 = vld [vmem:[#allocation51_spill] sm:$0xff]  ;;  %v2456_v32 = vsub.f32 %v7841_v30, %v7708_v21  ;;  %v2457_v10 = vsub.f32 %v7841_v30, %v7713_v6 }
 0x272   : > { %11507 = vst [vmem:[#allocation95_spill] sm:$0xff] %v8015_v43  ;;  %v2196_v35 = vadd.f32 %v11517_v52, %v11516_v39  ;;  %v11518_v22 = vld [vmem:[#allocation26_spill] sm:$0xff]  ;;  %v8036_v47 = vadd.f32 %v2612_v9, %v11520_v2  ;;  %v11522_v26 = vld [vmem:[#allocation40_spill] sm:$0xff]  ;;  %2911 = vperm.xlu2 %4710, %v7348_v54   ;;  %v11524_v3 = vld [vmem:[#allocation27_spill] sm:$0xff]  ;;  %v2582_v2 = vand.u32 2147483647, %v2454_v58  ;;  %v2490_v30 = vsub.f32 %v7857_v8, %v7694_v31 }
 0x273   : > { %11515 = vst [vmem:[#allocation122_spill] sm:$0xff] %v8027_v28  ;;  %v2197_v17 = vadd.f32 %v11519_v63, %v11518_v22  ;;  %v8039_v12 = vadd.f32 %v2613_v36, %v11522_v26  ;;  %v11525_v9 = vld [vmem:[#allocation31_spill] sm:$0xff]  ;;  %v11526_v52 = vld [vmem:[#allocation28_spill] sm:$0xff]  ;;  %v8054_v63 = vpop.permute.xlu1 %2355  ;;  %v2583_v26 = vand.u32 2147483647, %v2455_v23  ;;  %v11528_v43 = vld [vmem:[#allocation21_spill] sm:$0xff]  ;;  %v2492_v58 = vsub.f32 %v7857_v8, %v7708_v21 }
 0x274   : > { %11521 = vst [vmem:[#allocation134_spill] sm:$0xff] %v8036_v47  ;;  %v2230_v39 = vadd.f32 %v11525_v9, %v11524_v3  ;;  %v11527_v36 = vld [vmem:[#allocation32_spill] sm:$0xff]  ;;  %v11529_v20 = vld [vmem:[#allocation58_spill] sm:$0xff]  ;;  %v2584_v47 = vand.u32 2147483647, %v2456_v32  ;;  %v2491_v3 = vsub.f32 %v7857_v8, %v7699_v38  ;;  %v8064_v9 = vadd.f32 %v2582_v2, %v2194_v48 }
 0x275   : > { %11523 = vst [vmem:[#allocation179_spill] sm:$0xff] %v8039_v12  ;;  %v2231_v22 = vadd.f32 %v11527_v36, %v11526_v52  ;;  %v2232_v41 = vadd.f32 %v11529_v20, %v11528_v43  ;;  %v11530_v54 = vld [vmem:[#allocation22_spill] sm:$0xff]  ;;  %v2585_v28 = vand.u32 2147483647, %v2457_v10  ;;  %v8066_v52 = vadd.f32 %v2583_v26, %v2195_v60  ;;  %v8076_v10 = vpop.permute.xlu2 %2395 }
 0x276   : > { %v2233_v12 = vadd.f32 %v11531_v0, %v11530_v54  ;;  %11532 = vst [vmem:[#allocation142_spill] sm:$0xff] %v8064_v9  ;;  %v2493_v20 = vsub.f32 %v7857_v8, %v7713_v6  ;;  %v8072_v43 = vadd.f32 %v2584_v47, %v2196_v35  ;;  %v2618_v23 = vand.u32 2147483647, %v2490_v30 }
 0x277   : > { %11533 = vst [vmem:[#allocation143_spill] sm:$0xff] %v8066_v52  ;;  %v8074_v0 = vadd.f32 %v2585_v28, %v2197_v17  ;;  %v2619_v32 = vand.u32 2147483647, %v2491_v3  ;;  %v2620_v48 = vand.u32 2147483647, %v2492_v58  ;;  %v2494_v60 = vsub.f32 %v7910_v51, %v7694_v31  ;;  %v11541_v58 = vld [vmem:[#allocation74_spill] sm:$0xff] }
 0x278   : > { %11534 = vst [vmem:[#allocation144_spill] sm:$0xff] %v8072_v43  ;;  %2919 = vperm.xlu1 %4712, %v7386_v55   ;;  %v2621_v36 = vand.u32 2147483647, %v2493_v20  ;;  %v2495_v2 = vsub.f32 %v7910_v51, %v7699_v38  ;;  %v8083_v26 = vadd.f32 %v2618_v23, %v2230_v39  ;;  %v2496_v28 = vsub.f32 %v7910_v51, %v7708_v21  ;;  %v8091_v17 = vpop.permute.xlu0 %2399  ;;  %v11542_v23 = vld [vmem:[#allocation24_spill] sm:$0xff]  ;;  %v11560_v43 = vld [vmem:[#allocation35_spill] sm:$0xff]  ;;  %v11561_v52 = vld [vmem:[#allocation53_spill] sm:$0xff] }
 0x279   : > { %11535 = vst [vmem:[#allocation23_spill] sm:$0xff] %v8074_v0  ;;  %v8085_v8 = vadd.f32 %v2619_v32, %v2231_v22  ;;  %v2497_v35 = vsub.f32 %v7910_v51, %v7713_v6  ;;  %v8093_v55 = vadd.f32 %v2620_v48, %v2232_v41  ;;  %v2622_v54 = vand.u32 2147483647, %v2494_v60  ;;  %v11540_v22 = vld [vmem:[#allocation7_spill] sm:$0xff]  ;;  %v11543_v32 = vld [vmem:[#allocation49_spill] sm:$0xff]  ;;  %v11547_v48 = vld [vmem:[#allocation50_spill] sm:$0xff] }
 0x27a   : > { %11536 = vst [vmem:[#allocation135_spill] sm:$0xff] %v8083_v26  ;;  %v8095_v47 = vadd.f32 %v2621_v36, %v2233_v12  ;;  %v2623_v30 = vand.u32 2147483647, %v2495_v2  ;;  %2923 = vperm.xlu2 %4710, %v7398_v15   ;;  %v2624_v39 = vand.u32 2147483647, %v2496_v28  ;;  %v2202_v20 = vadd.f32 %v11541_v58, %v11540_v22  ;;  %v11544_v26 = vld [vmem:[#allocation83_spill] sm:$0xff] }
 0x27b   : > { %11537 = vst [vmem:[#allocation180_spill] sm:$0xff] %v8085_v8  ;;  %v2625_v3 = vand.u32 2147483647, %v2497_v35  ;;  %v2203_v8 = vadd.f32 %v11543_v32, %v11542_v23  ;;  %v8103_v51 = vadd.f32 %v2622_v54, %v11544_v26  ;;  %v11545_v0 = vld [vmem:[#allocation153_spill] sm:$0xff]  ;;  %v11546_v12 = vld [vmem:[#allocation6_spill] sm:$0xff]  ;;  %v11548_v60 = vld [vmem:[#allocation11_spill] sm:$0xff]  ;;  %v2462_v58 = vsub.f32 %v7904_v46, %v7694_v31 }
 0x27c   : > { %11538 = vst [vmem:[#allocation136_spill] sm:$0xff] %v8093_v55  ;;  %v8106_v41 = vadd.f32 %v2623_v30, %v11545_v0  ;;  %v2204_v36 = vadd.f32 %v11547_v48, %v11546_v12  ;;  %v11549_v2 = vld [vmem:[#allocation140_spill] sm:$0xff]  ;;  %v11550_v28 = vld [vmem:[#allocation146_spill] sm:$0xff]  ;;  %v2463_v26 = vsub.f32 %v7904_v46, %v7699_v38  ;;  %v8122_v0 = vpop.permute.xlu1 %2367  ;;  %v2464_v54 = vsub.f32 %v7904_v46, %v7708_v21  ;;  %v11554_v23 = vld [vmem:[#allocation33_spill] sm:$0xff] }
 0x27d   : > { %11539 = vst [vmem:[#allocation181_spill] sm:$0xff] %v8095_v47  ;;  %v2205_v15 = vadd.f32 %v11549_v2, %v11548_v60  ;;  %v8113_v35 = vadd.f32 %v2624_v39, %v11550_v28  ;;  %v11552_v47 = vld [vmem:[#allocation147_spill] sm:$0xff]  ;;  %v2465_v30 = vsub.f32 %v7904_v46, %v7713_v6  ;;  %v11555_v39 = vld [vmem:[#allocation145_spill] sm:$0xff]  ;;  %v11556_v12 = vld [vmem:[#allocation148_spill] sm:$0xff]  ;;  %v2590_v48 = vand.u32 2147483647, %v2462_v58 }
 0x27e   : > { %v8116_v22 = vadd.f32 %v2625_v3, %v11552_v47  ;;  %v2242_v32 = vadd.f32 %v11555_v39, %v11554_v23  ;;  %v11557_v47 = vld [vmem:[#allocation141_spill] sm:$0xff]  ;;  %v2591_v60 = vand.u32 2147483647, %v2463_v26  ;;  %v11558_v2 = vld [vmem:[#allocation34_spill] sm:$0xff]  ;;  %v11559_v28 = vld [vmem:[#allocation44_spill] sm:$0xff]  ;;  %v2245_v9 = vadd.f32 %v11561_v52, %v11560_v43  ;;  %v8149_v43 = vpop.permute.xlu2 %2407 }
 0x27f   : > { %11551 = vst [vmem:[#allocation96_spill] sm:$0xff] %v8113_v35  ;;  %v2243_v3 = vadd.f32 %v11557_v47, %v11556_v12  ;;  %v2244_v55 = vadd.f32 %v11559_v28, %v11558_v2  ;;  %v2593_v35 = vand.u32 2147483647, %v2465_v30  ;;  %v2502_v46 = vsub.f32 %v7928_v16, %v7694_v31 }
 0x280   : > { %11553 = vst [vmem:[#allocation182_spill] sm:$0xff] %v8116_v22  ;;  %2931 = vperm.xlu1 %4712, %v7445_v19   ;;  %v2592_v22 = vand.u32 2147483647, %v2464_v54  ;;  %v2503_v23 = vsub.f32 %v7928_v16, %v7699_v38  ;;  %v8141_v39 = vadd.f32 %v2590_v48, %v2202_v20  ;;  %v8143_v58 = vadd.f32 %v2591_v60, %v2203_v8  ;;  %v8160_v60 = vpop.permute.xlu0 %2411 }
 0x281   : > { %v2504_v26 = vsub.f32 %v7928_v16, %v7708_v21  ;;  %v2505_v52 = vsub.f32 %v7928_v16, %v7713_v6  ;;  %v8153_v54 = vadd.f32 %v2593_v35, %v2205_v15  ;;  %v2630_v30 = vand.u32 2147483647, %v2502_v46 }
 0x282   : > { %v8151_v19 = vadd.f32 %v2592_v22, %v2204_v36  ;;  %v2631_v12 = vand.u32 2147483647, %v2503_v23  ;;  %2935 = vperm.xlu2 %4710, %v7464_v11   ;;  %v2506_v8 = vsub.f32 %v7975_v57, %v7694_v31  ;;  %v2507_v48 = vsub.f32 %v7975_v57, %v7699_v38 }
 0x283   : > { %11562 = vst [vmem:[#allocation97_spill] sm:$0xff] %v8153_v54  ;;  %v2632_v20 = vand.u32 2147483647, %v2504_v26  ;;  %v2633_v47 = vand.u32 2147483647, %v2505_v52  ;;  %v8162_v16 = vadd.f32 %v2630_v30, %v2242_v32  ;;  %v2508_v15 = vsub.f32 %v7975_v57, %v7708_v21  ;;  %v11567_v26 = vld [vmem:[#allocation48_spill] sm:$0xff] }
 0x284   : > { %v8164_v36 = vadd.f32 %v2631_v12, %v2243_v3  ;;  %v2509_v11 = vsub.f32 %v7975_v57, %v7713_v6  ;;  %v2634_v2 = vand.u32 2147483647, %v2506_v8  ;;  %v2635_v28 = vand.u32 2147483647, %v2507_v48  ;;  %v11568_v52 = vld [vmem:[#allocation110_spill] sm:$0xff]  ;;  %v11569_v30 = vld [vmem:[#allocation16_spill] sm:$0xff]  ;;  %v8188_v48 = vpop.permute.xlu1 %2379 }
 0x285   : > { %11563 = vst [vmem:[#allocation98_spill] sm:$0xff] %v8162_v16  ;;  %v8170_v35 = vadd.f32 %v2632_v20, %v2244_v55  ;;  %v8172_v22 = vadd.f32 %v2633_v47, %v2245_v9  ;;  %v2636_v46 = vand.u32 2147483647, %v2508_v15  ;;  %v2214_v32 = vadd.f32 %v11568_v52, %v11567_v26  ;;  %v11570_v3 = vld [vmem:[#allocation108_spill] sm:$0xff]  ;;  %v11571_v57 = vld [vmem:[#allocation9_spill] sm:$0xff]  ;;  %v11572_v55 = vld [vmem:[#allocation111_spill] sm:$0xff] }
 0x286   : > { %11564 = vst [vmem:[#allocation99_spill] sm:$0xff] %v8164_v36  ;;  %v2637_v23 = vand.u32 2147483647, %v2509_v11  ;;  %v2215_v12 = vadd.f32 %v11570_v3, %v11569_v30  ;;  %v8179_v36 = vadd.f32 %v2634_v2, %v7355_v42  ;;  %v8182_v16 = vadd.f32 %v2635_v28, %v7361_v56  ;;  %v11573_v20 = vld [vmem:[#allocation29_spill] sm:$0xff] }
 0x287   : > { %11565 = vst [vmem:[#allocation183_spill] sm:$0xff] %v8170_v35  ;;  %v2216_v9 = vadd.f32 %v11572_v55, %v11571_v57  ;;  %v11574_v47 = vld [vmem:[#allocation185_spill] sm:$0xff]  ;;  %v8192_v15 = vadd.f32 %v2636_v46, %v7364_v33  ;;  %v2474_v42 = vsub.f32 %v7977_v40, %v7694_v31  ;;  %v2475_v56 = vsub.f32 %v7977_v40, %v7699_v38  ;;  %v8216_v57 = vpop.permute.xlu2 %2419 }
 0x288   : > { %11566 = vst [vmem:[#allocation103_spill] sm:$0xff] %v8172_v22  ;;  %v2217_v8 = vadd.f32 %v11574_v47, %v11573_v20  ;;  %2943 = vperm.xlu1 %4712, %v7502_v4   ;;  %v8195_v11 = vadd.f32 %v2637_v23, %v7367_v44  ;;  %v2476_v2 = vsub.f32 %v7977_v40, %v7708_v21  ;;  %v11583_v54 = vld [vmem:[#allocation149_spill] sm:$0xff] }
 0x289   : > { %v2477_v28 = vsub.f32 %v7977_v40, %v7713_v6  ;;  %v2514_v4 = vsub.f32 %v8003_v5, %v7694_v31  ;;  %v2515_v33 = vsub.f32 %v8003_v5, %v7699_v38  ;;  %v2602_v44 = vand.u32 2147483647, %v2474_v42 }
 0x28a   : > { %v2603_v46 = vand.u32 2147483647, %v2475_v56  ;;  %v2516_v23 = vsub.f32 %v8003_v5, %v7708_v21  ;;  %v2517_v26 = vsub.f32 %v8003_v5, %v7713_v6  ;;  %2947 = vperm.xlu2 %4710, %v7526_v45   ;;  %v2604_v52 = vand.u32 2147483647, %v2476_v2  ;;  %v11579_v45 = vld [vmem:[#allocation109_spill] sm:$0xff] }
 0x28b   : > { %v2605_v30 = vand.u32 2147483647, %v2477_v28  ;;  %v2642_v3 = vand.u32 2147483647, %v2514_v4  ;;  %v2518_v40 = vsub.f32 %v8033_v53, %v7694_v31  ;;  %v8218_v55 = vadd.f32 %v2602_v44, %v2214_v32  ;;  %v8229_v28 = vpop.permute.xlu0 %2423  ;;  %v11581_v4 = vld [vmem:[#allocation62_spill] sm:$0xff] }
 0x28c   : > { %v8220_v20 = vadd.f32 %v2603_v46, %v2215_v12  ;;  %v2643_v47 = vand.u32 2147483647, %v2515_v33  ;;  %v2644_v42 = vand.u32 2147483647, %v2516_v23  ;;  %v8222_v56 = vadd.f32 %v2604_v52, %v2216_v9  ;;  %v11587_v23 = vld [vmem:[#allocation118_spill] sm:$0xff] }
 0x28d   : > { %11575 = vst [vmem:[#allocation36_spill] sm:$0xff] %v8218_v55  ;;  %v8224_v22 = vadd.f32 %v2605_v30, %v2217_v8  ;;  %v2645_v5 = vand.u32 2147483647, %v2517_v26  ;;  %v8227_v2 = vadd.f32 %v2642_v3, %v11579_v45  ;;  %v2519_v12 = vsub.f32 %v8033_v53, %v7699_v38  ;;  %v11585_v8 = vld [vmem:[#allocation55_spill] sm:$0xff]  ;;  %v11589_v3 = vld [vmem:[#allocation150_spill] sm:$0xff] }
 0x28e   : > { %11576 = vst [vmem:[#allocation105_spill] sm:$0xff] %v8220_v20  ;;  %v8232_v35 = vadd.f32 %v2643_v47, %v11581_v4  ;;  %v8235_v32 = vadd.f32 %v2644_v42, %v11583_v54  ;;  %v2520_v9 = vsub.f32 %v8033_v53, %v7708_v21  ;;  %v2521_v44 = vsub.f32 %v8033_v53, %v7713_v6  ;;  %v11588_v54 = vld [vmem:[#allocation8_spill] sm:$0xff]  ;;  %v11591_v45 = vld [vmem:[#allocation186_spill] sm:$0xff] }
 0x28f   : > { %11577 = vst [vmem:[#allocation184_spill] sm:$0xff] %v8222_v56  ;;  %v8242_v33 = vadd.f32 %v2645_v5, %v11585_v8  ;;  %v2646_v46 = vand.u32 2147483647, %v2518_v40  ;;  %v2647_v26 = vand.u32 2147483647, %v2519_v12  ;;  %v4917_v30 = vmov 6  }
 0x290   : > { %11578 = vst [vmem:[#allocation100_spill] sm:$0xff] %v8224_v22  ;;  %2955 = vperm.xlu1 %4712, %v11587_v23   ;;  %v2648_v52 = vand.u32 2147483647, %v2520_v9  ;;  %4714 = vset.pattern.permute.xlu0 %v4917_v30  ;;  %v2226_v47 = vadd.f32 %v11589_v3, %v11588_v54  ;;  %v11590_v42 = vld [vmem:[#allocation52_spill] sm:$0xff]  ;;  %v11594_v8 = vld [vmem:[#allocation38_spill] sm:$0xff]  ;;  %v11596_v40 = vld [vmem:[#allocation39_spill] sm:$0xff]  ;;  %v8259_v9 = vpop.permute.xlu1 %2391 }
 0x291   : > { %11580 = vst [vmem:[#allocation101_spill] sm:$0xff] %v8227_v2  ;;  %v2227_v4 = vadd.f32 %v11591_v45, %v11590_v42  ;;  %v11597_v2 = vld [vmem:[#allocation188_spill] sm:$0xff]  ;;  %v11599_v22 = vld [vmem:[#allocation194_spill] sm:$0xff]  ;;  %v11601_v54 = vld [vmem:[#allocation195_spill] sm:$0xff] }
 0x292   : > { %11582 = vst [vmem:[#allocation37_spill] sm:$0xff] %v8232_v35  ;;  %v11592_v35 = vld [vmem:[#allocation193_spill] sm:$0xff]  ;;  %v2229_v23 = vadd.f32 %v11597_v2, %v11596_v40  ;;  %v11598_v12 = vld [vmem:[#allocation88_spill] sm:$0xff]  ;;  %v8262_v56 = vadd.f32 %v2647_v26, %v11599_v22  ;;  %v8265_v3 = vadd.f32 %v2648_v52, %v11601_v54  ;;  %4713 = vset.pattern.permute.xlu2 %v4917_v30  ;;  %v8280_v52 = vpop.permute.xlu2 %2431 }
 0x293   : > { %11584 = vst [vmem:[#allocation102_spill] sm:$0xff] %v8235_v32  ;;  %v2649_v32 = vand.u32 2147483647, %v2521_v44  ;;  %v8252_v5 = vadd.f32 %v2646_v46, %v11592_v35  ;;  %3351 = vperm.xlu0 %4714, %v11598_v12   ;;  %v2486_v35 = vsub.f32 %v8054_v63, %v7694_v31  ;;  %v2487_v44 = vsub.f32 %v8054_v63, %v7699_v38  ;;  %v11605_v42 = vld [vmem:[#allocation120_spill] sm:$0xff] }
 0x294   : > { %11586 = vst [vmem:[#allocation13_spill] sm:$0xff] %v8242_v33  ;;  %v11595_v33 = vld [vmem:[#allocation187_spill] sm:$0xff]  ;;  %v2488_v2 = vsub.f32 %v8054_v63, %v7708_v21  ;;  %v2489_v22 = vsub.f32 %v8054_v63, %v7713_v6  ;;  %v2526_v26 = vsub.f32 %v8076_v10, %v7694_v31  ;;  %3347 = vperm.xlu2 %4713, %v11605_v42  }
 0x295   : > { %11593 = vst [vmem:[#allocation104_spill] sm:$0xff] %v8252_v5  ;;  %v2228_v53 = vadd.f32 %v11595_v33, %v11594_v8  ;;  %v11603_v33 = vld [vmem:[#allocation196_spill] sm:$0xff]  ;;  %v2614_v45 = vand.u32 2147483647, %v2486_v35  ;;  %v2615_v8 = vand.u32 2147483647, %v2487_v44  ;;  %v2527_v40 = vsub.f32 %v8076_v10, %v7699_v38 }
 0x296   : > { %11600 = vst [vmem:[#allocation14_spill] sm:$0xff] %v8262_v56  ;;  %v8272_v46 = vadd.f32 %v2649_v32, %v11603_v33  ;;  %v2528_v32 = vsub.f32 %v8076_v10, %v7708_v21  ;;  %v2616_v12 = vand.u32 2147483647, %v2488_v2  ;;  %v2617_v54 = vand.u32 2147483647, %v2489_v22  ;;  %v11610_v56 = vld [vmem:[#allocation189_spill] sm:$0xff]  ;;  %v8300_v2 = vpop.permute.xlu0 %2435 }
 0x297   : > { %11602 = vst [vmem:[#allocation45_spill] sm:$0xff] %v8265_v3  ;;  %v2529_v63 = vsub.f32 %v8076_v10, %v7713_v6  ;;  %v2654_v33 = vand.u32 2147483647, %v2526_v26  ;;  %v8289_v20 = vadd.f32 %v2614_v45, %v2226_v47  ;;  %v8291_v55 = vadd.f32 %v2615_v8, %v2227_v4  ;;  %v11612_v22 = vld [vmem:[#allocation190_spill] sm:$0xff]  ;;  %v11614_v47 = vld [vmem:[#allocation191_spill] sm:$0xff]  ;;  %v11618_v45 = vld [vmem:[#allocation64_spill] sm:$0xff] }
 0x298   : > { %11604 = vst [vmem:[#allocation47_spill] sm:$0xff] %v8272_v46  ;;  %v2655_v46 = vand.u32 2147483647, %v2527_v40  ;;  %v2656_v42 = vand.u32 2147483647, %v2528_v32  ;;  %v8293_v35 = vadd.f32 %v2616_v12, %v2228_v53  ;;  %v8295_v44 = vadd.f32 %v2617_v54, %v2229_v23  ;;  %4715 = vset.pattern.permute.xlu1 %v4917_v30  ;;  %v11616_v23 = vld [vmem:[#allocation192_spill] sm:$0xff]  ;;  %v8323_v12 = vpop.permute.xlu1 %2403 }
 0x299   : > { %11606 = vst [vmem:[#allocation17_spill] sm:$0xff] %v8289_v20  ;;  %v2657_v3 = vand.u32 2147483647, %v2529_v63  ;;  %v8298_v5 = vadd.f32 %v2654_v33, %v11610_v56  ;;  %v2530_v4 = vsub.f32 %v8091_v17, %v7694_v31  ;;  %v2531_v53 = vsub.f32 %v8091_v17, %v7699_v38  ;;  %3355 = vperm.xlu1 %4715, %v7622_v37   ;;  %v11619_v8 = vld [vmem:[#allocation197_spill] sm:$0xff]  ;;  %v11621_v33 = vld [vmem:[#allocation59_spill] sm:$0xff]  ;;  %v11622_v37 = vld [vmem:[#allocation56_spill] sm:$0xff] }
 0x29a   : > { %11607 = vst [vmem:[#allocation15_spill] sm:$0xff] %v8291_v55  ;;  %v8303_v10 = vadd.f32 %v2655_v46, %v11612_v22  ;;  %v8306_v26 = vadd.f32 %v2656_v42, %v11614_v47  ;;  %v2532_v30 = vsub.f32 %v8091_v17, %v7708_v21  ;;  %v2533_v46 = vsub.f32 %v8091_v17, %v7713_v6  ;;  %v11620_v32 = vld [vmem:[#allocation65_spill] sm:$0xff]  ;;  %v11624_v22 = vld [vmem:[#allocation151_spill] sm:$0xff] }
 0x29b   : > { %11608 = vst [vmem:[#allocation5_spill] sm:$0xff] %v8293_v35  ;;  %v8314_v56 = vadd.f32 %v2657_v3, %v11616_v23  ;;  %v2238_v40 = vadd.f32 %v11619_v8, %v11618_v45  ;;  %3371 = vperm.xlu0 %4714, %v11620_v32   ;;  %v2658_v54 = vand.u32 2147483647, %v2530_v4  ;;  %v2659_v63 = vand.u32 2147483647, %v2531_v53  ;;  %v11623_v3 = vld [vmem:[#allocation60_spill] sm:$0xff] }
 0x29c   : > { %11609 = vst [vmem:[#allocation41_spill] sm:$0xff] %v8295_v44  ;;  %v2239_v42 = vadd.f32 %v11622_v37, %v11621_v33  ;;  %v2240_v47 = vadd.f32 %v11624_v22, %v11623_v3  ;;  %v2660_v23 = vand.u32 2147483647, %v2532_v30  ;;  %v2498_v45 = vsub.f32 %v8122_v0, %v7694_v31  ;;  %v11627_v8 = vld [vmem:[#allocation75_spill] sm:$0xff]  ;;  %v11628_v32 = vld [vmem:[#allocation198_spill] sm:$0xff]  ;;  %v11629_v4 = vld [vmem:[#allocation200_spill] sm:$0xff]  ;;  %v8352_v22 = vpop.permute.xlu2 %2831 }
 0x29d   : > { %11611 = vst [vmem:[#allocation18_spill] sm:$0xff] %v8298_v5  ;;  %3359 = vperm.xlu2 %4713, %v11627_v8   ;;  %v8335_v5 = vadd.f32 %v2658_v54, %v11628_v32  ;;  %v8338_v53 = vadd.f32 %v2659_v63, %v11629_v4  ;;  %v2499_v33 = vsub.f32 %v8122_v0, %v7699_v38 }
 0x29e   : > { %11613 = vst [vmem:[#allocation42_spill] sm:$0xff] %v8303_v10  ;;  %v11626_v10 = vld [vmem:[#allocation57_spill] sm:$0xff]  ;;  %v2500_v30 = vsub.f32 %v8122_v0, %v7708_v21  ;;  %v2501_v3 = vsub.f32 %v8122_v0, %v7713_v6  ;;  %v2626_v54 = vand.u32 2147483647, %v2498_v45  ;;  %v2538_v32 = vsub.f32 %v8149_v43, %v7694_v31 }
 0x29f   : > { %11615 = vst [vmem:[#allocation19_spill] sm:$0xff] %v8306_v26  ;;  %v11625_v26 = vld [vmem:[#allocation61_spill] sm:$0xff]  ;;  %v2627_v63 = vand.u32 2147483647, %v2499_v33  ;;  %v2539_v4 = vsub.f32 %v8149_v43, %v7699_v38  ;;  %v2541_v0 = vsub.f32 %v8149_v43, %v7713_v6 }
 0x2a0   : > { %11617 = vst [vmem:[#allocation43_spill] sm:$0xff] %v8314_v56  ;;  %v2661_v56 = vand.u32 2147483647, %v2533_v46  ;;  %v2241_v17 = vadd.f32 %v11626_v10, %v11625_v26  ;;  %v11630_v46 = vld [vmem:[#allocation201_spill] sm:$0xff]  ;;  %v11632_v10 = vld [vmem:[#allocation202_spill] sm:$0xff] }
 0x2a1   : > { %v8345_v37 = vadd.f32 %v2660_v23, %v11630_v46  ;;  %v2628_v8 = vand.u32 2147483647, %v2500_v30  ;;  %v2629_v44 = vand.u32 2147483647, %v2501_v3  ;;  %v8358_v23 = vadd.f32 %v2626_v54, %v2238_v40  ;;  %v11639_v54 = vld [vmem:[#allocation163_spill] sm:$0xff] }
 0x2a2   : > { %v8348_v26 = vadd.f32 %v2661_v56, %v11632_v10  ;;  %v2540_v56 = vsub.f32 %v8149_v43, %v7708_v21  ;;  %v8364_v45 = vadd.f32 %v2627_v63, %v2239_v42  ;;  %v2666_v33 = vand.u32 2147483647, %v2538_v32  ;;  %v11637_v10 = vld [vmem:[#allocation169_spill] sm:$0xff]  ;;  %v11640_v43 = vld [vmem:[#allocation152_spill] sm:$0xff] }
 0x2a3   : > { %11631 = vst [vmem:[#allocation112_spill] sm:$0xff] %v8345_v37  ;;  %v8366_v46 = vadd.f32 %v2628_v8, %v2240_v47  ;;  %v2667_v30 = vand.u32 2147483647, %v2539_v4  ;;  %3363 = vperm.xlu1 %4715, %v11637_v10   ;;  %v8369_v35 = vadd.f32 %v2629_v44, %v2241_v17  ;;  %v2669_v3 = vand.u32 2147483647, %v2541_v0  ;;  %3383 = vperm.xlu0 %4714, %v11639_v54   ;;  %v11642_v47 = vld [vmem:[#allocation89_spill] sm:$0xff]  ;;  %v8394_v10 = vpop.permute.xlu1 %2415 }
 0x2a4   : > { %11633 = vst [vmem:[#allocation20_spill] sm:$0xff] %v8348_v26  ;;  %v2668_v55 = vand.u32 2147483647, %v2540_v56  ;;  %v2542_v40 = vsub.f32 %v8160_v60, %v7694_v31  ;;  %v8377_v42 = vadd.f32 %v2666_v33, %v11640_v43  ;;  %v2543_v8 = vsub.f32 %v8160_v60, %v7699_v38  ;;  %v11644_v17 = vld [vmem:[#allocation90_spill] sm:$0xff]  ;;  %v11646_v4 = vld [vmem:[#allocation91_spill] sm:$0xff]  ;;  %v11659_v26 = vld [vmem:[#allocation116_spill] sm:$0xff] }
 0x2a5   : > { %11634 = vst [vmem:[#allocation46_spill] sm:$0xff] %v8358_v23  ;;  %v8374_v23 = vpop.permute.xlu0 %2835  ;;  %v8380_v63 = vadd.f32 %v2667_v30, %v11642_v47  ;;  %v2544_v44 = vsub.f32 %v8160_v60, %v7708_v21  ;;  %v8390_v56 = vadd.f32 %v2669_v3, %v11646_v4  ;;  %v2545_v0 = vsub.f32 %v8160_v60, %v7713_v6  ;;  %v11648_v30 = vld [vmem:[#allocation170_spill] sm:$0xff]  ;;  %v11649_v47 = vld [vmem:[#allocation69_spill] sm:$0xff]  ;;  %v11655_v4 = vld [vmem:[#allocation71_spill] sm:$0xff] }
 0x2a6   : > { %11635 = vst [vmem:[#allocation10_spill] sm:$0xff] %v8364_v45  ;;  %v8387_v32 = vadd.f32 %v2668_v55, %v11644_v17  ;;  %v2670_v33 = vand.u32 2147483647, %v2542_v40  ;;  %3367 = vperm.xlu2 %4713, %v11648_v30   ;;  %v2671_v54 = vand.u32 2147483647, %v2543_v8  ;;  %v11657_v40 = vld [vmem:[#allocation72_spill] sm:$0xff] }
 0x2a7   : > { %11636 = vst [vmem:[#allocation63_spill] sm:$0xff] %v8366_v46  ;;  %v2672_v43 = vand.u32 2147483647, %v2544_v44  ;;  %v11652_v46 = vld [vmem:[#allocation203_spill] sm:$0xff]  ;;  %v2673_v17 = vand.u32 2147483647, %v2545_v0  ;;  %v8427_v0 = vpop.permute.xlu2 %2843 }
 0x2a8   : > { %11638 = vst [vmem:[#allocation73_spill] sm:$0xff] %v8369_v35  ;;  %v11651_v35 = vld [vmem:[#allocation70_spill] sm:$0xff]  ;;  %v11658_v45 = vld [vmem:[#allocation205_spill] sm:$0xff]  ;;  %v8409_v30 = vadd.f32 %v2671_v54, %v11659_v26  ;;  %v2550_v26 = vsub.f32 %v8216_v57, %v7694_v31 }
 0x2a9   : > { %11641 = vst [vmem:[#allocation54_spill] sm:$0xff] %v8377_v42  ;;  %v2251_v55 = vadd.f32 %v11652_v46, %v11651_v35  ;;  %v2253_v20 = vadd.f32 %v11658_v45, %v11657_v40  ;;  %v11661_v8 = vld [vmem:[#allocation162_spill] sm:$0xff]  ;;  %v2511_v35 = vsub.f32 %v8188_v48, %v7699_v38  ;;  %v11663_v46 = vld [vmem:[#allocation119_spill] sm:$0xff]  ;;  %v2513_v45 = vsub.f32 %v8188_v48, %v7713_v6 }
 0x2aa   : > { %11643 = vst [vmem:[#allocation25_spill] sm:$0xff] %v8380_v63  ;;  %v11650_v63 = vld [vmem:[#allocation199_spill] sm:$0xff]  ;;  %v8412_v44 = vadd.f32 %v2672_v43, %v11661_v8  ;;  %v2551_v43 = vsub.f32 %v8216_v57, %v7699_v38  ;;  %v2678_v8 = vand.u32 2147483647, %v2550_v26 }
 0x2ab   : > { %11645 = vst [vmem:[#allocation30_spill] sm:$0xff] %v8387_v32  ;;  %v2250_v42 = vadd.f32 %v11650_v63, %v11649_v47  ;;  %v11653_v32 = vld [vmem:[#allocation155_spill] sm:$0xff]  ;;  %v2510_v63 = vsub.f32 %v8188_v48, %v7694_v31  ;;  %v2639_v54 = vand.u32 2147483647, %v2511_v35  ;;  %v2552_v47 = vsub.f32 %v8216_v57, %v7708_v21 }
 0x2ac   : > { %11647 = vst [vmem:[#allocation26_spill] sm:$0xff] %v8390_v56  ;;  %v8402_v3 = vadd.f32 %v2670_v33, %v11653_v32  ;;  %v11656_v56 = vld [vmem:[#allocation204_spill] sm:$0xff]  ;;  %v8419_v32 = vadd.f32 %v2673_v17, %v11663_v46  ;;  %v2641_v40 = vand.u32 2147483647, %v2513_v45  ;;  %v11666_v46 = vld [vmem:[#allocation158_spill] sm:$0xff] }
 0x2ad   : > { %v2252_v60 = vadd.f32 %v11656_v56, %v11655_v4  ;;  %11660 = vst [vmem:[#allocation51_spill] sm:$0xff] %v8409_v30  ;;  %v2512_v56 = vsub.f32 %v8188_v48, %v7708_v21  ;;  %v2638_v33 = vand.u32 2147483647, %v2510_v63  ;;  %v11665_v17 = vld [vmem:[#allocation84_spill] sm:$0xff]  ;;  %v2553_v48 = vsub.f32 %v8216_v57, %v7713_v6  ;;  %3395 = vperm.xlu0 %4714, %v11666_v46   ;;  %v8448_v45 = vpop.permute.xlu0 %2855  ;;  %v11673_v57 = vld [vmem:[#allocation67_spill] sm:$0xff] }
 0x2ae   : > { %11654 = vst [vmem:[#allocation12_spill] sm:$0xff] %v8402_v3  ;;  %3375 = vperm.xlu1 %4715, %v11665_v17   ;;  %v8439_v63 = vadd.f32 %v2639_v54, %v2251_v55  ;;  %v2679_v35 = vand.u32 2147483647, %v2551_v43  ;;  %v8443_v3 = vadd.f32 %v2641_v40, %v2253_v20  ;;  %v11671_v17 = vld [vmem:[#allocation66_spill] sm:$0xff]  ;;  %3379 = vperm.xlu2 %4713, %v7788_v34  }
 0x2af   : > { %11662 = vst [vmem:[#allocation40_spill] sm:$0xff] %v8412_v44  ;;  %v2640_v4 = vand.u32 2147483647, %v2512_v56  ;;  %v2680_v44 = vand.u32 2147483647, %v2552_v47  ;;  %v8446_v56 = vadd.f32 %v2678_v8, %v11671_v17  ;;  %v2555_v20 = vsub.f32 %v8229_v28, %v7699_v38 }
 0x2b0   : > { %11664 = vst [vmem:[#allocation27_spill] sm:$0xff] %v8419_v32  ;;  %v8437_v32 = vadd.f32 %v2638_v33, %v2250_v42  ;;  %v2681_v37 = vand.u32 2147483647, %v2553_v48  ;;  %v8452_v26 = vadd.f32 %v2679_v35, %v11673_v57  ;;  %v11675_v42 = vld [vmem:[#allocation154_spill] sm:$0xff]  ;;  %v11677_v33 = vld [vmem:[#allocation68_spill] sm:$0xff]  ;;  %v2556_v43 = vsub.f32 %v8229_v28, %v7708_v21 }
 0x2b1   : > { %11668 = vst [vmem:[#allocation28_spill] sm:$0xff] %v8439_v63  ;;  %v8441_v30 = vadd.f32 %v2640_v4, %v2252_v60  ;;  %v8455_v55 = vadd.f32 %v2680_v44, %v11675_v42  ;;  %v2554_v60 = vsub.f32 %v8229_v28, %v7694_v31  ;;  %v2557_v34 = vsub.f32 %v8229_v28, %v7713_v6  ;;  %v8470_v44 = vpop.permute.xlu1 %2427  ;;  %v11679_v28 = vld [vmem:[#allocation114_spill] sm:$0xff]  ;;  %v11680_v42 = vld [vmem:[#allocation76_spill] sm:$0xff]  ;;  %v11701_v63 = vld [vmem:[#allocation171_spill] sm:$0xff] }
 0x2b2   : > { %11667 = vst [vmem:[#allocation31_spill] sm:$0xff] %v8437_v32  ;;  %v8462_v54 = vadd.f32 %v2681_v37, %v11677_v33  ;;  %v2522_v47 = vsub.f32 %v8259_v9, %v7694_v31  ;;  %v2683_v40 = vand.u32 2147483647, %v2555_v20  ;;  %v2523_v48 = vsub.f32 %v8259_v9, %v7699_v38 }
 0x2b3   : > { %11669 = vst [vmem:[#allocation32_spill] sm:$0xff] %v8441_v30  ;;  %v2682_v4 = vand.u32 2147483647, %v2554_v60  ;;  %v2524_v37 = vsub.f32 %v8259_v9, %v7708_v21  ;;  %v2684_v8 = vand.u32 2147483647, %v2556_v43  ;;  %v2525_v35 = vsub.f32 %v8259_v9, %v7713_v6 }
 0x2b4   : > { %11670 = vst [vmem:[#allocation21_spill] sm:$0xff] %v8443_v3  ;;  %v2685_v46 = vand.u32 2147483647, %v2557_v34  ;;  %v2650_v17 = vand.u32 2147483647, %v2522_v47  ;;  %v8482_v33 = vadd.f32 %v2683_v40, %v11680_v42  ;;  %v11685_v47 = vld [vmem:[#allocation130_spill] sm:$0xff] }
 0x2b5   : > { %11672 = vst [vmem:[#allocation58_spill] sm:$0xff] %v8446_v56  ;;  %v8479_v57 = vadd.f32 %v2682_v4, %v11679_v28  ;;  %v2651_v60 = vand.u32 2147483647, %v2523_v48  ;;  %v2652_v20 = vand.u32 2147483647, %v2524_v37  ;;  %v11683_v56 = vld [vmem:[#allocation164_spill] sm:$0xff]  ;;  %3407 = vperm.xlu0 %4714, %v11685_v47   ;;  %v8495_v4 = vpop.permute.xlu2 %2851 }
 0x2b6   : > { %11674 = vst [vmem:[#allocation22_spill] sm:$0xff] %v8452_v26  ;;  %3387 = vperm.xlu1 %4715, %v7826_v29   ;;  %v11682_v26 = vld [vmem:[#allocation77_spill] sm:$0xff]  ;;  %v2653_v34 = vand.u32 2147483647, %v2525_v35  ;;  %v8492_v9 = vadd.f32 %v2650_v17, %v11683_v56  ;;  %v11686_v40 = vld [vmem:[#allocation79_spill] sm:$0xff]  ;;  %v2562_v29 = vsub.f32 %v8280_v52, %v7694_v31  ;;  %v2564_v56 = vsub.f32 %v8280_v52, %v7708_v21 }
 0x2b7   : > { %11676 = vst [vmem:[#allocation107_spill] sm:$0xff] %v8455_v55  ;;  %v8489_v43 = vadd.f32 %v2685_v46, %v11682_v26  ;;  %v8498_v28 = vadd.f32 %v2651_v60, %v11686_v40  ;;  %v11688_v48 = vld [vmem:[#allocation113_spill] sm:$0xff]  ;;  %v2563_v26 = vsub.f32 %v8280_v52, %v7699_v38  ;;  %v2565_v46 = vsub.f32 %v8280_v52, %v7713_v6  ;;  %v8523_v52 = vpop.permute.xlu0 %2867 }
 0x2b8   : > { %11678 = vst [vmem:[#allocation7_spill] sm:$0xff] %v8462_v54  ;;  %v11681_v54 = vld [vmem:[#allocation159_spill] sm:$0xff]  ;;  %v8501_v37 = vadd.f32 %v2652_v20, %v11688_v48  ;;  %v2566_v35 = vsub.f32 %v8300_v2, %v7694_v31  ;;  %3391 = vperm.xlu2 %4713, %v7854_v24   ;;  %v2690_v17 = vand.u32 2147483647, %v2562_v29  ;;  %v2567_v60 = vsub.f32 %v8300_v2, %v7699_v38  ;;  %v11694_v29 = vld [vmem:[#allocation81_spill] sm:$0xff] }
 0x2b9   : > { %v8486_v55 = vadd.f32 %v2684_v8, %v11681_v54  ;;  %11684 = vst [vmem:[#allocation74_spill] sm:$0xff] %v8492_v9  ;;  %v11690_v54 = vld [vmem:[#allocation80_spill] sm:$0xff]  ;;  %v2691_v42 = vand.u32 2147483647, %v2563_v26  ;;  %v2568_v20 = vsub.f32 %v8300_v2, %v7708_v21  ;;  %v2693_v47 = vand.u32 2147483647, %v2565_v46 }
 0x2ba   : > { %11687 = vst [vmem:[#allocation24_spill] sm:$0xff] %v8498_v28  ;;  %v8508_v8 = vadd.f32 %v2653_v34, %v11690_v54  ;;  %v2692_v34 = vand.u32 2147483647, %v2564_v56  ;;  %v2569_v40 = vsub.f32 %v8300_v2, %v7713_v6  ;;  %v2694_v48 = vand.u32 2147483647, %v2566_v35  ;;  %v8525_v54 = vpop.permute.xlu1 %2439  ;;  %v11696_v9 = vld [vmem:[#allocation157_spill] sm:$0xff] }
 0x2bb   : > { %11689 = vst [vmem:[#allocation49_spill] sm:$0xff] %v8501_v37  ;;  %v8531_v26 = vadd.f32 %v2691_v42, %v11694_v29  ;;  %v2695_v37 = vand.u32 2147483647, %v2567_v60  ;;  %v2696_v28 = vand.u32 2147483647, %v2568_v20  ;;  %v11698_v56 = vld [vmem:[#allocation82_spill] sm:$0xff]  ;;  %v2534_v42 = vsub.f32 %v8323_v12, %v7694_v31 }
 0x2bc   : > { %11691 = vst [vmem:[#allocation83_spill] sm:$0xff] %v8508_v8  ;;  %v11692_v8 = vld [vmem:[#allocation156_spill] sm:$0xff]  ;;  %v8534_v3 = vadd.f32 %v2692_v34, %v11696_v9  ;;  %v8537_v46 = vadd.f32 %v2693_v47, %v11698_v56  ;;  %v2697_v2 = vand.u32 2147483647, %v2569_v40  ;;  %v11700_v35 = vld [vmem:[#allocation131_spill] sm:$0xff]  ;;  %v2535_v9 = vsub.f32 %v8323_v12, %v7699_v38  ;;  %v8572_v40 = vld [vmem:[%s10672_s1 + $0x8] sm:$0xff] }
 0x2bd   : > { %v8528_v24 = vadd.f32 %v2690_v17, %v11692_v8  ;;  %11695 = vst [vmem:[#allocation6_spill] sm:$0xff] %v8531_v26  ;;  %v8540_v30 = vadd.f32 %v2694_v48, %v11700_v35  ;;  %v8543_v32 = vadd.f32 %v2695_v37, %v11701_v63  ;;  %v11702_v8 = vld [vmem:[#allocation132_spill] sm:$0xff]  ;;  %v2536_v34 = vsub.f32 %v8323_v12, %v7708_v21 }
 0x2be   : > { %11697 = vst [vmem:[#allocation50_spill] sm:$0xff] %v8534_v3  ;;  %v8546_v17 = vadd.f32 %v2696_v28, %v11702_v8  ;;  %3399 = vperm.xlu1 %4715, %v7892_v13   ;;  %v11703_v60 = vld [vmem:[#allocation172_spill] sm:$0xff]  ;;  %v2537_v63 = vsub.f32 %v8323_v12, %v7713_v6  ;;  %v8563_v28 = vld [vmem:[%s10672_s1] sm:$0xff]  ;;  %3419 = vperm.xlu0 %4714, %v7774_v49   ;;  %v2662_v13 = vand.u32 2147483647, %v2534_v42  ;;  %v8575_v48 = vperm.slane %v8572_v40, 5  ;;  %v8595_v42 = vpop.permute.xlu2 %2863 }
 0x2bf   : > { %11693 = vst [vmem:[#allocation153_spill] sm:$0xff] %v8528_v24  ;;  %v8554_v20 = vadd.f32 %v2697_v2, %v11703_v60  ;;  %v8566_v37 = vperm.slane %v8563_v28, 5  ;;  %v2663_v47 = vand.u32 2147483647, %v2535_v9  ;;  %v8580_v12 = vld [vmem:[%s10672_s1 + $0x10] sm:$0xff]  ;;  %v8588_v2 = vld [vmem:[%s10672_s1 + $0x18] sm:$0xff] }
 0x2c0   : > { %11699 = vst [vmem:[#allocation11_spill] sm:$0xff] %v8537_v46  ;;  %v8583_v29 = vperm.slane %v8580_v12, 5  ;;  %v2664_v56 = vand.u32 2147483647, %v2536_v34  ;;  %v2665_v49 = vand.u32 2147483647, %v2537_v63  ;;  %3403 = vperm.xlu2 %4713, %v7917_v27   ;;  %v2963_v46 = vsub.f32 %v8352_v22, %v8575_v48 }
 0x2c1   : > { %11704 = vst [vmem:[#allocation140_spill] sm:$0xff] %v8554_v20  ;;  %v8591_v35 = vperm.slane %v8588_v2, 5  ;;  %v2962_v8 = vsub.f32 %v8352_v22, %v8566_v37  ;;  %v11709_v9 = vld [vmem:[#allocation160_spill] sm:$0xff]  ;;  %v11711_v34 = vld [vmem:[#allocation78_spill] sm:$0xff]  ;;  %v11713_v3 = vld [vmem:[#allocation161_spill] sm:$0xff] }
 0x2c2   : > { %11705 = vst [vmem:[#allocation146_spill] sm:$0xff] %v8563_v28  ;;  %v8599_v60 = vadd.f32 %v2662_v13, %v11709_v9  ;;  %v8602_v63 = vadd.f32 %v2663_v47, %v11711_v34  ;;  %v8609_v26 = vadd.f32 %v2664_v56, %v11713_v3  ;;  %v3091_v9 = vand.u32 2147483647, %v2963_v46  ;;  %v11717_v24 = vld [vmem:[#allocation165_spill] sm:$0xff]  ;;  %v8629_v46 = vpop.permute.xlu1 %2839  ;;  %v11725_v20 = vld [vmem:[#allocation124_spill] sm:$0xff] }
 0x2c3   : > { %11706 = vst [vmem:[#allocation147_spill] sm:$0xff] %v8572_v40  ;;  %v2965_v27 = vsub.f32 %v8352_v22, %v8591_v35  ;;  %v3090_v13 = vand.u32 2147483647, %v2962_v8  ;;  %v2966_v47 = vsub.f32 %v8374_v23, %v8566_v37  ;;  %v2967_v34 = vsub.f32 %v8374_v23, %v8575_v48  ;;  %v11719_v56 = vld [vmem:[#allocation85_spill] sm:$0xff] }
 0x2c4   : > { %11707 = vst [vmem:[#allocation33_spill] sm:$0xff] %v8580_v12  ;;  %v11715_v12 = vld [vmem:[#allocation129_spill] sm:$0xff]  ;;  %v2968_v3 = vsub.f32 %v8374_v23, %v8583_v29 }
 0x2c5   : > { %11708 = vst [vmem:[#allocation145_spill] sm:$0xff] %v8588_v2  ;;  %v2964_v2 = vsub.f32 %v8352_v22, %v8583_v29  ;;  %v8612_v40 = vadd.f32 %v2665_v49, %v11715_v12  ;;  %v8621_v28 = vadd.f32 %v3090_v13, %v11717_v24  ;;  %v2969_v12 = vsub.f32 %v8374_v23, %v8591_v35  ;;  %v8627_v22 = vpop.permute.xlu0 %2879  ;;  %v11723_v24 = vld [vmem:[#allocation86_spill] sm:$0xff] }
 0x2c6   : > { %11710 = vst [vmem:[#allocation148_spill] sm:$0xff] %v8599_v60  ;;  %v8632_v49 = vadd.f32 %v3091_v9, %v11719_v56  ;;  %3411 = vperm.xlu1 %4715, %v7959_v1   ;;  %v2546_v23 = vsub.f32 %v8394_v10, %v7694_v31  ;;  %3431 = vperm.xlu0 %4714, %v7838_v25   ;;  %v11726_v56 = vld [vmem:[#allocation174_spill] sm:$0xff] }
 0x2c7   : > { %11712 = vst [vmem:[#allocation141_spill] sm:$0xff] %v8602_v63  ;;  %v3092_v60 = vand.u32 2147483647, %v2964_v2  ;;  %v3093_v63 = vand.u32 2147483647, %v2965_v27  ;;  %v11721_v2 = vld [vmem:[#allocation166_spill] sm:$0xff]  ;;  %v2548_v1 = vsub.f32 %v8394_v10, %v7708_v21  ;;  %v2549_v25 = vsub.f32 %v8394_v10, %v7713_v6 }
 0x2c8   : > { %11714 = vst [vmem:[#allocation34_spill] sm:$0xff] %v8609_v26  ;;  %v3094_v27 = vand.u32 2147483647, %v2966_v47  ;;  %v3097_v26 = vand.u32 2147483647, %v2969_v12  ;;  %v2547_v47 = vsub.f32 %v8394_v10, %v7699_v38  ;;  %3415 = vperm.xlu2 %4713, %v7984_v50   ;;  %v2977_v10 = vsub.f32 %v8427_v0, %v8591_v35  ;;  %v8674_v50 = vpop.permute.xlu2 %2875 }
 0x2c9   : > { %11716 = vst [vmem:[#allocation44_spill] sm:$0xff] %v8612_v40  ;;  %v8635_v8 = vadd.f32 %v3092_v60, %v11721_v2  ;;  %v3095_v40 = vand.u32 2147483647, %v2967_v34  ;;  %v8639_v13 = vadd.f32 %v3093_v63, %v11723_v24  ;;  %v11727_v63 = vld [vmem:[#allocation125_spill] sm:$0xff]  ;;  %v2676_v2 = vand.u32 2147483647, %v2548_v1 }
 0x2ca   : > { %11718 = vst [vmem:[#allocation35_spill] sm:$0xff] %v8621_v28  ;;  %v3096_v28 = vand.u32 2147483647, %v2968_v3  ;;  %v8645_v9 = vadd.f32 %v3094_v27, %v11725_v20  ;;  %v11729_v3 = vld [vmem:[#allocation176_spill] sm:$0xff]  ;;  %v2674_v20 = vand.u32 2147483647, %v2546_v23  ;;  %v2974_v27 = vsub.f32 %v8427_v0, %v8566_v37 }
 0x2cb   : > { %11720 = vst [vmem:[#allocation53_spill] sm:$0xff] %v8632_v49  ;;  %v8648_v60 = vadd.f32 %v3095_v40, %v11726_v56  ;;  %v8658_v12 = vadd.f32 %v3097_v26, %v11729_v3  ;;  %v2675_v40 = vand.u32 2147483647, %v2547_v47  ;;  %v2975_v24 = vsub.f32 %v8427_v0, %v8575_v48  ;;  %v11733_v23 = vld [vmem:[#allocation87_spill] sm:$0xff]  ;;  %v11735_v1 = vld [vmem:[#allocation168_spill] sm:$0xff] }
 0x2cc   : > { %11722 = vst [vmem:[#allocation48_spill] sm:$0xff] %v8635_v8  ;;  %v8655_v34 = vadd.f32 %v3096_v28, %v11727_v63  ;;  %v2677_v56 = vand.u32 2147483647, %v2549_v25  ;;  %v11731_v28 = vld [vmem:[#allocation167_spill] sm:$0xff]  ;;  %v2976_v26 = vsub.f32 %v8427_v0, %v8583_v29  ;;  %v8680_v3 = vadd.f32 %v2676_v2, %v11735_v1  ;;  %v11737_v8 = vld [vmem:[#allocation137_spill] sm:$0xff]  ;;  %v8687_v0 = vpop.permute.xlu1 %2847 }
 0x2cd   : > { %11724 = vst [vmem:[#allocation110_spill] sm:$0xff] %v8639_v13  ;;  %v8668_v63 = vadd.f32 %v2674_v20, %v11731_v28  ;;  %v8677_v47 = vadd.f32 %v2675_v40, %v11733_v23  ;;  %v3102_v13 = vand.u32 2147483647, %v2974_v27  ;;  %v3103_v25 = vand.u32 2147483647, %v2975_v24  ;;  %v11741_v40 = vld [vmem:[#allocation139_spill] sm:$0xff] }
 0x2ce   : > { %11728 = vst [vmem:[#allocation16_spill] sm:$0xff] %v8655_v34  ;;  %v8683_v20 = vadd.f32 %v2677_v56, %v11737_v8  ;;  %v3104_v28 = vand.u32 2147483647, %v2976_v26  ;;  %v2986_v49 = vsub.f32 %v8448_v45, %v8566_v37  ;;  %v2987_v2 = vsub.f32 %v8448_v45, %v8575_v48  ;;  %v8700_v27 = vld [vmem:[%s4995_s27 + $0x98] sm:$0xff]  ;;  %v11743_v24 = vld [vmem:[#allocation106_spill] sm:$0xff]  ;;  %v11745_v26 = vld [vmem:[#allocation123_spill] sm:$0xff] }
 0x2cf   : > { %11730 = vst [vmem:[#allocation108_spill] sm:$0xff] %v8658_v12  ;;  %v11739_v12 = vld [vmem:[#allocation138_spill] sm:$0xff]  ;;  %v8693_v23 = vadd.f32 %v3103_v25, %v11741_v40  ;;  %v2988_v8 = vsub.f32 %v8448_v45, %v8583_v29  ;;  %3423 = vperm.xlu1 %4715, %v8700_v27   ;;  %v8712_v1 = vld [vmem:[%s4995_s27 + $0xc0] sm:$0xff]  ;;  %v8715_v25 = vpop.permute.xlu0 %2891 }
 0x2d0   : > { %11732 = vst [vmem:[#allocation9_spill] sm:$0xff] %v8668_v63  ;;  %v3105_v63 = vand.u32 2147483647, %v2977_v10  ;;  %v8690_v34 = vadd.f32 %v3102_v13, %v11739_v12  ;;  %v8704_v56 = vadd.f32 %v3104_v28, %v11743_v24  ;;  %v2989_v12 = vsub.f32 %v8448_v45, %v8591_v35  ;;  %3443 = vperm.xlu0 %4714, %v8712_v1  }
 0x2d1   : > { %11734 = vst [vmem:[#allocation111_spill] sm:$0xff] %v8677_v47  ;;  %v3114_v10 = vand.u32 2147483647, %v2986_v49  ;;  %v3115_v40 = vand.u32 2147483647, %v2987_v2  ;;  %v2559_v28 = vsub.f32 %v8470_v44, %v7699_v38  ;;  %v2560_v45 = vsub.f32 %v8470_v44, %v7708_v21 }
 0x2d2   : > { %11736 = vst [vmem:[#allocation29_spill] sm:$0xff] %v8680_v3  ;;  %v8707_v13 = vadd.f32 %v3105_v63, %v11745_v26  ;;  %v3117_v63 = vand.u32 2147483647, %v2989_v12  ;;  %v2561_v49 = vsub.f32 %v8470_v44, %v7713_v6  ;;  %v8729_v26 = vld [vmem:[%s4995_s27 + $0xa0] sm:$0xff]  ;;  %v11749_v3 = vld [vmem:[#allocation127_spill] sm:$0xff] }
 0x2d3   : > { %11738 = vst [vmem:[#allocation185_spill] sm:$0xff] %v8683_v20  ;;  %v8722_v24 = vadd.f32 %v3114_v10, %v7939_v7  ;;  %3427 = vperm.xlu2 %4713, %v8729_v26   ;;  %v8733_v2 = vadd.f32 %v3115_v40, %v7942_v62  ;;  %v2688_v10 = vand.u32 2147483647, %v2560_v45  ;;  %v11753_v40 = vld [vmem:[#allocation126_spill] sm:$0xff]  ;;  %v8761_v45 = vpop.permute.xlu2 %2887 }
 0x2d4   : > { %11740 = vst [vmem:[#allocation109_spill] sm:$0xff] %v8690_v34  ;;  %v2558_v34 = vsub.f32 %v8470_v44, %v7694_v31  ;;  %v8739_v7 = vadd.f32 %v3117_v63, %v7952_v61  ;;  %v2982_v44 = vsub.f32 %v8495_v4, %v8566_v37  ;;  %v11751_v61 = vld [vmem:[#allocation177_spill] sm:$0xff] }
 0x2d5   : > { %11742 = vst [vmem:[#allocation62_spill] sm:$0xff] %v8693_v23  ;;  %v3116_v23 = vand.u32 2147483647, %v2988_v8 }
 0x2d6   : > { %11744 = vst [vmem:[#allocation149_spill] sm:$0xff] %v8704_v56  ;;  %v2686_v12 = vand.u32 2147483647, %v2558_v34  ;;  %v2689_v56 = vand.u32 2147483647, %v2561_v49  ;;  %v2984_v34 = vsub.f32 %v8495_v4, %v8583_v29  ;;  %v2998_v49 = vsub.f32 %v8523_v52, %v8566_v37 }
 0x2d7   : > { %11746 = vst [vmem:[#allocation55_spill] sm:$0xff] %v8707_v13  ;;  %v8736_v8 = vadd.f32 %v3116_v23, %v7949_v14  ;;  %v2687_v13 = vand.u32 2147483647, %v2559_v28  ;;  %v2983_v14 = vsub.f32 %v8495_v4, %v8575_v48  ;;  %v8754_v23 = vadd.f32 %v2688_v10, %v11751_v61  ;;  %v11756_v10 = vld [vmem:[#allocation115_spill] sm:$0xff] }
 0x2d8   : > { %11747 = vst [vmem:[#allocation118_spill] sm:$0xff] %v8729_v26  ;;  %v8744_v20 = vadd.f32 %v2686_v12, %v7895_v59  ;;  %v8757_v28 = vadd.f32 %v2689_v56, %v11753_v40  ;;  %v2985_v59 = vsub.f32 %v8495_v4, %v8591_v35  ;;  %v3110_v63 = vand.u32 2147483647, %v2982_v44  ;;  %v11759_v40 = vld [vmem:[#allocation128_spill] sm:$0xff]  ;;  %v8795_v26 = vpop.permute.xlu0 %2903 }
 0x2d9   : > { %v8747_v62 = vadd.f32 %v2687_v13, %v11749_v3  ;;  %11752 = vst [vmem:[#allocation52_spill] sm:$0xff] %v8754_v23  ;;  %v3111_v3 = vand.u32 2147483647, %v2983_v14  ;;  %v3112_v13 = vand.u32 2147483647, %v2984_v34  ;;  %v2999_v12 = vsub.f32 %v8523_v52, %v8575_v48  ;;  %v8779_v14 = vld [vmem:[%s4995_s27 + $0xd8] sm:$0xff]  ;;  %v8782_v34 = vpop.permute.xlu1 %2859 }
 0x2da   : > { %11748 = vst [vmem:[#allocation8_spill] sm:$0xff] %v8744_v20  ;;  %v3113_v56 = vand.u32 2147483647, %v2985_v59  ;;  %v8772_v61 = vadd.f32 %v3110_v63, %v11756_v10  ;;  %v3000_v4 = vsub.f32 %v8523_v52, %v8583_v29  ;;  %v3001_v44 = vsub.f32 %v8523_v52, %v8591_v35  ;;  %3455 = vperm.xlu0 %4714, %v8779_v14   ;;  %v11761_v59 = vld [vmem:[#allocation117_spill] sm:$0xff] }
 0x2db   : > { %11750 = vst [vmem:[#allocation150_spill] sm:$0xff] %v8747_v62  ;;  %v8768_v62 = vld [vmem:[%s4995_s27 + $0xb0] sm:$0xff]  ;;  %v8788_v23 = vadd.f32 %v3112_v13, %v11761_v59  ;;  %v3126_v63 = vand.u32 2147483647, %v2998_v49  ;;  %v3127_v10 = vand.u32 2147483647, %v2999_v12  ;;  %v2570_v52 = vsub.f32 %v8525_v54, %v7694_v31 }
 0x2dc   : > { %11754 = vst [vmem:[#allocation186_spill] sm:$0xff] %v8757_v28  ;;  %3435 = vperm.xlu1 %4715, %v8768_v62   ;;  %v8785_v28 = vadd.f32 %v3111_v3, %v11759_v40  ;;  %v3128_v47 = vand.u32 2147483647, %v3000_v4  ;;  %v11765_v13 = vld [vmem:[#allocation122_spill] sm:$0xff]  ;;  %v2571_v12 = vsub.f32 %v8525_v54, %v7699_v38  ;;  %v11767_v4 = vld [vmem:[#allocation179_spill] sm:$0xff]  ;;  %v2995_v38 = vsub.f32 %v8595_v42, %v8575_v48 }
 0x2dd   : > { %11755 = vst [vmem:[#allocation193_spill] sm:$0xff] %v8768_v62  ;;  %v3129_v62 = vand.u32 2147483647, %v3001_v44  ;;  %v8802_v3 = vadd.f32 %v3126_v63, %v8024_v18  ;;  %v8805_v49 = vadd.f32 %v3127_v10, %v11765_v13  ;;  %v2573_v18 = vsub.f32 %v8525_v54, %v7713_v6 }
 0x2de   : > { %11757 = vst [vmem:[#allocation38_spill] sm:$0xff] %v8772_v61  ;;  %v11763_v61 = vld [vmem:[#allocation92_spill] sm:$0xff]  ;;  %v2698_v40 = vand.u32 2147483647, %v2570_v52  ;;  %v2699_v59 = vand.u32 2147483647, %v2571_v12  ;;  %v2994_v10 = vsub.f32 %v8595_v42, %v8566_v37  ;;  %v2997_v6 = vsub.f32 %v8595_v42, %v8591_v35 }
 0x2df   : > { %11758 = vst [vmem:[#allocation187_spill] sm:$0xff] %v8779_v14  ;;  %v8791_v20 = vadd.f32 %v3113_v56, %v11763_v61  ;;  %v8798_v14 = vld [vmem:[%s4995_s27 + $0xb8] sm:$0xff]  ;;  %v2572_v56 = vsub.f32 %v8525_v54, %v7708_v21  ;;  %v11766_v61 = vld [vmem:[#allocation134_spill] sm:$0xff]  ;;  %v8815_v44 = vadd.f32 %v3129_v62, %v11767_v4  ;;  %v2701_v21 = vand.u32 2147483647, %v2573_v18  ;;  %v11770_v54 = vld [vmem:[#allocation93_spill] sm:$0xff] }
 0x2e0   : > { %11760 = vst [vmem:[#allocation39_spill] sm:$0xff] %v8785_v28  ;;  %3439 = vperm.xlu2 %4713, %v8798_v14   ;;  %v8812_v31 = vadd.f32 %v3128_v47, %v11766_v61  ;;  %v11768_v47 = vld [vmem:[#allocation173_spill] sm:$0xff]  ;;  %v2996_v62 = vsub.f32 %v8595_v42, %v8583_v29  ;;  %v8831_v52 = vadd.f32 %v2699_v59, %v11770_v54  ;;  %v11772_v12 = vld [vmem:[#allocation175_spill] sm:$0xff]  ;;  %v3122_v61 = vand.u32 2147483647, %v2994_v10  ;;  %v11775_v18 = vld [vmem:[#allocation94_spill] sm:$0xff] }
 0x2e1   : > { %11762 = vst [vmem:[#allocation188_spill] sm:$0xff] %v8788_v23  ;;  %v2700_v63 = vand.u32 2147483647, %v2572_v56  ;;  %v8824_v13 = vadd.f32 %v2698_v40, %v11768_v47  ;;  %v3123_v4 = vand.u32 2147483647, %v2995_v38  ;;  %v8841_v40 = vadd.f32 %v2701_v21, %v11775_v18  ;;  %v8846_v59 = vld [vmem:[%s4995_s27 + $0xf0] sm:$0xff] }
 0x2e2   : > { %11764 = vst [vmem:[#allocation88_spill] sm:$0xff] %v8791_v20  ;;  %v8837_v20 = vld [vmem:[%s4995_s27 + $0xc8] sm:$0xff]  ;;  %v3124_v47 = vand.u32 2147483647, %v2996_v62  ;;  %v3010_v42 = vsub.f32 %v8627_v22, %v8566_v37  ;;  %3467 = vperm.xlu0 %4714, %v8846_v59   ;;  %v11778_v10 = vld [vmem:[#allocation121_spill] sm:$0xff]  ;;  %v3011_v21 = vsub.f32 %v8627_v22, %v8575_v48  ;;  %v3012_v62 = vsub.f32 %v8627_v22, %v8583_v29  ;;  %v11793_v28 = vld [vmem:[#allocation143_spill] sm:$0xff] }
 0x2e3   : > { %11769 = vst [vmem:[#allocation194_spill] sm:$0xff] %v8824_v13  ;;  %v8834_v56 = vadd.f32 %v2700_v63, %v11772_v12  ;;  %v3125_v13 = vand.u32 2147483647, %v2997_v6  ;;  %v8849_v63 = vpop.permute.xlu2 %2899  ;;  %v8852_v38 = vadd.f32 %v3122_v61, %v11778_v10  ;;  %v11780_v54 = vld [vmem:[#allocation133_spill] sm:$0xff]  ;;  %v8861_v6 = vpop.permute.xlu1 %2871  ;;  %v11782_v18 = vld [vmem:[#allocation178_spill] sm:$0xff]  ;;  %v3013_v61 = vsub.f32 %v8627_v22, %v8591_v35 }
 0x2e4   : > { %11771 = vst [vmem:[#allocation195_spill] sm:$0xff] %v8831_v52  ;;  %3447 = vperm.xlu1 %4715, %v8837_v20   ;;  %v8855_v12 = vadd.f32 %v3123_v4, %v11780_v54  ;;  %v3138_v10 = vand.u32 2147483647, %v3010_v42  ;;  %v8872_v4 = vld [vmem:[%s4995_s27 + $0xd0] sm:$0xff]  ;;  %v3139_v54 = vand.u32 2147483647, %v3011_v21  ;;  %v2972_v22 = vsub.f32 %v8629_v46, %v8583_v29  ;;  %v8886_v42 = vpop.permute.xlu0 %2915 }
 0x2e5   : > { %11773 = vst [vmem:[#allocation196_spill] sm:$0xff] %v8834_v56  ;;  %v11784_v56 = vld [vmem:[#allocation95_spill] sm:$0xff]  ;;  %v11791_v23 = vld [vmem:[#allocation142_spill] sm:$0xff] }
 0x2e6   : > { %11774 = vst [vmem:[#allocation120_spill] sm:$0xff] %v8837_v20  ;;  %v8867_v52 = vadd.f32 %v3125_v13, %v11784_v56  ;;  %v8880_v13 = vadd.f32 %v3138_v10, %v8103_v51  ;;  %v2973_v56 = vsub.f32 %v8629_v46, %v8591_v35  ;;  %v8889_v21 = vadd.f32 %v3139_v54, %v8106_v41 }
 0x2e7   : > { %11776 = vst [vmem:[#allocation189_spill] sm:$0xff] %v8841_v40  ;;  %v8864_v40 = vadd.f32 %v3124_v47, %v11782_v18  ;;  %v2971_v47 = vsub.f32 %v8629_v46, %v8575_v48  ;;  %v3141_v18 = vand.u32 2147483647, %v3013_v61  ;;  %v3100_v10 = vand.u32 2147483647, %v2972_v22 }
 0x2e8   : > { %11777 = vst [vmem:[#allocation190_spill] sm:$0xff] %v8846_v59  ;;  %3451 = vperm.xlu2 %4713, %v8872_v4   ;;  %v3101_v59 = vand.u32 2147483647, %v2973_v56  ;;  %v3007_v41 = vsub.f32 %v8674_v50, %v8575_v48  ;;  %v3022_v56 = vsub.f32 %v8715_v25, %v8566_v37 }
 0x2e9   : > { %11779 = vst [vmem:[#allocation191_spill] sm:$0xff] %v8852_v38  ;;  %v2970_v38 = vsub.f32 %v8629_v46, %v8566_v37  ;;  %v3099_v61 = vand.u32 2147483647, %v2971_v47  ;;  %v11798_v47 = vld [vmem:[#allocation23_spill] sm:$0xff] }
 0x2ea   : > { %11781 = vst [vmem:[#allocation192_spill] sm:$0xff] %v8855_v12  ;;  %v3140_v12 = vand.u32 2147483647, %v3012_v62  ;;  %v11788_v62 = vld [vmem:[#allocation96_spill] sm:$0xff] }
 0x2eb   : > { %11783 = vst [vmem:[#allocation64_spill] sm:$0xff] %v8864_v40  ;;  %v3098_v40 = vand.u32 2147483647, %v2970_v38  ;;  %v8903_v20 = vadd.f32 %v3099_v61, %v11793_v28  ;;  %v3008_v38 = vsub.f32 %v8674_v50, %v8583_v29  ;;  %v3009_v28 = vsub.f32 %v8674_v50, %v8591_v35 }
 0x2ec   : > { %11785 = vst [vmem:[#allocation197_spill] sm:$0xff] %v8867_v52  ;;  %v8892_v52 = vadd.f32 %v3140_v12, %v11788_v62  ;;  %v8910_v12 = vld [vmem:[%s4995_s27 + $0xe0] sm:$0xff]  ;;  %v3023_v62 = vsub.f32 %v8715_v25, %v8575_v48 }
 0x2ed   : > { %11786 = vst [vmem:[#allocation65_spill] sm:$0xff] %v8872_v4  ;;  %v11789_v4 = vld [vmem:[#allocation182_spill] sm:$0xff]  ;;  %v8900_v46 = vadd.f32 %v3098_v40, %v11791_v23  ;;  %3459 = vperm.xlu1 %4715, %v8910_v12   ;;  %v8917_v23 = vadd.f32 %v3101_v59, %v11798_v47  ;;  %v3136_v22 = vand.u32 2147483647, %v3008_v38  ;;  %v3137_v61 = vand.u32 2147483647, %v3009_v28 }
 0x2ee   : > { %11787 = vst [vmem:[#allocation59_spill] sm:$0xff] %v8880_v13  ;;  %v8895_v51 = vadd.f32 %v3141_v18, %v11789_v4  ;;  %v3006_v13 = vsub.f32 %v8674_v50, %v8566_v37  ;;  %v11796_v4 = vld [vmem:[#allocation144_spill] sm:$0xff]  ;;  %v3135_v18 = vand.u32 2147483647, %v3007_v41  ;;  %v3024_v59 = vsub.f32 %v8715_v25, %v8583_v29  ;;  %v8932_v50 = vpop.permute.xlu2 %2911  ;;  %v8937_v41 = vld [vmem:[%s4995_s27 + $0xe8] sm:$0xff] }
 0x2ef   : > { %11792 = vst [vmem:[#allocation60_spill] sm:$0xff] %v8900_v46  ;;  %v8914_v54 = vadd.f32 %v3100_v10, %v11796_v4  ;;  %v3025_v10 = vsub.f32 %v8715_v25, %v8591_v35  ;;  %v11802_v38 = vld [vmem:[#allocation180_spill] sm:$0xff]  ;;  %v3150_v28 = vand.u32 2147483647, %v3022_v56  ;;  %v2980_v56 = vsub.f32 %v8687_v0, %v8583_v29 }
 0x2f0   : > { %11790 = vst [vmem:[#allocation56_spill] sm:$0xff] %v8895_v51  ;;  %v3134_v40 = vand.u32 2147483647, %v3006_v13  ;;  %v8934_v13 = vpop.permute.xlu1 %2883  ;;  %3463 = vperm.xlu2 %4713, %v8937_v41   ;;  %v8941_v4 = vadd.f32 %v3135_v18, %v11802_v38  ;;  %v11804_v47 = vld [vmem:[#allocation136_spill] sm:$0xff]  ;;  %v3152_v25 = vand.u32 2147483647, %v3024_v59  ;;  %v8969_v59 = vpop.permute.xlu0 %2927  ;;  %v3018_v38 = vsub.f32 %v8761_v45, %v8566_v37 }
 0x2f1   : > { %11794 = vst [vmem:[#allocation151_spill] sm:$0xff] %v8903_v20  ;;  %v11800_v20 = vld [vmem:[#allocation135_spill] sm:$0xff]  ;;  %v8952_v51 = vadd.f32 %v3150_v28, %v8179_v36  ;;  %v8976_v28 = vld [vmem:[%s4995_s27 + $0xf8] sm:$0xff] }
 0x2f2   : > { %11795 = vst [vmem:[#allocation61_spill] sm:$0xff] %v8910_v12  ;;  %v8926_v46 = vadd.f32 %v3134_v40, %v11800_v20  ;;  %v8944_v20 = vadd.f32 %v3136_v22, %v11804_v47  ;;  %v3151_v40 = vand.u32 2147483647, %v3023_v62  ;;  %v2978_v12 = vsub.f32 %v8687_v0, %v8566_v37 }
 0x2f3   : > { %11797 = vst [vmem:[#allocation57_spill] sm:$0xff] %v8914_v54  ;;  %v3153_v54 = vand.u32 2147483647, %v3025_v10  ;;  %v2979_v22 = vsub.f32 %v8687_v0, %v8575_v48  ;;  %v3108_v10 = vand.u32 2147483647, %v2980_v56  ;;  %v3019_v47 = vsub.f32 %v8761_v45, %v8575_v48  ;;  %v11811_v56 = vld [vmem:[#allocation97_spill] sm:$0xff] }
 0x2f4   : > { %11799 = vst [vmem:[#allocation75_spill] sm:$0xff] %v8917_v23  ;;  %v8955_v18 = vadd.f32 %v3151_v40, %v8182_v16  ;;  %v3106_v36 = vand.u32 2147483647, %v2978_v12  ;;  %v3021_v12 = vsub.f32 %v8761_v45, %v8591_v35 }
 0x2f5   : > { %11801 = vst [vmem:[#allocation198_spill] sm:$0xff] %v8926_v46  ;;  %v11806_v46 = vld [vmem:[#allocation181_spill] sm:$0xff]  ;;  %v8965_v62 = vadd.f32 %v3153_v54, %v8195_v11  ;;  %v3107_v16 = vand.u32 2147483647, %v2979_v22  ;;  %3471 = vperm.xlu1 %4715, %v8976_v28   ;;  %v8990_v40 = vadd.f32 %v3108_v10, %v8151_v19  ;;  %v3147_v22 = vand.u32 2147483647, %v3019_v47 }
 0x2f6   : > { %11803 = vst [vmem:[#allocation200_spill] sm:$0xff] %v8941_v4  ;;  %v8947_v23 = vadd.f32 %v3137_v61, %v11806_v46  ;;  %v8962_v46 = vadd.f32 %v3152_v25, %v8192_v15  ;;  %v2981_v61 = vsub.f32 %v8687_v0, %v8591_v35  ;;  %v8980_v11 = vadd.f32 %v3106_v36, %v8141_v39  ;;  %v11817_v10 = vld [vmem:[#allocation183_spill] sm:$0xff] }
 0x2f7   : > { %11805 = vst [vmem:[#allocation201_spill] sm:$0xff] %v8944_v20  ;;  %v3020_v0 = vsub.f32 %v8761_v45, %v8583_v29  ;;  %v8987_v54 = vadd.f32 %v3107_v16, %v8143_v58  ;;  %v3146_v25 = vand.u32 2147483647, %v3018_v38  ;;  %v3149_v39 = vand.u32 2147483647, %v3021_v12  ;;  %v11815_v45 = vld [vmem:[#allocation99_spill] sm:$0xff]  ;;  %v9017_v12 = vpop.permute.xlu2 %2923 }
 0x2f8   : > { %11807 = vst [vmem:[#allocation202_spill] sm:$0xff] %v8947_v23  ;;  %v3109_v15 = vand.u32 2147483647, %v2981_v61  ;;  %v3034_v36 = vsub.f32 %v8795_v26, %v8566_v37  ;;  %v9001_v4 = vadd.f32 %v3147_v22, %v11815_v45  ;;  %v3035_v58 = vsub.f32 %v8795_v26, %v8575_v48  ;;  %v9007_v16 = vpop.permute.xlu1 %2895  ;;  %v11819_v47 = vld [vmem:[#allocation103_spill] sm:$0xff] }
 0x2f9   : > { %11808 = vst [vmem:[#allocation169_spill] sm:$0xff] %v8980_v11  ;;  %v3148_v61 = vand.u32 2147483647, %v3020_v0  ;;  %v11813_v11 = vld [vmem:[#allocation98_spill] sm:$0xff]  ;;  %v3036_v19 = vsub.f32 %v8795_v26, %v8583_v29 }
 0x2fa   : > { %11809 = vst [vmem:[#allocation163_spill] sm:$0xff] %v8987_v54  ;;  %v8993_v23 = vadd.f32 %v3109_v15, %v11811_v56  ;;  %v8998_v20 = vadd.f32 %v3146_v25, %v11813_v11  ;;  %v9013_v15 = vadd.f32 %v3149_v39, %v11819_v47  ;;  %v3037_v11 = vsub.f32 %v8795_v26, %v8591_v35 }
 0x2fb   : > { %11810 = vst [vmem:[#allocation152_spill] sm:$0xff] %v8990_v40  ;;  %v9010_v38 = vadd.f32 %v3148_v61, %v11817_v10  ;;  %v3162_v0 = vand.u32 2147483647, %v3034_v36  ;;  %v3163_v25 = vand.u32 2147483647, %v3035_v58  ;;  %v2990_v56 = vsub.f32 %v8782_v34, %v8566_v37  ;;  %v11822_v36 = vld [vmem:[#allocation14_spill] sm:$0xff] }
 0x2fc   : > { %11812 = vst [vmem:[#allocation89_spill] sm:$0xff] %v8993_v23  ;;  %v3164_v22 = vand.u32 2147483647, %v3036_v19  ;;  %v3165_v45 = vand.u32 2147483647, %v3037_v11  ;;  %v4918_v10 = vmov 7   ;;  %v2991_v39 = vsub.f32 %v8782_v34, %v8575_v48 }
 0x2fd   : > { %11814 = vst [vmem:[#allocation90_spill] sm:$0xff] %v8998_v20  ;;  %4717 = vset.pattern.permute.xlu0 %v4918_v10  ;;  %v2992_v26 = vsub.f32 %v8782_v34, %v8583_v29  ;;  %4716 = vset.pattern.permute.xlu2 %v4918_v10  ;;  %v9029_v58 = vadd.f32 %v3163_v25, %v11822_v36  ;;  %v11824_v19 = vld [vmem:[#allocation45_spill] sm:$0xff]  ;;  %v9043_v36 = vpop.permute.xlu0 %2939 }
 0x2fe   : > { %11816 = vst [vmem:[#allocation91_spill] sm:$0xff] %v9001_v4  ;;  %v11821_v4 = vld [vmem:[#allocation104_spill] sm:$0xff]  ;;  %v9032_v47 = vadd.f32 %v3164_v22, %v11824_v19  ;;  %v2993_v11 = vsub.f32 %v8782_v34, %v8591_v35  ;;  %v3119_v23 = vand.u32 2147483647, %v2991_v39  ;;  %v3030_v25 = vsub.f32 %v8849_v63, %v8566_v37  ;;  %4718 = vset.pattern.permute.xlu1 %v4918_v10 }
 0x2ff   : > { %11818 = vst [vmem:[#allocation170_spill] sm:$0xff] %v9010_v38  ;;  %v9022_v61 = vadd.f32 %v3162_v0, %v11821_v4  ;;  %v3118_v4 = vand.u32 2147483647, %v2990_v56  ;;  %v4807_v0 = vld [vmem:[%s4995_s27 + $0x8] sm:$0xff]  ;;  %v11826_v38 = vld [vmem:[#allocation47_spill] sm:$0xff]  ;;  %v11828_v19 = vld [vmem:[#allocation36_spill] sm:$0xff]  ;;  %v3031_v56 = vsub.f32 %v8849_v63, %v8575_v48  ;;  %v3033_v10 = vsub.f32 %v8849_v63, %v8591_v35 }
 0x300   : > { %11820 = vst [vmem:[#allocation69_spill] sm:$0xff] %v9013_v15  ;;  %3867 = vperm.xlu0 %4717, %v4807_v0   ;;  %v4808_v15 = vld [vmem:[%s4995_s27] sm:$0xff]  ;;  %v9039_v20 = vadd.f32 %v3165_v45, %v11826_v38  ;;  %v3120_v40 = vand.u32 2147483647, %v2992_v26  ;;  %v3121_v22 = vand.u32 2147483647, %v2993_v11 }
 0x301   : > { %11823 = vst [vmem:[#allocation199_spill] sm:$0xff] %v9029_v58  ;;  %3863 = vperm.xlu2 %4716, %v4808_v15   ;;  %v9046_v34 = vadd.f32 %v3118_v4, %v11828_v19  ;;  %v3032_v15 = vsub.f32 %v8849_v63, %v8583_v29  ;;  %v4809_v38 = vld [vmem:[%s4995_s27 + $0x10] sm:$0xff]  ;;  %v11830_v45 = vld [vmem:[#allocation105_spill] sm:$0xff]  ;;  %v11832_v26 = vld [vmem:[#allocation184_spill] sm:$0xff]  ;;  %v3158_v11 = vand.u32 2147483647, %v3030_v25  ;;  %v3048_v63 = vsub.f32 %v8886_v42, %v8583_v29 }
 0x302   : > { %11825 = vst [vmem:[#allocation70_spill] sm:$0xff] %v9032_v47  ;;  %3871 = vperm.xlu1 %4718, %v4809_v38   ;;  %v9054_v39 = vadd.f32 %v3119_v23, %v11830_v45  ;;  %v9057_v0 = vadd.f32 %v3120_v40, %v11832_v26  ;;  %v11834_v4 = vld [vmem:[#allocation100_spill] sm:$0xff]  ;;  %v3161_v47 = vand.u32 2147483647, %v3033_v10  ;;  %v11836_v38 = vld [vmem:[#allocation101_spill] sm:$0xff]  ;;  %v3047_v23 = vsub.f32 %v8886_v42, %v8575_v48  ;;  %v9081_v26 = vpop.permute.xlu1 %2907 }
 0x303   : > { %11827 = vst [vmem:[#allocation203_spill] sm:$0xff] %v9039_v20  ;;  %v9062_v19 = vadd.f32 %v3121_v22, %v11834_v4  ;;  %v3160_v54 = vand.u32 2147483647, %v3032_v15  ;;  %v3046_v20 = vsub.f32 %v8886_v42, %v8566_v37  ;;  %v9067_v58 = vadd.f32 %v3158_v11, %v11836_v38  ;;  %v11838_v40 = vld [vmem:[#allocation37_spill] sm:$0xff]  ;;  %v11840_v22 = vld [vmem:[#allocation102_spill] sm:$0xff] }
 0x304   : > { %11829 = vst [vmem:[#allocation155_spill] sm:$0xff] %v9046_v34  ;;  %v3159_v34 = vand.u32 2147483647, %v3031_v56  ;;  %v3049_v15 = vsub.f32 %v8886_v42, %v8591_v35  ;;  %v11842_v10 = vld [vmem:[#allocation13_spill] sm:$0xff]  ;;  %v3175_v4 = vand.u32 2147483647, %v3047_v23  ;;  %v3003_v42 = vsub.f32 %v8861_v6, %v8575_v48 }
 0x305   : > { %11831 = vst [vmem:[#allocation71_spill] sm:$0xff] %v9054_v39  ;;  %v9077_v56 = vadd.f32 %v3160_v54, %v11840_v22  ;;  %v3174_v45 = vand.u32 2147483647, %v3046_v20  ;;  %v9084_v11 = vadd.f32 %v3161_v47, %v11842_v10  ;;  %v3176_v38 = vand.u32 2147483647, %v3048_v63  ;;  %v4810_v47 = vld [vmem:[%s4995_s27 + $0x30] sm:$0xff] }
 0x306   : > { %11833 = vst [vmem:[#allocation204_spill] sm:$0xff] %v9057_v0  ;;  %v9074_v25 = vadd.f32 %v3159_v34, %v11838_v40  ;;  %v9088_v34 = vpop.permute.xlu2 %2935  ;;  %v3177_v40 = vand.u32 2147483647, %v3049_v15  ;;  %v3004_v20 = vsub.f32 %v8861_v6, %v8583_v29  ;;  %v4811_v23 = vld [vmem:[%s4995_s27 + $0x18] sm:$0xff]  ;;  %v9100_v63 = vadd.f32 %v3175_v4, %v8338_v53  ;;  %v11847_v53 = vld [vmem:[#allocation17_spill] sm:$0xff] }
 0x307   : > { %11835 = vst [vmem:[#allocation72_spill] sm:$0xff] %v9062_v19  ;;  %v9091_v54 = vadd.f32 %v3174_v45, %v8335_v5  ;;  %v11844_v22 = vld [vmem:[#allocation112_spill] sm:$0xff]  ;;  %v3005_v5 = vsub.f32 %v8861_v6, %v8591_v35  ;;  %v4812_v19 = vld [vmem:[%s4995_s27 + $0x20] sm:$0xff]  ;;  %v3058_v0 = vsub.f32 %v8969_v59, %v8566_v37 }
 0x308   : > { %11837 = vst [vmem:[#allocation205_spill] sm:$0xff] %v9067_v58  ;;  %v3002_v58 = vsub.f32 %v8861_v6, %v8566_v37  ;;  %3887 = vperm.xlu0 %4717, %v4810_v47   ;;  %v9103_v10 = vadd.f32 %v3176_v38, %v11844_v22  ;;  %v11845_v45 = vld [vmem:[#allocation20_spill] sm:$0xff]  ;;  %v3042_v47 = vsub.f32 %v8932_v50, %v8566_v37 }
 0x309   : > { %11839 = vst [vmem:[#allocation116_spill] sm:$0xff] %v9074_v25  ;;  %3875 = vperm.xlu2 %4716, %v4811_v23   ;;  %v3132_v25 = vand.u32 2147483647, %v3004_v20  ;;  %v3133_v23 = vand.u32 2147483647, %v3005_v5  ;;  %v3043_v38 = vsub.f32 %v8932_v50, %v8575_v48  ;;  %v3044_v6 = vsub.f32 %v8932_v50, %v8583_v29  ;;  %v11851_v20 = vld [vmem:[#allocation5_spill] sm:$0xff] }
 0x30a   : > { %11841 = vst [vmem:[#allocation162_spill] sm:$0xff] %v9077_v56  ;;  %v3130_v15 = vand.u32 2147483647, %v3002_v58  ;;  %v3131_v56 = vand.u32 2147483647, %v3003_v42  ;;  %3879 = vperm.xlu1 %4718, %v4812_v19   ;;  %v9120_v58 = vpop.permute.xlu0 %2951  ;;  %v3045_v19 = vsub.f32 %v8932_v50, %v8591_v35  ;;  %v3060_v50 = vsub.f32 %v8969_v59, %v8583_v29 }
 0x30b   : > { %11843 = vst [vmem:[#allocation119_spill] sm:$0xff] %v9084_v11  ;;  %v9108_v11 = vadd.f32 %v3177_v40, %v11845_v45  ;;  %v11849_v40 = vld [vmem:[#allocation15_spill] sm:$0xff]  ;;  %v9126_v22 = vadd.f32 %v3132_v25, %v11851_v20  ;;  %v3170_v5 = vand.u32 2147483647, %v3042_v47  ;;  %v3059_v25 = vsub.f32 %v8969_v59, %v8575_v48  ;;  %v11857_v47 = vld [vmem:[#allocation42_spill] sm:$0xff] }
 0x30c   : > { %v9114_v4 = vadd.f32 %v3130_v15, %v11847_v53  ;;  %v9123_v42 = vadd.f32 %v3131_v56, %v11849_v40  ;;  %v11853_v15 = vld [vmem:[#allocation41_spill] sm:$0xff]  ;;  %v3171_v53 = vand.u32 2147483647, %v3043_v38  ;;  %v3173_v39 = vand.u32 2147483647, %v3045_v19  ;;  %v11855_v56 = vld [vmem:[#allocation18_spill] sm:$0xff] }
 0x30d   : > { %11846 = vst [vmem:[#allocation84_spill] sm:$0xff] %v9108_v11  ;;  %v9131_v45 = vadd.f32 %v3133_v23, %v11853_v15  ;;  %v9136_v40 = vadd.f32 %v3170_v5, %v11855_v56  ;;  %v11859_v20 = vld [vmem:[#allocation19_spill] sm:$0xff]  ;;  %v3186_v15 = vand.u32 2147483647, %v3058_v0  ;;  %v3187_v5 = vand.u32 2147483647, %v3059_v25 }
 0x30e   : > { %11848 = vst [vmem:[#allocation158_spill] sm:$0xff] %v9114_v4  ;;  %v3172_v4 = vand.u32 2147483647, %v3044_v6  ;;  %v9143_v23 = vadd.f32 %v3171_v53, %v11857_v47  ;;  %v3061_v6 = vsub.f32 %v8969_v59, %v8591_v35  ;;  %v11861_v19 = vld [vmem:[#allocation43_spill] sm:$0xff]  ;;  %v3188_v56 = vand.u32 2147483647, %v3060_v50  ;;  %v9156_v53 = vpop.permute.xlu1 %2919  ;;  %v9166_v0 = vpop.permute.xlu2 %2947 }
 0x30f   : > { %11850 = vst [vmem:[#allocation66_spill] sm:$0xff] %v9123_v42  ;;  %v4814_v47 = vld [vmem:[%s4995_s27 + $0x28] sm:$0xff]  ;;  %v3015_v59 = vsub.f32 %v8934_v13, %v8575_v48  ;;  %v11865_v25 = vld [vmem:[#allocation51_spill] sm:$0xff] }
 0x310   : > { %11852 = vst [vmem:[#allocation67_spill] sm:$0xff] %v9126_v22  ;;  %v9146_v38 = vadd.f32 %v3172_v4, %v11859_v20  ;;  %v4813_v22 = vld [vmem:[%s4995_s27 + $0x48] sm:$0xff]  ;;  %v3189_v4 = vand.u32 2147483647, %v3061_v6  ;;  %v11863_v20 = vld [vmem:[#allocation12_spill] sm:$0xff]  ;;  %v9169_v50 = vadd.f32 %v3187_v5, %v11865_v25  ;;  %v3017_v6 = vsub.f32 %v8934_v13, %v8591_v35 }
 0x311   : > { %11854 = vst [vmem:[#allocation154_spill] sm:$0xff] %v9131_v45  ;;  %v9151_v45 = vadd.f32 %v3173_v39, %v11861_v19  ;;  %3899 = vperm.xlu0 %4717, %v4813_v22   ;;  %3883 = vperm.xlu2 %4716, %v4814_v47   ;;  %v3016_v39 = vsub.f32 %v8934_v13, %v8583_v29  ;;  %v11866_v22 = vld [vmem:[#allocation40_spill] sm:$0xff]  ;;  %v11869_v5 = vld [vmem:[#allocation46_spill] sm:$0xff] }
 0x312   : > { %11856 = vst [vmem:[#allocation68_spill] sm:$0xff] %v9136_v40  ;;  %v3014_v40 = vsub.f32 %v8934_v13, %v8566_v37  ;;  %v9172_v19 = vadd.f32 %v3188_v56, %v11866_v22  ;;  %v3145_v11 = vand.u32 2147483647, %v3017_v6  ;;  %v3055_v56 = vsub.f32 %v9017_v12, %v8575_v48  ;;  %v9197_v6 = vpop.permute.xlu0 %3351 }
 0x313   : > { %11858 = vst [vmem:[#allocation114_spill] sm:$0xff] %v9143_v23  ;;  %v3143_v23 = vand.u32 2147483647, %v3015_v59  ;;  %v3144_v42 = vand.u32 2147483647, %v3016_v39  ;;  %v3056_v13 = vsub.f32 %v9017_v12, %v8583_v29  ;;  %v3057_v59 = vsub.f32 %v9017_v12, %v8591_v35 }
 0x314   : > { %11860 = vst [vmem:[#allocation76_spill] sm:$0xff] %v9146_v38  ;;  %v9160_v38 = vadd.f32 %v3186_v15, %v11863_v20  ;;  %v3142_v47 = vand.u32 2147483647, %v3014_v40  ;;  %v4815_v15 = vld [vmem:[%s4995_s27 + $0x38] sm:$0xff]  ;;  %v11867_v20 = vld [vmem:[#allocation27_spill] sm:$0xff]  ;;  %v11871_v40 = vld [vmem:[#allocation10_spill] sm:$0xff] }
 0x315   : > { %11862 = vst [vmem:[#allocation159_spill] sm:$0xff] %v9151_v45  ;;  %3891 = vperm.xlu1 %4718, %v4815_v15   ;;  %v9178_v45 = vadd.f32 %v3189_v4, %v11867_v20  ;;  %v9190_v22 = vadd.f32 %v3143_v23, %v11871_v40  ;;  %v11873_v4 = vld [vmem:[#allocation63_spill] sm:$0xff]  ;;  %v3070_v23 = vsub.f32 %v9043_v36, %v8566_v37  ;;  %v3185_v40 = vand.u32 2147483647, %v3057_v59  ;;  %v4816_v59 = vld [vmem:[%s4995_s27 + $0x60] sm:$0xff] }
 0x316   : > { %11864 = vst [vmem:[#allocation77_spill] sm:$0xff] %v9160_v38  ;;  %v3054_v38 = vsub.f32 %v9017_v12, %v8566_v37  ;;  %v9183_v25 = vadd.f32 %v3142_v47, %v11869_v5  ;;  %v9193_v15 = vadd.f32 %v3144_v42, %v11873_v4  ;;  %v11875_v47 = vld [vmem:[#allocation73_spill] sm:$0xff]  ;;  %v3183_v5 = vand.u32 2147483647, %v3055_v56 }
 0x317   : > { %11868 = vst [vmem:[#allocation164_spill] sm:$0xff] %v9178_v45  ;;  %v9200_v20 = vadd.f32 %v3145_v11, %v11875_v47  ;;  %v3071_v4 = vsub.f32 %v9043_v36, %v8575_v48  ;;  %v3072_v12 = vsub.f32 %v9043_v36, %v8583_v29  ;;  %v11881_v11 = vld [vmem:[#allocation30_spill] sm:$0xff]  ;;  %v3073_v56 = vsub.f32 %v9043_v36, %v8591_v35 }
 0x318   : > { %11870 = vst [vmem:[#allocation130_spill] sm:$0xff] %v9183_v25  ;;  %v3182_v39 = vand.u32 2147483647, %v3054_v38  ;;  %v3184_v25 = vand.u32 2147483647, %v3056_v13  ;;  %v11879_v38 = vld [vmem:[#allocation25_spill] sm:$0xff]  ;;  %v3027_v36 = vsub.f32 %v9007_v16, %v8575_v48 }
 0x319   : > { %11872 = vst [vmem:[#allocation79_spill] sm:$0xff] %v9190_v22  ;;  %v11877_v22 = vld [vmem:[#allocation54_spill] sm:$0xff]  ;;  %v3198_v13 = vand.u32 2147483647, %v3070_v23  ;;  %3911 = vperm.xlu0 %4717, %v4816_v59   ;;  %v3199_v45 = vand.u32 2147483647, %v3071_v4  ;;  %v3028_v23 = vsub.f32 %v9007_v16, %v8583_v29  ;;  %v3029_v4 = vsub.f32 %v9007_v16, %v8591_v35 }
 0x31a   : > { %11874 = vst [vmem:[#allocation113_spill] sm:$0xff] %v9193_v15  ;;  %v9205_v42 = vadd.f32 %v3182_v39, %v11877_v22  ;;  %v9212_v15 = vadd.f32 %v3183_v5, %v11879_v38  ;;  %v9215_v47 = vadd.f32 %v3184_v25, %v11881_v11  ;;  %v9220_v22 = vpop.permute.xlu1 %2931  ;;  %v4817_v39 = vld [vmem:[%s4995_s27 + $0x40] sm:$0xff]  ;;  %v3200_v5 = vand.u32 2147483647, %v3072_v12  ;;  %v4818_v59 = vld [vmem:[%s4995_s27 + $0x50] sm:$0xff] }
 0x31b   : > { %11876 = vst [vmem:[#allocation80_spill] sm:$0xff] %v9200_v20  ;;  %3895 = vperm.xlu2 %4716, %v4817_v39   ;;  %v3026_v25 = vsub.f32 %v9007_v16, %v8566_v37  ;;  %v3201_v38 = vand.u32 2147483647, %v3073_v56  ;;  %v9229_v11 = vadd.f32 %v3198_v13, %v8479_v57  ;;  %v9244_v57 = vpop.permute.xlu2 %3347  ;;  %v3155_v13 = vand.u32 2147483647, %v3027_v36 }
 0x31c   : > { %11878 = vst [vmem:[#allocation156_spill] sm:$0xff] %v9205_v42  ;;  %v11883_v42 = vld [vmem:[#allocation26_spill] sm:$0xff]  ;;  %v3156_v39 = vand.u32 2147483647, %v3028_v23  ;;  %v3068_v16 = vsub.f32 %v9088_v34, %v8583_v29  ;;  %v3069_v36 = vsub.f32 %v9088_v34, %v8591_v35 }
 0x31d   : > { %11880 = vst [vmem:[#allocation81_spill] sm:$0xff] %v9212_v15  ;;  %v9224_v20 = vadd.f32 %v3185_v40, %v11883_v42  ;;  %3903 = vperm.xlu1 %4718, %v4818_v59   ;;  %v9237_v40 = vadd.f32 %v3199_v45, %v8482_v33  ;;  %v9240_v42 = vadd.f32 %v3200_v5, %v8486_v55  ;;  %v3154_v12 = vand.u32 2147483647, %v3026_v25  ;;  %v11888_v33 = vld [vmem:[#allocation31_spill] sm:$0xff]  ;;  %v11890_v5 = vld [vmem:[#allocation28_spill] sm:$0xff]  ;;  %v9271_v15 = vpop.permute.xlu0 %3371 }
 0x31e   : > { %11882 = vst [vmem:[#allocation157_spill] sm:$0xff] %v9215_v47  ;;  %v9247_v56 = vadd.f32 %v3201_v38, %v8489_v43  ;;  %v3066_v59 = vsub.f32 %v9088_v34, %v8566_v37  ;;  %v3067_v55 = vsub.f32 %v9088_v34, %v8575_v48  ;;  %v9259_v43 = vadd.f32 %v3155_v13, %v11890_v5  ;;  %v11892_v25 = vld [vmem:[#allocation32_spill] sm:$0xff]  ;;  %v11896_v13 = vld [vmem:[#allocation58_spill] sm:$0xff] }
 0x31f   : > { %11884 = vst [vmem:[#allocation82_spill] sm:$0xff] %v9224_v20  ;;  %v3157_v20 = vand.u32 2147483647, %v3029_v4  ;;  %v9252_v45 = vadd.f32 %v3154_v12, %v11888_v33  ;;  %v9262_v38 = vadd.f32 %v3156_v39, %v11892_v25  ;;  %v11894_v4 = vld [vmem:[#allocation21_spill] sm:$0xff]  ;;  %v3082_v47 = vsub.f32 %v9120_v58, %v8566_v37  ;;  %v11900_v25 = vld [vmem:[#allocation107_spill] sm:$0xff] }
 0x320   : > { %11885 = vst [vmem:[#allocation131_spill] sm:$0xff] %v9237_v40  ;;  %v3194_v23 = vand.u32 2147483647, %v3066_v59  ;;  %v3195_v33 = vand.u32 2147483647, %v3067_v55  ;;  %v3083_v39 = vsub.f32 %v9120_v58, %v8575_v48  ;;  %v3084_v34 = vsub.f32 %v9120_v58, %v8583_v29  ;;  %v4820_v59 = vld [vmem:[%s4995_s27 + $0x58] sm:$0xff] }
 0x321   : > { %11886 = vst [vmem:[#allocation171_spill] sm:$0xff] %v9240_v42  ;;  %v9267_v12 = vadd.f32 %v3157_v20, %v11894_v4  ;;  %v4819_v20 = vld [vmem:[%s4995_s27 + $0x78] sm:$0xff]  ;;  %v11898_v55 = vld [vmem:[#allocation22_spill] sm:$0xff] }
 0x322   : > { %11887 = vst [vmem:[#allocation132_spill] sm:$0xff] %v9247_v56  ;;  %v3197_v56 = vand.u32 2147483647, %v3069_v36  ;;  %v9274_v5 = vadd.f32 %v3194_v23, %v11896_v13  ;;  %3923 = vperm.xlu0 %4717, %v4819_v20   ;;  %v3085_v36 = vsub.f32 %v9120_v58, %v8591_v35  ;;  %v3210_v23 = vand.u32 2147483647, %v3082_v47  ;;  %v9290_v13 = vpop.permute.xlu1 %2943 }
 0x323   : > { %11889 = vst [vmem:[#allocation172_spill] sm:$0xff] %v9252_v45  ;;  %v3196_v45 = vand.u32 2147483647, %v3068_v16  ;;  %3907 = vperm.xlu2 %4716, %v4820_v59   ;;  %v9283_v16 = vadd.f32 %v3195_v33, %v11898_v55  ;;  %v3038_v20 = vsub.f32 %v9081_v26, %v8566_v37  ;;  %v4821_v59 = vld [vmem:[%s4995_s27 + $0x68] sm:$0xff]  ;;  %v3039_v58 = vsub.f32 %v9081_v26, %v8575_v48  ;;  %v11907_v55 = vld [vmem:[#allocation140_spill] sm:$0xff] }
 0x324   : > { %11891 = vst [vmem:[#allocation160_spill] sm:$0xff] %v9259_v43  ;;  %v3212_v43 = vand.u32 2147483647, %v3084_v34  ;;  %v3213_v33 = vand.u32 2147483647, %v3085_v36  ;;  %v3040_v47 = vsub.f32 %v9081_v26, %v8583_v29 }
 0x325   : > { %11893 = vst [vmem:[#allocation78_spill] sm:$0xff] %v9262_v38  ;;  %v9286_v4 = vadd.f32 %v3196_v45, %v11900_v25  ;;  %v3211_v38 = vand.u32 2147483647, %v3083_v39  ;;  %3915 = vperm.xlu1 %4718, %v4821_v59   ;;  %v9299_v45 = vadd.f32 %v3210_v23, %v8540_v30  ;;  %v3041_v39 = vsub.f32 %v9081_v26, %v8591_v35  ;;  %v9318_v59 = vpop.permute.xlu2 %3359 }
 0x326   : > { %11895 = vst [vmem:[#allocation161_spill] sm:$0xff] %v9267_v12  ;;  %v3166_v34 = vand.u32 2147483647, %v3038_v20  ;;  %v9314_v25 = vadd.f32 %v3213_v33, %v11907_v55  ;;  %v3167_v30 = vand.u32 2147483647, %v3039_v58  ;;  %v3078_v23 = vsub.f32 %v9166_v0, %v8566_v37  ;;  %v11911_v20 = vld [vmem:[#allocation24_spill] sm:$0xff] }
 0x327   : > { %11897 = vst [vmem:[#allocation129_spill] sm:$0xff] %v9274_v5  ;;  %v11902_v5 = vld [vmem:[#allocation7_spill] sm:$0xff]  ;;  %v3168_v36 = vand.u32 2147483647, %v3040_v47  ;;  %v3079_v26 = vsub.f32 %v9166_v0, %v8575_v48  ;;  %v11913_v58 = vld [vmem:[#allocation49_spill] sm:$0xff]  ;;  %v3081_v55 = vsub.f32 %v9166_v0, %v8591_v35 }
 0x328   : > { %11899 = vst [vmem:[#allocation165_spill] sm:$0xff] %v9283_v16  ;;  %v9293_v12 = vadd.f32 %v3197_v56, %v11902_v5  ;;  %v9306_v56 = vadd.f32 %v3211_v38, %v8543_v32  ;;  %v9309_v5 = vadd.f32 %v3212_v43, %v8546_v17  ;;  %v3169_v32 = vand.u32 2147483647, %v3041_v39  ;;  %v11909_v38 = vld [vmem:[#allocation74_spill] sm:$0xff]  ;;  %v11915_v39 = vld [vmem:[#allocation83_spill] sm:$0xff] }
 0x329   : > { %11901 = vst [vmem:[#allocation85_spill] sm:$0xff] %v9286_v4  ;;  %v9321_v17 = vadd.f32 %v3166_v34, %v11909_v38  ;;  %v3080_v43 = vsub.f32 %v9166_v0, %v8583_v29  ;;  %v9328_v33 = vadd.f32 %v3167_v30, %v11911_v20  ;;  %v9331_v47 = vadd.f32 %v3168_v36, %v11913_v58  ;;  %v4823_v30 = vld [vmem:[%s4995_s27 + $0x70] sm:$0xff]  ;;  %v11918_v36 = vld [vmem:[#allocation153_spill] sm:$0xff]  ;;  %v11930_v4 = vld [vmem:[#allocation16_spill] sm:$0xff] }
 0x32a   : > { %11903 = vst [vmem:[#allocation166_spill] sm:$0xff] %v9293_v12  ;;  %v3207_v34 = vand.u32 2147483647, %v3079_v26  ;;  %v3209_v20 = vand.u32 2147483647, %v3081_v55  ;;  %v9352_v26 = vpop.permute.xlu0 %3383  ;;  %v11926_v55 = vld [vmem:[#allocation145_spill] sm:$0xff] }
 0x32b   : > { %11904 = vst [vmem:[#allocation86_spill] sm:$0xff] %v9299_v45  ;;  %v3208_v38 = vand.u32 2147483647, %v3080_v43  ;;  %3919 = vperm.xlu2 %4716, %v4823_v30   ;;  %v9354_v43 = vpop.permute.xlu1 %2955  ;;  %v9363_v30 = vperm.slane %v11926_v55, 6  ;;  %v3051_v55 = vsub.f32 %v9156_v53, %v8575_v48 }
 0x32c   : > { %11905 = vst [vmem:[#allocation124_spill] sm:$0xff] %v9306_v56  ;;  %v11917_v56 = vld [vmem:[#allocation146_spill] sm:$0xff] }
 0x32d   : > { %11906 = vst [vmem:[#allocation174_spill] sm:$0xff] %v9309_v5  ;;  %v9336_v5 = vadd.f32 %v3169_v32, %v11915_v39  ;;  %v9339_v45 = vperm.slane %v11917_v56, 6  ;;  %v11922_v56 = vld [vmem:[#allocation6_spill] sm:$0xff]  ;;  %v3179_v12 = vand.u32 2147483647, %v3051_v55  ;;  %v9397_v40 = vpop.permute.xlu2 %3367 }
 0x32e   : > { %11908 = vst [vmem:[#allocation125_spill] sm:$0xff] %v9314_v25  ;;  %v3206_v25 = vand.u32 2147483647, %v3078_v23  ;;  %v11921_v23 = vld [vmem:[#allocation33_spill] sm:$0xff]  ;;  %v9357_v39 = vadd.f32 %v3207_v34, %v11922_v56  ;;  %v3485_v56 = vsub.f32 %v9197_v6, %v9363_v30 }
 0x32f   : > { %11910 = vst [vmem:[#allocation176_spill] sm:$0xff] %v9321_v17  ;;  %v4822_v17 = vld [vmem:[%s4995_s27 + $0x90] sm:$0xff]  ;;  %v9350_v32 = vperm.slane %v11921_v23, 6 }
 0x330   : > { %11912 = vst [vmem:[#allocation167_spill] sm:$0xff] %v9328_v33  ;;  %3935 = vperm.xlu0 %4717, %v4822_v17   ;;  %v9344_v58 = vadd.f32 %v3206_v25, %v11918_v36  ;;  %v11924_v17 = vld [vmem:[#allocation50_spill] sm:$0xff]  ;;  %v3482_v25 = vsub.f32 %v9197_v6, %v9339_v45  ;;  %v11927_v36 = vld [vmem:[#allocation11_spill] sm:$0xff] }
 0x331   : > { %11914 = vst [vmem:[#allocation87_spill] sm:$0xff] %v9331_v47  ;;  %v11920_v47 = vld [vmem:[#allocation147_spill] sm:$0xff]  ;;  %v9369_v23 = vadd.f32 %v3209_v20, %v11927_v36  ;;  %v3484_v34 = vsub.f32 %v9197_v6, %v9350_v32  ;;  %v3052_v20 = vsub.f32 %v9156_v53, %v8583_v29 }
 0x332   : > { %11916 = vst [vmem:[#allocation168_spill] sm:$0xff] %v9336_v5  ;;  %v9347_v0 = vperm.slane %v11920_v47, 6  ;;  %v9360_v5 = vadd.f32 %v3208_v38, %v11924_v17  ;;  %v4824_v47 = vld [vmem:[%s4995_s27 + $0x80] sm:$0xff]  ;;  %v3050_v38 = vsub.f32 %v9156_v53, %v8566_v37  ;;  %v3610_v17 = vand.u32 2147483647, %v3482_v25 }
 0x333   : > { %11919 = vst [vmem:[#allocation137_spill] sm:$0xff] %v9344_v58  ;;  %3927 = vperm.xlu1 %4718, %v4824_v47   ;;  %v3612_v36 = vand.u32 2147483647, %v3484_v34  ;;  %v11932_v34 = vld [vmem:[#allocation148_spill] sm:$0xff] }
 0x334   : > { %11923 = vst [vmem:[#allocation138_spill] sm:$0xff] %v9357_v39  ;;  %v3483_v58 = vsub.f32 %v9197_v6, %v9347_v0  ;;  %v3613_v39 = vand.u32 2147483647, %v3485_v56  ;;  %v9386_v33 = vadd.f32 %v3610_v17, %v8645_v9  ;;  %v3180_v6 = vand.u32 2147483647, %v3052_v20  ;;  %v11936_v9 = vld [vmem:[#allocation141_spill] sm:$0xff] }
 0x335   : > { %11925 = vst [vmem:[#allocation139_spill] sm:$0xff] %v9360_v5  ;;  %v3178_v5 = vand.u32 2147483647, %v3050_v38  ;;  %v9392_v16 = vadd.f32 %v3612_v36, %v11930_v4  ;;  %v9403_v56 = vadd.f32 %v3179_v12, %v11936_v9  ;;  %v11938_v17 = vld [vmem:[#allocation34_spill] sm:$0xff]  ;;  %v3481_v12 = vsub.f32 %v9244_v57, %v9363_v30 }
 0x336   : > { %11928 = vst [vmem:[#allocation106_spill] sm:$0xff] %v9369_v23  ;;  %v3611_v47 = vand.u32 2147483647, %v3483_v58  ;;  %v3053_v23 = vsub.f32 %v9156_v53, %v8591_v35  ;;  %v11934_v53 = vld [vmem:[#allocation108_spill] sm:$0xff]  ;;  %v9406_v55 = vadd.f32 %v3180_v6, %v11938_v17  ;;  %v4825_v4 = vld [vmem:[%s4995_s27 + $0xa8] sm:$0xff]  ;;  %v3502_v6 = vsub.f32 %v9271_v15, %v9339_v45 }
 0x337   : > { %11931 = vst [vmem:[#allocation127_spill] sm:$0xff] %v9392_v16  ;;  %v9395_v42 = vadd.f32 %v3178_v5, %v11932_v34  ;;  %v9400_v38 = vadd.f32 %v3613_v39, %v11934_v53  ;;  %v3479_v5 = vsub.f32 %v9244_v57, %v9347_v0  ;;  %v3480_v39 = vsub.f32 %v9244_v57, %v9350_v32 }
 0x338   : > { %v9389_v25 = vadd.f32 %v3611_v47, %v8648_v60  ;;  %v3181_v58 = vand.u32 2147483647, %v3053_v23  ;;  %11937 = vst [vmem:[#allocation115_spill] sm:$0xff] %v9403_v56  ;;  %v3478_v60 = vsub.f32 %v9244_v57, %v9339_v45  ;;  %3947 = vperm.xlu0 %4717, %v4825_v4   ;;  %v11940_v23 = vld [vmem:[#allocation44_spill] sm:$0xff]  ;;  %v4826_v47 = vld [vmem:[%s4995_s27 + $0x88] sm:$0xff]  ;;  %v3503_v34 = vsub.f32 %v9271_v15, %v9347_v0  ;;  %v9430_v4 = vpop.permute.xlu0 %3395  ;;  %s165_s27 = sand.u32 1, %s4893_s10  }
 0x339   : > { %11933 = vst [vmem:[#allocation177_spill] sm:$0xff] %v9395_v42  ;;  %3931 = vperm.xlu2 %4716, %v4826_v47   ;;  %v3607_v53 = vand.u32 2147483647, %v3479_v5  ;;  %v3608_v9 = vand.u32 2147483647, %v3480_v39  ;;  %v3505_v57 = vsub.f32 %v9271_v15, %v9363_v30  ;;  %v11943_v42 = vld [vmem:[#allocation53_spill] sm:$0xff] }
 0x33a   : > { %11929 = vst [vmem:[#allocation123_spill] sm:$0xff] %v9389_v25  ;;  %v9412_v20 = vadd.f32 %v3181_v58, %v11940_v23  ;;  %v3606_v36 = vand.u32 2147483647, %v3478_v60  ;;  %v3504_v58 = vsub.f32 %v9271_v15, %v9350_v32  ;;  %v3609_v17 = vand.u32 2147483647, %v3481_v12  ;;  %v9432_v60 = vpop.permute.xlu1 %3355  ;;  %v11942_v23 = vld [vmem:[#allocation35_spill] sm:$0xff] }
 0x33b   : > { %11935 = vst [vmem:[#allocation126_spill] sm:$0xff] %v9400_v38  ;;  %3939 = vperm.xlu1 %4718, %v8700_v27   ;;  %v9438_v38 = vadd.f32 %v3607_v53, %v11943_v42  ;;  %v11945_v27 = vld [vmem:[#allocation48_spill] sm:$0xff]  ;;  %v11947_v39 = vld [vmem:[#allocation110_spill] sm:$0xff]  ;;  %v3633_v15 = vand.u32 2147483647, %v3505_v57  ;;  %v3062_v42 = vsub.f32 %v9220_v22, %v8566_v37  ;;  %v11950_v57 = vld [vmem:[#allocation9_spill] sm:$0xff] }
 0x33c   : > { %11939 = vst [vmem:[#allocation128_spill] sm:$0xff] %v9406_v55  ;;  %v9435_v47 = vadd.f32 %v3606_v36, %v11942_v23  ;;  %v3631_v55 = vand.u32 2147483647, %v3503_v34  ;;  %v3632_v56 = vand.u32 2147483647, %v3504_v58  ;;  %v9441_v5 = vadd.f32 %v3608_v9, %v11945_v27  ;;  %s4619_s6 = sshll.u32 %s165_s27, 10 }
 0x33d   : > { %11941 = vst [vmem:[#allocation117_spill] sm:$0xff] %v9412_v20  ;;  %v3630_v20 = vand.u32 2147483647, %v3502_v6  ;;  %v9444_v12 = vadd.f32 %v3609_v17, %v11947_v39  ;;  %v9458_v6 = vadd.f32 %v3633_v15, %v8739_v7  ;;  %v3063_v34 = vsub.f32 %v9220_v22, %v8575_v48  ;;  %v9475_v17 = vpop.permute.xlu2 %3379  ;;  %s10064_s7 = scalar_lea.vmem [#allocation2], %s4619_s6  ;;  %s4507_s23 = scalar_lea.sflag [#allocation3], %s165_s27 }
 0x33e   : > { %11944 = vst [vmem:[#allocation92_spill] sm:$0xff] %v9438_v38  ;;  %v9450_v25 = vadd.f32 %v3631_v55, %v8733_v2  ;;  %v9453_v36 = vadd.f32 %v3632_v56, %v8736_v8  ;;  %v3064_v58 = vsub.f32 %v9220_v22, %v8583_v29  ;;  %v3190_v2 = vand.u32 2147483647, %v3062_v42  ;;  %v11951_v42 = vld [vmem:[#allocation193_spill] sm:$0xff]  ;;  %s4522_s18 = sshll.u32 %s10064_s7, 4  ;;  %s4523_s18 = int_to_ptr.vmem [resolvable:$true] %s4522_s18 }
 0x33f   : > { %11946 = vst [vmem:[#allocation122_spill] sm:$0xff] %v9441_v5  ;;  %v9447_v16 = vadd.f32 %v3630_v20, %v8722_v24  ;;  %v3065_v24 = vsub.f32 %v9220_v22, %v8591_v35  ;;  %v3490_v8 = vsub.f32 %v9318_v59, %v9339_v45  ;;  %v3491_v56 = vsub.f32 %v9318_v59, %v9347_v0  ;;  %v11949_v22 = vld [vmem:[#allocation118_spill] sm:$0xff]  ;;  %v11957_v38 = vld [vmem:[#allocation109_spill] sm:$0xff] }
 0x340   : > { %11948 = vst [vmem:[#allocation134_spill] sm:$0xff] %v9444_v12  ;;  %v3492_v7 = vsub.f32 %v9318_v59, %v9350_v32  ;;  %3959 = vperm.xlu0 %4717, %v8712_v1   ;;  %v3191_v55 = vand.u32 2147483647, %v3063_v34  ;;  %v3192_v20 = vand.u32 2147483647, %v3064_v58  ;;  %v3493_v9 = vsub.f32 %v9318_v59, %v9363_v30  ;;  %v11952_v12 = vld [vmem:[#allocation111_spill] sm:$0xff] }
 0x341   : > { %v3193_v53 = vand.u32 2147483647, %v3065_v24  ;;  %3943 = vperm.xlu2 %4716, %v11949_v22   ;;  %v9479_v23 = vadd.f32 %v3190_v2, %v11950_v57  ;;  %v3618_v27 = vand.u32 2147483647, %v3490_v8  ;;  %v3619_v39 = vand.u32 2147483647, %v3491_v56 }
 0x342   : > { %v3620_v15 = vand.u32 2147483647, %v3492_v7  ;;  %v9483_v1 = vadd.f32 %v3191_v55, %v11952_v12  ;;  %v11953_v34 = vld [vmem:[#allocation29_spill] sm:$0xff]  ;;  %v3621_v5 = vand.u32 2147483647, %v3493_v9  ;;  %v11959_v2 = vld [vmem:[#allocation62_spill] sm:$0xff]  ;;  %v3514_v12 = vsub.f32 %v9352_v26, %v9339_v45  ;;  %v9511_v9 = vpop.permute.xlu0 %3407 }
 0x343   : > { %3951 = vperm.xlu1 %4718, %v11951_v42   ;;  %v9486_v58 = vadd.f32 %v3192_v20, %v11953_v34  ;;  %v11955_v24 = vld [vmem:[#allocation185_spill] sm:$0xff]  ;;  %v9492_v22 = vadd.f32 %v3618_v27, %v11957_v38  ;;  %v9495_v57 = vadd.f32 %v3619_v39, %v11959_v2  ;;  %v11963_v7 = vld [vmem:[#allocation55_spill] sm:$0xff]  ;;  %v3515_v20 = vsub.f32 %v9352_v26, %v9347_v0  ;;  %v9513_v27 = vpop.permute.xlu1 %3363 }
 0x344   : > { %v9489_v59 = vadd.f32 %v3193_v53, %v11955_v24  ;;  %v11961_v8 = vld [vmem:[#allocation149_spill] sm:$0xff]  ;;  %v9503_v55 = vadd.f32 %v3621_v5, %v11963_v7  ;;  %v3516_v53 = vsub.f32 %v9352_v26, %v9350_v32  ;;  %v3517_v38 = vsub.f32 %v9352_v26, %v9363_v30 }
 0x345   : > { %11954 = vst [vmem:[#allocation179_spill] sm:$0xff] %v9486_v58  ;;  %v9498_v56 = vadd.f32 %v3620_v15, %v11961_v8  ;;  %v3642_v39 = vand.u32 2147483647, %v3514_v12  ;;  %v3074_v15 = vsub.f32 %v9290_v13, %v8566_v37  ;;  %v3075_v5 = vsub.f32 %v9290_v13, %v8575_v48 }
 0x346   : > { %11956 = vst [vmem:[#allocation173_spill] sm:$0xff] %v9489_v59  ;;  %v3076_v42 = vsub.f32 %v9290_v13, %v8583_v29  ;;  %v3643_v34 = vand.u32 2147483647, %v3515_v20  ;;  %v3644_v24 = vand.u32 2147483647, %v3516_v53  ;;  %v3077_v26 = vsub.f32 %v9290_v13, %v8591_v35  ;;  %v11966_v13 = vld [vmem:[#allocation8_spill] sm:$0xff] }
 0x347   : > { %11958 = vst [vmem:[#allocation93_spill] sm:$0xff] %v9492_v22  ;;  %v3645_v2 = vand.u32 2147483647, %v3517_v38  ;;  %v9524_v8 = vadd.f32 %v3642_v39, %v8802_v3  ;;  %v3202_v7 = vand.u32 2147483647, %v3074_v15  ;;  %v11968_v38 = vld [vmem:[#allocation150_spill] sm:$0xff] }
 0x348   : > { %11960 = vst [vmem:[#allocation175_spill] sm:$0xff] %v9495_v57  ;;  %v3203_v12 = vand.u32 2147483647, %v3075_v5  ;;  %v9528_v57 = vadd.f32 %v3643_v34, %v8805_v49  ;;  %v9531_v22 = vadd.f32 %v3644_v24, %v8812_v31  ;;  %v3205_v53 = vand.u32 2147483647, %v3077_v26  ;;  %v11970_v15 = vld [vmem:[#allocation52_spill] sm:$0xff]  ;;  %v9558_v24 = vpop.permute.xlu2 %3391 }
 0x349   : > { %11962 = vst [vmem:[#allocation94_spill] sm:$0xff] %v9498_v56  ;;  %v11965_v56 = vld [vmem:[#allocation187_spill] sm:$0xff]  ;;  %v9534_v20 = vadd.f32 %v3645_v2, %v8815_v44  ;;  %3955 = vperm.xlu2 %4716, %v8798_v14   ;;  %v9538_v3 = vadd.f32 %v3202_v7, %v11966_v13  ;;  %v3498_v49 = vsub.f32 %v9397_v40, %v9339_v45  ;;  %v11972_v31 = vld [vmem:[#allocation120_spill] sm:$0xff]  ;;  %v11973_v5 = vld [vmem:[#allocation186_spill] sm:$0xff] }
 0x34a   : > { %11964 = vst [vmem:[#allocation121_spill] sm:$0xff] %v9503_v55  ;;  %v3204_v55 = vand.u32 2147483647, %v3076_v42  ;;  %3971 = vperm.xlu0 %4717, %v11965_v56   ;;  %v9541_v39 = vadd.f32 %v3203_v12, %v11968_v38  ;;  %v9550_v44 = vadd.f32 %v3205_v53, %v11973_v5  ;;  %v3499_v14 = vsub.f32 %v9397_v40, %v9347_v0  ;;  %v11979_v59 = vld [vmem:[#allocation88_spill] sm:$0xff] }
 0x34b   : > { %11967 = vst [vmem:[#allocation133_spill] sm:$0xff] %v9538_v3  ;;  %3963 = vperm.xlu1 %4718, %v11972_v31   ;;  %v3500_v42 = vsub.f32 %v9397_v40, %v9350_v32  ;;  %v3501_v34 = vsub.f32 %v9397_v40, %v9363_v30  ;;  %v3526_v2 = vsub.f32 %v9430_v4, %v9339_v45 }
 0x34c   : > { %11969 = vst [vmem:[#allocation178_spill] sm:$0xff] %v9541_v39  ;;  %v9544_v56 = vadd.f32 %v3204_v55, %v11970_v15  ;;  %v3626_v55 = vand.u32 2147483647, %v3498_v49  ;;  %v3527_v26 = vsub.f32 %v9430_v4, %v9347_v0  ;;  %v3528_v7 = vsub.f32 %v9430_v4, %v9350_v32  ;;  %v11975_v15 = vld [vmem:[#allocation38_spill] sm:$0xff]  ;;  %v11977_v39 = vld [vmem:[#allocation188_spill] sm:$0xff] }
 0x34d   : > { %11974 = vst [vmem:[#allocation96_spill] sm:$0xff] %v9550_v44  ;;  %v3627_v12 = vand.u32 2147483647, %v3499_v14  ;;  %v3628_v53 = vand.u32 2147483647, %v3500_v42  ;;  %v3529_v38 = vsub.f32 %v9430_v4, %v9363_v30  ;;  %v11976_v44 = vld [vmem:[#allocation39_spill] sm:$0xff]  ;;  %v9580_v42 = vpop.permute.xlu0 %3419 }
 0x34e   : > { %11971 = vst [vmem:[#allocation95_spill] sm:$0xff] %v9544_v56  ;;  %v3629_v13 = vand.u32 2147483647, %v3501_v34  ;;  %v9569_v40 = vadd.f32 %v3626_v55, %v11975_v15  ;;  %v3654_v31 = vand.u32 2147483647, %v3526_v2  ;;  %v9582_v34 = vpop.permute.xlu1 %3375  ;;  %v11981_v4 = vld [vmem:[#allocation59_spill] sm:$0xff]  ;;  %v3512_v15 = vsub.f32 %v9475_v17, %v9350_v32 }
 0x34f   : > { %v3655_v49 = vand.u32 2147483647, %v3527_v26  ;;  %v3656_v5 = vand.u32 2147483647, %v3528_v7  ;;  %v9572_v56 = vadd.f32 %v3627_v12, %v11976_v44  ;;  %v9575_v3 = vadd.f32 %v3628_v53, %v11977_v39  ;;  %v11982_v26 = vld [vmem:[#allocation190_spill] sm:$0xff] }
 0x350   : > { %v9578_v58 = vadd.f32 %v3629_v13, %v11979_v59  ;;  %v3657_v14 = vand.u32 2147483647, %v3529_v38  ;;  %v9585_v55 = vadd.f32 %v3654_v31, %v11981_v4  ;;  %v3086_v39 = vsub.f32 %v9354_v43, %v8566_v37  ;;  %v11983_v59 = vld [vmem:[#allocation56_spill] sm:$0xff]  ;;  %v11984_v13 = vld [vmem:[#allocation65_spill] sm:$0xff] }
 0x351   : > { %11978 = vst [vmem:[#allocation182_spill] sm:$0xff] %v9575_v3  ;;  %v9588_v2 = vadd.f32 %v3655_v49, %v8889_v21  ;;  %v9591_v44 = vadd.f32 %v3656_v5, %v8892_v52  ;;  %v3087_v12 = vsub.f32 %v9354_v43, %v8575_v48  ;;  %v3088_v53 = vsub.f32 %v9354_v43, %v8583_v29  ;;  %v11985_v31 = vld [vmem:[#allocation61_spill] sm:$0xff] }
 0x352   : > { %11980 = vst [vmem:[#allocation142_spill] sm:$0xff] %v9578_v58  ;;  %3983 = vperm.xlu0 %4717, %v11982_v26   ;;  %v9597_v7 = vadd.f32 %v3657_v14, %v11983_v59  ;;  %v3089_v21 = vsub.f32 %v9354_v43, %v8591_v35  ;;  %3967 = vperm.xlu2 %4716, %v11984_v13   ;;  %v3214_v52 = vand.u32 2147483647, %v3086_v39  ;;  %v11986_v43 = vld [vmem:[#allocation194_spill] sm:$0xff]  ;;  %v3640_v39 = vand.u32 2147483647, %v3512_v15 }
 0x353   : > { %v3510_v37 = vsub.f32 %v9475_v17, %v9339_v45  ;;  %v3511_v38 = vsub.f32 %v9475_v17, %v9347_v0  ;;  %3975 = vperm.xlu1 %4718, %v11985_v31   ;;  %v3215_v48 = vand.u32 2147483647, %v3087_v12  ;;  %v3216_v49 = vand.u32 2147483647, %v3088_v53  ;;  %v11988_v26 = vld [vmem:[#allocation195_spill] sm:$0xff]  ;;  %v11990_v13 = vld [vmem:[#allocation196_spill] sm:$0xff]  ;;  %v9627_v53 = vpop.permute.xlu2 %3403 }
 0x354   : > { %v3217_v29 = vand.u32 2147483647, %v3089_v21  ;;  %v3513_v35 = vsub.f32 %v9475_v17, %v9363_v30  ;;  %v9616_v5 = vadd.f32 %v3214_v52, %v11986_v43  ;;  %v11992_v3 = vld [vmem:[#allocation189_spill] sm:$0xff]  ;;  %v11994_v21 = vld [vmem:[#allocation191_spill] sm:$0xff]  ;;  %v11995_v52 = vld [vmem:[#allocation192_spill] sm:$0xff]  ;;  %v3538_v15 = vsub.f32 %v9511_v9, %v9339_v45 }
 0x355   : > { %v3638_v14 = vand.u32 2147483647, %v3510_v37  ;;  %v3639_v4 = vand.u32 2147483647, %v3511_v38  ;;  %v9619_v59 = vadd.f32 %v3215_v48, %v11988_v26  ;;  %v9622_v58 = vadd.f32 %v3216_v49, %v11990_v13  ;;  %v11996_v37 = vld [vmem:[#allocation64_spill] sm:$0xff]  ;;  %v11998_v48 = vld [vmem:[#allocation197_spill] sm:$0xff] }
 0x356   : > { %11987 = vst [vmem:[#allocation143_spill] sm:$0xff] %v9616_v5  ;;  %v9625_v31 = vadd.f32 %v3217_v29, %v11992_v3  ;;  %v3641_v12 = vand.u32 2147483647, %v3513_v35  ;;  %v9636_v38 = vadd.f32 %v3640_v39, %v11996_v37  ;;  %v3539_v3 = vsub.f32 %v9511_v9, %v9347_v0  ;;  %v9657_v37 = vpop.permute.xlu0 %3431 }
 0x357   : > { %11989 = vst [vmem:[#allocation144_spill] sm:$0xff] %v9619_v59  ;;  %v9630_v17 = vadd.f32 %v3638_v14, %v11994_v21  ;;  %v9633_v43 = vadd.f32 %v3639_v4, %v11995_v52  ;;  %v3540_v29 = vsub.f32 %v9511_v9, %v9350_v32  ;;  %v3541_v35 = vsub.f32 %v9511_v9, %v9363_v30  ;;  %v12000_v59 = vld [vmem:[#allocation60_spill] sm:$0xff] }
 0x358   : > { %11991 = vst [vmem:[#allocation23_spill] sm:$0xff] %v9622_v58  ;;  %v9641_v49 = vadd.f32 %v3641_v12, %v11998_v48  ;;  %v3666_v14 = vand.u32 2147483647, %v3538_v15  ;;  %v3486_v4 = vsub.f32 %v9432_v60, %v9339_v45  ;;  %v3487_v39 = vsub.f32 %v9432_v60, %v9347_v0  ;;  %v9659_v48 = vpop.permute.xlu1 %3387 }
 0x359   : > { %11993 = vst [vmem:[#allocation135_spill] sm:$0xff] %v9625_v31  ;;  %v3488_v26 = vsub.f32 %v9432_v60, %v9350_v32  ;;  %v3667_v13 = vand.u32 2147483647, %v3539_v3  ;;  %v3668_v12 = vand.u32 2147483647, %v3540_v29  ;;  %v3489_v52 = vsub.f32 %v9432_v60, %v9363_v30 }
 0x35a   : > { %11997 = vst [vmem:[#allocation180_spill] sm:$0xff] %v9636_v38  ;;  %v3669_v21 = vand.u32 2147483647, %v3541_v35  ;;  %3979 = vperm.xlu2 %4716, %v8937_v41   ;;  %v9663_v9 = vadd.f32 %v3666_v14, %v8952_v51  ;;  %v3614_v15 = vand.u32 2147483647, %v3486_v4  ;;  %v12002_v51 = vld [vmem:[#allocation151_spill] sm:$0xff] }
 0x35b   : > { %11999 = vst [vmem:[#allocation136_spill] sm:$0xff] %v9641_v49  ;;  %v3615_v31 = vand.u32 2147483647, %v3487_v39  ;;  %v3616_v58 = vand.u32 2147483647, %v3488_v26  ;;  %3987 = vperm.xlu1 %4718, %v8976_v28   ;;  %v9667_v3 = vadd.f32 %v3667_v13, %v8955_v18  ;;  %v9670_v29 = vadd.f32 %v3668_v12, %v8962_v46  ;;  %v12004_v4 = vld [vmem:[#allocation57_spill] sm:$0xff] }
 0x35c   : > { %v9673_v60 = vadd.f32 %v3669_v21, %v8965_v62  ;;  %v3617_v35 = vand.u32 2147483647, %v3489_v52  ;;  %v9676_v41 = vadd.f32 %v3614_v15, %v12000_v59  ;;  %v3522_v18 = vsub.f32 %v9558_v24, %v9339_v45  ;;  %v12006_v28 = vld [vmem:[#allocation75_spill] sm:$0xff] }
 0x35d   : > { %v9679_v14 = vadd.f32 %v3615_v31, %v12002_v51  ;;  %v9682_v39 = vadd.f32 %v3616_v58, %v12004_v4  ;;  %v3523_v46 = vsub.f32 %v9558_v24, %v9347_v0  ;;  %v3524_v62 = vsub.f32 %v9558_v24, %v9350_v32  ;;  %v9703_v51 = vpop.permute.xlu2 %3415  ;;  %v12008_v4 = vld [vmem:[#allocation198_spill] sm:$0xff]  ;;  %v12017_v49 = vld [vmem:[#allocation199_spill] sm:$0xff] }
 0x35e   : > { %12001 = vst [vmem:[#allocation181_spill] sm:$0xff] %v9676_v41  ;;  %v9687_v26 = vadd.f32 %v3617_v35, %v12006_v28  ;;  %v3525_v59 = vsub.f32 %v9558_v24, %v9363_v30  ;;  %v3650_v31 = vand.u32 2147483647, %v3522_v18  ;;  %v3550_v58 = vsub.f32 %v9580_v42, %v9339_v45 }
 0x35f   : > { %12003 = vst [vmem:[#allocation97_spill] sm:$0xff] %v9679_v14  ;;  %v3551_v13 = vsub.f32 %v9580_v42, %v9347_v0  ;;  %v3552_v12 = vsub.f32 %v9580_v42, %v9350_v32  ;;  %v3651_v21 = vand.u32 2147483647, %v3523_v46  ;;  %v3652_v52 = vand.u32 2147483647, %v3524_v62  ;;  %v12012_v14 = vld [vmem:[#allocation201_spill] sm:$0xff] }
 0x360   : > { %12005 = vst [vmem:[#allocation98_spill] sm:$0xff] %v9682_v39  ;;  %v3653_v15 = vand.u32 2147483647, %v3525_v59  ;;  %v3553_v35 = vsub.f32 %v9580_v42, %v9363_v30  ;;  %v9706_v24 = vadd.f32 %v3650_v31, %v12008_v4  ;;  %v3678_v18 = vand.u32 2147483647, %v3550_v58  ;;  %v12014_v46 = vld [vmem:[#allocation202_spill] sm:$0xff] }
 0x361   : > { %12007 = vst [vmem:[#allocation99_spill] sm:$0xff] %v9687_v26  ;;  %v3679_v28 = vand.u32 2147483647, %v3551_v13  ;;  %v3680_v5 = vand.u32 2147483647, %v3552_v12  ;;  %v12010_v26 = vld [vmem:[#allocation200_spill] sm:$0xff]  ;;  %v9712_v41 = vadd.f32 %v3652_v52, %v12012_v14  ;;  %v3495_v14 = vsub.f32 %v9513_v27, %v9347_v0  ;;  %v9739_v52 = vpop.permute.xlu1 %3399 }
 0x362   : > { %12009 = vst [vmem:[#allocation183_spill] sm:$0xff] %v9706_v24  ;;  %v9709_v39 = vadd.f32 %v3651_v21, %v12010_v26  ;;  %v9715_v62 = vadd.f32 %v3653_v15, %v12014_v46  ;;  %v3681_v59 = vand.u32 2147483647, %v3553_v35  ;;  %v9718_v42 = vadd.f32 %v3678_v18, %v9022_v61  ;;  %v12019_v31 = vld [vmem:[#allocation70_spill] sm:$0xff]  ;;  %v12021_v13 = vld [vmem:[#allocation203_spill] sm:$0xff]  ;;  %v12026_v24 = vld [vmem:[#allocation152_spill] sm:$0xff] }
 0x363   : > { %12013 = vst [vmem:[#allocation104_spill] sm:$0xff] %v9712_v41  ;;  %v9721_v38 = vadd.f32 %v3679_v28, %v12017_v49  ;;  %v9724_v58 = vadd.f32 %v3680_v5, %v12019_v31  ;;  %v3494_v26 = vsub.f32 %v9513_v27, %v9339_v45  ;;  %v3496_v21 = vsub.f32 %v9513_v27, %v9350_v32  ;;  %v9737_v49 = vpop.permute.xlu0 %3443  ;;  %v12024_v41 = vld [vmem:[#allocation163_spill] sm:$0xff] }
 0x364   : > { %12011 = vst [vmem:[#allocation103_spill] sm:$0xff] %v9709_v39  ;;  %v9729_v12 = vadd.f32 %v3681_v59, %v12021_v13  ;;  %v3497_v61 = vsub.f32 %v9513_v27, %v9363_v30  ;;  %v3534_v15 = vsub.f32 %v9627_v53, %v9339_v45  ;;  %v3535_v35 = vsub.f32 %v9627_v53, %v9347_v0  ;;  %v12023_v59 = vld [vmem:[#allocation169_spill] sm:$0xff] }
 0x365   : > { %12015 = vst [vmem:[#allocation14_spill] sm:$0xff] %v9715_v62  ;;  %v3622_v5 = vand.u32 2147483647, %v3494_v26  ;;  %v3536_v4 = vsub.f32 %v9627_v53, %v9350_v32  ;;  %v3623_v18 = vand.u32 2147483647, %v3495_v14  ;;  %v3537_v27 = vsub.f32 %v9627_v53, %v9363_v30  ;;  %v12032_v53 = vld [vmem:[#allocation91_spill] sm:$0xff] }
 0x366   : > { %12016 = vst [vmem:[#allocation45_spill] sm:$0xff] %v9718_v42  ;;  %v3624_v28 = vand.u32 2147483647, %v3496_v21  ;;  %v3625_v46 = vand.u32 2147483647, %v3497_v61  ;;  %v12030_v21 = vld [vmem:[#allocation90_spill] sm:$0xff] }
 0x367   : > { %12018 = vst [vmem:[#allocation47_spill] sm:$0xff] %v9721_v38  ;;  %v9750_v31 = vadd.f32 %v3622_v5, %v12023_v59  ;;  %v3662_v13 = vand.u32 2147483647, %v3534_v15  ;;  %v3663_v26 = vand.u32 2147483647, %v3535_v35  ;;  %v9753_v39 = vadd.f32 %v3623_v18, %v12024_v41  ;;  %v12034_v5 = vld [vmem:[#allocation170_spill] sm:$0xff] }
 0x368   : > { %12020 = vst [vmem:[#allocation36_spill] sm:$0xff] %v9724_v58  ;;  %v3664_v62 = vand.u32 2147483647, %v3536_v4  ;;  %v12028_v58 = vld [vmem:[#allocation89_spill] sm:$0xff]  ;;  %v3665_v14 = vand.u32 2147483647, %v3537_v27  ;;  %v3562_v41 = vsub.f32 %v9657_v37, %v9339_v45  ;;  %v3565_v18 = vsub.f32 %v9657_v37, %v9363_v30 }
 0x369   : > { %12022 = vst [vmem:[#allocation105_spill] sm:$0xff] %v9729_v12  ;;  %v9756_v12 = vadd.f32 %v3624_v28, %v12026_v24  ;;  %v9759_v38 = vadd.f32 %v3625_v46, %v12028_v58  ;;  %v9762_v61 = vadd.f32 %v3662_v13, %v12030_v21  ;;  %v9765_v42 = vadd.f32 %v3663_v26, %v12032_v53  ;;  %v12036_v35 = vld [vmem:[#allocation69_spill] sm:$0xff]  ;;  %v9781_v28 = vpop.permute.xlu2 %3427 }
 0x36a   : > { %12025 = vst [vmem:[#allocation184_spill] sm:$0xff] %v9753_v39  ;;  %v9768_v15 = vadd.f32 %v3664_v62, %v12034_v5  ;;  %v9773_v4 = vadd.f32 %v3665_v14, %v12036_v35  ;;  %v3563_v24 = vsub.f32 %v9657_v37, %v9347_v0  ;;  %v3564_v58 = vsub.f32 %v9657_v37, %v9350_v32 }
 0x36b   : > { %12027 = vst [vmem:[#allocation100_spill] sm:$0xff] %v9756_v12  ;;  %v3690_v46 = vand.u32 2147483647, %v3562_v41  ;;  %v3506_v62 = vsub.f32 %v9582_v34, %v9339_v45  ;;  %v3507_v27 = vsub.f32 %v9582_v34, %v9347_v0  ;;  %v3508_v59 = vsub.f32 %v9582_v34, %v9350_v32  ;;  %v12053_v12 = vld [vmem:[#allocation119_spill] sm:$0xff] }
 0x36c   : > { %12029 = vst [vmem:[#allocation101_spill] sm:$0xff] %v9759_v38  ;;  %v3691_v13 = vand.u32 2147483647, %v3563_v24  ;;  %v3692_v26 = vand.u32 2147483647, %v3564_v58  ;;  %v3509_v21 = vsub.f32 %v9582_v34, %v9363_v30  ;;  %v9803_v58 = vpop.permute.xlu0 %3455  ;;  %v12039_v34 = vld [vmem:[#allocation155_spill] sm:$0xff] }
 0x36d   : > { %12031 = vst [vmem:[#allocation37_spill] sm:$0xff] %v9762_v61  ;;  %v3693_v14 = vand.u32 2147483647, %v3565_v18  ;;  %v9792_v37 = vadd.f32 %v3690_v46, %v9091_v54  ;;  %v3634_v53 = vand.u32 2147483647, %v3506_v62  ;;  %v9805_v18 = vpop.permute.xlu1 %3411  ;;  %v12041_v46 = vld [vmem:[#allocation71_spill] sm:$0xff] }
 0x36e   : > { %12033 = vst [vmem:[#allocation102_spill] sm:$0xff] %v9765_v42  ;;  %v3635_v5 = vand.u32 2147483647, %v3507_v27  ;;  %v3636_v41 = vand.u32 2147483647, %v3508_v59  ;;  %v9795_v35 = vadd.f32 %v3691_v13, %v9100_v63  ;;  %v12043_v27 = vld [vmem:[#allocation204_spill] sm:$0xff]  ;;  %v3547_v13 = vsub.f32 %v9703_v51, %v9347_v0 }
 0x36f   : > { %12035 = vst [vmem:[#allocation13_spill] sm:$0xff] %v9768_v15  ;;  %v12038_v15 = vld [vmem:[#allocation84_spill] sm:$0xff]  ;;  %v3637_v24 = vand.u32 2147483647, %v3509_v21  ;;  %v9808_v54 = vadd.f32 %v3634_v53, %v12039_v34  ;;  %v3574_v53 = vsub.f32 %v9737_v49, %v9339_v45  ;;  %v12051_v61 = vld [vmem:[#allocation162_spill] sm:$0xff] }
 0x370   : > { %12037 = vst [vmem:[#allocation112_spill] sm:$0xff] %v9773_v4  ;;  %v9798_v4 = vadd.f32 %v3692_v26, %v9103_v10  ;;  %v9801_v42 = vadd.f32 %v3693_v14, %v12038_v15  ;;  %v9811_v62 = vadd.f32 %v3635_v5, %v12041_v46  ;;  %v9814_v63 = vadd.f32 %v3636_v41, %v12043_v27  ;;  %v12045_v59 = vld [vmem:[#allocation72_spill] sm:$0xff] }
 0x371   : > { %12040 = vst [vmem:[#allocation20_spill] sm:$0xff] %v9808_v54  ;;  %v3546_v10 = vsub.f32 %v9703_v51, %v9339_v45  ;;  %v9819_v15 = vadd.f32 %v3637_v24, %v12045_v59  ;;  %v3548_v26 = vsub.f32 %v9703_v51, %v9350_v32  ;;  %v3549_v14 = vsub.f32 %v9703_v51, %v9363_v30  ;;  %v12047_v59 = vld [vmem:[#allocation205_spill] sm:$0xff] }
 0x372   : > { %12042 = vst [vmem:[#allocation17_spill] sm:$0xff] %v9811_v62  ;;  %v3575_v5 = vsub.f32 %v9737_v49, %v9347_v0  ;;  %v3576_v41 = vsub.f32 %v9737_v49, %v9350_v32  ;;  %v3675_v24 = vand.u32 2147483647, %v3547_v13  ;;  %v3577_v27 = vsub.f32 %v9737_v49, %v9363_v30  ;;  %v12049_v62 = vld [vmem:[#allocation116_spill] sm:$0xff] }
 0x373   : > { %12044 = vst [vmem:[#allocation15_spill] sm:$0xff] %v9814_v63  ;;  %v3674_v21 = vand.u32 2147483647, %v3546_v10  ;;  %v3676_v34 = vand.u32 2147483647, %v3548_v26  ;;  %v9847_v26 = vpop.permute.xlu2 %3439 }
 0x374   : > { %12046 = vst [vmem:[#allocation5_spill] sm:$0xff] %v9819_v15  ;;  %v3677_v46 = vand.u32 2147483647, %v3549_v14  ;;  %v3702_v51 = vand.u32 2147483647, %v3574_v53  ;;  %v9839_v54 = vadd.f32 %v3675_v24, %v12049_v62  ;;  %v12055_v14 = vld [vmem:[#allocation77_spill] sm:$0xff]  ;;  %v3518_v62 = vsub.f32 %v9659_v48, %v9339_v45 }
 0x375   : > { %v9836_v15 = vadd.f32 %v3674_v21, %v12047_v59  ;;  %v3703_v10 = vand.u32 2147483647, %v3575_v5  ;;  %v3704_v63 = vand.u32 2147483647, %v3576_v41  ;;  %v9842_v38 = vadd.f32 %v3676_v34, %v12051_v61  ;;  %v12059_v61 = vld [vmem:[#allocation164_spill] sm:$0xff] }
 0x376   : > { %12050 = vst [vmem:[#allocation18_spill] sm:$0xff] %v9839_v54  ;;  %v9845_v39 = vadd.f32 %v3677_v46, %v12053_v12  ;;  %v3705_v13 = vand.u32 2147483647, %v3577_v27  ;;  %v9850_v49 = vadd.f32 %v3702_v51, %v12055_v14  ;;  %v3519_v12 = vsub.f32 %v9659_v48, %v9347_v0 }
 0x377   : > { %12048 = vst [vmem:[#allocation41_spill] sm:$0xff] %v9836_v15  ;;  %v9853_v21 = vadd.f32 %v3703_v10, %v9169_v50  ;;  %v9856_v53 = vadd.f32 %v3704_v63, %v9172_v19  ;;  %v3520_v41 = vsub.f32 %v9659_v48, %v9350_v32  ;;  %v3521_v24 = vsub.f32 %v9659_v48, %v9363_v30  ;;  %v9877_v10 = vpop.permute.xlu0 %3467  ;;  %v12062_v48 = vld [vmem:[#allocation158_spill] sm:$0xff]  ;;  %v12066_v15 = vld [vmem:[#allocation67_spill] sm:$0xff] }
 0x378   : > { %12052 = vst [vmem:[#allocation42_spill] sm:$0xff] %v9842_v38  ;;  %v9861_v5 = vadd.f32 %v3705_v13, %v12059_v61  ;;  %v3646_v50 = vand.u32 2147483647, %v3518_v62  ;;  %v3558_v19 = vsub.f32 %v9781_v28, %v9339_v45  ;;  %v3559_v63 = vsub.f32 %v9781_v28, %v9347_v0  ;;  %v9879_v13 = vpop.permute.xlu1 %3423  ;;  %v12064_v38 = vld [vmem:[#allocation66_spill] sm:$0xff] }
 0x379   : > { %12054 = vst [vmem:[#allocation19_spill] sm:$0xff] %v9845_v39  ;;  %v3560_v34 = vsub.f32 %v9781_v28, %v9350_v32  ;;  %v3647_v46 = vand.u32 2147483647, %v3519_v12  ;;  %v3648_v27 = vand.u32 2147483647, %v3520_v41  ;;  %v3561_v51 = vsub.f32 %v9781_v28, %v9363_v30  ;;  %v12068_v41 = vld [vmem:[#allocation154_spill] sm:$0xff] }
 0x37a   : > { %12056 = vst [vmem:[#allocation43_spill] sm:$0xff] %v9850_v49  ;;  %v3649_v59 = vand.u32 2147483647, %v3521_v24  ;;  %v9882_v14 = vadd.f32 %v3646_v50, %v12062_v48  ;;  %v3686_v62 = vand.u32 2147483647, %v3558_v19  ;;  %v12074_v50 = vld [vmem:[#allocation76_spill] sm:$0xff] }
 0x37b   : > { %12057 = vst [vmem:[#allocation12_spill] sm:$0xff] %v9853_v21  ;;  %v3687_v61 = vand.u32 2147483647, %v3559_v63  ;;  %v3688_v39 = vand.u32 2147483647, %v3560_v34  ;;  %v9885_v54 = vadd.f32 %v3647_v46, %v12064_v38  ;;  %v9888_v12 = vadd.f32 %v3648_v27, %v12066_v15  ;;  %v12072_v21 = vld [vmem:[#allocation114_spill] sm:$0xff] }
 0x37c   : > { %12058 = vst [vmem:[#allocation51_spill] sm:$0xff] %v9856_v53  ;;  %v9891_v24 = vadd.f32 %v3649_v59, %v12068_v41  ;;  %v3689_v28 = vand.u32 2147483647, %v3561_v51  ;;  %v3586_v38 = vsub.f32 %v9803_v58, %v9339_v45  ;;  %v12076_v63 = vld [vmem:[#allocation159_spill] sm:$0xff]  ;;  %v3587_v15 = vsub.f32 %v9803_v58, %v9347_v0  ;;  %v3452_v41 = vpop.permute.xlu2 %3451 }
 0x37d   : > { %12060 = vst [vmem:[#allocation40_spill] sm:$0xff] %v9861_v5  ;;  %v12070_v5 = vld [vmem:[#allocation68_spill] sm:$0xff]  ;;  %v9897_v49 = vadd.f32 %v3687_v61, %v12072_v21  ;;  %v9900_v19 = vadd.f32 %v3688_v39, %v12074_v50  ;;  %v3588_v46 = vsub.f32 %v9803_v58, %v9350_v32  ;;  %v3530_v39 = vsub.f32 %v9739_v52, %v9339_v45 }
 0x37e   : > { %12061 = vst [vmem:[#allocation27_spill] sm:$0xff] %v9877_v10  ;;  %v9894_v53 = vadd.f32 %v3686_v62, %v12070_v5  ;;  %v9905_v34 = vadd.f32 %v3689_v28, %v12076_v63  ;;  %v3589_v5 = vsub.f32 %v9803_v58, %v9363_v30  ;;  %v3714_v21 = vand.u32 2147483647, %v3586_v38  ;;  %v12079_v63 = vld [vmem:[#allocation131_spill] sm:$0xff] }
 0x37f   : > { %12063 = vst [vmem:[#allocation46_spill] sm:$0xff] %v9882_v14  ;;  %v3531_v27 = vsub.f32 %v9739_v52, %v9347_v0  ;;  %v3532_v59 = vsub.f32 %v9739_v52, %v9350_v32  ;;  %v3715_v51 = vand.u32 2147483647, %v3587_v15  ;;  %v3716_v48 = vand.u32 2147483647, %v3588_v46 }
 0x380   : > { %12065 = vst [vmem:[#allocation10_spill] sm:$0xff] %v9885_v54  ;;  %v3717_v62 = vand.u32 2147483647, %v3589_v5  ;;  %v3533_v61 = vsub.f32 %v9739_v52, %v9363_v30  ;;  %v9922_v28 = vadd.f32 %v3714_v21, %v9229_v11  ;;  %v3658_v58 = vand.u32 2147483647, %v3530_v39  ;;  %v12085_v5 = vld [vmem:[#allocation130_spill] sm:$0xff] }
 0x381   : > { %12067 = vst [vmem:[#allocation63_spill] sm:$0xff] %v9888_v12  ;;  %v3659_v50 = vand.u32 2147483647, %v3531_v27  ;;  %v3660_v38 = vand.u32 2147483647, %v3532_v59  ;;  %v12087_v52 = vld [vmem:[#allocation79_spill] sm:$0xff]  ;;  %v3570_v39 = vsub.f32 %v9847_v26, %v9339_v45 }
 0x382   : > { %12069 = vst [vmem:[#allocation73_spill] sm:$0xff] %v9891_v24  ;;  %v3661_v46 = vand.u32 2147483647, %v3533_v61  ;;  %v9934_v24 = vadd.f32 %v3658_v58, %v12085_v5  ;;  %v12089_v11 = vld [vmem:[#allocation113_spill] sm:$0xff]  ;;  %v12091_v27 = vld [vmem:[#allocation80_spill] sm:$0xff]  ;;  %v12106_v54 = vld [vmem:[#allocation78_spill] sm:$0xff] }
 0x383   : > { %12071 = vst [vmem:[#allocation54_spill] sm:$0xff] %v9894_v53  ;;  %v12083_v53 = vld [vmem:[#allocation132_spill] sm:$0xff]  ;;  %v9937_v12 = vadd.f32 %v3659_v50, %v12087_v52  ;;  %v9940_v21 = vadd.f32 %v3660_v38, %v12089_v11  ;;  %v3698_v61 = vand.u32 2147483647, %v3570_v39  ;;  %v12095_v5 = vld [vmem:[#allocation81_spill] sm:$0xff]  ;;  %v3543_v39 = vsub.f32 %v9805_v18, %v9347_v0 }
 0x384   : > { %12073 = vst [vmem:[#allocation25_spill] sm:$0xff] %v9897_v49  ;;  %v9931_v15 = vadd.f32 %v3717_v62, %v12083_v53  ;;  %v9945_v59 = vadd.f32 %v3661_v46, %v12091_v27  ;;  %v3571_v53 = vsub.f32 %v9847_v26, %v9347_v0  ;;  %v9955_v62 = vpop.permute.xlu1 %3435  ;;  %v12097_v11 = vld [vmem:[#allocation157_spill] sm:$0xff] }
 0x385   : > { %12075 = vst [vmem:[#allocation30_spill] sm:$0xff] %v9900_v19  ;;  %v12081_v19 = vld [vmem:[#allocation171_spill] sm:$0xff] }
 0x386   : > { %12077 = vst [vmem:[#allocation26_spill] sm:$0xff] %v9905_v34  ;;  %v9925_v34 = vadd.f32 %v3715_v51, %v12079_v63  ;;  %v9928_v49 = vadd.f32 %v3716_v48, %v12081_v19  ;;  %v3572_v19 = vsub.f32 %v9847_v26, %v9350_v32  ;;  %v3573_v51 = vsub.f32 %v9847_v26, %v9363_v30  ;;  %v9953_v48 = vpop.permute.xlu0 %3867  ;;  %v12093_v63 = vld [vmem:[#allocation156_spill] sm:$0xff] }
 0x387   : > { %12078 = vst [vmem:[#allocation31_spill] sm:$0xff] %v9922_v28  ;;  %v3699_v58 = vand.u32 2147483647, %v3571_v53  ;;  %v9958_v46 = vadd.f32 %v3698_v61, %v12093_v63  ;;  %v3542_v26 = vsub.f32 %v9805_v18, %v9339_v45  ;;  %v3544_v53 = vsub.f32 %v9805_v18, %v9350_v32 }
 0x388   : > { %12080 = vst [vmem:[#allocation28_spill] sm:$0xff] %v9925_v34  ;;  %v3700_v50 = vand.u32 2147483647, %v3572_v19  ;;  %v3701_v38 = vand.u32 2147483647, %v3573_v51  ;;  %v3545_v19 = vsub.f32 %v9805_v18, %v9363_v30  ;;  %v3582_v51 = vsub.f32 %v3452_v41, %v9339_v45  ;;  %v12120_v34 = vld [vmem:[#allocation87_spill] sm:$0xff] }
 0x389   : > { %12082 = vst [vmem:[#allocation32_spill] sm:$0xff] %v9928_v49  ;;  %v9961_v52 = vadd.f32 %v3699_v58, %v12095_v5  ;;  %v3583_v61 = vsub.f32 %v3452_v41, %v9347_v0  ;;  %v3584_v58 = vsub.f32 %v3452_v41, %v9350_v32  ;;  %v3671_v63 = vand.u32 2147483647, %v3543_v39 }
 0x38a   : > { %12084 = vst [vmem:[#allocation21_spill] sm:$0xff] %v9931_v15  ;;  %v9964_v27 = vadd.f32 %v3700_v50, %v12097_v11  ;;  %v9981_v50 = vpop.permute.xlu2 %3463  ;;  %v3672_v5 = vand.u32 2147483647, %v3544_v53  ;;  %v3554_v11 = vsub.f32 %v9879_v13, %v9339_v45  ;;  %v12108_v53 = vld [vmem:[#allocation161_spill] sm:$0xff] }
 0x38b   : > { %12086 = vst [vmem:[#allocation58_spill] sm:$0xff] %v9934_v24  ;;  %v3711_v18 = vand.u32 2147483647, %v3583_v61  ;;  %v12104_v24 = vld [vmem:[#allocation160_spill] sm:$0xff]  ;;  %v3712_v39 = vand.u32 2147483647, %v3584_v58 }
 0x38c   : > { %12088 = vst [vmem:[#allocation22_spill] sm:$0xff] %v9937_v12  ;;  %v12112_v61 = vld [vmem:[#allocation165_spill] sm:$0xff] }
 0x38d   : > { %12090 = vst [vmem:[#allocation107_spill] sm:$0xff] %v9940_v21 }
 0x38e   : > { %12092 = vst [vmem:[#allocation7_spill] sm:$0xff] %v9945_v59  ;;  %v12099_v59 = vld [vmem:[#allocation82_spill] sm:$0xff] }
 0x38f   : > { %12094 = vst [vmem:[#allocation140_spill] sm:$0xff] %v9958_v46  ;;  %v9967_v21 = vadd.f32 %v3701_v38, %v12099_v59  ;;  %v3585_v59 = vsub.f32 %v3452_v41, %v9363_v30  ;;  %v3670_v38 = vand.u32 2147483647, %v3542_v26  ;;  %v12102_v46 = vld [vmem:[#allocation172_spill] sm:$0xff]  ;;  %v9991_v41 = vadd.f32 %v3671_v63, %v12104_v24  ;;  %v12114_v24 = vld [vmem:[#allocation85_spill] sm:$0xff] }
 0x390   : > { %12096 = vst [vmem:[#allocation74_spill] sm:$0xff] %v9961_v52  ;;  %v3555_v52 = vsub.f32 %v9879_v13, %v9347_v0  ;;  %v9994_v26 = vadd.f32 %v3672_v5, %v12106_v54  ;;  %v10009_v63 = vadd.f32 %v3712_v39, %v12114_v24  ;;  %v4827_v54 = vld [vmem:[%s10672_s1] sm:$0xff]  ;;  %v3557_v24 = vsub.f32 %v9879_v13, %v9363_v30 }
 0x391   : > { %12098 = vst [vmem:[#allocation24_spill] sm:$0xff] %v9964_v27  ;;  %v3710_v27 = vand.u32 2147483647, %v3582_v51  ;;  %v9988_v12 = vadd.f32 %v3670_v38, %v12102_v46  ;;  %v3713_v15 = vand.u32 2147483647, %v3585_v59  ;;  %v3888_v46 = vpop.permute.xlu0 %3887  ;;  %v10006_v38 = vpop.permute.xlu1 %3447  ;;  %v4829_v59 = vld [vmem:[%s10672_s1 + $0x10] sm:$0xff] }
 0x392   : > { %12100 = vst [vmem:[#allocation49_spill] sm:$0xff] %v9967_v21  ;;  %v3673_v21 = vand.u32 2147483647, %v3545_v19  ;;  %v12110_v19 = vld [vmem:[#allocation129_spill] sm:$0xff]  ;;  %v10024_v5 = vperm.slane %v4829_v59, 7 }
 0x393   : > { %12101 = vst [vmem:[#allocation83_spill] sm:$0xff] %v9981_v50  ;;  %v10000_v51 = vadd.f32 %v3710_v27, %v12110_v19  ;;  %v10003_v50 = vadd.f32 %v3711_v18, %v12112_v61  ;;  %v4828_v27 = vld [vmem:[%s10672_s1 + $0x8] sm:$0xff]  ;;  %v3556_v61 = vsub.f32 %v9879_v13, %v9350_v32  ;;  %v3682_v59 = vand.u32 2147483647, %v3554_v11  ;;  %v12121_v11 = vld [vmem:[#allocation168_spill] sm:$0xff] }
 0x394   : > { %12103 = vst [vmem:[#allocation146_spill] sm:$0xff] %v9988_v12  ;;  %v9997_v14 = vadd.f32 %v3673_v21, %v12108_v53  ;;  %v10014_v21 = vperm.slane %v4827_v54, 7  ;;  %v10019_v58 = vperm.slane %v4828_v27, 7  ;;  %v12116_v18 = vld [vmem:[#allocation166_spill] sm:$0xff]  ;;  %v4830_v53 = vld [vmem:[%s10672_s1 + $0x18] sm:$0xff]  ;;  %v4000_v27 = vsub.f32 %v9953_v48, %v10024_v5  ;;  %v12119_v12 = vld [vmem:[#allocation167_spill] sm:$0xff] }
 0x395   : > { %12105 = vst [vmem:[#allocation153_spill] sm:$0xff] %v9991_v41  ;;  %v10027_v39 = vadd.f32 %v3713_v15, %v12116_v18  ;;  %v10032_v19 = vperm.slane %v4830_v53, 7  ;;  %v3683_v53 = vand.u32 2147483647, %v3555_v52 }
 0x396   : > { %12107 = vst [vmem:[#allocation147_spill] sm:$0xff] %v9994_v26  ;;  %v3998_v54 = vsub.f32 %v9953_v48, %v10014_v21  ;;  %v3999_v15 = vsub.f32 %v9953_v48, %v10019_v58 }
 0x397   : > { %12109 = vst [vmem:[#allocation33_spill] sm:$0xff] %v9997_v14  ;;  %v4001_v18 = vsub.f32 %v9953_v48, %v10032_v19  ;;  %v12118_v14 = vld [vmem:[#allocation176_spill] sm:$0xff]  ;;  %v10052_v49 = vadd.f32 %v3683_v53, %v12119_v12  ;;  %v3864_v48 = vpop.permute.xlu2 %3863  ;;  %v4018_v12 = vsub.f32 %v3888_v46, %v10014_v21 }
 0x398   : > { %12111 = vst [vmem:[#allocation6_spill] sm:$0xff] %v10000_v51  ;;  %v4127_v13 = vand.u32 2147483647, %v3999_v15  ;;  %v4128_v51 = vand.u32 2147483647, %v4000_v27  ;;  %v10049_v26 = vadd.f32 %v3682_v59, %v12118_v14  ;;  %v12125_v27 = vld [vmem:[#allocation126_spill] sm:$0xff]  ;;  %v3567_v59 = vsub.f32 %v9955_v62, %v9347_v0 }
 0x399   : > { %12113 = vst [vmem:[#allocation50_spill] sm:$0xff] %v10003_v50  ;;  %v4126_v50 = vand.u32 2147483647, %v3998_v54  ;;  %v4129_v41 = vand.u32 2147483647, %v4001_v18  ;;  %v12124_v54 = vld [vmem:[#allocation127_spill] sm:$0xff]  ;;  %v3568_v18 = vsub.f32 %v9955_v62, %v9350_v32 }
 0x39a   : > { %12115 = vst [vmem:[#allocation145_spill] sm:$0xff] %v10009_v63  ;;  %v3685_v63 = vand.u32 2147483647, %v3557_v24  ;;  %v4256_v15 = vadd.f32 %v4128_v51, %v12124_v54  ;;  %v10074_v51 = vpop.permute.xlu1 %3459  ;;  %v3695_v54 = vand.u32 2147483647, %v3567_v59  ;;  %v3996_v59 = vsub.f32 %v3864_v48, %v10024_v5 }
 0x39b   : > { %12117 = vst [vmem:[#allocation11_spill] sm:$0xff] %v10027_v39  ;;  %v3684_v39 = vand.u32 2147483647, %v3556_v61  ;;  %v4254_v52 = vadd.f32 %v4126_v50, %v9386_v33  ;;  %v12123_v61 = vld [vmem:[#allocation123_spill] sm:$0xff]  ;;  %v4257_v14 = vadd.f32 %v4129_v41, %v12125_v27  ;;  %v4021_v33 = vsub.f32 %v3888_v46, %v10032_v19  ;;  %v3900_v41 = vpop.permute.xlu0 %3899 }
 0x39c   : > { %v10058_v10 = vadd.f32 %v3685_v63, %v12121_v11  ;;  %v4255_v24 = vadd.f32 %v4127_v13, %v12123_v61  ;;  %v4020_v63 = vsub.f32 %v3888_v46, %v10024_v5  ;;  %v3566_v50 = vsub.f32 %v9955_v62, %v9339_v45  ;;  %4384 = vst [vmem:[%s10064_s7 + $0x30] sm:$0xff] %v4256_v15 }
 0x39d   : > { %v10055_v28 = vadd.f32 %v3684_v39, %v12120_v34  ;;  %4382 = vst [vmem:[%s10064_s7 + $0x20] sm:$0xff] %v4254_v52  ;;  %v4019_v34 = vsub.f32 %v3888_v46, %v10019_v58  ;;  %v4146_v39 = vand.u32 2147483647, %v4018_v12  ;;  %v3569_v46 = vsub.f32 %v9955_v62, %v9363_v30 }
 0x39e   : > { %12122 = vst [vmem:[#allocation16_spill] sm:$0xff] %v10058_v10  ;;  %v4148_v13 = vand.u32 2147483647, %v4020_v63  ;;  %v3994_v11 = vsub.f32 %v3864_v48, %v10014_v21  ;;  %v4149_v52 = vand.u32 2147483647, %v4021_v33  ;;  %v12126_v63 = vld [vmem:[#allocation177_spill] sm:$0xff] }
 0x39f   : > { %4383 = vst [vmem:[%s10064_s7 + $0x28] sm:$0xff] %v4255_v24  ;;  %v4147_v53 = vand.u32 2147483647, %v4019_v34  ;;  %v4274_v61 = vadd.f32 %v4146_v39, %v9447_v16  ;;  %v3694_v24 = vand.u32 2147483647, %v3566_v50  ;;  %v12127_v10 = vld [vmem:[#allocation115_spill] sm:$0xff]  ;;  %v3995_v16 = vsub.f32 %v3864_v48, %v10019_v58 }
 0x3a0   : > { %4385 = vst [vmem:[%s10064_s7 + $0x38] sm:$0xff] %v4257_v14  ;;  %v4276_v27 = vadd.f32 %v4148_v13, %v9453_v36  ;;  %v3696_v12 = vand.u32 2147483647, %v3568_v18  ;;  %v3697_v14 = vand.u32 2147483647, %v3569_v46  ;;  %v4277_v34 = vadd.f32 %v4149_v52, %v9458_v6  ;;  %v12128_v50 = vld [vmem:[#allocation128_spill] sm:$0xff]  ;;  %v3876_v18 = vpop.permute.xlu2 %3875 }
 0x3a1   : > { %v4275_v15 = vadd.f32 %v4147_v53, %v9450_v25  ;;  %4402 = vst [vmem:[%s10064_s7 + $0xc0] sm:$0xff] %v4274_v61  ;;  %v10091_v62 = vadd.f32 %v3694_v24, %v12126_v63  ;;  %v10094_v33 = vadd.f32 %v3695_v54, %v12127_v10  ;;  %v12129_v25 = vld [vmem:[#allocation117_spill] sm:$0xff]  ;;  %v3997_v6 = vsub.f32 %v3864_v48, %v10032_v19  ;;  %v12130_v48 = vld [vmem:[#allocation92_spill] sm:$0xff] }
 0x3a2   : > { %v10099_v39 = vadd.f32 %v3696_v12, %v12128_v50  ;;  %v10102_v36 = vadd.f32 %v3697_v14, %v12129_v25  ;;  %4404 = vst [vmem:[%s10064_s7 + $0xd0] sm:$0xff] %v4276_v27  ;;  %v4122_v53 = vand.u32 2147483647, %v3994_v11  ;;  %v4123_v13 = vand.u32 2147483647, %v3995_v16  ;;  %v12131_v14 = vld [vmem:[#allocation122_spill] sm:$0xff] }
 0x3a3   : > { %4403 = vst [vmem:[%s10064_s7 + $0xc8] sm:$0xff] %v4275_v15  ;;  %v4030_v10 = vsub.f32 %v3900_v41, %v10014_v21  ;;  %v4031_v46 = vsub.f32 %v3900_v41, %v10019_v58  ;;  %v4124_v52 = vand.u32 2147483647, %v3996_v59  ;;  %v4125_v61 = vand.u32 2147483647, %v3997_v6  ;;  %v12132_v16 = vld [vmem:[#allocation134_spill] sm:$0xff]  ;;  %v3912_v59 = vpop.permute.xlu0 %3911  ;;  %v10116_v6 = vpop.permute.xlu1 %3471 }
 0x3a4   : > { %4405 = vst [vmem:[%s10064_s7 + $0xd8] sm:$0xff] %v4277_v34  ;;  %v4032_v24 = vsub.f32 %v3900_v41, %v10024_v5  ;;  %v4033_v54 = vsub.f32 %v3900_v41, %v10032_v19  ;;  %v4250_v15 = vadd.f32 %v4122_v53, %v9435_v47  ;;  %v4251_v12 = vadd.f32 %v4123_v13, %v12130_v48 }
 0x3a5   : > { %v4158_v27 = vand.u32 2147483647, %v4030_v10  ;;  %v4159_v11 = vand.u32 2147483647, %v4031_v46  ;;  %v4252_v63 = vadd.f32 %v4124_v52, %v12131_v14  ;;  %v4253_v50 = vadd.f32 %v4125_v61, %v12132_v16  ;;  %v12133_v14 = vld [vmem:[#allocation179_spill] sm:$0xff]  ;;  %v12134_v16 = vld [vmem:[#allocation173_spill] sm:$0xff] }
 0x3a6   : > { %v4160_v25 = vand.u32 2147483647, %v4032_v24  ;;  %v4161_v34 = vand.u32 2147483647, %v4033_v54  ;;  %4378 = vst [vmem:[%s10064_s7] sm:$0xff] %v4250_v15  ;;  %v3578_v53 = vsub.f32 %v10006_v38, %v9339_v45  ;;  %v3579_v13 = vsub.f32 %v10006_v38, %v9347_v0 }
 0x3a7   : > { %v4286_v41 = vadd.f32 %v4158_v27, %v9524_v8  ;;  %v4287_v47 = vadd.f32 %v4159_v11, %v9528_v57  ;;  %4379 = vst [vmem:[%s10064_s7 + $0x8] sm:$0xff] %v4251_v12  ;;  %v3580_v52 = vsub.f32 %v10006_v38, %v9350_v32  ;;  %v3581_v8 = vsub.f32 %v10006_v38, %v9363_v30 }
 0x3a8   : > { %v4288_v10 = vadd.f32 %v4160_v25, %v9531_v22  ;;  %v4289_v46 = vadd.f32 %v4161_v34, %v9534_v20  ;;  %4380 = vst [vmem:[%s10064_s7 + $0x10] sm:$0xff] %v4252_v63  ;;  %v3706_v57 = vand.u32 2147483647, %v3578_v53  ;;  %v3707_v61 = vand.u32 2147483647, %v3579_v13  ;;  %v3884_v34 = vpop.permute.xlu2 %3883  ;;  %v12136_v53 = vld [vmem:[#allocation175_spill] sm:$0xff] }
 0x3a9   : > { %v4006_v24 = vsub.f32 %v3876_v18, %v10014_v21  ;;  %v4007_v54 = vsub.f32 %v3876_v18, %v10019_v58  ;;  %4381 = vst [vmem:[%s10064_s7 + $0x18] sm:$0xff] %v4253_v50  ;;  %v3708_v15 = vand.u32 2147483647, %v3580_v52  ;;  %v3709_v22 = vand.u32 2147483647, %v3581_v8  ;;  %v12137_v52 = vld [vmem:[#allocation94_spill] sm:$0xff] }
 0x3aa   : > { %v4008_v20 = vsub.f32 %v3876_v18, %v10024_v5  ;;  %v4009_v48 = vsub.f32 %v3876_v18, %v10032_v19  ;;  %4414 = vst [vmem:[%s10064_s7 + $0x120] sm:$0xff] %v4286_v41  ;;  %v10140_v38 = vadd.f32 %v3706_v57, %v9479_v23  ;;  %v10143_v12 = vadd.f32 %v3707_v61, %v9483_v1  ;;  %v12135_v23 = vld [vmem:[#allocation93_spill] sm:$0xff] }
 0x3ab   : > { %v4134_v27 = vand.u32 2147483647, %v4006_v24  ;;  %v4135_v11 = vand.u32 2147483647, %v4007_v54  ;;  %4415 = vst [vmem:[%s10064_s7 + $0x128] sm:$0xff] %v4287_v47  ;;  %v10147_v63 = vadd.f32 %v3708_v15, %v12133_v14  ;;  %v10150_v50 = vadd.f32 %v3709_v22, %v12134_v16  ;;  %v12138_v57 = vld [vmem:[#allocation121_spill] sm:$0xff]  ;;  %v10172_v14 = vpop.permute.xlu1 %3871 }
 0x3ac   : > { %v4136_v25 = vand.u32 2147483647, %v4008_v20  ;;  %v4137_v18 = vand.u32 2147483647, %v4009_v48  ;;  %4416 = vst [vmem:[%s10064_s7 + $0x130] sm:$0xff] %v4288_v10  ;;  %v4042_v13 = vsub.f32 %v3912_v59, %v10014_v21  ;;  %v4043_v47 = vsub.f32 %v3912_v59, %v10019_v58 }
 0x3ad   : > { %v4262_v41 = vadd.f32 %v4134_v27, %v12135_v23  ;;  %v4263_v1 = vadd.f32 %v4135_v11, %v12136_v53  ;;  %4417 = vst [vmem:[%s10064_s7 + $0x138] sm:$0xff] %v4289_v46  ;;  %v4044_v24 = vsub.f32 %v3912_v59, %v10024_v5  ;;  %v4045_v54 = vsub.f32 %v3912_v59, %v10032_v19  ;;  %v3924_v11 = vpop.permute.xlu0 %3923 }
 0x3ae   : > { %v4264_v8 = vadd.f32 %v4136_v25, %v12137_v52  ;;  %v4265_v61 = vadd.f32 %v4137_v18, %v12138_v57  ;;  %v4170_v10 = vand.u32 2147483647, %v4042_v13  ;;  %v4171_v15 = vand.u32 2147483647, %v4043_v47  ;;  %v12140_v52 = vld [vmem:[#allocation178_spill] sm:$0xff]  ;;  %v12141_v57 = vld [vmem:[#allocation95_spill] sm:$0xff] }
 0x3af   : > { %4390 = vst [vmem:[%s10064_s7 + $0x60] sm:$0xff] %v4262_v41  ;;  %v3590_v22 = vsub.f32 %v10074_v51, %v9339_v45  ;;  %v3591_v20 = vsub.f32 %v10074_v51, %v9347_v0  ;;  %v4172_v46 = vand.u32 2147483647, %v4044_v24  ;;  %v4173_v48 = vand.u32 2147483647, %v4045_v54 }
 0x3b0   : > { %4391 = vst [vmem:[%s10064_s7 + $0x68] sm:$0xff] %v4263_v1  ;;  %v3592_v27 = vsub.f32 %v10074_v51, %v9350_v32  ;;  %v3593_v59 = vsub.f32 %v10074_v51, %v9363_v30  ;;  %v4298_v16 = vadd.f32 %v4170_v10, %v9585_v55  ;;  %v4299_v25 = vadd.f32 %v4171_v15, %v9588_v2  ;;  %v12139_v51 = vld [vmem:[#allocation133_spill] sm:$0xff] }
 0x3b1   : > { %4392 = vst [vmem:[%s10064_s7 + $0x70] sm:$0xff] %v4264_v8  ;;  %v3718_v18 = vand.u32 2147483647, %v3590_v22  ;;  %v3719_v23 = vand.u32 2147483647, %v3591_v20  ;;  %v4300_v41 = vadd.f32 %v4172_v46, %v9591_v44  ;;  %v4301_v53 = vadd.f32 %v4173_v48, %v9597_v7  ;;  %v12142_v44 = vld [vmem:[#allocation96_spill] sm:$0xff] }
 0x3b2   : > { %4393 = vst [vmem:[%s10064_s7 + $0x78] sm:$0xff] %v4265_v61  ;;  %v3720_v1 = vand.u32 2147483647, %v3592_v27  ;;  %v3721_v13 = vand.u32 2147483647, %v3593_v59  ;;  %v4014_v55 = vsub.f32 %v3884_v34, %v10014_v21  ;;  %v4015_v2 = vsub.f32 %v3884_v34, %v10019_v58 }
 0x3b3   : > { %4426 = vst [vmem:[%s10064_s7 + $0x180] sm:$0xff] %v4298_v16  ;;  %v10182_v47 = vadd.f32 %v3718_v18, %v12139_v51  ;;  %v10185_v8 = vadd.f32 %v3719_v23, %v12140_v52  ;;  %v4016_v24 = vsub.f32 %v3884_v34, %v10024_v5  ;;  %v4017_v54 = vsub.f32 %v3884_v34, %v10032_v19  ;;  %v3896_v16 = vpop.permute.xlu2 %3895 }
 0x3b4   : > { %4427 = vst [vmem:[%s10064_s7 + $0x188] sm:$0xff] %v4299_v25  ;;  %v10191_v61 = vadd.f32 %v3720_v1, %v12141_v57  ;;  %v10194_v7 = vadd.f32 %v3721_v13, %v12142_v44  ;;  %v4142_v10 = vand.u32 2147483647, %v4014_v55  ;;  %v4143_v15 = vand.u32 2147483647, %v4015_v2  ;;  %v12144_v13 = vld [vmem:[#allocation142_spill] sm:$0xff]  ;;  %v10212_v2 = vpop.permute.xlu1 %3879 }
 0x3b5   : > { %4428 = vst [vmem:[%s10064_s7 + $0x190] sm:$0xff] %v4300_v41  ;;  %v4054_v22 = vsub.f32 %v3924_v11, %v10014_v21  ;;  %v4055_v20 = vsub.f32 %v3924_v11, %v10019_v58  ;;  %v4144_v46 = vand.u32 2147483647, %v4016_v24  ;;  %v4145_v48 = vand.u32 2147483647, %v4017_v54  ;;  %v12143_v41 = vld [vmem:[#allocation182_spill] sm:$0xff] }
 0x3b6   : > { %4429 = vst [vmem:[%s10064_s7 + $0x198] sm:$0xff] %v4301_v53  ;;  %v4056_v27 = vsub.f32 %v3924_v11, %v10024_v5  ;;  %v4057_v59 = vsub.f32 %v3924_v11, %v10032_v19  ;;  %v4270_v34 = vadd.f32 %v4142_v10, %v9569_v40  ;;  %v4271_v25 = vadd.f32 %v4143_v15, %v9572_v56  ;;  %v3936_v40 = vpop.permute.xlu0 %3935 }
 0x3b7   : > { %v4182_v18 = vand.u32 2147483647, %v4054_v22  ;;  %v4183_v23 = vand.u32 2147483647, %v4055_v20  ;;  %v4272_v1 = vadd.f32 %v4144_v46, %v12143_v41  ;;  %v4273_v53 = vadd.f32 %v4145_v48, %v12144_v13 }
 0x3b8   : > { %v4184_v51 = vand.u32 2147483647, %v4056_v27  ;;  %v4185_v52 = vand.u32 2147483647, %v4057_v59  ;;  %4398 = vst [vmem:[%s10064_s7 + $0xa0] sm:$0xff] %v4270_v34  ;;  %v4026_v57 = vsub.f32 %v3896_v16, %v10014_v21  ;;  %v4027_v44 = vsub.f32 %v3896_v16, %v10019_v58  ;;  %v12145_v34 = vld [vmem:[#allocation180_spill] sm:$0xff] }
 0x3b9   : > { %v4310_v55 = vadd.f32 %v4182_v18, %v9663_v9  ;;  %4399 = vst [vmem:[%s10064_s7 + $0xa8] sm:$0xff] %v4271_v25  ;;  %v4311_v11 = vadd.f32 %v4183_v23, %v9667_v3  ;;  %v4028_v9 = vsub.f32 %v3896_v16, %v10024_v5  ;;  %v4029_v54 = vsub.f32 %v3896_v16, %v10032_v19  ;;  %v12146_v18 = vld [vmem:[#allocation136_spill] sm:$0xff] }
 0x3ba   : > { %4400 = vst [vmem:[%s10064_s7 + $0xb0] sm:$0xff] %v4272_v1  ;;  %v4312_v56 = vadd.f32 %v4184_v51, %v9670_v29  ;;  %v4313_v24 = vadd.f32 %v4185_v52, %v9673_v60  ;;  %v4154_v3 = vand.u32 2147483647, %v4026_v57  ;;  %v4155_v10 = vand.u32 2147483647, %v4027_v44  ;;  %v12148_v52 = vld [vmem:[#allocation47_spill] sm:$0xff] }
 0x3bb   : > { %4401 = vst [vmem:[%s10064_s7 + $0xb8] sm:$0xff] %v4273_v53  ;;  %v4066_v15 = vsub.f32 %v3936_v40, %v10014_v21  ;;  %v4067_v29 = vsub.f32 %v3936_v40, %v10019_v58  ;;  %v4156_v22 = vand.u32 2147483647, %v4028_v9  ;;  %v4157_v20 = vand.u32 2147483647, %v4029_v54  ;;  %v3908_v13 = vpop.permute.xlu2 %3907  ;;  %v12147_v53 = vld [vmem:[#allocation45_spill] sm:$0xff] }
 0x3bc   : > { %4438 = vst [vmem:[%s10064_s7 + $0x1e0] sm:$0xff] %v4310_v55  ;;  %v4068_v46 = vsub.f32 %v3936_v40, %v10024_v5  ;;  %v4069_v60 = vsub.f32 %v3936_v40, %v10032_v19  ;;  %v4282_v48 = vadd.f32 %v4154_v3, %v9630_v17  ;;  %v4283_v27 = vadd.f32 %v4155_v10, %v9633_v43 }
 0x3bd   : > { %4439 = vst [vmem:[%s10064_s7 + $0x1e8] sm:$0xff] %v4311_v11  ;;  %v4194_v59 = vand.u32 2147483647, %v4066_v15  ;;  %v4195_v16 = vand.u32 2147483647, %v4067_v29  ;;  %v4284_v25 = vadd.f32 %v4156_v22, %v12145_v34  ;;  %v4285_v23 = vadd.f32 %v4157_v20, %v12146_v18  ;;  %v12149_v11 = vld [vmem:[#allocation36_spill] sm:$0xff] }
 0x3be   : > { %4440 = vst [vmem:[%s10064_s7 + $0x1f0] sm:$0xff] %v4312_v56  ;;  %v4196_v41 = vand.u32 2147483647, %v4068_v46  ;;  %v4197_v1 = vand.u32 2147483647, %v4069_v60  ;;  %v4002_v17 = vsub.f32 %v10172_v14, %v10014_v21  ;;  %v4003_v43 = vsub.f32 %v10172_v14, %v10019_v58  ;;  %v12150_v56 = vld [vmem:[#allocation105_spill] sm:$0xff]  ;;  %v3948_v46 = vpop.permute.xlu0 %3947  ;;  %v10254_v60 = vpop.permute.xlu1 %3891 }
 0x3bf   : > { %4441 = vst [vmem:[%s10064_s7 + $0x1f8] sm:$0xff] %v4313_v24  ;;  %v4322_v51 = vadd.f32 %v4194_v59, %v12147_v53  ;;  %v4323_v55 = vadd.f32 %v4195_v16, %v12148_v52  ;;  %v4004_v44 = vsub.f32 %v10172_v14, %v10024_v5  ;;  %v4005_v24 = vsub.f32 %v10172_v14, %v10032_v19  ;;  %v12151_v14 = vld [vmem:[#allocation181_spill] sm:$0xff] }
 0x3c0   : > { %4410 = vst [vmem:[%s10064_s7 + $0x100] sm:$0xff] %v4282_v48  ;;  %v4324_v40 = vadd.f32 %v4196_v41, %v12149_v11  ;;  %v4325_v57 = vadd.f32 %v4197_v1, %v12150_v56  ;;  %v4130_v9 = vand.u32 2147483647, %v4002_v17  ;;  %v4131_v54 = vand.u32 2147483647, %v4003_v43  ;;  %v12152_v59 = vld [vmem:[#allocation97_spill] sm:$0xff] }
 0x3c1   : > { %4411 = vst [vmem:[%s10064_s7 + $0x108] sm:$0xff] %v4283_v27  ;;  %v4038_v3 = vsub.f32 %v3908_v13, %v10014_v21  ;;  %v4039_v10 = vsub.f32 %v3908_v13, %v10019_v58  ;;  %v4132_v15 = vand.u32 2147483647, %v4004_v44  ;;  %v4133_v29 = vand.u32 2147483647, %v4005_v24  ;;  %v12155_v17 = vld [vmem:[#allocation183_spill] sm:$0xff] }
 0x3c2   : > { %4412 = vst [vmem:[%s10064_s7 + $0x110] sm:$0xff] %v4284_v25  ;;  %v4040_v22 = vsub.f32 %v3908_v13, %v10024_v5  ;;  %v4041_v20 = vsub.f32 %v3908_v13, %v10032_v19  ;;  %v4258_v48 = vadd.f32 %v4130_v9, %v12151_v14  ;;  %v4259_v16 = vadd.f32 %v4131_v54, %v12152_v59  ;;  %v12153_v25 = vld [vmem:[#allocation98_spill] sm:$0xff]  ;;  %v12154_v13 = vld [vmem:[#allocation99_spill] sm:$0xff]  ;;  %v12157_v54 = vld [vmem:[#allocation104_spill] sm:$0xff] }
 0x3c3   : > { %4413 = vst [vmem:[%s10064_s7 + $0x118] sm:$0xff] %v4285_v23  ;;  %v4166_v27 = vand.u32 2147483647, %v4038_v3  ;;  %v4167_v34 = vand.u32 2147483647, %v4039_v10  ;;  %v4260_v18 = vadd.f32 %v4132_v15, %v12153_v25  ;;  %v4078_v41 = vsub.f32 %v3948_v46, %v10014_v21  ;;  %v12156_v56 = vld [vmem:[#allocation103_spill] sm:$0xff]  ;;  %v3920_v9 = vpop.permute.xlu2 %3919 }
 0x3c4   : > { %4450 = vst [vmem:[%s10064_s7 + $0x240] sm:$0xff] %v4322_v51  ;;  %v4168_v23 = vand.u32 2147483647, %v4040_v22  ;;  %v4079_v1 = vsub.f32 %v3948_v46, %v10019_v58  ;;  %v4261_v53 = vadd.f32 %v4133_v29, %v12154_v13  ;;  %v4169_v51 = vand.u32 2147483647, %v4041_v20  ;;  %v12158_v29 = vld [vmem:[#allocation14_spill] sm:$0xff] }
 0x3c5   : > { %4451 = vst [vmem:[%s10064_s7 + $0x248] sm:$0xff] %v4323_v55  ;;  %v4080_v52 = vsub.f32 %v3948_v46, %v10024_v5  ;;  %v4081_v55 = vsub.f32 %v3948_v46, %v10032_v19  ;;  %v4294_v43 = vadd.f32 %v4166_v27, %v12155_v17  ;;  %v4206_v11 = vand.u32 2147483647, %v4078_v41 }
 0x3c6   : > { %4452 = vst [vmem:[%s10064_s7 + $0x250] sm:$0xff] %v4324_v40  ;;  %v4010_v40 = vsub.f32 %v10212_v2, %v10014_v21  ;;  %v4295_v44 = vadd.f32 %v4167_v34, %v12156_v56  ;;  %v4011_v24 = vsub.f32 %v10212_v2, %v10019_v58  ;;  %v4296_v3 = vadd.f32 %v4168_v23, %v12157_v54  ;;  %v3960_v25 = vpop.permute.xlu0 %3959  ;;  %v12161_v56 = vld [vmem:[#allocation101_spill] sm:$0xff] }
 0x3c7   : > { %4453 = vst [vmem:[%s10064_s7 + $0x258] sm:$0xff] %v4325_v57  ;;  %v4207_v57 = vand.u32 2147483647, %v4079_v1  ;;  %v4208_v10 = vand.u32 2147483647, %v4080_v52  ;;  %v4012_v15 = vsub.f32 %v10212_v2, %v10024_v5  ;;  %v4297_v22 = vadd.f32 %v4169_v51, %v12158_v29  ;;  %v12159_v52 = vld [vmem:[#allocation184_spill] sm:$0xff] }
 0x3c8   : > { %4386 = vst [vmem:[%s10064_s7 + $0x40] sm:$0xff] %v4258_v48  ;;  %v4209_v20 = vand.u32 2147483647, %v4081_v55  ;;  %v4013_v46 = vsub.f32 %v10212_v2, %v10032_v19  ;;  %v4334_v14 = vadd.f32 %v4206_v11, %v9792_v37  ;;  %v4138_v48 = vand.u32 2147483647, %v4010_v40 }
 0x3c9   : > { %4387 = vst [vmem:[%s10064_s7 + $0x48] sm:$0xff] %v4259_v16  ;;  %v4050_v27 = vsub.f32 %v3920_v9, %v10014_v21  ;;  %v4335_v59 = vadd.f32 %v4207_v57, %v9795_v35  ;;  %v4139_v16 = vand.u32 2147483647, %v4011_v24  ;;  %v4051_v34 = vsub.f32 %v3920_v9, %v10019_v58  ;;  %v12162_v24 = vld [vmem:[#allocation37_spill] sm:$0xff] }
 0x3ca   : > { %4388 = vst [vmem:[%s10064_s7 + $0x50] sm:$0xff] %v4260_v18  ;;  %v10290_v18 = vpop.permute.xlu1 %3903  ;;  %v4336_v2 = vadd.f32 %v4208_v10, %v9798_v4  ;;  %v4140_v23 = vand.u32 2147483647, %v4012_v15  ;;  %v4052_v37 = vsub.f32 %v3920_v9, %v10024_v5  ;;  %v4337_v41 = vadd.f32 %v4209_v20, %v9801_v42  ;;  %v12163_v15 = vld [vmem:[#allocation102_spill] sm:$0xff] }
 0x3cb   : > { %4389 = vst [vmem:[%s10064_s7 + $0x58] sm:$0xff] %v4261_v53  ;;  %v4141_v1 = vand.u32 2147483647, %v4013_v46  ;;  %v4053_v35 = vsub.f32 %v3920_v9, %v10032_v19  ;;  %v4266_v13 = vadd.f32 %v4138_v48, %v9750_v31  ;;  %v4178_v53 = vand.u32 2147483647, %v4050_v27  ;;  %v3932_v10 = vpop.permute.xlu2 %3931  ;;  %v12164_v46 = vld [vmem:[#allocation13_spill] sm:$0xff] }
 0x3cc   : > { %4422 = vst [vmem:[%s10064_s7 + $0x160] sm:$0xff] %v4294_v43  ;;  %v4090_v51 = vsub.f32 %v3960_v25, %v10014_v21  ;;  %v4267_v4 = vadd.f32 %v4139_v16, %v12159_v52  ;;  %v4179_v55 = vand.u32 2147483647, %v4051_v34  ;;  %v4091_v17 = vsub.f32 %v3960_v25, %v10019_v58  ;;  %v12160_v43 = vld [vmem:[#allocation100_spill] sm:$0xff] }
 0x3cd   : > { %4423 = vst [vmem:[%s10064_s7 + $0x168] sm:$0xff] %v4295_v44  ;;  %v4268_v42 = vadd.f32 %v4140_v23, %v12160_v43  ;;  %v4180_v11 = vand.u32 2147483647, %v4052_v37  ;;  %v4092_v40 = vsub.f32 %v3960_v25, %v10024_v5  ;;  %v4269_v31 = vadd.f32 %v4141_v1, %v12161_v56  ;;  %v12165_v16 = vld [vmem:[#allocation112_spill] sm:$0xff] }
 0x3ce   : > { %4424 = vst [vmem:[%s10064_s7 + $0x170] sm:$0xff] %v4296_v3  ;;  %v4181_v44 = vand.u32 2147483647, %v4053_v35  ;;  %v4093_v57 = vsub.f32 %v3960_v25, %v10032_v19  ;;  %v4306_v9 = vadd.f32 %v4178_v53, %v12162_v24  ;;  %v4218_v54 = vand.u32 2147483647, %v4090_v51  ;;  %v3972_v43 = vpop.permute.xlu0 %3971 }
 0x3cf   : > { %4425 = vst [vmem:[%s10064_s7 + $0x178] sm:$0xff] %v4297_v22  ;;  %v4022_v3 = vsub.f32 %v10254_v60, %v10014_v21  ;;  %v4307_v29 = vadd.f32 %v4179_v55, %v12163_v15  ;;  %v4219_v22 = vand.u32 2147483647, %v4091_v17  ;;  %v4023_v20 = vsub.f32 %v10254_v60, %v10019_v58 }
 0x3d0   : > { %4462 = vst [vmem:[%s10064_s7 + $0x2a0] sm:$0xff] %v4334_v14  ;;  %v4308_v14 = vadd.f32 %v4180_v11, %v12164_v46  ;;  %v4220_v48 = vand.u32 2147483647, %v4092_v40  ;;  %v4024_v27 = vsub.f32 %v10254_v60, %v10024_v5  ;;  %v4309_v34 = vadd.f32 %v4181_v44, %v12165_v16  ;;  %v12170_v44 = vld [vmem:[#allocation40_spill] sm:$0xff] }
 0x3d1   : > { %4463 = vst [vmem:[%s10064_s7 + $0x2a8] sm:$0xff] %v4335_v59  ;;  %v4025_v59 = vsub.f32 %v10254_v60, %v10032_v19  ;;  %v4221_v25 = vand.u32 2147483647, %v4093_v57  ;;  %v4063_v23 = vsub.f32 %v3932_v10, %v10019_v58  ;;  %v12167_v60 = vld [vmem:[#allocation43_spill] sm:$0xff]  ;;  %v4150_v53 = vand.u32 2147483647, %v4022_v3 }
 0x3d2   : > { %4464 = vst [vmem:[%s10064_s7 + $0x2b0] sm:$0xff] %v4336_v2  ;;  %v4062_v2 = vsub.f32 %v3932_v10, %v10014_v21  ;;  %v10328_v37 = vpop.permute.xlu1 %3915  ;;  %v4151_v17 = vand.u32 2147483647, %v4023_v20  ;;  %v4152_v40 = vand.u32 2147483647, %v4024_v27  ;;  %v4065_v24 = vsub.f32 %v3932_v10, %v10032_v19 }
 0x3d3   : > { %4465 = vst [vmem:[%s10064_s7 + $0x2b8] sm:$0xff] %v4337_v41  ;;  %v12166_v41 = vld [vmem:[#allocation27_spill] sm:$0xff]  ;;  %v4153_v56 = vand.u32 2147483647, %v4025_v59  ;;  %v4349_v57 = vadd.f32 %v4221_v25, %v12170_v44  ;;  %v4102_v20 = vsub.f32 %v3972_v43, %v10014_v21  ;;  %v4103_v59 = vsub.f32 %v3972_v43, %v10019_v58 }
 0x3d4   : > { %4394 = vst [vmem:[%s10064_s7 + $0x80] sm:$0xff] %v4266_v13  ;;  %v3598_v1 = vsub.f32 %v12166_v41, %v9339_v45  ;;  %v3599_v35 = vsub.f32 %v12166_v41, %v9347_v0  ;;  %v4346_v13 = vadd.f32 %v4218_v54, %v12167_v60  ;;  %v3600_v51 = vsub.f32 %v12166_v41, %v9350_v32  ;;  %v12176_v60 = vld [vmem:[#allocation18_spill] sm:$0xff] }
 0x3d5   : > { %4395 = vst [vmem:[%s10064_s7 + $0x88] sm:$0xff] %v4267_v4  ;;  %v3601_v52 = vsub.f32 %v12166_v41, %v9363_v30  ;;  %v12168_v4 = vld [vmem:[#allocation12_spill] sm:$0xff]  ;;  %v4191_v54 = vand.u32 2147483647, %v4063_v23  ;;  %v4104_v23 = vsub.f32 %v3972_v43, %v10024_v5  ;;  %v4193_v41 = vand.u32 2147483647, %v4065_v24 }
 0x3d6   : > { %4396 = vst [vmem:[%s10064_s7 + $0x90] sm:$0xff] %v4268_v42  ;;  %v4347_v55 = vadd.f32 %v4219_v22, %v12168_v4  ;;  %v12169_v42 = vld [vmem:[#allocation51_spill] sm:$0xff]  ;;  %v3726_v3 = vand.u32 2147483647, %v3598_v1  ;;  %v3727_v15 = vand.u32 2147483647, %v3599_v35 }
 0x3d7   : > { %4397 = vst [vmem:[%s10064_s7 + $0x98] sm:$0xff] %v4269_v31  ;;  %v4348_v11 = vadd.f32 %v4220_v48, %v12169_v42  ;;  %v4064_v31 = vsub.f32 %v3932_v10, %v10024_v5  ;;  %v3728_v46 = vand.u32 2147483647, %v3600_v51  ;;  %v12172_v48 = vld [vmem:[#allocation17_spill] sm:$0xff]  ;;  %v12173_v10 = vld [vmem:[#allocation15_spill] sm:$0xff]  ;;  %v3944_v51 = vpop.permute.xlu2 %3943 }
 0x3d8   : > { %4434 = vst [vmem:[%s10064_s7 + $0x1c0] sm:$0xff] %v4306_v9  ;;  %v4190_v9 = vand.u32 2147483647, %v4062_v2  ;;  %v4279_v27 = vadd.f32 %v4151_v17, %v12172_v48  ;;  %v4280_v16 = vadd.f32 %v4152_v40, %v12173_v10  ;;  %v12175_v1 = vld [vmem:[#allocation41_spill] sm:$0xff]  ;;  %v4230_v4 = vand.u32 2147483647, %v4102_v20 }
 0x3d9   : > { %4435 = vst [vmem:[%s10064_s7 + $0x1c8] sm:$0xff] %v4307_v29  ;;  %v12171_v29 = vld [vmem:[#allocation20_spill] sm:$0xff]  ;;  %v4192_v2 = vand.u32 2147483647, %v4064_v31  ;;  %v12177_v17 = vld [vmem:[#allocation86_spill] sm:$0xff]  ;;  %v12183_v48 = vld [vmem:[#allocation31_spill] sm:$0xff] }
 0x3da   : > { %4436 = vst [vmem:[%s10064_s7 + $0x1d0] sm:$0xff] %v4308_v14  ;;  %v4278_v22 = vadd.f32 %v4150_v53, %v12171_v29  ;;  %v3729_v14 = vand.u32 2147483647, %v3601_v52  ;;  %v4318_v35 = vadd.f32 %v4190_v9, %v12175_v1  ;;  %v4105_v53 = vsub.f32 %v3972_v43, %v10032_v19  ;;  %v10362_v52 = vpop.permute.xlu1 %3927  ;;  %v12179_v31 = vld [vmem:[#allocation174_spill] sm:$0xff]  ;;  %v12182_v29 = vld [vmem:[#allocation19_spill] sm:$0xff]  ;;  %v12184_v10 = vld [vmem:[#allocation28_spill] sm:$0xff] }
 0x3db   : > { %4437 = vst [vmem:[%s10064_s7 + $0x1d8] sm:$0xff] %v4309_v34  ;;  %v12174_v34 = vld [vmem:[#allocation5_spill] sm:$0xff]  ;;  %v10368_v42 = vadd.f32 %v3726_v3, %v12177_v17  ;;  %v4035_v43 = vsub.f32 %v10290_v18, %v10019_v58  ;;  %v10377_v44 = vadd.f32 %v3728_v46, %v12179_v31  ;;  %v12181_v9 = vld [vmem:[#allocation42_spill] sm:$0xff]  ;;  %v4232_v3 = vand.u32 2147483647, %v4104_v23  ;;  %v12185_v23 = vld [vmem:[#allocation32_spill] sm:$0xff] }
 0x3dc   : > { %4474 = vst [vmem:[%s10064_s7 + $0x300] sm:$0xff] %v4346_v13  ;;  %v4281_v25 = vadd.f32 %v4153_v56, %v12174_v34  ;;  %v4319_v13 = vadd.f32 %v4191_v54, %v12176_v60  ;;  %v4231_v56 = vand.u32 2147483647, %v4103_v59  ;;  %v4320_v54 = vadd.f32 %v4192_v2, %v12181_v9  ;;  %v3984_v2 = vpop.permute.xlu0 %3983  ;;  %v12189_v9 = vld [vmem:[#allocation10_spill] sm:$0xff] }
 0x3dd   : > { %4475 = vst [vmem:[%s10064_s7 + $0x308] sm:$0xff] %v4347_v55  ;;  %v4034_v55 = vsub.f32 %v10290_v18, %v10014_v21  ;;  %v4233_v20 = vand.u32 2147483647, %v4105_v53  ;;  %v4037_v46 = vsub.f32 %v10290_v18, %v10032_v19  ;;  %v4074_v59 = vsub.f32 %v3944_v51, %v10014_v21  ;;  %v12187_v53 = vld [vmem:[#allocation21_spill] sm:$0xff] }
 0x3de   : > { %4476 = vst [vmem:[%s10064_s7 + $0x310] sm:$0xff] %v4348_v11  ;;  %v12178_v11 = vld [vmem:[#allocation124_spill] sm:$0xff]  ;;  %v4163_v34 = vand.u32 2147483647, %v4035_v43  ;;  %v4114_v31 = vsub.f32 %v3984_v2, %v10014_v21 }
 0x3df   : > { %4477 = vst [vmem:[%s10064_s7 + $0x318] sm:$0xff] %v4349_v57  ;;  %v10371_v40 = vadd.f32 %v3727_v15, %v12178_v11  ;;  %v12180_v57 = vld [vmem:[#allocation125_spill] sm:$0xff]  ;;  %v4036_v15 = vsub.f32 %v10290_v18, %v10024_v5  ;;  %v4076_v18 = vsub.f32 %v3944_v51, %v10024_v5  ;;  %v12188_v11 = vld [vmem:[#allocation46_spill] sm:$0xff]  ;;  %v4202_v43 = vand.u32 2147483647, %v4074_v59 }
 0x3e0   : > { %4406 = vst [vmem:[%s10064_s7 + $0xe0] sm:$0xff] %v4278_v22  ;;  %v10380_v24 = vadd.f32 %v3729_v14, %v12180_v57  ;;  %v4321_v22 = vadd.f32 %v4193_v41, %v12182_v29  ;;  %v4358_v14 = vadd.f32 %v4230_v4, %v12183_v48  ;;  %v4360_v41 = vadd.f32 %v4232_v3, %v12185_v23  ;;  %v10414_v29 = vpop.permute.xlu2 %3955  ;;  %v12191_v59 = vld [vmem:[#allocation73_spill] sm:$0xff] }
 0x3e1   : > { %4407 = vst [vmem:[%s10064_s7 + $0xe8] sm:$0xff] %v4279_v27  ;;  %v4162_v27 = vand.u32 2147483647, %v4034_v55  ;;  %v4164_v1 = vand.u32 2147483647, %v4036_v15  ;;  %v4361_v4 = vadd.f32 %v4233_v20, %v12187_v53  ;;  %v4077_v55 = vsub.f32 %v3944_v51, %v10032_v19  ;;  %v12190_v20 = vld [vmem:[#allocation63_spill] sm:$0xff] }
 0x3e2   : > { %4408 = vst [vmem:[%s10064_s7 + $0xf0] sm:$0xff] %v4280_v16  ;;  %v4359_v16 = vadd.f32 %v4231_v56, %v12184_v10  ;;  %v10404_v17 = vpop.permute.xlu1 %3939  ;;  %v4115_v57 = vsub.f32 %v3984_v2, %v10019_v58  ;;  %v4116_v15 = vsub.f32 %v3984_v2, %v10024_v5  ;;  %v4204_v48 = vand.u32 2147483647, %v4076_v18 }
 0x3e3   : > { %4409 = vst [vmem:[%s10064_s7 + $0xf8] sm:$0xff] %v4281_v25  ;;  %v4075_v25 = vsub.f32 %v3944_v51, %v10019_v58  ;;  %v4290_v56 = vadd.f32 %v4162_v27, %v12188_v11  ;;  %v4117_v51 = vsub.f32 %v3984_v2, %v10032_v19  ;;  %v12192_v2 = vld [vmem:[#allocation54_spill] sm:$0xff] }
 0x3e4   : > { %4446 = vst [vmem:[%s10064_s7 + $0x220] sm:$0xff] %v4318_v35  ;;  %v12186_v35 = vld [vmem:[#allocation83_spill] sm:$0xff]  ;;  %v4330_v23 = vadd.f32 %v4202_v43, %v12192_v2  ;;  %v4049_v43 = vsub.f32 %v10328_v37, %v10032_v19 }
 0x3e5   : > { %4447 = vst [vmem:[%s10064_s7 + $0x228] sm:$0xff] %v4319_v13  ;;  %v3594_v60 = vsub.f32 %v12186_v35, %v9339_v45  ;;  %v4165_v13 = vand.u32 2147483647, %v4037_v46  ;;  %v4203_v3 = vand.u32 2147483647, %v4075_v25  ;;  %v4292_v46 = vadd.f32 %v4164_v1, %v12190_v20 }
 0x3e6   : > { %4448 = vst [vmem:[%s10064_s7 + $0x230] sm:$0xff] %v4320_v54  ;;  %v4291_v54 = vadd.f32 %v4163_v34, %v12189_v9  ;;  %v4047_v34 = vsub.f32 %v10328_v37, %v10019_v58  ;;  %v3596_v25 = vsub.f32 %v12186_v35, %v9350_v32  ;;  %v4243_v1 = vand.u32 2147483647, %v4115_v57 }
 0x3e7   : > { %4449 = vst [vmem:[%s10064_s7 + $0x238] sm:$0xff] %v4321_v22  ;;  %v3595_v22 = vsub.f32 %v12186_v35, %v9347_v0  ;;  %v3722_v27 = vand.u32 2147483647, %v3594_v60  ;;  %v4293_v10 = vadd.f32 %v4165_v13, %v12191_v59  ;;  %v3597_v18 = vsub.f32 %v12186_v35, %v9363_v30  ;;  %v12193_v60 = vld [vmem:[#allocation25_spill] sm:$0xff]  ;;  %v12195_v35 = vld [vmem:[#allocation26_spill] sm:$0xff] }
 0x3e8   : > { %4486 = vst [vmem:[%s10064_s7 + $0x360] sm:$0xff] %v4358_v14  ;;  %v4046_v14 = vsub.f32 %v10328_v37, %v10014_v21  ;;  %v4331_v53 = vadd.f32 %v4203_v3, %v12193_v60  ;;  %v4245_v13 = vand.u32 2147483647, %v4117_v51  ;;  %v4175_v9 = vand.u32 2147483647, %v4047_v34  ;;  %v12196_v34 = vld [vmem:[#allocation58_spill] sm:$0xff] }
 0x3e9   : > { %4487 = vst [vmem:[%s10064_s7 + $0x368] sm:$0xff] %v4359_v16  ;;  %v4205_v16 = vand.u32 2147483647, %v4077_v55  ;;  %v12194_v55 = vld [vmem:[#allocation30_spill] sm:$0xff]  ;;  %v4087_v3 = vsub.f32 %v10414_v29, %v10019_v58  ;;  %v3723_v51 = vand.u32 2147483647, %v3595_v22  ;;  %v4088_v22 = vsub.f32 %v10414_v29, %v10024_v5 }
 0x3ea   : > { %4488 = vst [vmem:[%s10064_s7 + $0x370] sm:$0xff] %v4360_v41  ;;  %v4242_v41 = vand.u32 2147483647, %v4114_v31  ;;  %v4332_v11 = vadd.f32 %v4204_v48, %v12194_v55  ;;  %v4174_v31 = vand.u32 2147483647, %v4046_v14  ;;  %v4371_v48 = vadd.f32 %v4243_v1, %v10371_v40  ;;  %v12200_v55 = vld [vmem:[#allocation139_spill] sm:$0xff] }
 0x3eb   : > { %4489 = vst [vmem:[%s10064_s7 + $0x378] sm:$0xff] %v4361_v4  ;;  %v4244_v4 = vand.u32 2147483647, %v4116_v15  ;;  %v4333_v57 = vadd.f32 %v4205_v16, %v12195_v35  ;;  %v10446_v15 = vpop.permute.xlu1 %3951  ;;  %v3724_v20 = vand.u32 2147483647, %v3596_v25  ;;  %v4373_v59 = vadd.f32 %v4245_v13, %v10380_v24  ;;  %v12202_v35 = vld [vmem:[#allocation107_spill] sm:$0xff] }
 0x3ec   : > { %4418 = vst [vmem:[%s10064_s7 + $0x140] sm:$0xff] %v4290_v56  ;;  %v4048_v56 = vsub.f32 %v10328_v37, %v10024_v5  ;;  %v4370_v37 = vadd.f32 %v4242_v41, %v10368_v42  ;;  %v4177_v16 = vand.u32 2147483647, %v4049_v43  ;;  %v4302_v2 = vadd.f32 %v4174_v31, %v12196_v34  ;;  %v12197_v42 = vld [vmem:[#allocation22_spill] sm:$0xff]  ;;  %v3968_v41 = vpop.permute.xlu2 %3967 }
 0x3ed   : > { %4419 = vst [vmem:[%s10064_s7 + $0x148] sm:$0xff] %v4291_v54  ;;  %v4086_v54 = vsub.f32 %v10414_v29, %v10014_v21  ;;  %v4372_v14 = vadd.f32 %v4244_v4, %v10377_v44  ;;  %v4303_v25 = vadd.f32 %v4175_v9, %v12197_v42  ;;  %v4215_v44 = vand.u32 2147483647, %v4087_v3  ;;  %v12203_v3 = vld [vmem:[#allocation7_spill] sm:$0xff] }
 0x3ee   : > { %4420 = vst [vmem:[%s10064_s7 + $0x150] sm:$0xff] %v4292_v46  ;;  %v3725_v46 = vand.u32 2147483647, %v3597_v18  ;;  %v4058_v24 = vsub.f32 %v10362_v52, %v10014_v21  ;;  %v4059_v1 = vsub.f32 %v10362_v52, %v10019_v58  ;;  %v12198_v18 = vld [vmem:[#allocation137_spill] sm:$0xff]  ;;  %v4061_v13 = vsub.f32 %v10362_v52, %v10032_v19 }
 0x3ef   : > { %4421 = vst [vmem:[%s10064_s7 + $0x158] sm:$0xff] %v4293_v10  ;;  %v4176_v10 = vand.u32 2147483647, %v4048_v56  ;;  %v4214_v40 = vand.u32 2147483647, %v4086_v54  ;;  %v10468_v60 = vadd.f32 %v3722_v27, %v12198_v18  ;;  %v12201_v56 = vld [vmem:[#allocation106_spill] sm:$0xff]  ;;  %v3602_v27 = vsub.f32 %v10116_v6, %v9339_v45 }
 0x3f0   : > { %4458 = vst [vmem:[%s10064_s7 + $0x280] sm:$0xff] %v4330_v23  ;;  %v4089_v23 = vsub.f32 %v10414_v29, %v10032_v19  ;;  %v4060_v29 = vsub.f32 %v10362_v52, %v10024_v5  ;;  %v10482_v43 = vadd.f32 %v3725_v46, %v12201_v56  ;;  %v3603_v31 = vsub.f32 %v10116_v6, %v9347_v0  ;;  %v12204_v45 = vld [vmem:[#allocation140_spill] sm:$0xff]  ;;  %v12210_v56 = vld [vmem:[#allocation147_spill] sm:$0xff] }
 0x3f1   : > { %4459 = vst [vmem:[%s10064_s7 + $0x288] sm:$0xff] %v4331_v53  ;;  %v12199_v53 = vld [vmem:[#allocation138_spill] sm:$0xff]  ;;  %v4216_v9 = vand.u32 2147483647, %v4088_v22  ;;  %v3604_v52 = vsub.f32 %v10116_v6, %v9350_v32  ;;  %v3605_v54 = vsub.f32 %v10116_v6, %v9363_v30  ;;  %v4186_v46 = vand.u32 2147483647, %v4058_v24 }
 0x3f2   : > { %4460 = vst [vmem:[%s10064_s7 + $0x290] sm:$0xff] %v4332_v11  ;;  %v10471_v4 = vadd.f32 %v3723_v51, %v12199_v53  ;;  %v10479_v11 = vadd.f32 %v3724_v20, %v12200_v55  ;;  %v4305_v51 = vadd.f32 %v4177_v16, %v12203_v3  ;;  %v4217_v20 = vand.u32 2147483647, %v4089_v23  ;;  %v12209_v53 = vld [vmem:[#allocation153_spill] sm:$0xff]  ;;  %v12212_v3 = vld [vmem:[#allocation143_spill] sm:$0xff] }
 0x3f3   : > { %4461 = vst [vmem:[%s10064_s7 + $0x298] sm:$0xff] %v4333_v57  ;;  %v4304_v57 = vadd.f32 %v4176_v10, %v12202_v35  ;;  %v4187_v0 = vand.u32 2147483647, %v4059_v1  ;;  %v4188_v10 = vand.u32 2147483647, %v4060_v29  ;;  %v4099_v30 = vsub.f32 %v3968_v41, %v10019_v58  ;;  %v10502_v6 = vpop.permute.xlu1 %3963  ;;  %v12208_v1 = vld [vmem:[#allocation146_spill] sm:$0xff] }
 0x3f4   : > { %4498 = vst [vmem:[%s10064_s7 + $0x3c0] sm:$0xff] %v4370_v37  ;;  %v4342_v37 = vadd.f32 %v4214_v40, %v12204_v45  ;;  %v4189_v34 = vand.u32 2147483647, %v4061_v13  ;;  %v3731_v16 = vand.u32 2147483647, %v3603_v31  ;;  %v4100_v42 = vsub.f32 %v3968_v41, %v10024_v5  ;;  %v12207_v40 = vld [vmem:[#allocation49_spill] sm:$0xff] }
 0x3f5   : > { %4499 = vst [vmem:[%s10064_s7 + $0x3c8] sm:$0xff] %v4371_v48  ;;  %v4098_v48 = vsub.f32 %v3968_v41, %v10014_v21  ;;  %v3732_v23 = vand.u32 2147483647, %v3604_v52  ;;  %v4101_v24 = vsub.f32 %v3968_v41, %v10032_v19  ;;  %v4314_v18 = vadd.f32 %v4186_v46, %v12208_v1  ;;  %v12211_v31 = vld [vmem:[#allocation33_spill] sm:$0xff] }
 0x3f6   : > { %4500 = vst [vmem:[%s10064_s7 + $0x3d0] sm:$0xff] %v4372_v14  ;;  %v12205_v14 = vld [vmem:[#allocation74_spill] sm:$0xff]  ;;  %v4315_v29 = vadd.f32 %v4187_v0, %v12209_v53  ;;  %v4070_v55 = vsub.f32 %v10404_v17, %v10014_v21  ;;  %v4317_v35 = vadd.f32 %v4189_v34, %v12211_v31  ;;  %v4071_v41 = vsub.f32 %v10404_v17, %v10019_v58  ;;  %v12214_v0 = vld [vmem:[#allocation23_spill] sm:$0xff] }
 0x3f7   : > { %4501 = vst [vmem:[%s10064_s7 + $0x3d8] sm:$0xff] %v4373_v59  ;;  %v4343_v32 = vadd.f32 %v4215_v44, %v12205_v14  ;;  %v3730_v59 = vand.u32 2147483647, %v3602_v27  ;;  %v4345_v44 = vadd.f32 %v4217_v20, %v12207_v40  ;;  %v4226_v13 = vand.u32 2147483647, %v4098_v48  ;;  %v12213_v20 = vld [vmem:[#allocation144_spill] sm:$0xff] }
 0x3f8   : > { %4430 = vst [vmem:[%s10064_s7 + $0x1a0] sm:$0xff] %v4302_v2  ;;  %v12206_v2 = vld [vmem:[#allocation24_spill] sm:$0xff]  ;;  %v4316_v27 = vadd.f32 %v4188_v10, %v12210_v56  ;;  %v4228_v52 = vand.u32 2147483647, %v4100_v42  ;;  %v10527_v45 = vadd.f32 %v3731_v16, %v12213_v20  ;;  %v4073_v46 = vsub.f32 %v10404_v17, %v10032_v19  ;;  %v12215_v14 = vld [vmem:[#allocation135_spill] sm:$0xff]  ;;  %v12216_v10 = vld [vmem:[#allocation6_spill] sm:$0xff] }
 0x3f9   : > { %4431 = vst [vmem:[%s10064_s7 + $0x1a8] sm:$0xff] %v4303_v25  ;;  %v4344_v22 = vadd.f32 %v4216_v9, %v12206_v2  ;;  %v3733_v25 = vand.u32 2147483647, %v3605_v54  ;;  %v3980_v9 = vpop.permute.xlu2 %3979  ;;  %v4072_v54 = vsub.f32 %v10404_v17, %v10024_v5  ;;  %v10533_v48 = vadd.f32 %v3732_v23, %v12214_v0  ;;  %v12217_v16 = vld [vmem:[#allocation50_spill] sm:$0xff]  ;;  %v12218_v42 = vld [vmem:[#allocation145_spill] sm:$0xff] }
 0x3fa   : > { %4432 = vst [vmem:[%s10064_s7 + $0x1b0] sm:$0xff] %v4304_v57  ;;  %v4227_v57 = vand.u32 2147483647, %v4099_v30  ;;  %v4354_v34 = vadd.f32 %v4226_v13, %v12216_v10  ;;  %v4198_v30 = vand.u32 2147483647, %v4070_v55  ;;  %v4111_v17 = vsub.f32 %v3980_v9, %v10019_v58 }
 0x3fb   : > { %4433 = vst [vmem:[%s10064_s7 + $0x1b8] sm:$0xff] %v4305_v51  ;;  %v10524_v51 = vadd.f32 %v3730_v59, %v12212_v3  ;;  %v4110_v59 = vsub.f32 %v3980_v9, %v10014_v21  ;;  %v4356_v23 = vadd.f32 %v4228_v52, %v12218_v42  ;;  %v4112_v40 = vsub.f32 %v3980_v9, %v10024_v5  ;;  %v10550_v53 = vpop.permute.xlu1 %3975 }
 0x3fc   : > { %4470 = vst [vmem:[%s10064_s7 + $0x2e0] sm:$0xff] %v4342_v37  ;;  %v4229_v37 = vand.u32 2147483647, %v4101_v24  ;;  %v4355_v2 = vadd.f32 %v4227_v57, %v12217_v16  ;;  %v4201_v1 = vand.u32 2147483647, %v4073_v46  ;;  %v4082_v55 = vsub.f32 %v10446_v15, %v10014_v21 }
 0x3fd   : > { %4471 = vst [vmem:[%s10064_s7 + $0x2e8] sm:$0xff] %v4343_v32  ;;  %v10536_v32 = vadd.f32 %v3733_v25, %v12215_v14  ;;  %v4200_v25 = vand.u32 2147483647, %v4072_v54  ;;  %v4238_v13 = vand.u32 2147483647, %v4110_v59  ;;  %v4083_v31 = vsub.f32 %v10446_v15, %v10019_v58 }
 0x3fe   : > { %4472 = vst [vmem:[%s10064_s7 + $0x2f0] sm:$0xff] %v4344_v22  ;;  %v4199_v22 = vand.u32 2147483647, %v4071_v41  ;;  %v4240_v57 = vand.u32 2147483647, %v4112_v40  ;;  %v12220_v41 = vld [vmem:[#allocation16_spill] sm:$0xff]  ;;  %v4095_v46 = vsub.f32 %v10502_v6, %v10019_v58 }
 0x3ff   : > { %4473 = vst [vmem:[%s10064_s7 + $0x2f8] sm:$0xff] %v4345_v44  ;;  %v12219_v44 = vld [vmem:[#allocation11_spill] sm:$0xff]  ;;  %v4366_v54 = vadd.f32 %v4238_v13, %v10468_v60  ;;  %v4210_v3 = vand.u32 2147483647, %v4082_v55  ;;  %v4096_v60 = vsub.f32 %v10502_v6, %v10024_v5 }
 0x400   : > { %4442 = vst [vmem:[%s10064_s7 + $0x200] sm:$0xff] %v4314_v18  ;;  %v4357_v24 = vadd.f32 %v4229_v37, %v12219_v44  ;;  %v4113_v18 = vsub.f32 %v3980_v9, %v10032_v19  ;;  %v4327_v56 = vadd.f32 %v4199_v22, %v10052_v49  ;;  %v4329_v9 = vadd.f32 %v4201_v1, %v12220_v41 }
 0x401   : > { %4443 = vst [vmem:[%s10064_s7 + $0x208] sm:$0xff] %v4315_v29  ;;  %v4326_v29 = vadd.f32 %v4198_v30, %v10049_v26  ;;  %v4084_v26 = vsub.f32 %v10446_v15, %v10024_v5  ;;  %v4085_v49 = vsub.f32 %v10446_v15, %v10032_v19  ;;  %v4211_v37 = vand.u32 2147483647, %v4083_v31 }
 0x402   : > { %4444 = vst [vmem:[%s10064_s7 + $0x210] sm:$0xff] %v4316_v27  ;;  %v4239_v27 = vand.u32 2147483647, %v4111_v17  ;;  %v4241_v52 = vand.u32 2147483647, %v4113_v18  ;;  %v4368_v0 = vadd.f32 %v4240_v57, %v10479_v11  ;;  %v4106_v11 = vsub.f32 %v10550_v53, %v10014_v21 }
 0x403   : > { %4445 = vst [vmem:[%s10064_s7 + $0x218] sm:$0xff] %v4317_v35  ;;  %v4328_v35 = vadd.f32 %v4200_v25, %v10055_v28  ;;  %v4094_v28 = vsub.f32 %v10502_v6, %v10014_v21  ;;  %v4212_v15 = vand.u32 2147483647, %v4084_v26  ;;  %v4213_v10 = vand.u32 2147483647, %v4085_v49 }
 0x404   : > { %4482 = vst [vmem:[%s10064_s7 + $0x340] sm:$0xff] %v4354_v34  ;;  %v4367_v20 = vadd.f32 %v4239_v27, %v10471_v4  ;;  %v4369_v14 = vadd.f32 %v4241_v52, %v10482_v43  ;;  %v4097_v4 = vsub.f32 %v10502_v6, %v10032_v19  ;;  %v4338_v34 = vadd.f32 %v4210_v3, %v10091_v62 }
 0x405   : > { %4483 = vst [vmem:[%s10064_s7 + $0x348] sm:$0xff] %v4355_v2  ;;  %v4222_v30 = vand.u32 2147483647, %v4094_v28  ;;  %v4339_v59 = vadd.f32 %v4211_v37, %v10094_v33  ;;  %v4223_v16 = vand.u32 2147483647, %v4095_v46  ;;  %v4107_v43 = vsub.f32 %v10550_v53, %v10019_v58  ;;  %v3988_v2 = vpop.permute.xlu1 %3987 }
 0x406   : > { %4484 = vst [vmem:[%s10064_s7 + $0x350] sm:$0xff] %v4356_v23  ;;  %v4340_v6 = vadd.f32 %v4212_v15, %v10099_v39  ;;  %v4224_v22 = vand.u32 2147483647, %v4096_v60  ;;  %v4108_v62 = vsub.f32 %v10550_v53, %v10024_v5  ;;  %v4341_v17 = vadd.f32 %v4213_v10, %v10102_v36 }
 0x407   : > { %4485 = vst [vmem:[%s10064_s7 + $0x358] sm:$0xff] %v4357_v24  ;;  %v4225_v42 = vand.u32 2147483647, %v4097_v4  ;;  %v4109_v33 = vsub.f32 %v10550_v53, %v10032_v19  ;;  %v4350_v23 = vadd.f32 %v4222_v30, %v10140_v38  ;;  %v4234_v25 = vand.u32 2147483647, %v4106_v11 }
 0x408   : > { %4454 = vst [vmem:[%s10064_s7 + $0x260] sm:$0xff] %v4326_v29  ;;  %v4118_v39 = vsub.f32 %v3988_v2, %v10014_v21  ;;  %v4351_v40 = vadd.f32 %v4223_v16, %v10143_v12  ;;  %v4235_v44 = vand.u32 2147483647, %v4107_v43  ;;  %v4119_v24 = vsub.f32 %v3988_v2, %v10019_v58 }
 0x409   : > { %4455 = vst [vmem:[%s10064_s7 + $0x268] sm:$0xff] %v4327_v56  ;;  %v4352_v36 = vadd.f32 %v4224_v22, %v10147_v63  ;;  %v4236_v1 = vand.u32 2147483647, %v4108_v62  ;;  %v4120_v18 = vsub.f32 %v3988_v2, %v10024_v5  ;;  %v4353_v38 = vadd.f32 %v4225_v42, %v10150_v50 }
 0x40a   : > { %4456 = vst [vmem:[%s10064_s7 + $0x270] sm:$0xff] %v4328_v35  ;;  %v4237_v53 = vand.u32 2147483647, %v4109_v33  ;;  %v4121_v21 = vsub.f32 %v3988_v2, %v10032_v19  ;;  %v4362_v58 = vadd.f32 %v4234_v25, %v10182_v47  ;;  %v4246_v12 = vand.u32 2147483647, %v4118_v39 }
 0x40b   : > { %4457 = vst [vmem:[%s10064_s7 + $0x278] sm:$0xff] %v4329_v9  ;;  %v4363_v63 = vadd.f32 %v4235_v44, %v10185_v8  ;;  %v4247_v5 = vand.u32 2147483647, %v4119_v24  ;;  %v4364_v50 = vadd.f32 %v4236_v1, %v10191_v61  ;;  %v4248_v29 = vand.u32 2147483647, %v4120_v18 }
 0x40c   : > { %4494 = vst [vmem:[%s10064_s7 + $0x3a0] sm:$0xff] %v4366_v54  ;;  %v4365_v19 = vadd.f32 %v4237_v53, %v10194_v7  ;;  %v4249_v47 = vand.u32 2147483647, %v4121_v21  ;;  %v4374_v8 = vadd.f32 %v4246_v12, %v10524_v51 }
 0x40d   : > { %4495 = vst [vmem:[%s10064_s7 + $0x3a8] sm:$0xff] %v4367_v20  ;;  %v4375_v61 = vadd.f32 %v4247_v5, %v10527_v45  ;;  %v4376_v13 = vadd.f32 %v4248_v29, %v10533_v48 }
 0x40e   : > { %4496 = vst [vmem:[%s10064_s7 + $0x3b0] sm:$0xff] %v4368_v0  ;;  %v4377_v55 = vadd.f32 %v4249_v47, %v10536_v32 }
 0x40f   : > { %4497 = vst [vmem:[%s10064_s7 + $0x3b8] sm:$0xff] %v4369_v14 }
 0x410   : > { %4466 = vst [vmem:[%s10064_s7 + $0x2c0] sm:$0xff] %v4338_v34 }
 0x411   : > { %4467 = vst [vmem:[%s10064_s7 + $0x2c8] sm:$0xff] %v4339_v59 }
 0x412   : > { %4468 = vst [vmem:[%s10064_s7 + $0x2d0] sm:$0xff] %v4340_v6 }
 0x413   : > { %4469 = vst [vmem:[%s10064_s7 + $0x2d8] sm:$0xff] %v4341_v17 }
 0x414   : > { %4478 = vst [vmem:[%s10064_s7 + $0x320] sm:$0xff] %v4350_v23 }
 0x415   : > { %4479 = vst [vmem:[%s10064_s7 + $0x328] sm:$0xff] %v4351_v40 }
 0x416   : > { %4480 = vst [vmem:[%s10064_s7 + $0x330] sm:$0xff] %v4352_v36 }
 0x417   : > { %4481 = vst [vmem:[%s10064_s7 + $0x338] sm:$0xff] %v4353_v38 }
 0x418   : > { %4490 = vst [vmem:[%s10064_s7 + $0x380] sm:$0xff] %v4362_v58 }
 0x419   : > { %4491 = vst [vmem:[%s10064_s7 + $0x388] sm:$0xff] %v4363_v63 }
 0x41a   : > { %4492 = vst [vmem:[%s10064_s7 + $0x390] sm:$0xff] %v4364_v50 }
 0x41b   : > { %4493 = vst [vmem:[%s10064_s7 + $0x398] sm:$0xff] %v4365_v19 }
 0x41c   : > { %4502 = vst [vmem:[%s10064_s7 + $0x3e0] sm:$0xff] %v4374_v8 }
 0x41d   : > { %4503 = vst [vmem:[%s10064_s7 + $0x3e8] sm:$0xff] %v4375_v61 }
 0x41e   : > { %4504 = vst [vmem:[%s10064_s7 + $0x3f0] sm:$0xff] %v4376_v13 }
 0x41f   : > { %4505 = vst [vmem:[%s10064_s7 + $0x3f8] sm:$0xff] %v4377_v55 }
 0x420   : > { %4858 = shalt.err (!%p4855_p5)
}
 0x421   : > { %s4919_s27 = smov 512   ;;  %s4920_s4 = smov 32  }
 0x422   : > { %4630 = dma.vmem_to_hbm [thread:$0]  (%p4976_p4), %s4523_s18, 16384, %s4525_s20, %s4507_s23, %s4919_s27, %s4919_s27, %s4920_s4  }
 0x423 PF: > { %p4636_p6 = scmp.ge.s32.totalorder %s4909_s14, 2  ;;  %s4539_s5 = sand.u32 1, %s4889_s9  }
 0x424   : > { %s4540_s6 = scalar_lea.sflag [#allocation3], %s4539_s5 }
 0x425   : > { %p4633_p7 = pnand %p4636_p6, %p4983_p8 }
 0x427   : > { %p4634_p9 = pneg %p4633_p7 }
 0x429   : > { %4884 = dma.done.wait (%p4634_p9), %s4540_s6, 16384  }
 0x42a   : > { %4886 = vsyncadd (%p4634_p9), %s4540_s6, 4294950912  ;;  %s15_s14 = sadd.s32 1, %s4909_s14   ;;  %s12221_s9 = smov %s4893_s10 }
 0x42b   : > { %p12_p10 = scmp.ge.s32.totalorder %s15_s14, 4   ;;  %s12222_s10 = smov %s4897_s11 }
 0x42c   : > { %s12223_s11 = smov %s4989_s22  ;;  %s12224_s12 = smov %s4905_s13 }
 0x42d   : > { %s12225_s13 = smov %s12227_s17  ;;  %14 = sbr.rel (!%p12_p10) target bundleno = 4 (0x4), region = 66 }
 0x432   :  { %4546 = vsyncpa [#allocation3], 1 }
 0x433   :  { %4548 = vsyncpa [#allocation3 + $0x1], 1 }

</bundles_post_ra>
